<compile_context>
chip_gen: v6e
topology: v6e:2x2x1
jax: 0.10.0
libtpu: 0.0.40
codegen_flags: <defaults>
</compile_context>

<pallas_src>
import jax
import jax.numpy as jnp
from jax import lax
from jax.experimental import pallas as pl
from jax.experimental.pallas import tpu as pltpu

F32 = jnp.float32
BF16 = jnp.bfloat16


# ----------------------------------------------------------------------------
# Fused forward kernel
# ----------------------------------------------------------------------------
def vqa_fused_kernel(*refs):
    (word_ref, img_ref, mask_ref,
     wi_ref, bi_ref,
     wv_ref,
     wbq_w_ref, whq_w_ref, whv_w_ref,
     wbq_p_ref, whq_p_ref, whv_p_ref,
     wbq_q_ref, whq_q_ref, whv_q_ref,
     pw_ref, pb_ref,
     wih_ref, whh_ref, lb_ref,
     ww_ref, bw_ref, wp_ref, bp_ref, wq_ref, bq_ref, wo_ref, bo_ref,
     out_ref, ques_scr) = refs

    B, T, H = word_ref.shape
    _, N, C = img_ref.shape
    BT = B * T
    BN = B * N

    word3 = word_ref[...]                         # (B, T, H) f32
    word2 = word3.reshape(BT, H)                  # (B*T, H)
    mask2 = mask_ref[...]                         # (B, T)  1.0 real / 0.0 pad

    # ---- image feature projection: tanh(regions @ Wi + bi), one GEMM -------
    img2 = img_ref[...].reshape(BN, C)
    img_feat2 = jnp.tanh(
        jnp.dot(img2.astype(BF16), wi_ref[...], preferred_element_type=F32)
        + bi_ref[...])                            # (B*N, H) f32
    img_feat3 = img_feat2.reshape(B, N, H)
    img3_bf = img_feat3.astype(BF16)

    # ---- image-side co-attention projection, fused across all 3 levels -----
    # V @ [Wv_word | Wv_phrase | Wv_ques]  ->  (B*N, 3H), sliced per level
    VWv_all = jnp.dot(img_feat2.astype(BF16), wv_ref[...],
                      preferred_element_type=F32)                     # (BN, 3H)
    VWv_w = VWv_all[:, 0:H].reshape(B, N, H)
    VWv_p = VWv_all[:, H:2 * H].reshape(B, N, H)
    VWv_q = VWv_all[:, 2 * H:3 * H].reshape(B, N, H)

    # ---- parallel co-attention (batched over B) ----------------------------
    def coattn(q3, wbq_cat, whq, whv, VWv):
        q2b = q3.reshape(BT, H).astype(BF16)
        qproj = jnp.dot(q2b, wbq_cat, preferred_element_type=F32)     # (BT, 2H)
        QWb = qproj[:, 0:H].reshape(B, T, H)
        QWq = qproj[:, H:2 * H].reshape(B, T, H)

        # affinity C = tanh(Q Wb V^T)
        Caff = jnp.tanh(jnp.einsum('bth,bnh->btn', QWb.astype(BF16), img3_bf,
                                   preferred_element_type=F32))       # (B,T,N)
        Hq = jnp.tanh(QWq + jnp.einsum('btn,bnh->bth', Caff.astype(BF16),
                                       VWv.astype(BF16),
                                       preferred_element_type=F32))   # (B,T,H)
        Hv = jnp.tanh(VWv + jnp.einsum('btn,bth->bnh', Caff.astype(BF16),
                                       QWq.astype(BF16),
                                       preferred_element_type=F32))   # (B,N,H)

        sq = jnp.sum(Hq * whq, axis=2)                                # (B, T)
        sv = jnp.sum(Hv * whv, axis=2)                                # (B, N)

        # masked softmax over question positions
        sq = jnp.where(mask2 > 0, sq, -1e30)
        sq = sq - jnp.max(sq, axis=1, keepdims=True)
        eq = jnp.exp(sq)
        aq = eq * pl.reciprocal(jnp.sum(eq, axis=1, keepdims=True), approx=True)

        # softmax over image regions
        sv = sv - jnp.max(sv, axis=1, keepdims=True)
        ev = jnp.exp(sv)
        av = ev * pl.reciprocal(jnp.sum(ev, axis=1, keepdims=True), approx=True)

        q_att = jnp.sum(aq[:, :, None] * q3, axis=1)                  # (B, H)
        v_att = jnp.sum(av[:, :, None] * img_feat3, axis=1)           # (B, H)
        return q_att, v_att

    # ---- phrase level: block-fused unigram/bigram/trigram conv + max-pool --
    row = lax.broadcasted_iota(jnp.int32, (BT, 1), 0)
    t_idx = row % T
    # shift within each sequence; zero at sequence starts/ends (also kills
    # any cross-batch wrap from the roll)
    x_prev = jnp.where(t_idx == 0, 0.0, pltpu.roll(word2, shift=1, axis=0))
    x_next = jnp.where(t_idx == T - 1, 0.0,
                       pltpu.roll(word2, shift=BT - 1, axis=0))
    ph_in = jnp.concatenate([word2, x_prev, x_next], axis=1).astype(BF16)  # (BT,3H)
    y = (jnp.dot(ph_in, pw_ref[...], preferred_element_type=F32)
         + pb_ref[...])                                                    # (BT,3H)
    c1 = jnp.tanh(y[:, 0:H])
    c2 = jnp.tanh(y[:, H:2 * H])
    c3 = jnp.tanh(y[:, 2 * H:3 * H])
    phrase3 = jnp.maximum(jnp.maximum(c1, c2), c3).reshape(B, T, H)

    # ---- question level: LSTM, input projection hoisted, unrolled over T ---
    # TODO(synk): rnn_layers fixed to 1, dropout treated as eval-mode identity.
    whh = whh_ref[...]
    gates_x = (jnp.dot(word2.astype(BF16), wih_ref[...],
                       preferred_element_type=F32)
               + lb_ref[...]).reshape(B, T, 4 * H)
    h = jnp.zeros((B, H), F32)
    c = jnp.zeros((B, H), F32)
    for t in range(T):   # T is a compile-time constant -> fully unrolled
        g = gates_x[:, t, :] + jnp.dot(h.astype(BF16), whh,
                                       preferred_element_type=F32)
        i_g = jax.nn.sigmoid(g[:, 0:H])
        f_g = jax.nn.sigmoid(g[:, H:2 * H])
        g_g = jnp.tanh(g[:, 2 * H:3 * H])
        o_g = jax.nn.sigmoid(g[:, 3 * H:4 * H])
        c = f_g * c + i_g * g_g
        h = o_g * jnp.tanh(c)
        ques_scr[:, t, :] = h
    ques3 = ques_scr[...]                                              # (B, T, H)

    # ---- three co-attention levels ------------------------------------------
    qw, vw = coattn(word3, wbq_w_ref[...], whq_w_ref[...], whv_w_ref[...], VWv_w)
    qp, vp = coattn(phrase3, wbq_p_ref[...], whq_p_ref[...], whv_p_ref[...], VWv_p)
    qq, vq = coattn(ques3, wbq_q_ref[...], whq_q_ref[...], whv_q_ref[...], VWv_q)

    # ---- recursive encoder  h_w -> h_p -> h_q -> logits (fused 2-in GEMMs) --
    h_w = jnp.tanh(jnp.dot((qw + vw).astype(BF16), ww_ref[...],
                           preferred_element_type=F32) + bw_ref[...])
    hp_in = jnp.concatenate([qp + vp, h_w], axis=1).astype(BF16)        # (B, 2H)
    h_p = jnp.tanh(jnp.dot(hp_in, wp_ref[...], preferred_element_type=F32)
                   + bp_ref[...])
    hq_in = jnp.concatenate([qq + vq, h_p], axis=1).astype(BF16)        # (B, 2H)
    h_q = jnp.tanh(jnp.dot(hq_in, wq_ref[...], preferred_element_type=F32)
                   + bq_ref[...])
    out_ref[...] = (jnp.dot(h_q.astype(BF16), wo_ref[...],
                            preferred_element_type=F32) + bo_ref[...])


# ----------------------------------------------------------------------------
# Parameters & forward
# ----------------------------------------------------------------------------
def init_params(key, vocab_size, H, C, O):
    keys = iter(jax.random.split(key, 40))

    def nxt(shape):
        return 0.05 * jax.random.normal(next(keys), shape, dtype=jnp.float32)

    def coattn_p():
        return dict(wb=nxt((H, H)), wq=nxt((H, H)), wv=nxt((H, H)),
                    whq=nxt((1, H)), whv=nxt((1, H)))

    zeros = lambda s: jnp.zeros(s, jnp.float32)
    return dict(
        embed=nxt((vocab_size, H)),
        wi=nxt((C, H)), bi=zeros((1, H)),
        ca_w=coattn_p(), ca_p=coattn_p(), ca_q=coattn_p(),
        phrase=dict(w1=nxt((H, H)), w2a=nxt((H, H)), w2b=nxt((H, H)),
                    w3a=nxt((H, H)), w3b=nxt((H, H)), w3c=nxt((H, H)),
                    b1=zeros((1, H)), b2=zeros((1, H)), b3=zeros((1, H))),
        lstm=dict(wih=nxt((H, 4 * H)), whh=nxt((H, 4 * H)), b=zeros((1, 4 * H))),
        enc=dict(ww=nxt((H, H)), bw=zeros((1, H)),
                 wp1=nxt((H, H)), wp2=nxt((H, H)), bp=zeros((1, H)),
                 wq1=nxt((H, H)), wq2=nxt((H, H)), bq=zeros((1, H)),
                 wo=nxt((H, O)), bo=zeros((1, O))),
    )


def vqa_forward(params, questions, images):
    # layout: questions int32 (B, T); images float32 NCHW (B, C, S, S)
    B, T = questions.shape
    _, C, S1, S2 = images.shape
    N = S1 * S2
    H = params["wi"].shape[1]
    O = params["enc"]["wo"].shape[1]

    # glue: embedding gather + tanh (gather has no clean tiled Pallas form)
    # TODO(synk): nn.Embedding gather stays in plain JAX.
    word_feat = jnp.tanh(jnp.take(params["embed"], questions, axis=0))   # (B,T,H)
    mask = (questions != 0).astype(jnp.float32)                         # (B,T)
    img_regions = jnp.transpose(images, (0, 2, 3, 1)).reshape(B, N, C)

    bf = lambda w: w.astype(jnp.bfloat16)

    # per-level fused [Wb | Wq] and cross-level fused [Wv_w | Wv_p | Wv_q]
    def wbq(p):
        return bf(jnp.concatenate([p["wb"], p["wq"]], axis=1))            # (H,2H)

    wv_cat = bf(jnp.concatenate([params["ca_w"]["wv"], params["ca_p"]["wv"],
                                 params["ca_q"]["wv"]], axis=1))          # (H,3H)

    # phrase n-gram conv weights as one block matrix over [x | x_prev | x_next]
    ph = params["phrase"]
    zH = jnp.zeros((H, H), jnp.float32)
    pw_all = bf(jnp.concatenate([
        jnp.concatenate([ph["w1"], ph["w2b"], ph["w3b"]], axis=1),
        jnp.concatenate([zH,       ph["w2a"], ph["w3a"]], axis=1),
        jnp.concatenate([zH,       zH,        ph["w3c"]], axis=1),
    ], axis=0))                                                           # (3H,3H)
    pb = jnp.concatenate([ph["b1"], ph["b2"], ph["b3"]], axis=1)          # (1,3H)

    enc = params["enc"]
    wp_cat = bf(jnp.concatenate([enc["wp1"], enc["wp2"]], axis=0))        # (2H,H)
    wq_cat = bf(jnp.concatenate([enc["wq1"], enc["wq2"]], axis=0))        # (2H,H)

    args = (
        word_feat, img_regions, mask,
        bf(params["wi"]), params["bi"],
        wv_cat,
        wbq(params["ca_w"]), params["ca_w"]["whq"], params["ca_w"]["whv"],
        wbq(params["ca_p"]), params["ca_p"]["whq"], params["ca_p"]["whv"],
        wbq(params["ca_q"]), params["ca_q"]["whq"], params["ca_q"]["whv"],
        pw_all, pb,
        bf(params["lstm"]["wih"]), bf(params["lstm"]["whh"]), params["lstm"]["b"],
        bf(enc["ww"]), enc["bw"], wp_cat, enc["bp"],
        wq_cat, enc["bq"], bf(enc["wo"]), enc["bo"],
    )
    vmem = pltpu.MemorySpace.VMEM
    return pl.pallas_call(
        vqa_fused_kernel,
        out_shape=jax.ShapeDtypeStruct((B, O), jnp.float32),
        in_specs=[pl.BlockSpec(memory_space=vmem) for _ in args],
        out_specs=pl.BlockSpec(memory_space=vmem),
        scratch_shapes=[pltpu.VMEM((B, T, H), jnp.float32)],   # LSTM hidden states
        compiler_params=pltpu.CompilerParams(vmem_limit_bytes=32 * 1024 * 1024),
    )(*args)


if __name__ == "__main__":
    B, T, H = 2, 8, 128          # batch, seq_length, hidden_size
    C, S = 32, 8                 # image feature channels / spatial size
    vocab_size, output_size = 100, 128

    key = jax.random.PRNGKey(0)
    k_q, k_img, k_p = jax.random.split(key, 3)
    questions = jax.random.randint(k_q, (B, T), 1, vocab_size).astype(jnp.int32)
    questions = questions.at[1, 6:].set(0)          # padded tail on sample 1
    images = jax.random.normal(k_img, (B, C, S, S), dtype=jnp.float32)
    params = init_params(k_p, vocab_size, H, C, output_size)

    out = jax.jit(vqa_forward)(params, questions, images)
    jax.block_until_ready(out)
    assert out.shape == (B, output_size) and out.dtype == jnp.float32
    assert bool(jnp.all(jnp.isfinite(out)))
    print("KERNEL_OK")
</pallas_src>

<mosaic_0001>
module attributes {stable_mosaic.version = 11 : i64} {
  func.func @vqa_fused_kernel(%arg0: memref<2x8x128xf32, #tpu.memory_space<vmem>>, %arg1: memref<2x64x32xf32, #tpu.memory_space<vmem>>, %arg2: memref<2x8xf32, #tpu.memory_space<vmem>>, %arg3: memref<32x128xbf16, #tpu.memory_space<vmem>>, %arg4: memref<1x128xf32, #tpu.memory_space<vmem>>, %arg5: memref<128x384xbf16, #tpu.memory_space<vmem>>, %arg6: memref<128x256xbf16, #tpu.memory_space<vmem>>, %arg7: memref<1x128xf32, #tpu.memory_space<vmem>>, %arg8: memref<1x128xf32, #tpu.memory_space<vmem>>, %arg9: memref<128x256xbf16, #tpu.memory_space<vmem>>, %arg10: memref<1x128xf32, #tpu.memory_space<vmem>>, %arg11: memref<1x128xf32, #tpu.memory_space<vmem>>, %arg12: memref<128x256xbf16, #tpu.memory_space<vmem>>, %arg13: memref<1x128xf32, #tpu.memory_space<vmem>>, %arg14: memref<1x128xf32, #tpu.memory_space<vmem>>, %arg15: memref<384x384xbf16, #tpu.memory_space<vmem>>, %arg16: memref<1x384xf32, #tpu.memory_space<vmem>>, %arg17: memref<128x512xbf16, #tpu.memory_space<vmem>>, %arg18: memref<128x512xbf16, #tpu.memory_space<vmem>>, %arg19: memref<1x512xf32, #tpu.memory_space<vmem>>, %arg20: memref<128x128xbf16, #tpu.memory_space<vmem>>, %arg21: memref<1x128xf32, #tpu.memory_space<vmem>>, %arg22: memref<256x128xbf16, #tpu.memory_space<vmem>>, %arg23: memref<1x128xf32, #tpu.memory_space<vmem>>, %arg24: memref<256x128xbf16, #tpu.memory_space<vmem>>, %arg25: memref<1x128xf32, #tpu.memory_space<vmem>>, %arg26: memref<128x128xbf16, #tpu.memory_space<vmem>>, %arg27: memref<1x128xf32, #tpu.memory_space<vmem>>, %arg28: memref<2x128xf32, #tpu.memory_space<vmem>>, %arg29: memref<2x8x128xf32, #tpu.memory_space<vmem>>) attributes {dimension_semantics = [], scalar_prefetch = 0 : i64, scratch_operands = 1 : i64, tpu.core_type = #tpu.core_type<tc>} {
    %c0 = arith.constant 0 : index
    %c0_0 = arith.constant 0 : index
    %c0_1 = arith.constant 0 : index
    %0 = vector.load %arg0[%c0, %c0_0, %c0_1] : memref<2x8x128xf32, #tpu.memory_space<vmem>>, vector<2x8x128xf32>
    %1 = vector.shape_cast %0 : vector<2x8x128xf32> to vector<16x128xf32>
    %c0_2 = arith.constant 0 : index
    %c0_3 = arith.constant 0 : index
    %2 = vector.load %arg2[%c0_2, %c0_3] : memref<2x8xf32, #tpu.memory_space<vmem>>, vector<2x8xf32>
    %c0_4 = arith.constant 0 : index
    %c0_5 = arith.constant 0 : index
    %c0_6 = arith.constant 0 : index
    %3 = vector.load %arg1[%c0_4, %c0_5, %c0_6] : memref<2x64x32xf32, #tpu.memory_space<vmem>>, vector<2x64x32xf32>
    %4 = vector.shape_cast %3 : vector<2x64x32xf32> to vector<128x32xf32>
    %5 = arith.truncf %4 : vector<128x32xf32> to vector<128x32xbf16>
    %c0_7 = arith.constant 0 : index
    %c0_8 = arith.constant 0 : index
    %6 = vector.load %arg3[%c0_7, %c0_8] : memref<32x128xbf16, #tpu.memory_space<vmem>>, vector<32x128xbf16>
    %cst = arith.constant dense<0.000000e+00> : vector<128x128xf32>
    %7 = tpu.matmul %5, %6, %cst {dimension_numbers = #tpu.dot_dimension_numbers<[1], [0], [0], [1], [0, 0, 1, 1], [], []>} : vector<128x32xbf16>, vector<32x128xbf16>, vector<128x128xf32> -> vector<128x128xf32>
    %c0_9 = arith.constant 0 : index
    %c0_10 = arith.constant 0 : index
    %8 = vector.load %arg4[%c0_9, %c0_10] : memref<1x128xf32, #tpu.memory_space<vmem>>, vector<1x128xf32>
    %9 = vector.broadcast %8 : vector<1x128xf32> to vector<128x128xf32>
    %10 = arith.addf %7, %9 : vector<128x128xf32>
    %11 = math.tanh %10 : vector<128x128xf32>
    %12 = vector.shape_cast %11 : vector<128x128xf32> to vector<2x64x128xf32>
    %13 = arith.truncf %12 : vector<2x64x128xf32> to vector<2x64x128xbf16>
    %14 = arith.truncf %11 : vector<128x128xf32> to vector<128x128xbf16>
    %c0_11 = arith.constant 0 : index
    %c0_12 = arith.constant 0 : index
    %15 = vector.load %arg5[%c0_11, %c0_12] : memref<128x384xbf16, #tpu.memory_space<vmem>>, vector<128x384xbf16>
    %cst_13 = arith.constant dense<0.000000e+00> : vector<128x384xf32>
    %16 = tpu.matmul %14, %15, %cst_13 {dimension_numbers = #tpu.dot_dimension_numbers<[1], [0], [0], [1], [0, 0, 1, 1], [], []>} : vector<128x128xbf16>, vector<128x384xbf16>, vector<128x384xf32> -> vector<128x384xf32>
    %17 = vector.extract_strided_slice %16 {offsets = [0, 0], sizes = [128, 128], strides = [1, 1]} : vector<128x384xf32> to vector<128x128xf32>
    %18 = vector.shape_cast %17 : vector<128x128xf32> to vector<2x64x128xf32>
    %19 = vector.extract_strided_slice %16 {offsets = [0, 128], sizes = [128, 128], strides = [1, 1]} : vector<128x384xf32> to vector<128x128xf32>
    %20 = vector.shape_cast %19 : vector<128x128xf32> to vector<2x64x128xf32>
    %21 = vector.extract_strided_slice %16 {offsets = [0, 256], sizes = [128, 128], strides = [1, 1]} : vector<128x384xf32> to vector<128x128xf32>
    %22 = vector.shape_cast %21 : vector<128x128xf32> to vector<2x64x128xf32>
    %23 = tpu.iota {dimensions = array<i32: 0>} : vector<16x1xi32>
    %c8_i32 = arith.constant 8 : i32
    %c0_i32 = arith.constant 0 : i32
    %24 = arith.cmpi eq, %c8_i32, %c0_i32 : i32
    %c1_i32 = arith.constant 1 : i32
    %25 = arith.select %24, %c1_i32, %c8_i32 : i32
    %26 = vector.broadcast %25 : i32 to vector<16x1xi32>
    %27 = arith.remsi %23, %26 : vector<16x1xi32>
    %c0_i32_14 = arith.constant 0 : i32
    %28 = vector.broadcast %c0_i32_14 : i32 to vector<16x1xi32>
    %29 = arith.cmpi ne, %27, %28 : vector<16x1xi32>
    %c0_i32_15 = arith.constant 0 : i32
    %30 = vector.broadcast %c0_i32_15 : i32 to vector<16x1xi32>
    %31 = arith.cmpi slt, %27, %30 : vector<16x1xi32>
    %c0_i32_16 = arith.constant 0 : i32
    %32 = arith.cmpi slt, %25, %c0_i32_16 : i32
    %33 = vector.broadcast %32 : i1 to vector<16x1xi1>
    %34 = vector.broadcast %33 : vector<16x1xi1> to vector<16x1xi1>
    %35 = arith.xori %31, %34 : vector<16x1xi1>
    %36 = arith.andi %35, %29 : vector<16x1xi1>
    %37 = vector.broadcast %25 : i32 to vector<16x1xi32>
    %38 = arith.addi %27, %37 : vector<16x1xi32>
    %39 = arith.select %36, %38, %27 : vector<16x1xi1>, vector<16x1xi32>
    %c0_i32_17 = arith.constant 0 : i32
    %40 = vector.broadcast %c0_i32_17 : i32 to vector<16x1xi32>
    %41 = arith.cmpi eq, %39, %40 : vector<16x1xi32>
    %c1_i32_18 = arith.constant 1 : i32
    %42 = tpu.dynamic_rotate %1 by %c1_i32_18 dim 0 : vector<16x128xf32>, i32 -> vector<16x128xf32>
    %cst_19 = arith.constant 0.000000e+00 : f32
    %43 = vector.shape_cast %41 : vector<16x1xi1> to vector<16x1xi1>
    %44 = vector.broadcast %43 : vector<16x1xi1> to vector<16x128xi1>
    %45 = vector.broadcast %cst_19 : f32 to vector<16x128xf32>
    %46 = arith.select %44, %45, %42 : vector<16x128xi1>, vector<16x128xf32>
    %c7_i32 = arith.constant 7 : i32
    %47 = vector.broadcast %c7_i32 : i32 to vector<16x1xi32>
    %48 = arith.cmpi eq, %39, %47 : vector<16x1xi32>
    %c15_i32 = arith.constant 15 : i32
    %49 = tpu.dynamic_rotate %1 by %c15_i32 dim 0 : vector<16x128xf32>, i32 -> vector<16x128xf32>
    %cst_20 = arith.constant 0.000000e+00 : f32
    %50 = vector.shape_cast %48 : vector<16x1xi1> to vector<16x1xi1>
    %51 = vector.broadcast %50 : vector<16x1xi1> to vector<16x128xi1>
    %52 = vector.broadcast %cst_20 : f32 to vector<16x128xf32>
    %53 = arith.select %51, %52, %49 : vector<16x128xi1>, vector<16x128xf32>
    %54 = tpu.concatenate %1, %46, %53 in 1 : vector<16x128xf32>, vector<16x128xf32>, vector<16x128xf32> -> vector<16x384xf32>
    %55 = arith.truncf %54 : vector<16x384xf32> to vector<16x384xbf16>
    %c0_21 = arith.constant 0 : index
    %c0_22 = arith.constant 0 : index
    %56 = vector.load %arg15[%c0_21, %c0_22] : memref<384x384xbf16, #tpu.memory_space<vmem>>, vector<384x384xbf16>
    %cst_23 = arith.constant dense<0.000000e+00> : vector<16x384xf32>
    %57 = tpu.matmul %55, %56, %cst_23 {dimension_numbers = #tpu.dot_dimension_numbers<[1], [0], [0], [1], [0, 0, 1, 1], [], []>} : vector<16x384xbf16>, vector<384x384xbf16>, vector<16x384xf32> -> vector<16x384xf32>
    %c0_24 = arith.constant 0 : index
    %c0_25 = arith.constant 0 : index
    %58 = vector.load %arg16[%c0_24, %c0_25] : memref<1x384xf32, #tpu.memory_space<vmem>>, vector<1x384xf32>
    %59 = vector.broadcast %58 : vector<1x384xf32> to vector<16x384xf32>
    %60 = arith.addf %57, %59 : vector<16x384xf32>
    %61 = vector.extract_strided_slice %60 {offsets = [0, 0], sizes = [16, 128], strides = [1, 1]} : vector<16x384xf32> to vector<16x128xf32>
    %62 = math.tanh %61 : vector<16x128xf32>
    %63 = vector.extract_strided_slice %60 {offsets = [0, 128], sizes = [16, 128], strides = [1, 1]} : vector<16x384xf32> to vector<16x128xf32>
    %64 = math.tanh %63 : vector<16x128xf32>
    %65 = vector.extract_strided_slice %60 {offsets = [0, 256], sizes = [16, 128], strides = [1, 1]} : vector<16x384xf32> to vector<16x128xf32>
    %66 = math.tanh %65 : vector<16x128xf32>
    %67 = arith.maximumf %62, %64 : vector<16x128xf32>
    %68 = arith.maximumf %67, %66 : vector<16x128xf32>
    %69 = vector.shape_cast %68 : vector<16x128xf32> to vector<2x8x128xf32>
    %c0_26 = arith.constant 0 : index
    %c0_27 = arith.constant 0 : index
    %70 = vector.load %arg18[%c0_26, %c0_27] : memref<128x512xbf16, #tpu.memory_space<vmem>>, vector<128x512xbf16>
    %71 = arith.truncf %1 : vector<16x128xf32> to vector<16x128xbf16>
    %c0_28 = arith.constant 0 : index
    %c0_29 = arith.constant 0 : index
    %72 = vector.load %arg17[%c0_28, %c0_29] : memref<128x512xbf16, #tpu.memory_space<vmem>>, vector<128x512xbf16>
    %cst_30 = arith.constant dense<0.000000e+00> : vector<16x512xf32>
    %73 = tpu.matmul %71, %72, %cst_30 {dimension_numbers = #tpu.dot_dimension_numbers<[1], [0], [0], [1], [0, 0, 1, 1], [], []>} : vector<16x128xbf16>, vector<128x512xbf16>, vector<16x512xf32> -> vector<16x512xf32>
    %c0_31 = arith.constant 0 : index
    %c0_32 = arith.constant 0 : index
    %74 = vector.load %arg19[%c0_31, %c0_32] : memref<1x512xf32, #tpu.memory_space<vmem>>, vector<1x512xf32>
    %75 = vector.broadcast %74 : vector<1x512xf32> to vector<16x512xf32>
    %76 = arith.addf %73, %75 : vector<16x512xf32>
    %77 = vector.shape_cast %76 : vector<16x512xf32> to vector<2x8x512xf32>
    %cst_33 = arith.constant 0.000000e+00 : f32
    %78 = vector.broadcast %cst_33 : f32 to vector<2x128xf32>
    %cst_34 = arith.constant 0.000000e+00 : f32
    %79 = vector.broadcast %cst_34 : f32 to vector<2x128xf32>
    %80 = vector.extract_strided_slice %77 {offsets = [0, 0, 0], sizes = [2, 1, 512], strides = [1, 1, 1]} : vector<2x8x512xf32> to vector<2x1x512xf32>
    %81 = vector.shape_cast %80 : vector<2x1x512xf32> to vector<2x512xf32>
    %82 = arith.truncf %78 : vector<2x128xf32> to vector<2x128xbf16>
    %cst_35 = arith.constant dense<0.000000e+00> : vector<2x512xf32>
    %83 = tpu.matmul %82, %70, %cst_35 {dimension_numbers = #tpu.dot_dimension_numbers<[1], [0], [0], [1], [0, 0, 1, 1], [], []>} : vector<2x128xbf16>, vector<128x512xbf16>, vector<2x512xf32> -> vector<2x512xf32>
    %84 = arith.addf %81, %83 : vector<2x512xf32>
    %85 = vector.extract_strided_slice %84 {offsets = [0, 0], sizes = [2, 128], strides = [1, 1]} : vector<2x512xf32> to vector<2x128xf32>
    %86 = arith.negf %85 : vector<2x128xf32>
    %87 = math.exp %86 : vector<2x128xf32>
    %cst_36 = arith.constant 1.000000e+00 : f32
    %88 = vector.broadcast %cst_36 : f32 to vector<2x128xf32>
    %89 = arith.addf %88, %87 : vector<2x128xf32>
    %90 = arith.divf %88, %89 : vector<2x128xf32>
    %91 = vector.extract_strided_slice %84 {offsets = [0, 128], sizes = [2, 128], strides = [1, 1]} : vector<2x512xf32> to vector<2x128xf32>
    %92 = arith.negf %91 : vector<2x128xf32>
    %93 = math.exp %92 : vector<2x128xf32>
    %cst_37 = arith.constant 1.000000e+00 : f32
    %94 = vector.broadcast %cst_37 : f32 to vector<2x128xf32>
    %95 = arith.addf %94, %93 : vector<2x128xf32>
    %96 = arith.divf %94, %95 : vector<2x128xf32>
    %97 = vector.extract_strided_slice %84 {offsets = [0, 256], sizes = [2, 128], strides = [1, 1]} : vector<2x512xf32> to vector<2x128xf32>
    %98 = math.tanh %97 : vector<2x128xf32>
    %99 = vector.extract_strided_slice %84 {offsets = [0, 384], sizes = [2, 128], strides = [1, 1]} : vector<2x512xf32> to vector<2x128xf32>
    %100 = arith.negf %99 : vector<2x128xf32>
    %101 = math.exp %100 : vector<2x128xf32>
    %cst_38 = arith.constant 1.000000e+00 : f32
    %102 = vector.broadcast %cst_38 : f32 to vector<2x128xf32>
    %103 = arith.addf %102, %101 : vector<2x128xf32>
    %104 = arith.divf %102, %103 : vector<2x128xf32>
    %105 = arith.mulf %96, %79 : vector<2x128xf32>
    %106 = arith.mulf %90, %98 : vector<2x128xf32>
    %107 = arith.addf %105, %106 : vector<2x128xf32>
    %108 = math.tanh %107 : vector<2x128xf32>
    %109 = arith.mulf %104, %108 : vector<2x128xf32>
    %c0_39 = arith.constant 0 : index
    %c0_40 = arith.constant 0 : index
    %c0_41 = arith.constant 0 : index
    %110 = vector.load %arg29[%c0_39, %c0_40, %c0_41] : memref<2x8x128xf32, #tpu.memory_space<vmem>>, vector<2x1x128xf32>
    %111 = vector.shape_cast %110 : vector<2x1x128xf32> to vector<2x128xf32>
    %112 = vector.shape_cast %109 : vector<2x128xf32> to vector<2x1x128xf32>
    tpu.vector_store %arg29[%c0_39, %c0_40, %c0_41], %112 {strides = array<i32>} : memref<2x8x128xf32, #tpu.memory_space<vmem>>, vector<2x1x128xf32>,
    %113 = vector.extract_strided_slice %77 {offsets = [0, 1, 0], sizes = [2, 1, 512], strides = [1, 1, 1]} : vector<2x8x512xf32> to vector<2x1x512xf32>
    %114 = vector.shape_cast %113 : vector<2x1x512xf32> to vector<2x512xf32>
    %115 = arith.truncf %109 : vector<2x128xf32> to vector<2x128xbf16>
    %cst_42 = arith.constant dense<0.000000e+00> : vector<2x512xf32>
    %116 = tpu.matmul %115, %70, %cst_42 {dimension_numbers = #tpu.dot_dimension_numbers<[1], [0], [0], [1], [0, 0, 1, 1], [], []>} : vector<2x128xbf16>, vector<128x512xbf16>, vector<2x512xf32> -> vector<2x512xf32>
    %117 = arith.addf %114, %116 : vector<2x512xf32>
    %118 = vector.extract_strided_slice %117 {offsets = [0, 0], sizes = [2, 128], strides = [1, 1]} : vector<2x512xf32> to vector<2x128xf32>
    %119 = arith.negf %118 : vector<2x128xf32>
    %120 = math.exp %119 : vector<2x128xf32>
    %cst_43 = arith.constant 1.000000e+00 : f32
    %121 = vector.broadcast %cst_43 : f32 to vector<2x128xf32>
    %122 = arith.addf %121, %120 : vector<2x128xf32>
    %123 = arith.divf %121, %122 : vector<2x128xf32>
    %124 = vector.extract_strided_slice %117 {offsets = [0, 128], sizes = [2, 128], strides = [1, 1]} : vector<2x512xf32> to vector<2x128xf32>
    %125 = arith.negf %124 : vector<2x128xf32>
    %126 = math.exp %125 : vector<2x128xf32>
    %cst_44 = arith.constant 1.000000e+00 : f32
    %127 = vector.broadcast %cst_44 : f32 to vector<2x128xf32>
    %128 = arith.addf %127, %126 : vector<2x128xf32>
    %129 = arith.divf %127, %128 : vector<2x128xf32>
    %130 = vector.extract_strided_slice %117 {offsets = [0, 256], sizes = [2, 128], strides = [1, 1]} : vector<2x512xf32> to vector<2x128xf32>
    %131 = math.tanh %130 : vector<2x128xf32>
    %132 = vector.extract_strided_slice %117 {offsets = [0, 384], sizes = [2, 128], strides = [1, 1]} : vector<2x512xf32> to vector<2x128xf32>
    %133 = arith.negf %132 : vector<2x128xf32>
    %134 = math.exp %133 : vector<2x128xf32>
    %cst_45 = arith.constant 1.000000e+00 : f32
    %135 = vector.broadcast %cst_45 : f32 to vector<2x128xf32>
    %136 = arith.addf %135, %134 : vector<2x128xf32>
    %137 = arith.divf %135, %136 : vector<2x128xf32>
    %138 = arith.mulf %129, %107 : vector<2x128xf32>
    %139 = arith.mulf %123, %131 : vector<2x128xf32>
    %140 = arith.addf %138, %139 : vector<2x128xf32>
    %141 = math.tanh %140 : vector<2x128xf32>
    %142 = arith.mulf %137, %141 : vector<2x128xf32>
    %c0_46 = arith.constant 0 : index
    %c1 = arith.constant 1 : index
    %c0_47 = arith.constant 0 : index
    %143 = vector.load %arg29[%c0_46, %c1, %c0_47] : memref<2x8x128xf32, #tpu.memory_space<vmem>>, vector<2x1x128xf32>
    %144 = vector.shape_cast %143 : vector<2x1x128xf32> to vector<2x128xf32>
    %145 = vector.shape_cast %142 : vector<2x128xf32> to vector<2x1x128xf32>
    tpu.vector_store %arg29[%c0_46, %c1, %c0_47], %145 {strides = array<i32>} : memref<2x8x128xf32, #tpu.memory_space<vmem>>, vector<2x1x128xf32>,
    %146 = vector.extract_strided_slice %77 {offsets = [0, 2, 0], sizes = [2, 1, 512], strides = [1, 1, 1]} : vector<2x8x512xf32> to vector<2x1x512xf32>
    %147 = vector.shape_cast %146 : vector<2x1x512xf32> to vector<2x512xf32>
    %148 = arith.truncf %142 : vector<2x128xf32> to vector<2x128xbf16>
    %cst_48 = arith.constant dense<0.000000e+00> : vector<2x512xf32>
    %149 = tpu.matmul %148, %70, %cst_48 {dimension_numbers = #tpu.dot_dimension_numbers<[1], [0], [0], [1], [0, 0, 1, 1], [], []>} : vector<2x128xbf16>, vector<128x512xbf16>, vector<2x512xf32> -> vector<2x512xf32>
    %150 = arith.addf %147, %149 : vector<2x512xf32>
    %151 = vector.extract_strided_slice %150 {offsets = [0, 0], sizes = [2, 128], strides = [1, 1]} : vector<2x512xf32> to vector<2x128xf32>
    %152 = arith.negf %151 : vector<2x128xf32>
    %153 = math.exp %152 : vector<2x128xf32>
    %cst_49 = arith.constant 1.000000e+00 : f32
    %154 = vector.broadcast %cst_49 : f32 to vector<2x128xf32>
    %155 = arith.addf %154, %153 : vector<2x128xf32>
    %156 = arith.divf %154, %155 : vector<2x128xf32>
    %157 = vector.extract_strided_slice %150 {offsets = [0, 128], sizes = [2, 128], strides = [1, 1]} : vector<2x512xf32> to vector<2x128xf32>
    %158 = arith.negf %157 : vector<2x128xf32>
    %159 = math.exp %158 : vector<2x128xf32>
    %cst_50 = arith.constant 1.000000e+00 : f32
    %160 = vector.broadcast %cst_50 : f32 to vector<2x128xf32>
    %161 = arith.addf %160, %159 : vector<2x128xf32>
    %162 = arith.divf %160, %161 : vector<2x128xf32>
    %163 = vector.extract_strided_slice %150 {offsets = [0, 256], sizes = [2, 128], strides = [1, 1]} : vector<2x512xf32> to vector<2x128xf32>
    %164 = math.tanh %163 : vector<2x128xf32>
    %165 = vector.extract_strided_slice %150 {offsets = [0, 384], sizes = [2, 128], strides = [1, 1]} : vector<2x512xf32> to vector<2x128xf32>
    %166 = arith.negf %165 : vector<2x128xf32>
    %167 = math.exp %166 : vector<2x128xf32>
    %cst_51 = arith.constant 1.000000e+00 : f32
    %168 = vector.broadcast %cst_51 : f32 to vector<2x128xf32>
    %169 = arith.addf %168, %167 : vector<2x128xf32>
    %170 = arith.divf %168, %169 : vector<2x128xf32>
    %171 = arith.mulf %162, %140 : vector<2x128xf32>
    %172 = arith.mulf %156, %164 : vector<2x128xf32>
    %173 = arith.addf %171, %172 : vector<2x128xf32>
    %174 = math.tanh %173 : vector<2x128xf32>
    %175 = arith.mulf %170, %174 : vector<2x128xf32>
    %c0_52 = arith.constant 0 : index
    %c2 = arith.constant 2 : index
    %c0_53 = arith.constant 0 : index
    %176 = vector.load %arg29[%c0_52, %c2, %c0_53] : memref<2x8x128xf32, #tpu.memory_space<vmem>>, vector<2x1x128xf32>
    %177 = vector.shape_cast %176 : vector<2x1x128xf32> to vector<2x128xf32>
    %178 = vector.shape_cast %175 : vector<2x128xf32> to vector<2x1x128xf32>
    tpu.vector_store %arg29[%c0_52, %c2, %c0_53], %178 {strides = array<i32>} : memref<2x8x128xf32, #tpu.memory_space<vmem>>, vector<2x1x128xf32>,
    %179 = vector.extract_strided_slice %77 {offsets = [0, 3, 0], sizes = [2, 1, 512], strides = [1, 1, 1]} : vector<2x8x512xf32> to vector<2x1x512xf32>
    %180 = vector.shape_cast %179 : vector<2x1x512xf32> to vector<2x512xf32>
    %181 = arith.truncf %175 : vector<2x128xf32> to vector<2x128xbf16>
    %cst_54 = arith.constant dense<0.000000e+00> : vector<2x512xf32>
    %182 = tpu.matmul %181, %70, %cst_54 {dimension_numbers = #tpu.dot_dimension_numbers<[1], [0], [0], [1], [0, 0, 1, 1], [], []>} : vector<2x128xbf16>, vector<128x512xbf16>, vector<2x512xf32> -> vector<2x512xf32>
    %183 = arith.addf %180, %182 : vector<2x512xf32>
    %184 = vector.extract_strided_slice %183 {offsets = [0, 0], sizes = [2, 128], strides = [1, 1]} : vector<2x512xf32> to vector<2x128xf32>
    %185 = arith.negf %184 : vector<2x128xf32>
    %186 = math.exp %185 : vector<2x128xf32>
    %cst_55 = arith.constant 1.000000e+00 : f32
    %187 = vector.broadcast %cst_55 : f32 to vector<2x128xf32>
    %188 = arith.addf %187, %186 : vector<2x128xf32>
    %189 = arith.divf %187, %188 : vector<2x128xf32>
    %190 = vector.extract_strided_slice %183 {offsets = [0, 128], sizes = [2, 128], strides = [1, 1]} : vector<2x512xf32> to vector<2x128xf32>
    %191 = arith.negf %190 : vector<2x128xf32>
    %192 = math.exp %191 : vector<2x128xf32>
    %cst_56 = arith.constant 1.000000e+00 : f32
    %193 = vector.broadcast %cst_56 : f32 to vector<2x128xf32>
    %194 = arith.addf %193, %192 : vector<2x128xf32>
    %195 = arith.divf %193, %194 : vector<2x128xf32>
    %196 = vector.extract_strided_slice %183 {offsets = [0, 256], sizes = [2, 128], strides = [1, 1]} : vector<2x512xf32> to vector<2x128xf32>
    %197 = math.tanh %196 : vector<2x128xf32>
    %198 = vector.extract_strided_slice %183 {offsets = [0, 384], sizes = [2, 128], strides = [1, 1]} : vector<2x512xf32> to vector<2x128xf32>
    %199 = arith.negf %198 : vector<2x128xf32>
    %200 = math.exp %199 : vector<2x128xf32>
    %cst_57 = arith.constant 1.000000e+00 : f32
    %201 = vector.broadcast %cst_57 : f32 to vector<2x128xf32>
    %202 = arith.addf %201, %200 : vector<2x128xf32>
    %203 = arith.divf %201, %202 : vector<2x128xf32>
    %204 = arith.mulf %195, %173 : vector<2x128xf32>
    %205 = arith.mulf %189, %197 : vector<2x128xf32>
    %206 = arith.addf %204, %205 : vector<2x128xf32>
    %207 = math.tanh %206 : vector<2x128xf32>
    %208 = arith.mulf %203, %207 : vector<2x128xf32>
    %c0_58 = arith.constant 0 : index
    %c3 = arith.constant 3 : index
    %c0_59 = arith.constant 0 : index
    %209 = vector.load %arg29[%c0_58, %c3, %c0_59] : memref<2x8x128xf32, #tpu.memory_space<vmem>>, vector<2x1x128xf32>
    %210 = vector.shape_cast %209 : vector<2x1x128xf32> to vector<2x128xf32>
    %211 = vector.shape_cast %208 : vector<2x128xf32> to vector<2x1x128xf32>
    tpu.vector_store %arg29[%c0_58, %c3, %c0_59], %211 {strides = array<i32>} : memref<2x8x128xf32, #tpu.memory_space<vmem>>, vector<2x1x128xf32>,
    %212 = vector.extract_strided_slice %77 {offsets = [0, 4, 0], sizes = [2, 1, 512], strides = [1, 1, 1]} : vector<2x8x512xf32> to vector<2x1x512xf32>
    %213 = vector.shape_cast %212 : vector<2x1x512xf32> to vector<2x512xf32>
    %214 = arith.truncf %208 : vector<2x128xf32> to vector<2x128xbf16>
    %cst_60 = arith.constant dense<0.000000e+00> : vector<2x512xf32>
    %215 = tpu.matmul %214, %70, %cst_60 {dimension_numbers = #tpu.dot_dimension_numbers<[1], [0], [0], [1], [0, 0, 1, 1], [], []>} : vector<2x128xbf16>, vector<128x512xbf16>, vector<2x512xf32> -> vector<2x512xf32>
    %216 = arith.addf %213, %215 : vector<2x512xf32>
    %217 = vector.extract_strided_slice %216 {offsets = [0, 0], sizes = [2, 128], strides = [1, 1]} : vector<2x512xf32> to vector<2x128xf32>
    %218 = arith.negf %217 : vector<2x128xf32>
    %219 = math.exp %218 : vector<2x128xf32>
    %cst_61 = arith.constant 1.000000e+00 : f32
    %220 = vector.broadcast %cst_61 : f32 to vector<2x128xf32>
    %221 = arith.addf %220, %219 : vector<2x128xf32>
    %222 = arith.divf %220, %221 : vector<2x128xf32>
    %223 = vector.extract_strided_slice %216 {offsets = [0, 128], sizes = [2, 128], strides = [1, 1]} : vector<2x512xf32> to vector<2x128xf32>
    %224 = arith.negf %223 : vector<2x128xf32>
    %225 = math.exp %224 : vector<2x128xf32>
    %cst_62 = arith.constant 1.000000e+00 : f32
    %226 = vector.broadcast %cst_62 : f32 to vector<2x128xf32>
    %227 = arith.addf %226, %225 : vector<2x128xf32>
    %228 = arith.divf %226, %227 : vector<2x128xf32>
    %229 = vector.extract_strided_slice %216 {offsets = [0, 256], sizes = [2, 128], strides = [1, 1]} : vector<2x512xf32> to vector<2x128xf32>
    %230 = math.tanh %229 : vector<2x128xf32>
    %231 = vector.extract_strided_slice %216 {offsets = [0, 384], sizes = [2, 128], strides = [1, 1]} : vector<2x512xf32> to vector<2x128xf32>
    %232 = arith.negf %231 : vector<2x128xf32>
    %233 = math.exp %232 : vector<2x128xf32>
    %cst_63 = arith.constant 1.000000e+00 : f32
    %234 = vector.broadcast %cst_63 : f32 to vector<2x128xf32>
    %235 = arith.addf %234, %233 : vector<2x128xf32>
    %236 = arith.divf %234, %235 : vector<2x128xf32>
    %237 = arith.mulf %228, %206 : vector<2x128xf32>
    %238 = arith.mulf %222, %230 : vector<2x128xf32>
    %239 = arith.addf %237, %238 : vector<2x128xf32>
    %240 = math.tanh %239 : vector<2x128xf32>
    %241 = arith.mulf %236, %240 : vector<2x128xf32>
    %c0_64 = arith.constant 0 : index
    %c4 = arith.constant 4 : index
    %c0_65 = arith.constant 0 : index
    %242 = vector.load %arg29[%c0_64, %c4, %c0_65] : memref<2x8x128xf32, #tpu.memory_space<vmem>>, vector<2x1x128xf32>
    %243 = vector.shape_cast %242 : vector<2x1x128xf32> to vector<2x128xf32>
    %244 = vector.shape_cast %241 : vector<2x128xf32> to vector<2x1x128xf32>
    tpu.vector_store %arg29[%c0_64, %c4, %c0_65], %244 {strides = array<i32>} : memref<2x8x128xf32, #tpu.memory_space<vmem>>, vector<2x1x128xf32>,
    %245 = vector.extract_strided_slice %77 {offsets = [0, 5, 0], sizes = [2, 1, 512], strides = [1, 1, 1]} : vector<2x8x512xf32> to vector<2x1x512xf32>
    %246 = vector.shape_cast %245 : vector<2x1x512xf32> to vector<2x512xf32>
    %247 = arith.truncf %241 : vector<2x128xf32> to vector<2x128xbf16>
    %cst_66 = arith.constant dense<0.000000e+00> : vector<2x512xf32>
    %248 = tpu.matmul %247, %70, %cst_66 {dimension_numbers = #tpu.dot_dimension_numbers<[1], [0], [0], [1], [0, 0, 1, 1], [], []>} : vector<2x128xbf16>, vector<128x512xbf16>, vector<2x512xf32> -> vector<2x512xf32>
    %249 = arith.addf %246, %248 : vector<2x512xf32>
    %250 = vector.extract_strided_slice %249 {offsets = [0, 0], sizes = [2, 128], strides = [1, 1]} : vector<2x512xf32> to vector<2x128xf32>
    %251 = arith.negf %250 : vector<2x128xf32>
    %252 = math.exp %251 : vector<2x128xf32>
    %cst_67 = arith.constant 1.000000e+00 : f32
    %253 = vector.broadcast %cst_67 : f32 to vector<2x128xf32>
    %254 = arith.addf %253, %252 : vector<2x128xf32>
    %255 = arith.divf %253, %254 : vector<2x128xf32>
    %256 = vector.extract_strided_slice %249 {offsets = [0, 128], sizes = [2, 128], strides = [1, 1]} : vector<2x512xf32> to vector<2x128xf32>
    %257 = arith.negf %256 : vector<2x128xf32>
    %258 = math.exp %257 : vector<2x128xf32>
    %cst_68 = arith.constant 1.000000e+00 : f32
    %259 = vector.broadcast %cst_68 : f32 to vector<2x128xf32>
    %260 = arith.addf %259, %258 : vector<2x128xf32>
    %261 = arith.divf %259, %260 : vector<2x128xf32>
    %262 = vector.extract_strided_slice %249 {offsets = [0, 256], sizes = [2, 128], strides = [1, 1]} : vector<2x512xf32> to vector<2x128xf32>
    %263 = math.tanh %262 : vector<2x128xf32>
    %264 = vector.extract_strided_slice %249 {offsets = [0, 384], sizes = [2, 128], strides = [1, 1]} : vector<2x512xf32> to vector<2x128xf32>
    %265 = arith.negf %264 : vector<2x128xf32>
    %266 = math.exp %265 : vector<2x128xf32>
    %cst_69 = arith.constant 1.000000e+00 : f32
    %267 = vector.broadcast %cst_69 : f32 to vector<2x128xf32>
    %268 = arith.addf %267, %266 : vector<2x128xf32>
    %269 = arith.divf %267, %268 : vector<2x128xf32>
    %270 = arith.mulf %261, %239 : vector<2x128xf32>
    %271 = arith.mulf %255, %263 : vector<2x128xf32>
    %272 = arith.addf %270, %271 : vector<2x128xf32>
    %273 = math.tanh %272 : vector<2x128xf32>
    %274 = arith.mulf %269, %273 : vector<2x128xf32>
    %c0_70 = arith.constant 0 : index
    %c5 = arith.constant 5 : index
    %c0_71 = arith.constant 0 : index
    %275 = vector.load %arg29[%c0_70, %c5, %c0_71] : memref<2x8x128xf32, #tpu.memory_space<vmem>>, vector<2x1x128xf32>
    %276 = vector.shape_cast %275 : vector<2x1x128xf32> to vector<2x128xf32>
    %277 = vector.shape_cast %274 : vector<2x128xf32> to vector<2x1x128xf32>
    tpu.vector_store %arg29[%c0_70, %c5, %c0_71], %277 {strides = array<i32>} : memref<2x8x128xf32, #tpu.memory_space<vmem>>, vector<2x1x128xf32>,
    %278 = vector.extract_strided_slice %77 {offsets = [0, 6, 0], sizes = [2, 1, 512], strides = [1, 1, 1]} : vector<2x8x512xf32> to vector<2x1x512xf32>
    %279 = vector.shape_cast %278 : vector<2x1x512xf32> to vector<2x512xf32>
    %280 = arith.truncf %274 : vector<2x128xf32> to vector<2x128xbf16>
    %cst_72 = arith.constant dense<0.000000e+00> : vector<2x512xf32>
    %281 = tpu.matmul %280, %70, %cst_72 {dimension_numbers = #tpu.dot_dimension_numbers<[1], [0], [0], [1], [0, 0, 1, 1], [], []>} : vector<2x128xbf16>, vector<128x512xbf16>, vector<2x512xf32> -> vector<2x512xf32>
    %282 = arith.addf %279, %281 : vector<2x512xf32>
    %283 = vector.extract_strided_slice %282 {offsets = [0, 0], sizes = [2, 128], strides = [1, 1]} : vector<2x512xf32> to vector<2x128xf32>
    %284 = arith.negf %283 : vector<2x128xf32>
    %285 = math.exp %284 : vector<2x128xf32>
    %cst_73 = arith.constant 1.000000e+00 : f32
    %286 = vector.broadcast %cst_73 : f32 to vector<2x128xf32>
    %287 = arith.addf %286, %285 : vector<2x128xf32>
    %288 = arith.divf %286, %287 : vector<2x128xf32>
    %289 = vector.extract_strided_slice %282 {offsets = [0, 128], sizes = [2, 128], strides = [1, 1]} : vector<2x512xf32> to vector<2x128xf32>
    %290 = arith.negf %289 : vector<2x128xf32>
    %291 = math.exp %290 : vector<2x128xf32>
    %cst_74 = arith.constant 1.000000e+00 : f32
    %292 = vector.broadcast %cst_74 : f32 to vector<2x128xf32>
    %293 = arith.addf %292, %291 : vector<2x128xf32>
    %294 = arith.divf %292, %293 : vector<2x128xf32>
    %295 = vector.extract_strided_slice %282 {offsets = [0, 256], sizes = [2, 128], strides = [1, 1]} : vector<2x512xf32> to vector<2x128xf32>
    %296 = math.tanh %295 : vector<2x128xf32>
    %297 = vector.extract_strided_slice %282 {offsets = [0, 384], sizes = [2, 128], strides = [1, 1]} : vector<2x512xf32> to vector<2x128xf32>
    %298 = arith.negf %297 : vector<2x128xf32>
    %299 = math.exp %298 : vector<2x128xf32>
    %cst_75 = arith.constant 1.000000e+00 : f32
    %300 = vector.broadcast %cst_75 : f32 to vector<2x128xf32>
    %301 = arith.addf %300, %299 : vector<2x128xf32>
    %302 = arith.divf %300, %301 : vector<2x128xf32>
    %303 = arith.mulf %294, %272 : vector<2x128xf32>
    %304 = arith.mulf %288, %296 : vector<2x128xf32>
    %305 = arith.addf %303, %304 : vector<2x128xf32>
    %306 = math.tanh %305 : vector<2x128xf32>
    %307 = arith.mulf %302, %306 : vector<2x128xf32>
    %c0_76 = arith.constant 0 : index
    %c6 = arith.constant 6 : index
    %c0_77 = arith.constant 0 : index
    %308 = vector.load %arg29[%c0_76, %c6, %c0_77] : memref<2x8x128xf32, #tpu.memory_space<vmem>>, vector<2x1x128xf32>
    %309 = vector.shape_cast %308 : vector<2x1x128xf32> to vector<2x128xf32>
    %310 = vector.shape_cast %307 : vector<2x128xf32> to vector<2x1x128xf32>
    tpu.vector_store %arg29[%c0_76, %c6, %c0_77], %310 {strides = array<i32>} : memref<2x8x128xf32, #tpu.memory_space<vmem>>, vector<2x1x128xf32>,
    %311 = vector.extract_strided_slice %77 {offsets = [0, 7, 0], sizes = [2, 1, 512], strides = [1, 1, 1]} : vector<2x8x512xf32> to vector<2x1x512xf32>
    %312 = vector.shape_cast %311 : vector<2x1x512xf32> to vector<2x512xf32>
    %313 = arith.truncf %307 : vector<2x128xf32> to vector<2x128xbf16>
    %cst_78 = arith.constant dense<0.000000e+00> : vector<2x512xf32>
    %314 = tpu.matmul %313, %70, %cst_78 {dimension_numbers = #tpu.dot_dimension_numbers<[1], [0], [0], [1], [0, 0, 1, 1], [], []>} : vector<2x128xbf16>, vector<128x512xbf16>, vector<2x512xf32> -> vector<2x512xf32>
    %315 = arith.addf %312, %314 : vector<2x512xf32>
    %316 = vector.extract_strided_slice %315 {offsets = [0, 0], sizes = [2, 128], strides = [1, 1]} : vector<2x512xf32> to vector<2x128xf32>
    %317 = arith.negf %316 : vector<2x128xf32>
    %318 = math.exp %317 : vector<2x128xf32>
    %cst_79 = arith.constant 1.000000e+00 : f32
    %319 = vector.broadcast %cst_79 : f32 to vector<2x128xf32>
    %320 = arith.addf %319, %318 : vector<2x128xf32>
    %321 = arith.divf %319, %320 : vector<2x128xf32>
    %322 = vector.extract_strided_slice %315 {offsets = [0, 128], sizes = [2, 128], strides = [1, 1]} : vector<2x512xf32> to vector<2x128xf32>
    %323 = arith.negf %322 : vector<2x128xf32>
    %324 = math.exp %323 : vector<2x128xf32>
    %cst_80 = arith.constant 1.000000e+00 : f32
    %325 = vector.broadcast %cst_80 : f32 to vector<2x128xf32>
    %326 = arith.addf %325, %324 : vector<2x128xf32>
    %327 = arith.divf %325, %326 : vector<2x128xf32>
    %328 = vector.extract_strided_slice %315 {offsets = [0, 256], sizes = [2, 128], strides = [1, 1]} : vector<2x512xf32> to vector<2x128xf32>
    %329 = math.tanh %328 : vector<2x128xf32>
    %330 = vector.extract_strided_slice %315 {offsets = [0, 384], sizes = [2, 128], strides = [1, 1]} : vector<2x512xf32> to vector<2x128xf32>
    %331 = arith.negf %330 : vector<2x128xf32>
    %332 = math.exp %331 : vector<2x128xf32>
    %cst_81 = arith.constant 1.000000e+00 : f32
    %333 = vector.broadcast %cst_81 : f32 to vector<2x128xf32>
    %334 = arith.addf %333, %332 : vector<2x128xf32>
    %335 = arith.divf %333, %334 : vector<2x128xf32>
    %336 = arith.mulf %327, %305 : vector<2x128xf32>
    %337 = arith.mulf %321, %329 : vector<2x128xf32>
    %338 = arith.addf %336, %337 : vector<2x128xf32>
    %339 = math.tanh %338 : vector<2x128xf32>
    %340 = arith.mulf %335, %339 : vector<2x128xf32>
    %c0_82 = arith.constant 0 : index
    %c7 = arith.constant 7 : index
    %c0_83 = arith.constant 0 : index
    %341 = vector.load %arg29[%c0_82, %c7, %c0_83] : memref<2x8x128xf32, #tpu.memory_space<vmem>>, vector<2x1x128xf32>
    %342 = vector.shape_cast %341 : vector<2x1x128xf32> to vector<2x128xf32>
    %343 = vector.shape_cast %340 : vector<2x128xf32> to vector<2x1x128xf32>
    tpu.vector_store %arg29[%c0_82, %c7, %c0_83], %343 {strides = array<i32>} : memref<2x8x128xf32, #tpu.memory_space<vmem>>, vector<2x1x128xf32>,
    %c0_84 = arith.constant 0 : index
    %c0_85 = arith.constant 0 : index
    %c0_86 = arith.constant 0 : index
    %344 = vector.load %arg29[%c0_84, %c0_85, %c0_86] : memref<2x8x128xf32, #tpu.memory_space<vmem>>, vector<2x8x128xf32>
    %c0_87 = arith.constant 0 : index
    %c0_88 = arith.constant 0 : index
    %345 = vector.load %arg6[%c0_87, %c0_88] : memref<128x256xbf16, #tpu.memory_space<vmem>>, vector<128x256xbf16>
    %c0_89 = arith.constant 0 : index
    %c0_90 = arith.constant 0 : index
    %346 = vector.load %arg7[%c0_89, %c0_90] : memref<1x128xf32, #tpu.memory_space<vmem>>, vector<1x128xf32>
    %c0_91 = arith.constant 0 : index
    %c0_92 = arith.constant 0 : index
    %347 = vector.load %arg8[%c0_91, %c0_92] : memref<1x128xf32, #tpu.memory_space<vmem>>, vector<1x128xf32>
    %348 = vector.shape_cast %0 : vector<2x8x128xf32> to vector<16x128xf32>
    %349 = arith.truncf %348 : vector<16x128xf32> to vector<16x128xbf16>
    %cst_93 = arith.constant dense<0.000000e+00> : vector<16x256xf32>
    %350 = tpu.matmul %349, %345, %cst_93 {dimension_numbers = #tpu.dot_dimension_numbers<[1], [0], [0], [1], [0, 0, 1, 1], [], []>} : vector<16x128xbf16>, vector<128x256xbf16>, vector<16x256xf32> -> vector<16x256xf32>
    %351 = vector.extract_strided_slice %350 {offsets = [0, 0], sizes = [16, 128], strides = [1, 1]} : vector<16x256xf32> to vector<16x128xf32>
    %352 = vector.shape_cast %351 : vector<16x128xf32> to vector<2x8x128xf32>
    %353 = vector.extract_strided_slice %350 {offsets = [0, 128], sizes = [16, 128], strides = [1, 1]} : vector<16x256xf32> to vector<16x128xf32>
    %354 = vector.shape_cast %353 : vector<16x128xf32> to vector<2x8x128xf32>
    %355 = arith.truncf %352 : vector<2x8x128xf32> to vector<2x8x128xbf16>
    "tpu.trace_start"() <{level = 10 : i32, message = "bth,bnh->btn"}> : () -> ()
    %cst_94 = arith.constant dense<0.000000e+00> : vector<2x8x64xf32>
    %356 = tpu.matmul %355, %13, %cst_94 {dimension_numbers = #tpu.dot_dimension_numbers<[2], [2], [1], [1], [0, 0, 0, 1, 1, 1], [0], [0]>} : vector<2x8x128xbf16>, vector<2x64x128xbf16>, vector<2x8x64xf32> -> vector<2x8x64xf32>
    "tpu.trace_stop"() : () -> ()
    %357 = math.tanh %356 : vector<2x8x64xf32>
    %358 = arith.truncf %357 : vector<2x8x64xf32> to vector<2x8x64xbf16>
    %359 = arith.truncf %18 : vector<2x64x128xf32> to vector<2x64x128xbf16>
    "tpu.trace_start"() <{level = 10 : i32, message = "btn,bnh->bth"}> : () -> ()
    %cst_95 = arith.constant dense<0.000000e+00> : vector<2x8x128xf32>
    %360 = tpu.matmul %358, %359, %cst_95 {dimension_numbers = #tpu.dot_dimension_numbers<[2], [1], [1], [2], [0, 0, 0, 1, 1, 2], [0], [0]>} : vector<2x8x64xbf16>, vector<2x64x128xbf16>, vector<2x8x128xf32> -> vector<2x8x128xf32>
    "tpu.trace_stop"() : () -> ()
    %361 = arith.addf %354, %360 : vector<2x8x128xf32>
    %362 = math.tanh %361 : vector<2x8x128xf32>
    %363 = arith.truncf %357 : vector<2x8x64xf32> to vector<2x8x64xbf16>
    %364 = arith.truncf %354 : vector<2x8x128xf32> to vector<2x8x128xbf16>
    "tpu.trace_start"() <{level = 10 : i32, message = "btn,bth->bnh"}> : () -> ()
    %cst_96 = arith.constant dense<0.000000e+00> : vector<2x64x128xf32>
    %365 = tpu.matmul %363, %364, %cst_96 {dimension_numbers = #tpu.dot_dimension_numbers<[1], [1], [2], [2], [0, 0, 0, 2, 1, 2], [0], [0]>} : vector<2x8x64xbf16>, vector<2x8x128xbf16>, vector<2x64x128xf32> -> vector<2x64x128xf32>
    "tpu.trace_stop"() : () -> ()
    %366 = arith.addf %18, %365 : vector<2x64x128xf32>
    %367 = math.tanh %366 : vector<2x64x128xf32>
    %368 = vector.shape_cast %346 : vector<1x128xf32> to vector<1x1x128xf32>
    %369 = vector.broadcast %368 : vector<1x1x128xf32> to vector<2x8x128xf32>
    %370 = arith.mulf %362, %369 : vector<2x8x128xf32>
    %cst_97 = arith.constant dense<0.000000e+00> : vector<2x8xf32>
    %371 = vector.multi_reduction <add>, %370, %cst_97 [2] : vector<2x8x128xf32> to vector<2x8xf32>
    %372 = vector.shape_cast %347 : vector<1x128xf32> to vector<1x1x128xf32>
    %373 = vector.broadcast %372 : vector<1x1x128xf32> to vector<2x64x128xf32>
    %374 = arith.mulf %367, %373 : vector<2x64x128xf32>
    %cst_98 = arith.constant dense<0.000000e+00> : vector<2x64xf32>
    %375 = vector.multi_reduction <add>, %374, %cst_98 [2] : vector<2x64x128xf32> to vector<2x64xf32>
    %cst_99 = arith.constant 0.000000e+00 : f32
    %376 = vector.broadcast %cst_99 : f32 to vector<2x8xf32>
    %377 = arith.cmpf ogt, %2, %376 : vector<2x8xf32>
    %cst_100 = arith.constant -1.000000e+30 : f32
    %378 = vector.broadcast %cst_100 : f32 to vector<2x8xf32>
    %379 = arith.select %377, %371, %378 : vector<2x8xi1>, vector<2x8xf32>
    %cst_101 = arith.constant dense<0xFF800000> : vector<2xf32>
    %380 = vector.multi_reduction <maximumf>, %379, %cst_101 [1] : vector<2x8xf32> to vector<2xf32>
    %381 = vector.shape_cast %380 : vector<2xf32> to vector<2x1xf32>
    %382 = vector.broadcast %381 : vector<2x1xf32> to vector<2x8xf32>
    %383 = arith.subf %379, %382 : vector<2x8xf32>
    %384 = math.exp %383 : vector<2x8xf32>
    %cst_102 = arith.constant dense<0.000000e+00> : vector<2xf32>
    %385 = vector.multi_reduction <add>, %384, %cst_102 [1] : vector<2x8xf32> to vector<2xf32>
    %386 = vector.shape_cast %385 : vector<2xf32> to vector<2x1xf32>
    %387 = tpu.reciprocal %386 {approx = true} : vector<2x1xf32> -> vector<2x1xf32>
    %388 = vector.broadcast %387 : vector<2x1xf32> to vector<2x8xf32>
    %389 = arith.mulf %384, %388 : vector<2x8xf32>
    %cst_103 = arith.constant dense<0xFF800000> : vector<2xf32>
    %390 = vector.multi_reduction <maximumf>, %375, %cst_103 [1] : vector<2x64xf32> to vector<2xf32>
    %391 = vector.shape_cast %390 : vector<2xf32> to vector<2x1xf32>
    %392 = vector.broadcast %391 : vector<2x1xf32> to vector<2x64xf32>
    %393 = arith.subf %375, %392 : vector<2x64xf32>
    %394 = math.exp %393 : vector<2x64xf32>
    %cst_104 = arith.constant dense<0.000000e+00> : vector<2xf32>
    %395 = vector.multi_reduction <add>, %394, %cst_104 [1] : vector<2x64xf32> to vector<2xf32>
    %396 = vector.shape_cast %395 : vector<2xf32> to vector<2x1xf32>
    %397 = tpu.reciprocal %396 {approx = true} : vector<2x1xf32> -> vector<2x1xf32>
    %398 = vector.broadcast %397 : vector<2x1xf32> to vector<2x64xf32>
    %399 = arith.mulf %394, %398 : vector<2x64xf32>
    %400 = vector.shape_cast %389 : vector<2x8xf32> to vector<2x8x1xf32>
    %401 = vector.broadcast %400 : vector<2x8x1xf32> to vector<2x8x128xf32>
    %402 = arith.mulf %401, %0 : vector<2x8x128xf32>
    %cst_105 = arith.constant dense<0.000000e+00> : vector<2x128xf32>
    %403 = vector.multi_reduction <add>, %402, %cst_105 [1] : vector<2x8x128xf32> to vector<2x128xf32>
    %404 = vector.shape_cast %399 : vector<2x64xf32> to vector<2x64x1xf32>
    %405 = vector.broadcast %404 : vector<2x64x1xf32> to vector<2x64x128xf32>
    %406 = arith.mulf %405, %12 : vector<2x64x128xf32>
    %cst_106 = arith.constant dense<0.000000e+00> : vector<2x128xf32>
    %407 = vector.multi_reduction <add>, %406, %cst_106 [1] : vector<2x64x128xf32> to vector<2x128xf32>
    %c0_107 = arith.constant 0 : index
    %c0_108 = arith.constant 0 : index
    %408 = vector.load %arg9[%c0_107, %c0_108] : memref<128x256xbf16, #tpu.memory_space<vmem>>, vector<128x256xbf16>
    %c0_109 = arith.constant 0 : index
    %c0_110 = arith.constant 0 : index
    %409 = vector.load %arg10[%c0_109, %c0_110] : memref<1x128xf32, #tpu.memory_space<vmem>>, vector<1x128xf32>
    %c0_111 = arith.constant 0 : index
    %c0_112 = arith.constant 0 : index
    %410 = vector.load %arg11[%c0_111, %c0_112] : memref<1x128xf32, #tpu.memory_space<vmem>>, vector<1x128xf32>
    %411 = vector.shape_cast %69 : vector<2x8x128xf32> to vector<16x128xf32>
    %412 = arith.truncf %411 : vector<16x128xf32> to vector<16x128xbf16>
    %cst_113 = arith.constant dense<0.000000e+00> : vector<16x256xf32>
    %413 = tpu.matmul %412, %408, %cst_113 {dimension_numbers = #tpu.dot_dimension_numbers<[1], [0], [0], [1], [0, 0, 1, 1], [], []>} : vector<16x128xbf16>, vector<128x256xbf16>, vector<16x256xf32> -> vector<16x256xf32>
    %414 = vector.extract_strided_slice %413 {offsets = [0, 0], sizes = [16, 128], strides = [1, 1]} : vector<16x256xf32> to vector<16x128xf32>
    %415 = vector.shape_cast %414 : vector<16x128xf32> to vector<2x8x128xf32>
    %416 = vector.extract_strided_slice %413 {offsets = [0, 128], sizes = [16, 128], strides = [1, 1]} : vector<16x256xf32> to vector<16x128xf32>
    %417 = vector.shape_cast %416 : vector<16x128xf32> to vector<2x8x128xf32>
    %418 = arith.truncf %415 : vector<2x8x128xf32> to vector<2x8x128xbf16>
    "tpu.trace_start"() <{level = 10 : i32, message = "bth,bnh->btn"}> : () -> ()
    %cst_114 = arith.constant dense<0.000000e+00> : vector<2x8x64xf32>
    %419 = tpu.matmul %418, %13, %cst_114 {dimension_numbers = #tpu.dot_dimension_numbers<[2], [2], [1], [1], [0, 0, 0, 1, 1, 1], [0], [0]>} : vector<2x8x128xbf16>, vector<2x64x128xbf16>, vector<2x8x64xf32> -> vector<2x8x64xf32>
    "tpu.trace_stop"() : () -> ()
    %420 = math.tanh %419 : vector<2x8x64xf32>
    %421 = arith.truncf %420 : vector<2x8x64xf32> to vector<2x8x64xbf16>
    %422 = arith.truncf %20 : vector<2x64x128xf32> to vector<2x64x128xbf16>
    "tpu.trace_start"() <{level = 10 : i32, message = "btn,bnh->bth"}> : () -> ()
    %cst_115 = arith.constant dense<0.000000e+00> : vector<2x8x128xf32>
    %423 = tpu.matmul %421, %422, %cst_115 {dimension_numbers = #tpu.dot_dimension_numbers<[2], [1], [1], [2], [0, 0, 0, 1, 1, 2], [0], [0]>} : vector<2x8x64xbf16>, vector<2x64x128xbf16>, vector<2x8x128xf32> -> vector<2x8x128xf32>
    "tpu.trace_stop"() : () -> ()
    %424 = arith.addf %417, %423 : vector<2x8x128xf32>
    %425 = math.tanh %424 : vector<2x8x128xf32>
    %426 = arith.truncf %420 : vector<2x8x64xf32> to vector<2x8x64xbf16>
    %427 = arith.truncf %417 : vector<2x8x128xf32> to vector<2x8x128xbf16>
    "tpu.trace_start"() <{level = 10 : i32, message = "btn,bth->bnh"}> : () -> ()
    %cst_116 = arith.constant dense<0.000000e+00> : vector<2x64x128xf32>
    %428 = tpu.matmul %426, %427, %cst_116 {dimension_numbers = #tpu.dot_dimension_numbers<[1], [1], [2], [2], [0, 0, 0, 2, 1, 2], [0], [0]>} : vector<2x8x64xbf16>, vector<2x8x128xbf16>, vector<2x64x128xf32> -> vector<2x64x128xf32>
    "tpu.trace_stop"() : () -> ()
    %429 = arith.addf %20, %428 : vector<2x64x128xf32>
    %430 = math.tanh %429 : vector<2x64x128xf32>
    %431 = vector.shape_cast %409 : vector<1x128xf32> to vector<1x1x128xf32>
    %432 = vector.broadcast %431 : vector<1x1x128xf32> to vector<2x8x128xf32>
    %433 = arith.mulf %425, %432 : vector<2x8x128xf32>
    %cst_117 = arith.constant dense<0.000000e+00> : vector<2x8xf32>
    %434 = vector.multi_reduction <add>, %433, %cst_117 [2] : vector<2x8x128xf32> to vector<2x8xf32>
    %435 = vector.shape_cast %410 : vector<1x128xf32> to vector<1x1x128xf32>
    %436 = vector.broadcast %435 : vector<1x1x128xf32> to vector<2x64x128xf32>
    %437 = arith.mulf %430, %436 : vector<2x64x128xf32>
    %cst_118 = arith.constant dense<0.000000e+00> : vector<2x64xf32>
    %438 = vector.multi_reduction <add>, %437, %cst_118 [2] : vector<2x64x128xf32> to vector<2x64xf32>
    %cst_119 = arith.constant 0.000000e+00 : f32
    %439 = vector.broadcast %cst_119 : f32 to vector<2x8xf32>
    %440 = arith.cmpf ogt, %2, %439 : vector<2x8xf32>
    %cst_120 = arith.constant -1.000000e+30 : f32
    %441 = vector.broadcast %cst_120 : f32 to vector<2x8xf32>
    %442 = arith.select %440, %434, %441 : vector<2x8xi1>, vector<2x8xf32>
    %cst_121 = arith.constant dense<0xFF800000> : vector<2xf32>
    %443 = vector.multi_reduction <maximumf>, %442, %cst_121 [1] : vector<2x8xf32> to vector<2xf32>
    %444 = vector.shape_cast %443 : vector<2xf32> to vector<2x1xf32>
    %445 = vector.broadcast %444 : vector<2x1xf32> to vector<2x8xf32>
    %446 = arith.subf %442, %445 : vector<2x8xf32>
    %447 = math.exp %446 : vector<2x8xf32>
    %cst_122 = arith.constant dense<0.000000e+00> : vector<2xf32>
    %448 = vector.multi_reduction <add>, %447, %cst_122 [1] : vector<2x8xf32> to vector<2xf32>
    %449 = vector.shape_cast %448 : vector<2xf32> to vector<2x1xf32>
    %450 = tpu.reciprocal %449 {approx = true} : vector<2x1xf32> -> vector<2x1xf32>
    %451 = vector.broadcast %450 : vector<2x1xf32> to vector<2x8xf32>
    %452 = arith.mulf %447, %451 : vector<2x8xf32>
    %cst_123 = arith.constant dense<0xFF800000> : vector<2xf32>
    %453 = vector.multi_reduction <maximumf>, %438, %cst_123 [1] : vector<2x64xf32> to vector<2xf32>
    %454 = vector.shape_cast %453 : vector<2xf32> to vector<2x1xf32>
    %455 = vector.broadcast %454 : vector<2x1xf32> to vector<2x64xf32>
    %456 = arith.subf %438, %455 : vector<2x64xf32>
    %457 = math.exp %456 : vector<2x64xf32>
    %cst_124 = arith.constant dense<0.000000e+00> : vector<2xf32>
    %458 = vector.multi_reduction <add>, %457, %cst_124 [1] : vector<2x64xf32> to vector<2xf32>
    %459 = vector.shape_cast %458 : vector<2xf32> to vector<2x1xf32>
    %460 = tpu.reciprocal %459 {approx = true} : vector<2x1xf32> -> vector<2x1xf32>
    %461 = vector.broadcast %460 : vector<2x1xf32> to vector<2x64xf32>
    %462 = arith.mulf %457, %461 : vector<2x64xf32>
    %463 = vector.shape_cast %452 : vector<2x8xf32> to vector<2x8x1xf32>
    %464 = vector.broadcast %463 : vector<2x8x1xf32> to vector<2x8x128xf32>
    %465 = arith.mulf %464, %69 : vector<2x8x128xf32>
    %cst_125 = arith.constant dense<0.000000e+00> : vector<2x128xf32>
    %466 = vector.multi_reduction <add>, %465, %cst_125 [1] : vector<2x8x128xf32> to vector<2x128xf32>
    %467 = vector.shape_cast %462 : vector<2x64xf32> to vector<2x64x1xf32>
    %468 = vector.broadcast %467 : vector<2x64x1xf32> to vector<2x64x128xf32>
    %469 = arith.mulf %468, %12 : vector<2x64x128xf32>
    %cst_126 = arith.constant dense<0.000000e+00> : vector<2x128xf32>
    %470 = vector.multi_reduction <add>, %469, %cst_126 [1] : vector<2x64x128xf32> to vector<2x128xf32>
    %c0_127 = arith.constant 0 : index
    %c0_128 = arith.constant 0 : index
    %471 = vector.load %arg12[%c0_127, %c0_128] : memref<128x256xbf16, #tpu.memory_space<vmem>>, vector<128x256xbf16>
    %c0_129 = arith.constant 0 : index
    %c0_130 = arith.constant 0 : index
    %472 = vector.load %arg13[%c0_129, %c0_130] : memref<1x128xf32, #tpu.memory_space<vmem>>, vector<1x128xf32>
    %c0_131 = arith.constant 0 : index
    %c0_132 = arith.constant 0 : index
    %473 = vector.load %arg14[%c0_131, %c0_132] : memref<1x128xf32, #tpu.memory_space<vmem>>, vector<1x128xf32>
    %474 = vector.shape_cast %344 : vector<2x8x128xf32> to vector<16x128xf32>
    %475 = arith.truncf %474 : vector<16x128xf32> to vector<16x128xbf16>
    %cst_133 = arith.constant dense<0.000000e+00> : vector<16x256xf32>
    %476 = tpu.matmul %475, %471, %cst_133 {dimension_numbers = #tpu.dot_dimension_numbers<[1], [0], [0], [1], [0, 0, 1, 1], [], []>} : vector<16x128xbf16>, vector<128x256xbf16>, vector<16x256xf32> -> vector<16x256xf32>
    %477 = vector.extract_strided_slice %476 {offsets = [0, 0], sizes = [16, 128], strides = [1, 1]} : vector<16x256xf32> to vector<16x128xf32>
    %478 = vector.shape_cast %477 : vector<16x128xf32> to vector<2x8x128xf32>
    %479 = vector.extract_strided_slice %476 {offsets = [0, 128], sizes = [16, 128], strides = [1, 1]} : vector<16x256xf32> to vector<16x128xf32>
    %480 = vector.shape_cast %479 : vector<16x128xf32> to vector<2x8x128xf32>
    %481 = arith.truncf %478 : vector<2x8x128xf32> to vector<2x8x128xbf16>
    "tpu.trace_start"() <{level = 10 : i32, message = "bth,bnh->btn"}> : () -> ()
    %cst_134 = arith.constant dense<0.000000e+00> : vector<2x8x64xf32>
    %482 = tpu.matmul %481, %13, %cst_134 {dimension_numbers = #tpu.dot_dimension_numbers<[2], [2], [1], [1], [0, 0, 0, 1, 1, 1], [0], [0]>} : vector<2x8x128xbf16>, vector<2x64x128xbf16>, vector<2x8x64xf32> -> vector<2x8x64xf32>
    "tpu.trace_stop"() : () -> ()
    %483 = math.tanh %482 : vector<2x8x64xf32>
    %484 = arith.truncf %483 : vector<2x8x64xf32> to vector<2x8x64xbf16>
    %485 = arith.truncf %22 : vector<2x64x128xf32> to vector<2x64x128xbf16>
    "tpu.trace_start"() <{level = 10 : i32, message = "btn,bnh->bth"}> : () -> ()
    %cst_135 = arith.constant dense<0.000000e+00> : vector<2x8x128xf32>
    %486 = tpu.matmul %484, %485, %cst_135 {dimension_numbers = #tpu.dot_dimension_numbers<[2], [1], [1], [2], [0, 0, 0, 1, 1, 2], [0], [0]>} : vector<2x8x64xbf16>, vector<2x64x128xbf16>, vector<2x8x128xf32> -> vector<2x8x128xf32>
    "tpu.trace_stop"() : () -> ()
    %487 = arith.addf %480, %486 : vector<2x8x128xf32>
    %488 = math.tanh %487 : vector<2x8x128xf32>
    %489 = arith.truncf %483 : vector<2x8x64xf32> to vector<2x8x64xbf16>
    %490 = arith.truncf %480 : vector<2x8x128xf32> to vector<2x8x128xbf16>
    "tpu.trace_start"() <{level = 10 : i32, message = "btn,bth->bnh"}> : () -> ()
    %cst_136 = arith.constant dense<0.000000e+00> : vector<2x64x128xf32>
    %491 = tpu.matmul %489, %490, %cst_136 {dimension_numbers = #tpu.dot_dimension_numbers<[1], [1], [2], [2], [0, 0, 0, 2, 1, 2], [0], [0]>} : vector<2x8x64xbf16>, vector<2x8x128xbf16>, vector<2x64x128xf32> -> vector<2x64x128xf32>
    "tpu.trace_stop"() : () -> ()
    %492 = arith.addf %22, %491 : vector<2x64x128xf32>
    %493 = math.tanh %492 : vector<2x64x128xf32>
    %494 = vector.shape_cast %472 : vector<1x128xf32> to vector<1x1x128xf32>
    %495 = vector.broadcast %494 : vector<1x1x128xf32> to vector<2x8x128xf32>
    %496 = arith.mulf %488, %495 : vector<2x8x128xf32>
    %cst_137 = arith.constant dense<0.000000e+00> : vector<2x8xf32>
    %497 = vector.multi_reduction <add>, %496, %cst_137 [2] : vector<2x8x128xf32> to vector<2x8xf32>
    %498 = vector.shape_cast %473 : vector<1x128xf32> to vector<1x1x128xf32>
    %499 = vector.broadcast %498 : vector<1x1x128xf32> to vector<2x64x128xf32>
    %500 = arith.mulf %493, %499 : vector<2x64x128xf32>
    %cst_138 = arith.constant dense<0.000000e+00> : vector<2x64xf32>
    %501 = vector.multi_reduction <add>, %500, %cst_138 [2] : vector<2x64x128xf32> to vector<2x64xf32>
    %cst_139 = arith.constant 0.000000e+00 : f32
    %502 = vector.broadcast %cst_139 : f32 to vector<2x8xf32>
    %503 = arith.cmpf ogt, %2, %502 : vector<2x8xf32>
    %cst_140 = arith.constant -1.000000e+30 : f32
    %504 = vector.broadcast %cst_140 : f32 to vector<2x8xf32>
    %505 = arith.select %503, %497, %504 : vector<2x8xi1>, vector<2x8xf32>
    %cst_141 = arith.constant dense<0xFF800000> : vector<2xf32>
    %506 = vector.multi_reduction <maximumf>, %505, %cst_141 [1] : vector<2x8xf32> to vector<2xf32>
    %507 = vector.shape_cast %506 : vector<2xf32> to vector<2x1xf32>
    %508 = vector.broadcast %507 : vector<2x1xf32> to vector<2x8xf32>
    %509 = arith.subf %505, %508 : vector<2x8xf32>
    %510 = math.exp %509 : vector<2x8xf32>
    %cst_142 = arith.constant dense<0.000000e+00> : vector<2xf32>
    %511 = vector.multi_reduction <add>, %510, %cst_142 [1] : vector<2x8xf32> to vector<2xf32>
    %512 = vector.shape_cast %511 : vector<2xf32> to vector<2x1xf32>
    %513 = tpu.reciprocal %512 {approx = true} : vector<2x1xf32> -> vector<2x1xf32>
    %514 = vector.broadcast %513 : vector<2x1xf32> to vector<2x8xf32>
    %515 = arith.mulf %510, %514 : vector<2x8xf32>
    %cst_143 = arith.constant dense<0xFF800000> : vector<2xf32>
    %516 = vector.multi_reduction <maximumf>, %501, %cst_143 [1] : vector<2x64xf32> to vector<2xf32>
    %517 = vector.shape_cast %516 : vector<2xf32> to vector<2x1xf32>
    %518 = vector.broadcast %517 : vector<2x1xf32> to vector<2x64xf32>
    %519 = arith.subf %501, %518 : vector<2x64xf32>
    %520 = math.exp %519 : vector<2x64xf32>
    %cst_144 = arith.constant dense<0.000000e+00> : vector<2xf32>
    %521 = vector.multi_reduction <add>, %520, %cst_144 [1] : vector<2x64xf32> to vector<2xf32>
    %522 = vector.shape_cast %521 : vector<2xf32> to vector<2x1xf32>
    %523 = tpu.reciprocal %522 {approx = true} : vector<2x1xf32> -> vector<2x1xf32>
    %524 = vector.broadcast %523 : vector<2x1xf32> to vector<2x64xf32>
    %525 = arith.mulf %520, %524 : vector<2x64xf32>
    %526 = vector.shape_cast %515 : vector<2x8xf32> to vector<2x8x1xf32>
    %527 = vector.broadcast %526 : vector<2x8x1xf32> to vector<2x8x128xf32>
    %528 = arith.mulf %527, %344 : vector<2x8x128xf32>
    %cst_145 = arith.constant dense<0.000000e+00> : vector<2x128xf32>
    %529 = vector.multi_reduction <add>, %528, %cst_145 [1] : vector<2x8x128xf32> to vector<2x128xf32>
    %530 = vector.shape_cast %525 : vector<2x64xf32> to vector<2x64x1xf32>
    %531 = vector.broadcast %530 : vector<2x64x1xf32> to vector<2x64x128xf32>
    %532 = arith.mulf %531, %12 : vector<2x64x128xf32>
    %cst_146 = arith.constant dense<0.000000e+00> : vector<2x128xf32>
    %533 = vector.multi_reduction <add>, %532, %cst_146 [1] : vector<2x64x128xf32> to vector<2x128xf32>
    %534 = arith.addf %403, %407 : vector<2x128xf32>
    %535 = arith.truncf %534 : vector<2x128xf32> to vector<2x128xbf16>
    %c0_147 = arith.constant 0 : index
    %c0_148 = arith.constant 0 : index
    %536 = vector.load %arg20[%c0_147, %c0_148] : memref<128x128xbf16, #tpu.memory_space<vmem>>, vector<128x128xbf16>
    %cst_149 = arith.constant dense<0.000000e+00> : vector<2x128xf32>
    %537 = tpu.matmul %535, %536, %cst_149 {dimension_numbers = #tpu.dot_dimension_numbers<[1], [0], [0], [1], [0, 0, 1, 1], [], []>} : vector<2x128xbf16>, vector<128x128xbf16>, vector<2x128xf32> -> vector<2x128xf32>
    %c0_150 = arith.constant 0 : index
    %c0_151 = arith.constant 0 : index
    %538 = vector.load %arg21[%c0_150, %c0_151] : memref<1x128xf32, #tpu.memory_space<vmem>>, vector<1x128xf32>
    %539 = vector.broadcast %538 : vector<1x128xf32> to vector<2x128xf32>
    %540 = arith.addf %537, %539 : vector<2x128xf32>
    %541 = math.tanh %540 : vector<2x128xf32>
    %542 = arith.addf %466, %470 : vector<2x128xf32>
    %543 = tpu.concatenate %542, %541 in 1 : vector<2x128xf32>, vector<2x128xf32> -> vector<2x256xf32>
    %544 = arith.truncf %543 : vector<2x256xf32> to vector<2x256xbf16>
    %c0_152 = arith.constant 0 : index
    %c0_153 = arith.constant 0 : index
    %545 = vector.load %arg22[%c0_152, %c0_153] : memref<256x128xbf16, #tpu.memory_space<vmem>>, vector<256x128xbf16>
    %cst_154 = arith.constant dense<0.000000e+00> : vector<2x128xf32>
    %546 = tpu.matmul %544, %545, %cst_154 {dimension_numbers = #tpu.dot_dimension_numbers<[1], [0], [0], [1], [0, 0, 1, 1], [], []>} : vector<2x256xbf16>, vector<256x128xbf16>, vector<2x128xf32> -> vector<2x128xf32>
    %c0_155 = arith.constant 0 : index
    %c0_156 = arith.constant 0 : index
    %547 = vector.load %arg23[%c0_155, %c0_156] : memref<1x128xf32, #tpu.memory_space<vmem>>, vector<1x128xf32>
    %548 = vector.broadcast %547 : vector<1x128xf32> to vector<2x128xf32>
    %549 = arith.addf %546, %548 : vector<2x128xf32>
    %550 = math.tanh %549 : vector<2x128xf32>
    %551 = arith.addf %529, %533 : vector<2x128xf32>
    %552 = tpu.concatenate %551, %550 in 1 : vector<2x128xf32>, vector<2x128xf32> -> vector<2x256xf32>
    %553 = arith.truncf %552 : vector<2x256xf32> to vector<2x256xbf16>
    %c0_157 = arith.constant 0 : index
    %c0_158 = arith.constant 0 : index
    %554 = vector.load %arg24[%c0_157, %c0_158] : memref<256x128xbf16, #tpu.memory_space<vmem>>, vector<256x128xbf16>
    %cst_159 = arith.constant dense<0.000000e+00> : vector<2x128xf32>
    %555 = tpu.matmul %553, %554, %cst_159 {dimension_numbers = #tpu.dot_dimension_numbers<[1], [0], [0], [1], [0, 0, 1, 1], [], []>} : vector<2x256xbf16>, vector<256x128xbf16>, vector<2x128xf32> -> vector<2x128xf32>
    %c0_160 = arith.constant 0 : index
    %c0_161 = arith.constant 0 : index
    %556 = vector.load %arg25[%c0_160, %c0_161] : memref<1x128xf32, #tpu.memory_space<vmem>>, vector<1x128xf32>
    %557 = vector.broadcast %556 : vector<1x128xf32> to vector<2x128xf32>
    %558 = arith.addf %555, %557 : vector<2x128xf32>
    %559 = math.tanh %558 : vector<2x128xf32>
    %560 = arith.truncf %559 : vector<2x128xf32> to vector<2x128xbf16>
    %c0_162 = arith.constant 0 : index
    %c0_163 = arith.constant 0 : index
    %561 = vector.load %arg26[%c0_162, %c0_163] : memref<128x128xbf16, #tpu.memory_space<vmem>>, vector<128x128xbf16>
    %cst_164 = arith.constant dense<0.000000e+00> : vector<2x128xf32>
    %562 = tpu.matmul %560, %561, %cst_164 {dimension_numbers = #tpu.dot_dimension_numbers<[1], [0], [0], [1], [0, 0, 1, 1], [], []>} : vector<2x128xbf16>, vector<128x128xbf16>, vector<2x128xf32> -> vector<2x128xf32>
    %c0_165 = arith.constant 0 : index
    %c0_166 = arith.constant 0 : index
    %563 = vector.load %arg27[%c0_165, %c0_166] : memref<1x128xf32, #tpu.memory_space<vmem>>, vector<1x128xf32>
    %564 = vector.broadcast %563 : vector<1x128xf32> to vector<2x128xf32>
    %565 = arith.addf %562, %564 : vector<2x128xf32>
    %c0_167 = arith.constant 0 : index
    %c0_168 = arith.constant 0 : index
    %566 = vector.load %arg28[%c0_167, %c0_168] : memref<2x128xf32, #tpu.memory_space<vmem>>, vector<2x128xf32>
    tpu.vector_store %arg28[%c0_167, %c0_168], %565 {strides = array<i32>} : memref<2x128xf32, #tpu.memory_space<vmem>>, vector<2x128xf32>,
    return
  }
}

</mosaic_0001>

<bundles_post_ra>
// kernel: vqa_forward.1
= control target key start
LH: loop header
LB: loop body
LE: loop exit
PB: predicated region body
PF: predicated region fallthrough
CT: control target
= control target key end

     0   :  { %s12355_s0 = inlined_call_operand.vmem [shape: f32[2,8,128], index: 0, kind: input, shape index: {}]   ;;  %s12356_s1 = inlined_call_operand.vmem [shape: f32[2,64,32], index: 1, kind: input, shape index: {}]   ;;  %s12357_s2 = inlined_call_operand.vmem [shape: f32[2,8], index: 2, kind: input, shape index: {}]   ;;  %s12358_s3 = inlined_call_operand.vmem [shape: bf16[32,128], index: 3, kind: input, shape index: {}]   ;;  %s12359_s4 = inlined_call_operand.vmem [shape: f32[1,128], index: 4, kind: input, shape index: {}]   ;;  %s12360_s5 = inlined_call_operand.vmem [shape: bf16[128,384], index: 5, kind: input, shape index: {}]   ;;  %s12361_s6 = inlined_call_operand.vmem [shape: bf16[128,256], index: 6, kind: input, shape index: {}]   ;;  %s12362_s7 = inlined_call_operand.vmem [shape: f32[1,128], index: 7, kind: input, shape index: {}]   ;;  %s12363_s8 = inlined_call_operand.vmem [shape: f32[1,128], index: 8, kind: input, shape index: {}]   ;;  %s12364_s9 = inlined_call_operand.vmem [shape: bf16[128,256], index: 9, kind: input, shape index: {}]   ;;  %s12365_s10 = inlined_call_operand.vmem [shape: f32[1,128], index: 10, kind: input, shape index: {}]   ;;  %s12366_s11 = inlined_call_operand.vmem [shape: f32[1,128], index: 11, kind: input, shape index: {}]   ;;  %s12367_s12 = inlined_call_operand.vmem [shape: bf16[128,256], index: 12, kind: input, shape index: {}]   ;;  %s12368_s13 = inlined_call_operand.vmem [shape: f32[1,128], index: 13, kind: input, shape index: {}]   ;;  %s12369_s14 = inlined_call_operand.vmem [shape: f32[1,128], index: 14, kind: input, shape index: {}]   ;;  %s12370_s15 = inlined_call_operand.vmem [shape: bf16[384,384], index: 15, kind: input, shape index: {}]   ;;  %s12371_s16 = inlined_call_operand.vmem [shape: f32[1,384], index: 16, kind: input, shape index: {}]   ;;  %s12372_s17 = inlined_call_operand.vmem [shape: bf16[128,512], index: 17, kind: input, shape index: {}]   ;;  %s12373_s18 = inlined_call_operand.vmem [shape: bf16[128,512], index: 18, kind: input, shape index: {}]   ;;  %s12374_s19 = inlined_call_operand.vmem [shape: f32[1,512], index: 19, kind: input, shape index: {}]   ;;  %s12375_s20 = inlined_call_operand.vmem [shape: bf16[128,128], index: 20, kind: input, shape index: {}]   ;;  %s12376_s21 = inlined_call_operand.vmem [shape: f32[1,128], index: 21, kind: input, shape index: {}]   ;;  %s12377_s22 = inlined_call_operand.vmem [shape: bf16[256,128], index: 22, kind: input, shape index: {}]   ;;  %s12378_s23 = inlined_call_operand.vmem [shape: f32[1,128], index: 23, kind: input, shape index: {}]   ;;  %s12379_s24 = inlined_call_operand.vmem [shape: bf16[256,128], index: 24, kind: input, shape index: {}]   ;;  %s12380_s25 = inlined_call_operand.vmem [shape: f32[1,128], index: 25, kind: input, shape index: {}]   ;;  %s12381_s26 = inlined_call_operand.vmem [shape: bf16[128,128], index: 26, kind: input, shape index: {}]   ;;  %s12382_s27 = inlined_call_operand.vmem [shape: f32[1,128], index: 27, kind: input, shape index: {}]   ;;  %s12383_s28 = inlined_call_operand.hbm [shape: f32[2,128], index: 28, kind: output, shape index: {}]  }
   0x1   :  { %12519 = sst [smem:[#allocation83_spill]] %s12355_s0 }
   0x2   :  { %12520 = sst [smem:[#allocation84_spill]] %s12356_s1 }
   0x3   :  { %12521 = sst [smem:[#allocation85_spill]] %s12357_s2 }
   0x4   :  { %12522 = sst [smem:[#allocation86_spill]] %s12358_s3 }
   0x5   :  { %12523 = sst [smem:[#allocation87_spill]] %s12359_s4 }
   0x6   :  { %12524 = sst [smem:[#allocation88_spill]] %s12360_s5 }
   0x7   :  { %12525 = sst [smem:[#allocation89_spill]] %s12361_s6 }
   0x8   :  { %12526 = sst [smem:[#allocation90_spill]] %s12362_s7 }
   0x9   :  { %12527 = sst [smem:[#allocation91_spill]] %s12363_s8 }
   0xa   :  { %12528 = sst [smem:[#allocation92_spill]] %s12364_s9 }
   0xb   :  { %12529 = sst [smem:[#allocation93_spill]] %s12365_s10 }
   0xc   :  { %12530 = sst [smem:[#allocation94_spill]] %s12366_s11 }
   0xd   :  { %12531 = sst [smem:[#allocation95_spill]] %s12367_s12 }
   0xe   :  { %s12532_s9 = sld [smem:[#allocation86_spill]]  ;;  %vm141_vm0 = vcmask 261120   ;;  %v8238_v50 = vld [vmem:[%s12370_s15 + $0xac] ss:$12 sps:$4 sm:$0xff]   ;;  %v12394_v51 = vmov 0  }
   0xf   :  { %s12533_s0 = sld [smem:[#allocation84_spill]]  ;;  %479 = vmatprep.mubr.bf16.mxu1 %v12394_v51  ;;  %v8241_v52 = vld [vmem:[%s12370_s15 + $0x22c] ss:$12 sps:$4 sm:$0xff]  }
  0x10   :  { %s12534_s6 = sld [smem:[#allocation88_spill]] }
  0x14   :  { %v8202_v0 = vld [vmem:[%s12532_s9 + $0x8] sm:$0xff]   ;;  %v8203_v1 = vld [vmem:[%s12532_s9] sm:$0xff]  }
  0x15   :  { %7874 = vmatprep.subr.bf16.mxu0 %v8202_v0  ;;  %v94_v2 = vld [vmem:[%s12533_s0] sm:$0xff]  ;;  %v95_v3 = vld [vmem:[%s12533_s0 + $0x8] sm:$0xff]  ;;  %v96_v5 = vld [vmem:[%s12533_s0 + $0x10] sm:$0xff] }
  0x16   :  { %7875 = vmatpush3.bf16.msra.mxu0 %v8202_v0  ;;  %v110_v4 = vpack.c.bf16 %v95_v3, %v94_v2  ;;  %v97_v6 = vld [vmem:[%s12533_s0 + $0x18] sm:$0xff]  ;;  %v98_v7 = vld [vmem:[%s12533_s0 + $0x20] sm:$0xff]  ;;  %v99_v8 = vld [vmem:[%s12533_s0 + $0x28] sm:$0xff] }
  0x17   :  { %7876 = vmatprep.subr.bf16.mxu0 %v8203_v1  ;;  %v111_v9 = vpack.c.bf16 %v97_v6, %v96_v5  ;;  %v112_v10 = vpack.c.bf16 %v99_v8, %v98_v7  ;;  %v8204_v11 = vld [vmem:[%s12534_s6 + $0xac] ss:$12 sps:$4 sm:$0xff]   ;;  %v8206_v12 = vld [vmem:[%s12534_s6 + $0xa8] ss:$12 sps:$4 sm:$0xff]   ;;  %v8207_v15 = vld [vmem:[%s12534_s6 + $0xb0] ss:$12 sps:$4 sm:$0xff]  }
  0x18   :  { %7878 = vmatprep.mubr.msk.bf16.mxu0 %vm141_vm0, %v110_v4  ;;  %v100_v13 = vld [vmem:[%s12533_s0 + $0x30] sm:$0xff]  ;;  %v101_v14 = vld [vmem:[%s12533_s0 + $0x38] sm:$0xff]  ;;  %v102_v16 = vld [vmem:[%s12533_s0 + $0x40] sm:$0xff]  ;;  %447 = vmatprep.subr.bf16.mxu1 %v8204_v11 }
  0x19   :  { %v103_v17 = vld [vmem:[%s12533_s0 + $0x48] sm:$0xff]  ;;  %v8208_v18 = vld [vmem:[%s12534_s6 + $0x94] ss:$12 sps:$4 sm:$0xff]   ;;  %v8210_v19 = vld [vmem:[%s12534_s6 + $0x90] ss:$12 sps:$4 sm:$0xff]   ;;  %448 = vmatpush1.bf16.msra.mxu1 %v8206_v12  ;;  %v113_v21 = vpack.c.bf16 %v101_v14, %v100_v13 }
  0x1a   :  { %7877 = vmatpush3.bf16.msra.mxu0 %v8203_v1  ;;  %v8211_v20 = vld [vmem:[%s12534_s6 + $0x98] ss:$12 sps:$4 sm:$0xff]   ;;  %449 = vmatprep.subr.bf16.mxu1 %v8208_v18  ;;  %v114_v22 = vpack.c.bf16 %v103_v17, %v102_v16  ;;  %v104_v23 = vld [vmem:[%s12533_s0 + $0x50] sm:$0xff]  ;;  %v107_v26 = vld [vmem:[%s12533_s0 + $0x68] sm:$0xff] }
  0x1b   :  { %7894 = vmatprep.subr.bf16.mxu0 %v8207_v15  ;;  %v105_v24 = vld [vmem:[%s12533_s0 + $0x58] sm:$0xff]  ;;  %v106_v25 = vld [vmem:[%s12533_s0 + $0x60] sm:$0xff]  ;;  %v108_v29 = vld [vmem:[%s12533_s0 + $0x70] sm:$0xff] }
  0x1c   :  { %v115_v27 = vpack.c.bf16 %v105_v24, %v104_v23  ;;  %v116_v28 = vpack.c.bf16 %v107_v26, %v106_v25  ;;  %v109_v30 = vld [vmem:[%s12533_s0 + $0x78] sm:$0xff]  ;;  %v8215_v34 = vld [vmem:[%s12534_s6 + $0x80] ss:$12 sps:$4 sm:$0xff]   ;;  %v8216_v35 = vld [vmem:[%s12534_s6 + $0x64] ss:$12 sps:$4 sm:$0xff]  }
  0x1d   :  { %7879 = vmatmul.mubr.msk.bf16.vlgmr.msra.gmra.mxu0 %vm141_vm0, %v111_v9  ;;  %450 = vmatpush1.bf16.msra.mxu1 %v8210_v19  ;;  %v117_v31 = vpack.c.bf16 %v109_v30, %v108_v29  ;;  %v8212_v32 = vld [vmem:[%s12534_s6 + $0x7c] ss:$12 sps:$4 sm:$0xff]   ;;  %v8214_v33 = vld [vmem:[%s12534_s6 + $0x78] ss:$12 sps:$4 sm:$0xff]   ;;  %v8218_v36 = vld [vmem:[%s12534_s6 + $0x60] ss:$12 sps:$4 sm:$0xff]  }
  0x1e   :  { %7882 = vmatprep.mubr.msk.bf16.mxu0 %vm141_vm0, %v112_v10  ;;  %7895 = vmatpush3.bf16.msra.mxu0 %v8207_v15  ;;  %v8219_v37 = vld [vmem:[%s12534_s6 + $0x68] ss:$12 sps:$4 sm:$0xff]   ;;  %v8220_v38 = vld [vmem:[%s12534_s6 + $0x4c] ss:$12 sps:$4 sm:$0xff]   ;;  %v8223_v40 = vld [vmem:[%s12534_s6 + $0x50] ss:$12 sps:$4 sm:$0xff]  }
  0x1f   :  { %7896 = vmatprep.subr.bf16.mxu0 %v8211_v20  ;;  %451 = vmatprep.subr.bf16.mxu1 %v8212_v32  ;;  %v8222_v39 = vld [vmem:[%s12534_s6 + $0x48] ss:$12 sps:$4 sm:$0xff]   ;;  %v8226_v42 = vld [vmem:[%s12534_s6 + $0x30] ss:$12 sps:$4 sm:$0xff]   ;;  %v8227_v43 = vld [vmem:[%s12534_s6 + $0x38] ss:$12 sps:$4 sm:$0xff]  }
  0x20   :  { %v8224_v41 = vld [vmem:[%s12534_s6 + $0x34] ss:$12 sps:$4 sm:$0xff]   ;;  %v8228_v44 = vld [vmem:[%s12534_s6 + $0x1c] ss:$12 sps:$4 sm:$0xff]   ;;  %v8230_v45 = vld [vmem:[%s12534_s6 + $0x18] ss:$12 sps:$4 sm:$0xff]  }
  0x21   :  { %452 = vmatpush1.bf16.msra.mxu1 %v8214_v33  ;;  %v8231_v46 = vld [vmem:[%s12534_s6 + $0x20] ss:$12 sps:$4 sm:$0xff]   ;;  %v8232_v47 = vld [vmem:[%s12534_s6 + $0x4] ss:$12 sps:$4 sm:$0xff]   ;;  %v8235_v49 = vld [vmem:[%s12534_s6 + $0x8] ss:$12 sps:$4 sm:$0xff]  }
  0x22   :  { %7897 = vmatpush3.bf16.msra.mxu0 %v8211_v20  ;;  %453 = vmatprep.subr.bf16.mxu1 %v8216_v35  ;;  %v8234_v48 = vld [vmem:[%s12534_s6] ss:$12 sps:$4 sm:$0xff]  }
  0x23   :  { %7898 = vmatprep.subr.bf16.mxu0 %v8215_v34 }
  0x25   :  { %7883 = vmatmul.mubr.msk.bf16.gmra.mxu0 %vm141_vm0, %v113_v21  ;;  %454 = vmatpush1.bf16.msra.mxu1 %v8218_v36 }
  0x26   :  { %7886 = vmatprep.mubr.msk.bf16.mxu0 %vm141_vm0, %v114_v22  ;;  %7899 = vmatpush3.bf16.msra.mxu0 %v8215_v34 }
  0x27   :  { %7900 = vmatprep.subr.bf16.mxu0 %v8219_v37  ;;  %455 = vmatprep.subr.bf16.mxu1 %v8220_v38 }
  0x29   :  { %456 = vmatpush1.bf16.msra.mxu1 %v8222_v39 }
  0x2a   :  { %7901 = vmatpush3.bf16.msra.mxu0 %v8219_v37  ;;  %457 = vmatprep.subr.bf16.mxu1 %v8224_v41 }
  0x2b   :  { %7902 = vmatprep.subr.bf16.mxu0 %v8223_v40 }
  0x2d   :  { %7887 = vmatmul.mubr.msk.bf16.gmra.mxu0 %vm141_vm0, %v115_v27  ;;  %458 = vmatpush1.bf16.msra.mxu1 %v8226_v42 }
  0x2e   :  { %7890 = vmatprep.mubr.msk.bf16.mxu0 %vm141_vm0, %v116_v28  ;;  %7903 = vmatpush3.bf16.msra.mxu0 %v8223_v40 }
  0x2f   :  { %7904 = vmatprep.subr.bf16.mxu0 %v8227_v43  ;;  %459 = vmatprep.subr.bf16.mxu1 %v8228_v44 }
  0x31   :  { %460 = vmatpush1.bf16.msra.mxu1 %v8230_v45 }
  0x32   :  { %7905 = vmatpush3.bf16.msra.mxu0 %v8227_v43  ;;  %461 = vmatprep.subr.bf16.mxu1 %v8232_v47 }
  0x33   :  { %7906 = vmatprep.subr.bf16.mxu0 %v8231_v46 }
  0x35   :  { %7891 = vmatmul.mubr.msk.bf16.gmra.mxu0 %vm141_vm0, %v117_v31  ;;  %462 = vmatpush1.bf16.msra.mxu1 %v8234_v48 }
  0x36   :  { %7907 = vmatpush3.bf16.msra.mxu0 %v8231_v46  ;;  %1210 = vmatprep.subr.bf16.mxu1 %v8238_v50 }
  0x37   :  { %7908 = vmatprep.subr.bf16.mxu0 %v8235_v49 }
  0x3a   :  { %7909 = vmatpush3.bf16.msra.mxu0 %v8235_v49 }
  0x3b   :  { %1253 = vmatprep.subr.bf16.mxu0 %v8241_v52 }
  0x3c   :  { %33 = vsyncpa [#allocation4], 0  ;;  %s12535_s2 = sld [smem:[#allocation87_spill]]  ;;  %v8236_v16 = vld [vmem:[%s12370_s15 + $0xa8] ss:$12 sps:$4 sm:$0xff]   ;;  %vm9148_vm9 = vmmov 0  }
  0x3d   :  { %v8239_v20 = vld [vmem:[%s12370_s15 + $0x228] ss:$12 sps:$4 sm:$0xff]   ;;  %v8242_v28 = vld [vmem:[%s12370_s15 + $0x90] ss:$12 sps:$4 sm:$0xff]   ;;  %v8248_v39 = vld [vmem:[%s12370_s15 + $0x78] ss:$12 sps:$4 sm:$0xff]  }
  0x3e   :  { %v8244_v21 = vld [vmem:[%s12370_s15 + $0x94] ss:$12 sps:$4 sm:$0xff]   ;;  %v8245_v31 = vld [vmem:[%s12370_s15 + $0x210] ss:$12 sps:$4 sm:$0xff]   ;;  %v8251_v43 = vld [vmem:[%s12370_s15 + $0x1f8] ss:$12 sps:$4 sm:$0xff]  }
  0x3f   :  { %v8247_v24 = vld [vmem:[%s12370_s15 + $0x214] ss:$12 sps:$4 sm:$0xff]   ;;  %v8250_v32 = vld [vmem:[%s12370_s15 + $0x7c] ss:$12 sps:$4 sm:$0xff]   ;;  %v8256_v44 = vld [vmem:[%s12370_s15 + $0x64] ss:$12 sps:$4 sm:$0xff]  }
  0x40   :  { %v8253_v35 = vld [vmem:[%s12370_s15 + $0x1fc] ss:$12 sps:$4 sm:$0xff]   ;;  %v8259_v45 = vld [vmem:[%s12370_s15 + $0x1e4] ss:$12 sps:$4 sm:$0xff]   ;;  %v8254_v47 = vld [vmem:[%s12370_s15 + $0x60] ss:$12 sps:$4 sm:$0xff]  }
  0x41   :  { %v8257_v49 = vld [vmem:[%s12370_s15 + $0x1e0] ss:$12 sps:$4 sm:$0xff]   ;;  %s12557_s5 = sld [smem:[#allocation83_spill]]  ;;  %vm2043_vm10 = vcmask 1041409   ;;  %vm3629_vm11 = vcmask 1043456   ;;  %vm3507_vm12 = vcmask 523264  }
  0x42   :  { %v9439_v54 = vld [vmem:[%s12535_s2] ss:$0 sm:$0xff]  ;;  %v8262_v50 = vld [vmem:[%s12370_s15 + $0x4c] ss:$12 sps:$4 sm:$0xff]   ;;  %s12624_s9 = sld [smem:[#allocation89_spill]]  ;;  %vm3616_vm13 = vcmask 64512  }
  0x43   :  { %s12649_s1 = sld [smem:[#allocation92_spill]]  ;;  %vm3945_vm14 = vcmask 130112   ;;  %vm3952_vm15 = vcmask 195712   ;;  %vm3959_vm0 = vcmask 261312  }
  0x44   :  { %s12652_s29 = sld [smem:[#allocation90_spill]] }
  0x45   :  { %s12662_s8 = sld [smem:[#allocation95_spill]] }
  0x46   :  { %s12674_s2 = sld [smem:[#allocation93_spill]] }
  0x47   :  { %s12687_s12 = sld [smem:[#allocation85_spill]] }
  0x48   :  { %s12709_s0 = sld [smem:[#allocation94_spill]] }
  0xdd   :  { %v7880_v53 = vpop.f32.mrf.mxu0 }
  0xde   :  { %v209_v59 = vadd.f32 %v7880_v53, %v9439_v54  ;;  %v8265_v53 = vld [vmem:[%s12370_s15 + $0x1cc] ss:$12 sps:$4 sm:$0xff]  }
  0xdf   :  { %v200_v55 = vpop.f32.mrf.mxu0 }
  0xe0   :  { %v201_v56 = vadd.f32 %v9439_v54, %v200_v55 }
  0xe1   :  { %v7881_v57 = vpop.f32.mrf.mxu0 }
  0xe2   :  { %v212_v58 = vadd.f32 %v7881_v57, %v9439_v54  ;;  %8548 = vtanh.f32 %v201_v56  ;;  %v8260_v56 = vld [vmem:[%s12370_s15 + $0x48] ss:$12 sps:$4 sm:$0xff]  }
  0xe3   :  { %v203_v60 = vpop.f32.mrf.mxu0 }
  0xe4   :  { %v204_v61 = vadd.f32 %v9439_v54, %v203_v60  ;;  %8550 = vtanh.f32 %v212_v58  ;;  %v8268_v60 = vld [vmem:[%s12370_s15 + $0x34] ss:$12 sps:$4 sm:$0xff]  }
  0xe5   :  { %v7884_v62 = vpop.f32.mrf.mxu0 }
  0xe6   :  { %8552 = vtanh.f32 %v204_v61  ;;  %v225_v63 = vadd.f32 %v7884_v62, %v9439_v54  ;;  %v8271_v61 = vld [vmem:[%s12370_s15 + $0x1b4] ss:$12 sps:$4 sm:$0xff]  }
  0xe7   :  { %8554 = vtanh.f32 %v209_v59  ;;  %v216_v0 = vpop.f32.mrf.mxu0  ;;  %v8263_v59 = vld [vmem:[%s12370_s15 + $0x1c8] ss:$12 sps:$4 sm:$0xff]  }
  0xe8   :  { %v217_v1 = vadd.f32 %v9439_v54, %v216_v0  ;;  %8556 = vtanh.f32 %v225_v63  ;;  %v8266_v0 = vld [vmem:[%s12370_s15 + $0x30] ss:$12 sps:$4 sm:$0xff]  }
  0xe9   :  { %v7885_v2 = vpop.f32.mrf.mxu0 }
  0xea   :  { %v228_v3 = vadd.f32 %v7885_v2, %v9439_v54  ;;  %8558 = vtanh.f32 %v217_v1  ;;  %v8269_v2 = vld [vmem:[%s12370_s15 + $0x1b0] ss:$12 sps:$4 sm:$0xff]  }
  0xeb   :  { %v219_v4 = vpop.f32.mrf.mxu0 }
  0xec   :  { %8560 = vtanh.f32 %v228_v3  ;;  %v220_v5 = vadd.f32 %v9439_v54, %v219_v4  ;;  %v8274_v3 = vld [vmem:[%s12370_s15 + $0x1c] ss:$12 sps:$4 sm:$0xff]  }
  0xed   :  { %v7888_v6 = vpop.f32.mrf.mxu0 }
  0xee   :  { %8562 = vtanh.f32 %v220_v5  ;;  %v241_v7 = vadd.f32 %v7888_v6, %v9439_v54  ;;  %v8277_v5 = vld [vmem:[%s12370_s15 + $0x19c] ss:$12 sps:$4 sm:$0xff]   ;;  %v9601_v6 = vld [vmem:[%s12557_s5] sm:$0xff] }
  0xef   :  { %v232_v8 = vpop.f32.mrf.mxu0  ;;  %v9451_v10 = vpop.eup %8548 }
  0xf0   :  { %v233_v9 = vadd.f32 %v9439_v54, %v232_v8  ;;  %12536 = vst [vmem:[#allocation6_spill] sm:$0xff] %v9451_v10  ;;  %8564 = vtanh.f32 %v241_v7  ;;  %v9606_v7 = vld [vmem:[%s12557_s5 + $0x8] sm:$0xff] }
  0xf1   :  { %v7889_v11 = vpop.f32.mrf.mxu0  ;;  %v9453_v12 = vpop.eup %8550 }
  0xf2   :  { %12537 = vst [vmem:[#allocation7_spill] sm:$0xff] %v9453_v12  ;;  %v244_v13 = vadd.f32 %v7889_v11, %v9439_v54  ;;  %8566 = vtanh.f32 %v233_v9  ;;  %v8272_v11 = vld [vmem:[%s12370_s15 + $0x18] ss:$12 sps:$4 sm:$0xff]  }
  0xf3   :  { %v9456_v14 = vpop.eup %8552  ;;  %v235_v15 = vpop.f32.mrf.mxu0 }
  0xf4   :  { %12538 = vst [vmem:[#allocation8_spill] sm:$0xff] %v9456_v14  ;;  %v9461_v17 = vpop.eup %8554  ;;  %8568 = vtanh.f32 %v244_v13  ;;  %v236_v18 = vadd.f32 %v9439_v54, %v235_v15  ;;  %v9466_v19 = vpack.c.bf16 %v9456_v14, %v9451_v10 }
  0xf5   :  { %12539 = vst [vmem:[#allocation9_spill] sm:$0xff] %v9461_v17  ;;  %v7892_v22 = vpop.f32.mrf.mxu0  ;;  %v9476_v23 = vpack.c.bf16 %v9453_v12, %v9461_v17  ;;  %v9484_v26 = vpop.eup %8556 }
  0xf6   :  { %12540 = vst [vmem:[#allocation10_spill] sm:$0xff] %v9466_v19  ;;  %8570 = vtanh.f32 %v236_v18  ;;  %v257_v25 = vadd.f32 %v7892_v22, %v9439_v54  ;;  %480 = vmatmul.mubr.bf16.vlgmr.msra.gmra.mxu1 %v9466_v19  ;;  %7910 = vmatprep.mubr.bf16.mxu0 %v9466_v19  ;;  %12542 = vst [vmem:[#allocation12_spill] sm:$0xff] %v9484_v26  ;;  %v8280_v18 = vld [vmem:[%s12370_s15 + $0x4] ss:$12 sps:$4 sm:$0xff]  }
  0xf7   :  { %12541 = vst [vmem:[#allocation11_spill] sm:$0xff] %v9476_v23  ;;  %1211 = vmatpush1.bf16.msra.mxu1 %v8236_v16  ;;  %v248_v27 = vpop.f32.mrf.mxu0  ;;  %7911 = vmatmul.mubr.bf16.vlgmr.msra.gmra.mxu0 %v9476_v23  ;;  %v9490_v29 = vpop.eup %8558  ;;  %v8275_v16 = vld [vmem:[%s12370_s15 + $0x198] ss:$12 sps:$4 sm:$0xff]  }
  0xf8   :  { %12543 = vst [vmem:[#allocation13_spill] sm:$0xff] %v9490_v29  ;;  %v249_v30 = vadd.f32 %v9439_v54, %v248_v27  ;;  %1254 = vmatpush1.bf16.msra.mxu0 %v8239_v20  ;;  %1212 = vmatprep.subr.bf16.mxu1 %v8244_v21  ;;  %8572 = vtanh.f32 %v257_v25  ;;  %v699_v20 = vrot.slane %v9601_v6, 1  ;;  %v700_v21 = vrot.slane %v9606_v7, 1  ;;  %v8283_v22 = vld [vmem:[%s12370_s15 + $0x184] ss:$12 sps:$4 sm:$0xff]  }
  0xf9   :  { %v9499_v33 = vpop.eup %8560  ;;  %v7893_v34 = vpop.f32.mrf.mxu0  ;;  %1255 = vmatprep.subr.bf16.mxu0 %v8247_v24  ;;  %489 = vmatprep.mubr.bf16.mxu1 %v12394_v51  ;;  %v8278_v27 = vld [vmem:[%s12370_s15] ss:$12 sps:$4 sm:$0xff]  }
  0xfa   :  { %12544 = vst [vmem:[#allocation14_spill] sm:$0xff] %v9499_v33  ;;  %v260_v36 = vadd.f32 %v7893_v34, %v9439_v54  ;;  %8574 = vtanh.f32 %v249_v30  ;;  %v9513_v40 = vpack.c.bf16 %v9499_v33, %v9484_v26  ;;  %v687_v30 = vrot.slane %v9606_v7, 7 }
  0xfb   :  { %v9506_v37 = vpop.eup %8562  ;;  %1213 = vmatpush1.bf16.msra.mxu1 %v8242_v28  ;;  %v251_v38 = vpop.f32.mrf.mxu0  ;;  %v686_v28 = vrot.slane %v9601_v6, 7 }
  0xfc   :  { %12545 = vst [vmem:[#allocation15_spill] sm:$0xff] %v9506_v37  ;;  %8576 = vtanh.f32 %v260_v36  ;;  %v252_v41 = vadd.f32 %v9439_v54, %v251_v38  ;;  %1256 = vmatpush1.bf16.msra.mxu0 %v8245_v31  ;;  %1214 = vmatprep.subr.bf16.mxu1 %v8250_v32  ;;  %v9518_v42 = vpack.c.bf16 %v9506_v37, %v9490_v29  ;;  %v12391_v54 = vlaneseq  ;;  %v8281_v31 = vld [vmem:[%s12370_s15 + $0x180] ss:$12 sps:$4 sm:$0xff]   ;;  %v8287_v36 = vld [vmem:[%s12370_s15 + $0x170] ss:$12 sps:$4 sm:$0xff]  }
  0xfd   :  { %1257 = vmatprep.subr.bf16.mxu0 %v8253_v35  ;;  %v9531_v46 = vpop.eup %8564  ;;  %v8286_v32 = vld [vmem:[%s12370_s15 + $0x16c] ss:$12 sps:$4 sm:$0xff]  }
  0xfe   :  { %12546 = vst [vmem:[#allocation16_spill] sm:$0xff] %v9518_v42  ;;  %8578 = vtanh.f32 %v252_v41  ;;  %490 = vmatmul.mubr.bf16.gmra.mxu1 %v9476_v23  ;;  %7914 = vmatprep.mubr.bf16.mxu0 %v9518_v42  ;;  %12547 = vst [vmem:[#allocation17_spill] sm:$0xff] %v9531_v46  ;;  %v9574_v62 = vshrl.u32 %v12391_v54, 7  ;;  %v8284_v41 = vld [vmem:[%s12370_s15 + $0x168] ss:$12 sps:$4 sm:$0xff]  }
  0xff   :  { %1215 = vmatpush1.bf16.msra.mxu1 %v8248_v39  ;;  %7915 = vmatmul.mubr.bf16.gmra.mxu0 %v9513_v40  ;;  %v9537_v48 = vpop.eup %8566  ;;  %v8370_v38 = vld [vmem:[%s12372_s17 + $0xac] ss:$16 sps:$4 sm:$0xff]   ;;  %v9931_v39 = vld [vmem:[%s12373_s18 + $0xa4] ss:$16 sps:$4 sm:$0xff]  }
 0x100   :  { %12548 = vst [vmem:[#allocation18_spill] sm:$0xff] %v9537_v48  ;;  %1258 = vmatpush1.bf16.msra.mxu0 %v8251_v43  ;;  %1216 = vmatprep.subr.bf16.mxu1 %v8256_v44  ;;  %12553 = vst [vmem:[#allocation23_spill] sm:$0xff] %v9574_v62  ;;  %v659_v8 = vadd.s32 8, %v9574_v62  ;;  %v664_v24 = vand.u32 7, %v9574_v62  ;;  %vm701_vm1 = vcmp.lt.s32.totalorder %v9574_v62, 7  ;;  %vm688_vm2 = vcmp.lt.s32.totalorder %v9574_v62, 1 }
 0x101   :  { %v9545_v52 = vpop.eup %8568  ;;  %1259 = vmatprep.subr.bf16.mxu0 %v8259_v45  ;;  %499 = vmatprep.mubr.bf16.mxu1 %v12394_v51  ;;  %v702_v34 = vsel %vm701_vm1, %v699_v20, %v700_v21  ;;  %v703_v35 = vsel %vm701_vm1, %v700_v21, %v699_v20  ;;  %v689_v44 = vsel %vm688_vm2, %v686_v28, %v687_v30  ;;  %v8306_v20 = vld [vmem:[%s12370_s15 + $0x10c] ss:$12 sps:$4 sm:$0xff]   ;;  %v8307_v21 = vld [vmem:[%s12370_s15 + $0x110] ss:$12 sps:$4 sm:$0xff]   ;;  %vm3966_vm1 = vcmask 326912  }
 0x102   :  { %12549 = vst [vmem:[#allocation19_spill] sm:$0xff] %v9545_v52  ;;  %v9558_v57 = vpack.c.bf16 %v9545_v52, %v9531_v46  ;;  %v671_v25 = vand.u32 7, %v659_v8  ;;  %vm9658_vm4 = vcmp.ne.s32.totalorder %v664_v24, 7  ;;  %v9666_v43 = vpack.c.bf16 %v703_v35, %v702_v34  ;;  %v8301_v8 = vld [vmem:[%s12370_s15 + $0x124] ss:$12 sps:$4 sm:$0xff]  }
 0x103   :  { %v9551_v55 = vpop.eup %8570  ;;  %1217 = vmatpush1.bf16.msra.mxu1 %v8254_v47  ;;  %v690_v45 = vsel %vm688_vm2, %v687_v30, %v686_v28  ;;  %v8288_v47 = vld [vmem:[%s12370_s15 + $0xb0] ss:$12 sps:$4 sm:$0xff]   ;;  %vm9682_vm7 = vcmp.ne.s32.totalorder %v664_v24, 0  ;;  %v8313_v30 = vld [vmem:[%s12370_s15 + $0x38] ss:$12 sps:$4 sm:$0xff]   ;;  %vm3973_vm2 = vcmask 392512  }
 0x104   :  { %12550 = vst [vmem:[#allocation20_spill] sm:$0xff] %v9551_v55  ;;  %12551 = vst [vmem:[#allocation21_spill] sm:$0xff] %v9558_v57  ;;  %1260 = vmatpush1.bf16.msra.mxu0 %v8257_v49  ;;  %1218 = vmatprep.subr.bf16.mxu1 %v8262_v50  ;;  %v9562_v58 = vpack.c.bf16 %v9551_v55, %v9537_v48  ;;  %vm9654_vm3 = vcmp.ne.s32.totalorder %v671_v25, 7  ;;  %v8291_v49 = vld [vmem:[%s12370_s15 + $0x154] ss:$12 sps:$4 sm:$0xff]   ;;  %vm9678_vm6 = vcmp.ne.s32.totalorder %v671_v25, 0 }
 0x105   :  { %1261 = vmatprep.subr.bf16.mxu0 %v8265_v53  ;;  %v9578_v63 = vpop.eup %8572  ;;  %vm7400_vm5 = vmpackc.low %vm9654_vm3, %vm9658_vm4  ;;  %v8308_v24 = vld [vmem:[%s12370_s15 + $0x50] ss:$12 sps:$4 sm:$0xff]   ;;  %v8311_v25 = vld [vmem:[%s12370_s15 + $0xf4] ss:$12 sps:$4 sm:$0xff]   ;;  %v12392_v53 = vmov 0.0   ;;  %vm3980_vm3 = vcmask 458112  }
 0x106   :  { %12552 = vst [vmem:[#allocation22_spill] sm:$0xff] %v9562_v58  ;;  %500 = vmatmul.mubr.bf16.gmra.mxu1 %v9518_v42  ;;  %7918 = vmatprep.mubr.bf16.mxu0 %v9562_v58  ;;  %12554 = vst [vmem:[#allocation24_spill] sm:$0xff] %v9578_v63  ;;  %v8309_v28 = vld [vmem:[%s12370_s15 + $0xf0] ss:$12 sps:$4 sm:$0xff]   ;;  %v8314_v34 = vld [vmem:[%s12370_s15 + $0xd8] ss:$12 sps:$4 sm:$0xff]  }
 0x107   :  { %1219 = vmatpush1.bf16.msra.mxu1 %v8260_v56  ;;  %7919 = vmatmul.mubr.bf16.gmra.mxu0 %v9558_v57  ;;  %v9584_v1 = vpop.eup %8574  ;;  %v8292_v56 = vld [vmem:[%s12370_s15 + $0x158] ss:$12 sps:$4 sm:$0xff]   ;;  %vm7395_vm8 = vmpackc.low %vm9678_vm6, %vm9682_vm7  ;;  %v8318_v35 = vld [vmem:[%s12370_s15 + $0x20] ss:$12 sps:$4 sm:$0xff]   ;;  %vm3987_vm4 = vcmask 523712   ;;  %vm3908_vm7 = vcmask 58368  }
 0x108   :  { %12555 = vst [vmem:[#allocation25_spill] sm:$0xff] %v9584_v1  ;;  %1262 = vmatpush1.bf16.msra.mxu0 %v8263_v59  ;;  %1220 = vmatprep.subr.bf16.mxu1 %v8268_v60  ;;  %v7396_v59 = vpack.c.bf16 %v689_v44, %v690_v45  ;;  %v8289_v60 = vld [vmem:[%s12370_s15 + $0x150] ss:$12 sps:$4 sm:$0xff]   ;;  %v8319_v44 = vld [vmem:[%s12370_s15 + $0xc0] ss:$12 sps:$4 sm:$0xff]  }
 0x109   :  { %v9592_v4 = vpop.eup %8576  ;;  %1263 = vmatprep.subr.bf16.mxu0 %v8271_v61  ;;  %509 = vmatprep.mubr.bf16.mxu1 %v12394_v51  ;;  %v8293_v61 = vld [vmem:[%s12370_s15 + $0x98] ss:$12 sps:$4 sm:$0xff]   ;;  %v8323_v45 = vld [vmem:[%s12370_s15 + $0x8] ss:$12 sps:$4 sm:$0xff]   ;;  %v8324_v50 = vld [vmem:[%s12370_s15 + $0x230] ss:$12 sps:$4 sm:$0xff]  }
 0x10a   :  { %12556 = vst [vmem:[#allocation26_spill] sm:$0xff] %v9592_v4  ;;  %v9616_v13 = vpack.c.bf16 %v9592_v4, %v9578_v63 }
 0x10b   :  { %v9609_v9 = vpop.eup %8578  ;;  %1221 = vmatpush1.bf16.msra.mxu1 %v8266_v0  ;;  %v8296_v0 = vld [vmem:[%s12370_s15 + $0x13c] ss:$12 sps:$4 sm:$0xff]  }
 0x10c   :  { %12558 = vst [vmem:[#allocation27_spill] sm:$0xff] %v9609_v9  ;;  %12559 = vst [vmem:[#allocation28_spill] sm:$0xff] %v9616_v13  ;;  %1264 = vmatpush1.bf16.msra.mxu0 %v8269_v2  ;;  %1222 = vmatprep.subr.bf16.mxu1 %v8274_v3  ;;  %v9620_v15 = vpack.c.bf16 %v9609_v9, %v9584_v1  ;;  %v8297_v2 = vld [vmem:[%s12370_s15 + $0x140] ss:$12 sps:$4 sm:$0xff]   ;;  %v8294_v3 = vld [vmem:[%s12370_s15 + $0x138] ss:$12 sps:$4 sm:$0xff]  }
 0x10d   :  { %1265 = vmatprep.subr.bf16.mxu0 %v8277_v5  ;;  %v8298_v5 = vld [vmem:[%s12370_s15 + $0x80] ss:$12 sps:$4 sm:$0xff]  }
 0x10e   :  { %12560 = vst [vmem:[#allocation29_spill] sm:$0xff] %v9620_v15  ;;  %510 = vmatmul.mubr.bf16.gmra.mxu1 %v9513_v40  ;;  %7922 = vmatprep.mubr.bf16.mxu0 %v9620_v15 }
 0x10f   :  { %1223 = vmatpush1.bf16.msra.mxu1 %v8272_v11  ;;  %7923 = vmatmul.mubr.bf16.gmra.mxu0 %v9616_v13  ;;  %v8302_v11 = vld [vmem:[%s12370_s15 + $0x128] ss:$12 sps:$4 sm:$0xff]  }
 0x110   :  { %1266 = vmatpush1.bf16.msra.mxu0 %v8275_v16  ;;  %1224 = vmatprep.subr.bf16.mxu1 %v8280_v18  ;;  %v8299_v16 = vld [vmem:[%s12370_s15 + $0x120] ss:$12 sps:$4 sm:$0xff]   ;;  %v8303_v18 = vld [vmem:[%s12370_s15 + $0x68] ss:$12 sps:$4 sm:$0xff]  }
 0x111   :  { %1267 = vmatprep.subr.bf16.mxu0 %v8283_v22  ;;  %519 = vmatprep.mubr.bf16.mxu1 %v12394_v51  ;;  %v8304_v22 = vld [vmem:[%s12370_s15 + $0x108] ss:$12 sps:$4 sm:$0xff]  }
 0x112   :  { %1285 = vmatprep.mubr.bf16.mxu0 %v12394_v51 }
 0x113   :  { %1225 = vmatpush1.bf16.msra.mxu1 %v8278_v27  ;;  %v8312_v27 = vld [vmem:[%s12370_s15 + $0xf8] ss:$12 sps:$4 sm:$0xff]  }
 0x114   :  { %1268 = vmatpush1.bf16.msra.mxu0 %v8281_v31  ;;  %1226 = vmatprep.subr.bf16.mxu1 %v8286_v32  ;;  %v8316_v31 = vld [vmem:[%s12370_s15 + $0xdc] ss:$12 sps:$4 sm:$0xff]   ;;  %v8317_v32 = vld [vmem:[%s12370_s15 + $0xe0] ss:$12 sps:$4 sm:$0xff]  }
 0x115   :  { %7691 = vmatprep.subr.bf16.mxu0 %v8287_v36  ;;  %v8321_v36 = vld [vmem:[%s12370_s15 + $0xc4] ss:$12 sps:$4 sm:$0xff]  }
 0x116   :  { %520 = vmatmul.mubr.bf16.gmra.mxu1 %v9562_v58 }
 0x117   :  { %1227 = vmatpush2.bf16.msra.mxu1 %v8284_v41  ;;  %7402 = vmatmul.mubr.msk.bf16.vlgmr.msra.gmra.mxu0 %vm7400_vm5, %v9666_v43  ;;  %v8322_v41 = vld [vmem:[%s12370_s15 + $0xc8] ss:$12 sps:$4 sm:$0xff]  }
 0x118   :  { %7692 = vmatpush3.bf16.msra.mxu0 %v8288_v47  ;;  %1228 = vmatprep.subr.bf16.mxu1 %v8291_v49  ;;  %v8327_v47 = vld [vmem:[%s12372_s17 + $0xe4] ss:$16 sps:$4 sm:$0xff]   ;;  %v9799_v49 = vpack.c.bf16 %v9606_v7, %v9601_v6  ;;  %v8329_v7 = vld [vmem:[%s12372_s17 + $0xc0] ss:$16 sps:$4 sm:$0xff]  }
 0x119   :  { %7693 = vmatprep.subr.bf16.mxu0 %v8292_v56  ;;  %529 = vmatprep.mubr.bf16.mxu1 %v12394_v51  ;;  %v8325_v56 = vld [vmem:[%s12372_s17 + $0xe0] ss:$16 sps:$4 sm:$0xff]   ;;  %v8328_v6 = vld [vmem:[%s12370_s15 + $0x218] ss:$12 sps:$4 sm:$0xff]  }
 0x11a   :  { %7407 = vmatprep.mubr.msk.bf16.mxu0 %vm7395_vm8, %v7396_v59  ;;  %12569 = vst [vmem:[#allocation30_spill] sm:$0xff] %v9799_v49 }
 0x11b   :  { %1229 = vmatpush2.bf16.msra.mxu1 %v8289_v60  ;;  %v8335_v60 = vld [vmem:[%s12372_s17 + $0xa4] ss:$16 sps:$4 sm:$0xff]  }
 0x11c   :  { %7694 = vmatpush3.bf16.msra.mxu0 %v8293_v61  ;;  %1230 = vmatprep.subr.bf16.mxu1 %v8296_v0  ;;  %v8332_v61 = vld [vmem:[%s12370_s15 + $0x200] ss:$12 sps:$4 sm:$0xff]  }
 0x11d   :  { %7695 = vmatprep.subr.bf16.mxu0 %v8297_v2  ;;  %v8333_v0 = vld [vmem:[%s12372_s17 + $0xa0] ss:$16 sps:$4 sm:$0xff]   ;;  %v8339_v2 = vld [vmem:[%s12372_s17 + $0x84] ss:$16 sps:$4 sm:$0xff]  }
 0x11e   :  { %530 = vmatmul.mubr.bf16.gmra.mxu1 %v9558_v57 }
 0x11f   :  { %1231 = vmatpush2.bf16.msra.mxu1 %v8294_v3  ;;  %539 = vmatprep.mubr.bf16.mxu1 %v12394_v51  ;;  %v8336_v3 = vld [vmem:[%s12370_s15 + $0x1e8] ss:$12 sps:$4 sm:$0xff]  }
 0x120   :  { %7696 = vmatpush3.bf16.msra.mxu0 %v8298_v5  ;;  %1232 = vmatprep.subr.bf16.mxu1 %v8301_v8  ;;  %v8337_v5 = vld [vmem:[%s12372_s17 + $0x80] ss:$16 sps:$4 sm:$0xff]   ;;  %v8343_v8 = vld [vmem:[%s12372_s17 + $0x64] ss:$16 sps:$4 sm:$0xff]  }
 0x121   :  { %7697 = vmatprep.subr.bf16.mxu0 %v8302_v11  ;;  %v8340_v11 = vld [vmem:[%s12370_s15 + $0x1d0] ss:$12 sps:$4 sm:$0xff]  }
 0x123   :  { %1233 = vmatpush2.bf16.msra.mxu1 %v8299_v16  ;;  %v8341_v16 = vld [vmem:[%s12372_s17 + $0x60] ss:$16 sps:$4 sm:$0xff]  }
 0x124   :  { %7698 = vmatpush3.bf16.msra.mxu0 %v8303_v18  ;;  %1234 = vmatprep.subr.bf16.mxu1 %v8306_v20  ;;  %v8347_v18 = vld [vmem:[%s12372_s17 + $0x44] ss:$16 sps:$4 sm:$0xff]  }
 0x125   :  { %7699 = vmatprep.subr.bf16.mxu0 %v8307_v21  ;;  %v8344_v20 = vld [vmem:[%s12370_s15 + $0x1b8] ss:$12 sps:$4 sm:$0xff]   ;;  %v8345_v21 = vld [vmem:[%s12372_s17 + $0x40] ss:$16 sps:$4 sm:$0xff]  }
 0x126   :  { %540 = vmatmul.mubr.bf16.gmra.mxu1 %v9620_v15 }
 0x127   :  { %1235 = vmatpush2.bf16.msra.mxu1 %v8304_v22  ;;  %549 = vmatprep.mubr.bf16.mxu1 %v12394_v51  ;;  %v8351_v22 = vld [vmem:[%s12372_s17 + $0x24] ss:$16 sps:$4 sm:$0xff]  }
 0x128   :  { %7700 = vmatpush3.bf16.msra.mxu0 %v8308_v24  ;;  %1236 = vmatprep.subr.bf16.mxu1 %v8311_v25  ;;  %v8348_v24 = vld [vmem:[%s12370_s15 + $0x1a0] ss:$12 sps:$4 sm:$0xff]  }
 0x129   :  { %7701 = vmatprep.subr.bf16.mxu0 %v8312_v27  ;;  %v8349_v25 = vld [vmem:[%s12372_s17 + $0x20] ss:$16 sps:$4 sm:$0xff]   ;;  %v8355_v27 = vld [vmem:[%s12372_s17 + $0x4] ss:$16 sps:$4 sm:$0xff]  }
 0x12b   :  { %1237 = vmatpush2.bf16.msra.mxu1 %v8309_v28  ;;  %v8352_v28 = vld [vmem:[%s12370_s15 + $0x188] ss:$12 sps:$4 sm:$0xff]  }
 0x12c   :  { %7702 = vmatpush3.bf16.msra.mxu0 %v8313_v30  ;;  %1238 = vmatprep.subr.bf16.mxu1 %v8316_v31  ;;  %v8353_v30 = vld [vmem:[%s12372_s17] ss:$16 sps:$4 sm:$0xff]   ;;  %v8358_v31 = vld [vmem:[%s12372_s17 + $0xec] ss:$16 sps:$4 sm:$0xff]  }
 0x12d   :  { %7703 = vmatprep.subr.bf16.mxu0 %v8317_v32  ;;  %v9889_v32 = vld [vmem:[%s12373_s18 + $0xe4] ss:$16 sps:$4 sm:$0xff]  }
 0x12e   :  { %550 = vmatmul.mubr.bf16.gmra.mxu1 %v9616_v13 }
 0x12f   :  { %1239 = vmatpush2.bf16.msra.mxu1 %v8314_v34  ;;  %7397 = vmatprep.mubr.msk.bf16.mxu1 %vm7395_vm8, %v7396_v59  ;;  %v8331_v59 = vld [vmem:[%s12372_s17 + $0xc4] ss:$16 sps:$4 sm:$0xff]   ;;  %v8356_v34 = vld [vmem:[%s12372_s17 + $0xe8] ss:$16 sps:$4 sm:$0xff]  }
 0x130   :  { %7704 = vmatpush3.bf16.msra.mxu0 %v8318_v35  ;;  %1240 = vmatprep.subr.bf16.mxu1 %v8321_v36  ;;  %v9897_v35 = vld [vmem:[%s12373_s18 + $0xe0] ss:$16 sps:$4 sm:$0xff]   ;;  %v8364_v36 = vld [vmem:[%s12372_s17 + $0xcc] ss:$16 sps:$4 sm:$0xff]  }
 0x131   :  { %7705 = vmatprep.subr.bf16.mxu0 %v8322_v41  ;;  %v9906_v41 = vld [vmem:[%s12373_s18 + $0xc4] ss:$16 sps:$4 sm:$0xff]  }
 0x133   :  { %1241 = vmatpush2.bf16.msra.mxu1 %v8319_v44  ;;  %v8362_v44 = vld [vmem:[%s12372_s17 + $0xc8] ss:$16 sps:$4 sm:$0xff]  }
 0x134   :  { %7706 = vmatpush3.bf16.msra.mxu0 %v8323_v45  ;;  %7926 = vmatprep.subr.bf16.mxu1 %v12392_v53  ;;  %v9922_v45 = vld [vmem:[%s12373_s18 + $0xc0] ss:$16 sps:$4 sm:$0xff]  }
 0x135   :  { %1634 = vmatprep.subr.bf16.mxu0 %v8327_v47  ;;  %v9942_v47 = vld [vmem:[%s12373_s18 + $0xa0] ss:$16 sps:$4 sm:$0xff]  }
 0x136   :  { %1243 = vmatmul.mubr.bf16.vlgmr.msra.gmra.mxu1 %v9799_v49 }
 0x137   :  { %7927 = vmatpush3.bf16.msra.mxu1 %v8324_v50  ;;  %1329 = vmatmul.mubr.bf16.vlgmr.msra.gmra.mxu0 %v9799_v49  ;;  %v8376_v50 = vld [vmem:[%s12372_s17 + $0x8c] ss:$16 sps:$4 sm:$0xff]  }
 0x138   :  { %1635 = vmatpush1.bf16.msra.mxu0 %v8325_v56  ;;  %7928 = vmatprep.subr.bf16.mxu1 %v12392_v53  ;;  %v9951_v56 = vld [vmem:[%s12373_s18 + $0x84] ss:$16 sps:$4 sm:$0xff]  }
 0x139   :  { %1636 = vmatprep.subr.bf16.mxu0 %v8331_v59  ;;  %7942 = vmatprep.mubr.msk.bf16.mxu1 %vm9148_vm9, %v12392_v53  ;;  %v8374_v59 = vld [vmem:[%s12372_s17 + $0x88] ss:$16 sps:$4 sm:$0xff]  }
 0x13a   :  { %1666 = vmatprep.mubr.bf16.mxu0 %v12394_v51 }
 0x13b   :  { %7929 = vmatpush3.bf16.msra.mxu1 %v8328_v6  ;;  %v9960_v6 = vld [vmem:[%s12373_s18 + $0x80] ss:$16 sps:$4 sm:$0xff]  }
 0x13c   :  { %1637 = vmatpush1.bf16.msra.mxu0 %v8329_v7  ;;  %7930 = vmatprep.subr.bf16.mxu1 %v12392_v53  ;;  %v8382_v7 = vld [vmem:[%s12372_s17 + $0x6c] ss:$16 sps:$4 sm:$0xff]  }
 0x13d   :  { %1638 = vmatprep.subr.bf16.mxu0 %v8335_v60  ;;  %v9969_v60 = vld [vmem:[%s12373_s18 + $0x64] ss:$16 sps:$4 sm:$0xff]  }
 0x13f   :  { %7931 = vmatpush3.bf16.msra.mxu1 %v8332_v61  ;;  %v8380_v61 = vld [vmem:[%s12372_s17 + $0x68] ss:$16 sps:$4 sm:$0xff]  }
 0x140   :  { %1639 = vmatpush1.bf16.msra.mxu0 %v8333_v0  ;;  %7932 = vmatprep.subr.bf16.mxu1 %v12392_v53  ;;  %v9978_v0 = vld [vmem:[%s12373_s18 + $0x60] ss:$16 sps:$4 sm:$0xff]  }
 0x141   :  { %1640 = vmatprep.subr.bf16.mxu0 %v8339_v2  ;;  %v8388_v2 = vld [vmem:[%s12372_s17 + $0x4c] ss:$16 sps:$4 sm:$0xff]  }
 0x143   :  { %7933 = vmatpush3.bf16.msra.mxu1 %v8336_v3  ;;  %v9987_v3 = vld [vmem:[%s12373_s18 + $0x44] ss:$16 sps:$4 sm:$0xff]  }
 0x144   :  { %1641 = vmatpush1.bf16.msra.mxu0 %v8337_v5  ;;  %7934 = vmatprep.subr.bf16.mxu1 %v12392_v53  ;;  %v8386_v5 = vld [vmem:[%s12372_s17 + $0x48] ss:$16 sps:$4 sm:$0xff]  }
 0x145   :  { %1642 = vmatprep.subr.bf16.mxu0 %v8343_v8  ;;  %v9996_v8 = vld [vmem:[%s12373_s18 + $0x40] ss:$16 sps:$4 sm:$0xff]  }
 0x147   :  { %7935 = vmatpush3.bf16.msra.mxu1 %v8340_v11  ;;  %v8394_v11 = vld [vmem:[%s12372_s17 + $0x2c] ss:$16 sps:$4 sm:$0xff]  }
 0x148   :  { %1643 = vmatpush1.bf16.msra.mxu0 %v8341_v16  ;;  %7936 = vmatprep.subr.bf16.mxu1 %v12392_v53  ;;  %v10005_v16 = vld [vmem:[%s12373_s18 + $0x24] ss:$16 sps:$4 sm:$0xff]  }
 0x149   :  { %1644 = vmatprep.subr.bf16.mxu0 %v8347_v18  ;;  %v8392_v18 = vld [vmem:[%s12372_s17 + $0x28] ss:$16 sps:$4 sm:$0xff]  }
 0x14b   :  { %7937 = vmatpush3.bf16.msra.mxu1 %v8344_v20  ;;  %v10014_v20 = vld [vmem:[%s12373_s18 + $0x20] ss:$16 sps:$4 sm:$0xff]  }
 0x14c   :  { %1645 = vmatpush1.bf16.msra.mxu0 %v8345_v21  ;;  %7938 = vmatprep.subr.bf16.mxu1 %v12392_v53  ;;  %v8400_v21 = vld [vmem:[%s12372_s17 + $0xc] ss:$16 sps:$4 sm:$0xff]  }
 0x14d   :  { %1646 = vmatprep.subr.bf16.mxu0 %v8351_v22  ;;  %v10023_v22 = vld [vmem:[%s12373_s18 + $0x4] ss:$16 sps:$4 sm:$0xff]  }
 0x14f   :  { %7939 = vmatpush3.bf16.msra.mxu1 %v8348_v24  ;;  %v8398_v24 = vld [vmem:[%s12372_s17 + $0x8] ss:$16 sps:$4 sm:$0xff]  }
 0x150   :  { %1647 = vmatpush1.bf16.msra.mxu0 %v8349_v25  ;;  %7940 = vmatprep.subr.bf16.mxu1 %v12392_v53  ;;  %v10032_v25 = vld [vmem:[%s12373_s18] ss:$16 sps:$4 sm:$0xff]  }
 0x151   :  { %1648 = vmatprep.subr.bf16.mxu0 %v8355_v27  ;;  %v10037_v27 = vld [vmem:[%s12373_s18 + $0xec] ss:$16 sps:$4 sm:$0xff]  }
 0x153   :  { %7941 = vmatpush3.bf16.msra.mxu1 %v8352_v28  ;;  %v10043_v28 = vld [vmem:[%s12373_s18 + $0xe8] ss:$16 sps:$4 sm:$0xff]  }
 0x154   :  { %1649 = vmatpush1.bf16.msra.mxu0 %v8353_v30  ;;  %1677 = vmatprep.subr.bf16.mxu1 %v8358_v31  ;;  %v10050_v30 = vld [vmem:[%s12373_s18 + $0xcc] ss:$16 sps:$4 sm:$0xff]   ;;  %v10059_v31 = vld [vmem:[%s12373_s18 + $0xc8] ss:$16 sps:$4 sm:$0xff]  }
 0x155   :  { %1880 = vmatprep.subr.bf16.mxu0 %v9889_v32 }
 0x156   :  { %7943 = vmatmul.mubr.msk.bf16.vlgmr.msra.gmra.mxu1 %vm7400_vm5, %v9666_v43  ;;  %v8368_v43 = vld [vmem:[%s12372_s17 + $0xa8] ss:$16 sps:$4 sm:$0xff]   ;;  %vm4030_vm5 = vcmask 517120  }
 0x157   :  { %1678 = vmatpush1.bf16.msra.mxu1 %v8356_v34  ;;  %1667 = vmatmul.mubr.bf16.vlgmr.msra.gmra.mxu0 %v9799_v49  ;;  %v10065_v34 = vld [vmem:[%s12373_s18 + $0xac] ss:$16 sps:$4 sm:$0xff]  }
 0x158   :  { %1881 = vmatpush1.bf16.msra.mxu0 %v9897_v35  ;;  %1679 = vmatprep.subr.bf16.mxu1 %v8364_v36  ;;  %v10075_v36 = vld [vmem:[%s12373_s18 + $0xa8] ss:$16 sps:$4 sm:$0xff]  }
 0x159   :  { %1882 = vmatprep.subr.bf16.mxu0 %v9906_v41  ;;  %1709 = vmatprep.mubr.bf16.mxu1 %v12394_v51 }
 0x15a   :  { %1912 = vmatprep.mubr.bf16.mxu0 %v12394_v51 }
 0x15b   :  { %1680 = vmatpush1.bf16.msra.mxu1 %v8362_v44  ;;  %v10081_v44 = vld [vmem:[%s12373_s18 + $0x8c] ss:$16 sps:$4 sm:$0xff]  }
 0x15c   :  { %1883 = vmatpush1.bf16.msra.mxu0 %v9922_v45  ;;  %1681 = vmatprep.subr.bf16.mxu1 %v8370_v38  ;;  %v10089_v38 = vld [vmem:[%s12373_s18 + $0x88] ss:$16 sps:$4 sm:$0xff]  }
 0x15d   :  { %1884 = vmatprep.subr.bf16.mxu0 %v9931_v39 }
 0x15f   :  { %1682 = vmatpush1.bf16.msra.mxu1 %v8368_v43  ;;  %v10095_v43 = vld [vmem:[%s12373_s18 + $0x6c] ss:$16 sps:$4 sm:$0xff]  }
 0x160   :  { %1885 = vmatpush1.bf16.msra.mxu0 %v9942_v47  ;;  %1683 = vmatprep.subr.bf16.mxu1 %v8376_v50  ;;  %v10103_v50 = vld [vmem:[%s12373_s18 + $0x68] ss:$16 sps:$4 sm:$0xff]  }
 0x161   :  { %1886 = vmatprep.subr.bf16.mxu0 %v9951_v56 }
 0x163   :  { %1684 = vmatpush1.bf16.msra.mxu1 %v8374_v59  ;;  %v10109_v59 = vld [vmem:[%s12373_s18 + $0x4c] ss:$16 sps:$4 sm:$0xff]  }
 0x164   :  { %1887 = vmatpush1.bf16.msra.mxu0 %v9960_v6  ;;  %1685 = vmatprep.subr.bf16.mxu1 %v8382_v7  ;;  %v10117_v7 = vld [vmem:[%s12373_s18 + $0x48] ss:$16 sps:$4 sm:$0xff]  }
 0x165   :  { %1888 = vmatprep.subr.bf16.mxu0 %v9969_v60 }
 0x167   :  { %1686 = vmatpush1.bf16.msra.mxu1 %v8380_v61  ;;  %v10123_v61 = vld [vmem:[%s12373_s18 + $0x2c] ss:$16 sps:$4 sm:$0xff]  }
 0x168   :  { %1889 = vmatpush1.bf16.msra.mxu0 %v9978_v0  ;;  %1687 = vmatprep.subr.bf16.mxu1 %v8388_v2  ;;  %v10131_v2 = vld [vmem:[%s12373_s18 + $0x28] ss:$16 sps:$4 sm:$0xff]  }
 0x169   :  { %1890 = vmatprep.subr.bf16.mxu0 %v9987_v3 }
 0x16b   :  { %1688 = vmatpush1.bf16.msra.mxu1 %v8386_v5  ;;  %v10137_v5 = vld [vmem:[%s12373_s18 + $0xc] ss:$16 sps:$4 sm:$0xff]  }
 0x16c   :  { %1891 = vmatpush1.bf16.msra.mxu0 %v9996_v8  ;;  %1689 = vmatprep.subr.bf16.mxu1 %v8394_v11  ;;  %v10145_v11 = vld [vmem:[%s12373_s18 + $0x8] ss:$16 sps:$4 sm:$0xff]  }
 0x16d   :  { %1892 = vmatprep.subr.bf16.mxu0 %v10005_v16 }
 0x16f   :  { %1690 = vmatpush1.bf16.msra.mxu1 %v8392_v18 }
 0x170   :  { %1893 = vmatpush1.bf16.msra.mxu0 %v10014_v20  ;;  %1691 = vmatprep.subr.bf16.mxu1 %v8400_v21 }
 0x171   :  { %1894 = vmatprep.subr.bf16.mxu0 %v10023_v22 }
 0x173   :  { %1692 = vmatpush1.bf16.msra.mxu1 %v8398_v24 }
 0x174   :  { %1895 = vmatpush1.bf16.msra.mxu0 %v10032_v25  ;;  %1921 = vmatprep.subr.bf16.mxu1 %v10037_v27 }
 0x175   :  { %2047 = vmatprep.subr.bf16.mxu0 %v9889_v32 }
 0x176   :  { %1710 = vmatmul.mubr.bf16.vlgmr.msra.gmra.mxu1 %v9799_v49 }
 0x177   :  { %1913 = vmatmul.mubr.bf16.vlgmr.msra.gmra.mxu0 %v12394_v51  ;;  %1922 = vmatpush1.bf16.msra.mxu1 %v10043_v28 }
 0x178   :  { %1923 = vmatprep.subr.bf16.mxu1 %v10050_v30  ;;  %1953 = vmatprep.mubr.bf16.mxu1 %v12394_v51 }
 0x179   :  { %2048 = vmatpush1.bf16.msra.mxu0 %v9897_v35  ;;  %2079 = vmatprep.mubr.bf16.mxu0 %v12394_v51 }
 0x17a   :  { %2049 = vmatprep.subr.bf16.mxu0 %v9906_v41 }
 0x17b   :  { %1924 = vmatpush1.bf16.msra.mxu1 %v10059_v31 }
 0x17c   :  { %1925 = vmatprep.subr.bf16.mxu1 %v10065_v34 }
 0x17d   :  { %2050 = vmatpush1.bf16.msra.mxu0 %v9922_v45 }
 0x17e   :  { %2051 = vmatprep.subr.bf16.mxu0 %v9931_v39 }
 0x17f   :  { %1926 = vmatpush1.bf16.msra.mxu1 %v10075_v36 }
 0x180   :  { %1927 = vmatprep.subr.bf16.mxu1 %v10081_v44 }
 0x181   :  { %2052 = vmatpush1.bf16.msra.mxu0 %v9942_v47 }
 0x182   :  { %2053 = vmatprep.subr.bf16.mxu0 %v9951_v56 }
 0x183   :  { %1928 = vmatpush1.bf16.msra.mxu1 %v10089_v38 }
 0x184   :  { %1929 = vmatprep.subr.bf16.mxu1 %v10095_v43 }
 0x185   :  { %2054 = vmatpush1.bf16.msra.mxu0 %v9960_v6 }
 0x186   :  { %2055 = vmatprep.subr.bf16.mxu0 %v9969_v60 }
 0x187   :  { %1930 = vmatpush1.bf16.msra.mxu1 %v10103_v50 }
 0x188   :  { %1931 = vmatprep.subr.bf16.mxu1 %v10109_v59 }
 0x189   :  { %2056 = vmatpush1.bf16.msra.mxu0 %v9978_v0 }
 0x18a   :  { %2057 = vmatprep.subr.bf16.mxu0 %v9987_v3 }
 0x18b   :  { %1932 = vmatpush1.bf16.msra.mxu1 %v10117_v7 }
 0x18c   :  { %1933 = vmatprep.subr.bf16.mxu1 %v10123_v61 }
 0x18d   :  { %2058 = vmatpush1.bf16.msra.mxu0 %v9996_v8 }
 0x18e   :  { %2059 = vmatprep.subr.bf16.mxu0 %v10005_v16 }
 0x18f   :  { %1934 = vmatpush1.bf16.msra.mxu1 %v10131_v2 }
 0x190   :  { %1935 = vmatprep.subr.bf16.mxu1 %v10137_v5 }
 0x191   :  { %2060 = vmatpush1.bf16.msra.mxu0 %v10014_v20 }
 0x192   :  { %2061 = vmatprep.subr.bf16.mxu0 %v10023_v22 }
 0x193   :  { %1936 = vmatpush1.bf16.msra.mxu1 %v10145_v11 }
 0x194   :  { %2088 = vmatprep.subr.bf16.mxu1 %v10037_v27 }
 0x195   :  { %2062 = vmatpush1.bf16.msra.mxu0 %v10032_v25 }
 0x196   :  { %1954 = vmatmul.mubr.bf16.vlgmr.msra.gmra.mxu1 %v12394_v51  ;;  %2219 = vmatprep.subr.bf16.mxu0 %v9889_v32 }
 0x197   :  { %2089 = vmatpush1.bf16.msra.mxu1 %v10043_v28  ;;  %2120 = vmatprep.mubr.bf16.mxu1 %v12394_v51 }
 0x198   :  { %2090 = vmatprep.subr.bf16.mxu1 %v10050_v30 }
 0x19b   :  { %2091 = vmatpush1.bf16.msra.mxu1 %v10059_v31 }
 0x19c   :  { %2092 = vmatprep.subr.bf16.mxu1 %v10065_v34 }
 0x19f   :  { %2093 = vmatpush1.bf16.msra.mxu1 %v10075_v36 }
 0x1a0   :  { %2094 = vmatprep.subr.bf16.mxu1 %v10081_v44 }
 0x1a3   :  { %2095 = vmatpush1.bf16.msra.mxu1 %v10089_v38 }
 0x1a4   :  { %2096 = vmatprep.subr.bf16.mxu1 %v10095_v43 }
 0x1a7   :  { %2097 = vmatpush1.bf16.msra.mxu1 %v10103_v50 }
 0x1a8   :  { %2098 = vmatprep.subr.bf16.mxu1 %v10109_v59 }
 0x1ab   :  { %2099 = vmatpush1.bf16.msra.mxu1 %v10117_v7 }
 0x1ac   :  { %2100 = vmatprep.subr.bf16.mxu1 %v10123_v61 }
 0x1af   :  { %2101 = vmatpush1.bf16.msra.mxu1 %v10131_v2 }
 0x1b0   :  { %2102 = vmatprep.subr.bf16.mxu1 %v10137_v5 }
 0x1b3   :  { %2103 = vmatpush1.bf16.msra.mxu1 %v10145_v11 }
 0x1b4   :  { %2260 = vmatprep.subr.bf16.mxu1 %v10037_v27 }
 0x1b6   :  { %v10172_v18 = vpop.f32.mrf.mxu1 }
 0x1b7   :  { %12570 = vst [vmem:[#allocation31_spill] sm:$0xff] %v10172_v18  ;;  %v10174_v21 = vpop.f32.mrf.mxu0 }
 0x1b8   :  { %12571 = vst [vmem:[#allocation32_spill] sm:$0xff] %v10174_v21  ;;  %v10176_v24 = vpop.f32.mrf.mxu1 }
 0x1b9   :  { %12572 = vst [vmem:[#allocation33_spill] sm:$0xff] %v10176_v24  ;;  %v10178_v54 = vpop.f32.mrf.mxu0 }
 0x1ba   :  { %12573 = vst [vmem:[#allocation34_spill] sm:$0xff] %v10178_v54  ;;  %v10180_v53 = vpop.f32.mrf.mxu1 }
 0x1bb   :  { %12574 = vst [vmem:[#allocation35_spill] sm:$0xff] %v10180_v53  ;;  %v10182_v51 = vpop.f32.mrf.mxu0 }
 0x1bc   :  { %12575 = vst [vmem:[#allocation36_spill] sm:$0xff] %v10182_v51  ;;  %v10184_v4 = vpop.f32.mrf.mxu1 }
 0x1bd   :  { %12576 = vst [vmem:[#allocation37_spill] sm:$0xff] %v10184_v4  ;;  %v10186_v63 = vpop.f32.mrf.mxu0 }
 0x1be   :  { %12577 = vst [vmem:[#allocation38_spill] sm:$0xff] %v10186_v63  ;;  %v10188_v9 = vpop.f32.mrf.mxu1 }
 0x1bf   :  { %12578 = vst [vmem:[#allocation39_spill] sm:$0xff] %v10188_v9  ;;  %v10190_v1 = vpop.f32.mrf.mxu0 }
 0x1c0   :  { %12579 = vst [vmem:[#allocation40_spill] sm:$0xff] %v10190_v1  ;;  %v10192_v33 = vpop.f32.mrf.mxu1 }
 0x1c1   :  { %12580 = vst [vmem:[#allocation41_spill] sm:$0xff] %v10192_v33  ;;  %v10194_v52 = vpop.f32.mrf.mxu0 }
 0x1c2   :  { %12581 = vst [vmem:[#allocation42_spill] sm:$0xff] %v10194_v52  ;;  %v10196_v46 = vpop.f32.mrf.mxu1 }
 0x1c3   :  { %12582 = vst [vmem:[#allocation43_spill] sm:$0xff] %v10196_v46  ;;  %v10198_v48 = vpop.f32.mrf.mxu0 }
 0x1c4   :  { %12583 = vst [vmem:[#allocation44_spill] sm:$0xff] %v10198_v48  ;;  %v10200_v26 = vpop.f32.mrf.mxu1 }
 0x1c5   :  { %12584 = vst [vmem:[#allocation45_spill] sm:$0xff] %v10200_v26  ;;  %v10204_v37 = vpop.f32.mrf.mxu0 }
 0x1c6   :  { %v10202_v55 = vpop.f32.mrf.mxu1  ;;  %12586 = vst [vmem:[#allocation47_spill] sm:$0xff] %v10204_v37 }
 0x1c7   :  { %12585 = vst [vmem:[#allocation46_spill] sm:$0xff] %v10202_v55  ;;  %v10210_v17 = vpop.f32.mrf.mxu0 }
 0x1c8   :  { %v10206_v29 = vpop.f32.mrf.mxu1  ;;  %12589 = vst [vmem:[#allocation50_spill] sm:$0xff] %v10210_v17 }
 0x1c9   :  { %12587 = vst [vmem:[#allocation48_spill] sm:$0xff] %v10206_v29  ;;  %v10216_v63 = vpop.f32.mrf.mxu0 }
 0x1ca   :  { %v10208_v12 = vpop.f32.mrf.mxu1  ;;  %12592 = vst [vmem:[#allocation53_spill] sm:$0xff] %v10216_v63 }
 0x1cb   :  { %12588 = vst [vmem:[#allocation49_spill] sm:$0xff] %v10208_v12  ;;  %v10222_v21 = vpop.f32.mrf.mxu0 }
 0x1cc   :  { %v10212_v14 = vpop.f32.mrf.mxu1  ;;  %12595 = vst [vmem:[#allocation56_spill] sm:$0xff] %v10222_v21 }
 0x1cd   :  { %12590 = vst [vmem:[#allocation51_spill] sm:$0xff] %v10212_v14  ;;  %v10228_v48 = vpop.f32.mrf.mxu0 }
 0x1ce   :  { %v10214_v10 = vpop.f32.mrf.mxu1  ;;  %12598 = vst [vmem:[#allocation59_spill] sm:$0xff] %v10228_v48 }
 0x1cf   :  { %12591 = vst [vmem:[#allocation52_spill] sm:$0xff] %v10214_v10  ;;  %v10234_v4 = vpop.f32.mrf.mxu0 }
 0x1d0   :  { %v10218_v54 = vpop.f32.mrf.mxu1  ;;  %12601 = vst [vmem:[#allocation62_spill] sm:$0xff] %v10234_v4 }
 0x1d1   :  { %12593 = vst [vmem:[#allocation54_spill] sm:$0xff] %v10218_v54  ;;  %v10240_v26 = vpop.f32.mrf.mxu0 }
 0x1d2   :  { %v10220_v51 = vpop.f32.mrf.mxu1  ;;  %12604 = vst [vmem:[#allocation65_spill] sm:$0xff] %v10240_v26 }
 0x1d3   :  { %12594 = vst [vmem:[#allocation55_spill] sm:$0xff] %v10220_v51  ;;  %v10246_v14 = vpop.f32.mrf.mxu0 }
 0x1d4   :  { %v10224_v52 = vpop.f32.mrf.mxu1  ;;  %12607 = vst [vmem:[#allocation68_spill] sm:$0xff] %v10246_v14 }
 0x1d5   :  { %12596 = vst [vmem:[#allocation57_spill] sm:$0xff] %v10224_v52 }
 0x1d6   :  { %v10226_v37 = vpop.f32.mrf.mxu1 }
 0x1d7   :  { %12597 = vst [vmem:[#allocation58_spill] sm:$0xff] %v10226_v37 }
 0x1d8   :  { %v10230_v1 = vpop.f32.mrf.mxu1 }
 0x1d9   :  { %12599 = vst [vmem:[#allocation60_spill] sm:$0xff] %v10230_v1  ;;  %v10252_v1 = vpop.f32.mrf.mxu0 }
 0x1da   :  { %v10232_v17 = vpop.f32.mrf.mxu1  ;;  %12610 = vst [vmem:[#allocation71_spill] sm:$0xff] %v10252_v1 }
 0x1db   :  { %12600 = vst [vmem:[#allocation61_spill] sm:$0xff] %v10232_v17  ;;  %v1287_v4 = vpop.f32.mrf.mxu0 }
 0x1dc   :  { %v10236_v24 = vpop.f32.mrf.mxu1 }
 0x1dd   :  { %12602 = vst [vmem:[#allocation63_spill] sm:$0xff] %v10236_v24  ;;  %v1289_v26 = vpop.f32.mrf.mxu0 }
 0x1de   :  { %v10238_v63 = vpop.f32.mrf.mxu1 }
 0x1df   :  { %12603 = vst [vmem:[#allocation64_spill] sm:$0xff] %v10238_v63  ;;  %v1291_v1 = vpop.f32.mrf.mxu0  ;;  %v821_v63 = vsub.s32 2, %v9574_v62 }
 0x1e0   :  { %v10242_v33 = vpop.f32.mrf.mxu1 }
 0x1e1   :  { %12605 = vst [vmem:[#allocation66_spill] sm:$0xff] %v10242_v33  ;;  %v10263_v33 = vsub.s32 0, %v9574_v62  ;;  %v1293_v53 = vpop.f32.mrf.mxu0 }
 0x1e2   :  { %v10244_v21 = vpop.f32.mrf.mxu1 }
 0x1e3   :  { %12606 = vst [vmem:[#allocation67_spill] sm:$0xff] %v10244_v21  ;;  %12615 = vst [vmem:[#allocation76_spill] sm:$0xff] %v10263_v33 }
 0x1e4   :  { %v10248_v29 = vpop.f32.mrf.mxu1 }
 0x1e5   :  { %12608 = vst [vmem:[#allocation69_spill] sm:$0xff] %v10248_v29  ;;  %v809_v29 = vld [vmem:[%s12371_s16] sm:$0x7] }
 0x1e6   :  { %v10250_v48 = vpop.f32.mrf.mxu1  ;;  %v822_v9 = vrot.slane %v809_v29, %v821_v63 }
 0x1e7   :  { %12609 = vst [vmem:[#allocation70_spill] sm:$0xff] %v10250_v48 }
 0x1e8   :  { %v10254_v52 = vpop.f32.mrf.mxu1 }
 0x1e9   :  { %12611 = vst [vmem:[#allocation72_spill] sm:$0xff] %v10254_v52  ;;  %v10271_v52 = vsub.s32 1, %v9574_v62 }
 0x1ea   :  { %v10256_v24 = vpop.f32.mrf.mxu1 }
 0x1eb   :  { %12612 = vst [vmem:[#allocation73_spill] sm:$0xff] %v10256_v24  ;;  %12617 = vst [vmem:[#allocation78_spill] sm:$0xff] %v10271_v52  ;;  %v818_v18 = vrot.slane %v809_v29, %v10271_v52 }
 0x1ec   :  { %v10258_v54 = vpop.f32.mrf.mxu1 }
 0x1ed   :  { %12613 = vst [vmem:[#allocation74_spill] sm:$0xff] %v10258_v54  ;;  %v814_v54 = vrot.slane %v809_v29, %v10263_v33 }
 0x1ee   :  { %v10260_v17 = vpop.f32.mrf.mxu1 }
 0x1ef   :  { %12614 = vst [vmem:[#allocation75_spill] sm:$0xff] %v10260_v17 }
 0x1f0   :  { %v10265_v14 = vpop.f32.mrf.mxu1 }
 0x1f1   :  { %12616 = vst [vmem:[#allocation77_spill] sm:$0xff] %v10265_v14 }
 0x1f2   :  { %v10273_v37 = vpop.f32.mrf.mxu1 }
 0x1f3   :  { %12618 = vst [vmem:[#allocation79_spill] sm:$0xff] %v10273_v37 }
 0x1f4   :  { %v10276_v21 = vpop.f32.mrf.mxu1 }
 0x1f5   :  { %12619 = vst [vmem:[#allocation80_spill] sm:$0xff] %v10276_v21 }
 0x1f6   :  { %v1244_v14 = vpop.f32.mrf.mxu1 }
 0x1f7   :  { %v1245_v24 = vadd.f32 %v1244_v14, %v814_v54  ;;  %v7707_v48 = vpop.f32.mrf.mxu0 }
 0x1f8   :  { %v1246_v46 = vpop.f32.mrf.mxu1 }
 0x1f9   :  { %v1288_v17 = vadd.f32 %v1287_v4, %v1245_v24  ;;  %v1247_v12 = vadd.f32 %v1246_v46, %v818_v18  ;;  %v7708_v55 = vpop.f32.mrf.mxu0 }
 0x1fa   :  { %v1248_v37 = vpop.f32.mrf.mxu1  ;;  %v7709_v51 = vadd.f32 %v7708_v55, %v7707_v48 }
 0x1fb   :  { %v1290_v10 = vadd.f32 %v1289_v26, %v1247_v12  ;;  %v1249_v58 = vadd.f32 %v1248_v37, %v814_v54  ;;  %v7710_v21 = vpop.f32.mrf.mxu0  ;;  %8580 = vtanh.f32 %v1288_v17 }
 0x1fc   :  { %v1250_v57 = vpop.f32.mrf.mxu1  ;;  %v1331_v15 = vadd.f32 %v7709_v51, %v822_v9 }
 0x1fd   :  { %8582 = vtanh.f32 %v1290_v10  ;;  %v1292_v13 = vadd.f32 %v1291_v1, %v1249_v58  ;;  %v1251_v49 = vadd.f32 %v1250_v57, %v818_v18  ;;  %v7711_v14 = vpop.f32.mrf.mxu0 }
 0x1fe   :  { %v7712_v19 = vadd.f32 %v7711_v14, %v7710_v21 }
 0x1ff   :  { %v1294_v23 = vadd.f32 %v1293_v53, %v1251_v49  ;;  %8584 = vtanh.f32 %v1292_v13 }
 0x200   :  { %v1334_v42 = vadd.f32 %v7712_v19, %v822_v9  ;;  %v1452_v9 = vld [vmem:[%s12374_s19] sm:$0xf] }
 0x201   :  { %8586 = vtanh.f32 %v1294_v23  ;;  %v1461_v49 = vrot.slane %v1452_v9, %v10271_v52 }
 0x208   :  { %v8581_v29 = vpop.eup %8580 }
 0x20a   :  { %v8583_v46 = vpop.eup %8582 }
 0x20b   :  { %v1384_v4 = vmax.f32 %v8581_v29, %v8583_v46 }
 0x20c   :  { %v8585_v24 = vpop.eup %8584 }
 0x20e   :  { %v8587_v48 = vpop.eup %8586 }
 0x20f   :  { %v1385_v12 = vmax.f32 %v8585_v24, %v8587_v48 }
 0x216   :  { %v1371_v26 = vpop.f32.mrf.mxu1 }
 0x217   :  { %v1372_v37 = vadd.f32 %v1371_v26, %v1331_v15  ;;  %v1668_v58 = vpop.f32.mrf.mxu0  ;;  %v1457_v15 = vrot.slane %v1452_v9, %v10263_v33 }
 0x218   :  { %v7944_v17 = vpop.f32.mrf.mxu1 }
 0x219   :  { %8588 = vtanh.f32 %v1372_v37  ;;  %v1670_v1 = vpop.f32.mrf.mxu0  ;;  %v10291_v18 = vadd.f32 %v1668_v58, %v1457_v15 }
 0x21a   :  { %v1374_v51 = vpop.f32.mrf.mxu1  ;;  %v10293_v21 = vadd.f32 %v1670_v1, %v1461_v49 }
 0x21b   :  { %v1375_v10 = vadd.f32 %v1374_v51, %v1334_v42  ;;  %v1672_v13 = vpop.f32.mrf.mxu0 }
 0x21c   :  { %v7945_v54 = vpop.f32.mrf.mxu1  ;;  %v10299_v26 = vadd.f32 %v1672_v13, %v1457_v15 }
 0x21d   :  { %8590 = vtanh.f32 %v1375_v10  ;;  %v1674_v42 = vpop.f32.mrf.mxu0 }
 0x21e   :  { %v10295_v29 = vadd.f32 %v1674_v42, %v1461_v49  ;;  %v1468_v49 = vsub.s32 3, %v9574_v62 }
 0x226   :  { %v8589_v55 = vpop.eup %8588 }
 0x227   :  { %v10282_v57 = vmax.f32 %v1384_v4, %v8589_v55 }
 0x229   :  { %12620 = vst [vmem:[#allocation81_spill] sm:$0xff] %v10282_v57 }
 0x22a   :  { %v8591_v19 = vpop.eup %8590 }
 0x22b   :  { %v10284_v23 = vmax.f32 %v1385_v12, %v8591_v19 }
 0x22d   :  { %12621 = vst [vmem:[#allocation82_spill] sm:$0xff] %v10284_v23 }
 0x236   :  { %v1711_v19 = vpop.f32.mrf.mxu1 }
 0x237   :  { %v1914_v53 = vpop.f32.mrf.mxu0 }
 0x238   :  { %v1966_v46 = vrot.slane %v1914_v53, 1  ;;  %v1978_v4 = vadd.f32 %v1914_v53, %v10291_v18  ;;  %v1713_v1 = vpop.f32.mrf.mxu1 }
 0x239   :  { %v1916_v14 = vpop.f32.mrf.mxu0 }
 0x23a   :  { %v1967_v24 = vrot.slane %v1916_v14, 1  ;;  %v1979_v48 = vadd.f32 %v1916_v14, %v10293_v21  ;;  %v1982_v51 = vadd.f32 %v1966_v46, %v10299_v26  ;;  %v7477_v10 = vmul.f32 -1.442695, %v1978_v4  ;;  %v1715_v15 = vpop.f32.mrf.mxu1 }
 0x23b   :  { %v1918_v12 = vpop.f32.mrf.mxu0  ;;  %v1465_v14 = vrot.slane %v1452_v9, %v821_v63  ;;  %v1469_v4 = vrot.slane %v1452_v9, %v1468_v49 }
 0x23c   :  { %v1983_v37 = vadd.f32 %v1967_v24, %v10295_v29  ;;  %v7479_v54 = vmul.f32 -1.442695, %v1979_v48  ;;  %8592 = vpow2.f32 %v7477_v10  ;;  %v7478_v58 = vmul.f32 -1.442695, %v1982_v51 }
 0x23d   :  { %v1919_v17 = vpop.f32.mrf.mxu0  ;;  %v10308_v10 = vadd.f32 %v1713_v1, %v1469_v4 }
 0x23e   :  { %v7480_v55 = vmul.f32 -1.442695, %v1983_v37  ;;  %8594 = vpow2.f32 %v7479_v54  ;;  %v1717_v37 = vpop.f32.mrf.mxu1  ;;  %v10306_v17 = vadd.f32 %v1711_v19, %v1465_v14 }
 0x23f   :  { %v10313_v63 = vadd.f32 %v1717_v37, %v1469_v4 }
 0x240   :  { %8596 = vpow2.f32 %v7480_v55  ;;  %v10310_v55 = vadd.f32 %v1715_v15, %v1465_v14 }
 0x241   :  { %8598 = vpow2.f32 %v7478_v58 }
 0x249   :  { %v8593_v42 = vpop.eup %8592 }
 0x24a   :  { %v1992_v46 = vadd.f32 1.0, %v8593_v42 }
 0x24b   :  { %v8595_v13 = vpop.eup %8594 }
 0x24c   :  { %v2004_v48 = vadd.f32 1.0, %v8595_v13  ;;  %8600 = vrcp.f32 %v1992_v46 }
 0x24d   :  { %v8597_v53 = vpop.eup %8596 }
 0x24e   :  { %v8599_v24 = vpop.eup %8598  ;;  %v2005_v12 = vadd.f32 1.0, %v8597_v53  ;;  %8602 = vrcp.f32 %v2004_v48 }
 0x24f   :  { %v1993_v51 = vadd.f32 1.0, %v8599_v24 }
 0x250   :  { %8604 = vrcp.f32 %v2005_v12 }
 0x256   :  { %v1955_v54 = vpop.f32.mrf.mxu1 }
 0x257   :  { %v1968_v58 = vrot.slane %v1955_v54, 1  ;;  %v1980_v52 = vadd.f32 %v1955_v54, %v10306_v17 }
 0x258   :  { %v1957_v9 = vpop.f32.mrf.mxu1 }
 0x259   :  { %v1984_v49 = vadd.f32 %v1968_v58, %v10310_v55  ;;  %8606 = vtanh.f32 %v1980_v52  ;;  %v1969_v19 = vrot.slane %v1957_v9, 1  ;;  %v1981_v42 = vadd.f32 %v1957_v9, %v10308_v10  ;;  %v8601_v46 = vpop.eup %8600 }
 0x25a   :  { %8608 = vrcp.f32 %v1993_v51  ;;  %v1959_v1 = vpop.f32.mrf.mxu1 }
 0x25b   :  { %8610 = vtanh.f32 %v1984_v49  ;;  %v1985_v13 = vadd.f32 %v1969_v19, %v10313_v63  ;;  %v7481_v15 = vmul.f32 -1.442695, %v1981_v42  ;;  %v8603_v4 = vpop.eup %8602 }
 0x25c   :  { %v1960_v53 = vpop.f32.mrf.mxu1  ;;  %v2024_v37 = vmul.f32 0.0, %v8603_v4 }
 0x25d   :  { %8612 = vpow2.f32 %v7481_v15  ;;  %v7482_v14 = vmul.f32 -1.442695, %v1985_v13  ;;  %v8605_v24 = vpop.eup %8604 }
 0x25e   :  { %v2025_v58 = vmul.f32 0.0, %v8605_v24 }
 0x25f   :  { %8614 = vpow2.f32 %v7482_v14 }
 0x266   :  { %v8607_v48 = vpop.eup %8606 }
 0x267   :  { %v8609_v12 = vpop.eup %8608  ;;  %v2026_v52 = vmul.f32 %v8607_v48, %v8601_v46 }
 0x268   :  { %v8611_v54 = vpop.eup %8610 }
 0x269   :  { %v2027_v9 = vmul.f32 %v8611_v54, %v8609_v12  ;;  %v10318_v51 = vadd.f32 %v2026_v52, %v2024_v37 }
 0x26a   :  { %v8613_v49 = vpop.eup %8612 }
 0x26b   :  { %v10320_v1 = vadd.f32 %v2027_v9, %v2025_v58  ;;  %v2018_v19 = vadd.f32 1.0, %v8613_v49  ;;  %8616 = vtanh.f32 %v10318_v51  ;;  %v12622_v49 = vmov 0  }
 0x26c   :  { %v8615_v42 = vpop.eup %8614 }
 0x26d   :  { %8618 = vtanh.f32 %v10320_v1  ;;  %v2019_v13 = vadd.f32 1.0, %v8615_v42 }
 0x26e   :  { %8620 = vrcp.f32 %v2018_v19 }
 0x26f   :  { %8622 = vrcp.f32 %v2019_v13 }
 0x278   :  { %v8617_v15 = vpop.eup %8616 }
 0x27a   :  { %v8619_v53 = vpop.eup %8618 }
 0x27b   :  { %v8621_v14 = vpop.eup %8620 }
 0x27c   :  { %v8623_v46 = vpop.eup %8622  ;;  %v2032_v4 = vmul.f32 %v8621_v14, %v8617_v15 }
 0x27d   :  { %v2033_v24 = vmul.f32 %v8623_v46, %v8619_v53 }
 0x27e   :  { %2034 = vst [vmem:[#allocation2] sm:$0x1] %v2032_v4  ;;  %v2036_v48 = vpack.c.bf16 %v2032_v4, %v2032_v4 }
 0x27f   :  { %2035 = vst [vmem:[#allocation2 + $0x8] sm:$0x1] %v2033_v24  ;;  %v2037_v12 = vpack.c.bf16 %v2033_v24, %v2033_v24 }
 0x280   :  { %v2040_v52 = vunpack.c.l.b16 %v2036_v48 }
 0x281   :  { %v2041_v37 = vunpack.c.l.b16 %v2037_v12 }
 0x283   :  { %v2042_v54 = vrot.slane %v2041_v37, 7 }
 0x285   :  { %v2044_v58 = vsel %vm2043_vm10, %v2042_v54, %v2040_v52 }
 0x286   :  { %v2045_v9 = vpack.c.b16 %v2044_v58, %v2044_v58 }
 0x288   :  { %2080 = vmatmul.mubr.bf16.vlgmr.msra.gmra.mxu0 %v2045_v9  ;;  %2121 = vmatmul.mubr.bf16.vlgmr.msra.gmra.mxu1 %v2045_v9 }
 0x289   :  { %2220 = vmatpush1.bf16.msra.mxu0 %v9897_v35  ;;  %2261 = vmatpush1.bf16.msra.mxu1 %v10043_v28 }
 0x28a   :  { %2221 = vmatprep.subr.bf16.mxu0 %v9906_v41  ;;  %2262 = vmatprep.subr.bf16.mxu1 %v10050_v30 }
 0x28b   :  { %2251 = vmatprep.mubr.bf16.mxu0 %v12622_v49  ;;  %2292 = vmatprep.mubr.bf16.mxu1 %v12622_v49 }
 0x28d   :  { %2222 = vmatpush1.bf16.msra.mxu0 %v9922_v45  ;;  %2263 = vmatpush1.bf16.msra.mxu1 %v10059_v31 }
 0x28e   :  { %2223 = vmatprep.subr.bf16.mxu0 %v9931_v39  ;;  %2264 = vmatprep.subr.bf16.mxu1 %v10065_v34 }
 0x291   :  { %2224 = vmatpush1.bf16.msra.mxu0 %v9942_v47  ;;  %2265 = vmatpush1.bf16.msra.mxu1 %v10075_v36 }
 0x292   :  { %2225 = vmatprep.subr.bf16.mxu0 %v9951_v56  ;;  %2266 = vmatprep.subr.bf16.mxu1 %v10081_v44 }
 0x295   :  { %2226 = vmatpush1.bf16.msra.mxu0 %v9960_v6  ;;  %2267 = vmatpush1.bf16.msra.mxu1 %v10089_v38 }
 0x296   :  { %2227 = vmatprep.subr.bf16.mxu0 %v9969_v60  ;;  %2268 = vmatprep.subr.bf16.mxu1 %v10095_v43 }
 0x299   :  { %2228 = vmatpush1.bf16.msra.mxu0 %v9978_v0  ;;  %2269 = vmatpush1.bf16.msra.mxu1 %v10103_v50 }
 0x29a   :  { %2229 = vmatprep.subr.bf16.mxu0 %v9987_v3  ;;  %2270 = vmatprep.subr.bf16.mxu1 %v10109_v59 }
 0x29d   :  { %2230 = vmatpush1.bf16.msra.mxu0 %v9996_v8  ;;  %2271 = vmatpush1.bf16.msra.mxu1 %v10117_v7 }
 0x29e   :  { %2231 = vmatprep.subr.bf16.mxu0 %v10005_v16  ;;  %2272 = vmatprep.subr.bf16.mxu1 %v10123_v61 }
 0x2a1   :  { %2232 = vmatpush1.bf16.msra.mxu0 %v10014_v20  ;;  %2273 = vmatpush1.bf16.msra.mxu1 %v10131_v2 }
 0x2a2   :  { %2233 = vmatprep.subr.bf16.mxu0 %v10023_v22  ;;  %2274 = vmatprep.subr.bf16.mxu1 %v10137_v5 }
 0x2a5   :  { %2234 = vmatpush1.bf16.msra.mxu0 %v10032_v25  ;;  %2275 = vmatpush1.bf16.msra.mxu1 %v10145_v11 }
 0x2a6   :  { %2396 = vmatprep.subr.bf16.mxu0 %v9889_v32  ;;  %2437 = vmatprep.subr.bf16.mxu1 %v10037_v27 }
 0x348   :  { %v2081_v19 = vpop.f32.mrf.mxu0  ;;  %v2122_v42 = vpop.f32.mrf.mxu1 }
 0x349   :  { %v2133_v13 = vrot.slane %v2081_v19, 7  ;;  %v2149_v15 = vadd.f32 %v2081_v19, %v10299_v26 }
 0x34a   :  { %v2083_v53 = vpop.f32.mrf.mxu0  ;;  %v2124_v14 = vpop.f32.mrf.mxu1 }
 0x34b   :  { %v2145_v46 = vadd.f32 %v2133_v13, %v10291_v18  ;;  %v7484_v4 = vmul.f32 -1.442695, %v2149_v15  ;;  %v2134_v24 = vrot.slane %v2083_v53, 7  ;;  %v2150_v48 = vadd.f32 %v2083_v53, %v10295_v29 }
 0x34c   :  { %v2085_v12 = vpop.f32.mrf.mxu0  ;;  %v2126_v37 = vpop.f32.mrf.mxu1  ;;  %v2136_v19 = vrot.slane %v2124_v14, 7  ;;  %v2152_v13 = vadd.f32 %v2124_v14, %v10313_v63  ;;  %v2151_v53 = vadd.f32 %v2122_v42, %v10310_v55 }
 0x34d   :  { %v7483_v52 = vmul.f32 -1.442695, %v2145_v46  ;;  %8624 = vpow2.f32 %v7484_v4  ;;  %v2146_v54 = vadd.f32 %v2134_v24, %v10293_v21  ;;  %v7486_v58 = vmul.f32 -1.442695, %v2150_v48 }
 0x34e   :  { %v2086_v9 = vpop.f32.mrf.mxu0  ;;  %v2127_v33 = vpop.f32.mrf.mxu1  ;;  %v2148_v15 = vadd.f32 %v2136_v19, %v10308_v10  ;;  %v7488_v12 = vmul.f32 -1.442695, %v2152_v13  ;;  %v2135_v37 = vrot.slane %v2122_v42, 7 }
 0x34f   :  { %8626 = vpow2.f32 %v7483_v52  ;;  %v7485_v62 = vmul.f32 -1.442695, %v2146_v54 }
 0x350   :  { %8628 = vpow2.f32 %v7486_v58  ;;  %v7487_v46 = vmul.f32 -1.442695, %v2148_v15  ;;  %v2147_v52 = vadd.f32 %v2135_v37, %v10306_v17  ;;  %v2194_v15 = vrot.slane %v10320_v1, 7 }
 0x351   :  { %8630 = vpow2.f32 %v7485_v62  ;;  %v2193_v37 = vrot.slane %v10318_v51, 7 }
 0x352   :  { %8632 = vtanh.f32 %v2151_v53 }
 0x353   :  { %8634 = vpow2.f32 %v7488_v12 }
 0x354   :  { %8636 = vpow2.f32 %v7487_v46 }
 0x35a   :  { %v8625_v4 = vpop.eup %8624 }
 0x35b   :  { %v2160_v23 = vadd.f32 1.0, %v8625_v4 }
 0x35c   :  { %v8627_v24 = vpop.eup %8626 }
 0x35d   :  { %v8629_v33 = vpop.eup %8628  ;;  %v2159_v48 = vadd.f32 1.0, %v8627_v24  ;;  %8638 = vrcp.f32 %v2160_v23 }
 0x35e   :  { %v2172_v62 = vadd.f32 1.0, %v8629_v33  ;;  %v8631_v14 = vpop.eup %8630 }
 0x35f   :  { %8640 = vrcp.f32 %v2159_v48  ;;  %v2171_v54 = vadd.f32 1.0, %v8631_v14  ;;  %v8633_v42 = vpop.eup %8632 }
 0x360   :  { %8642 = vrcp.f32 %v2172_v62  ;;  %v8635_v58 = vpop.eup %8634 }
 0x361   :  { %8644 = vtanh.f32 %v2147_v52  ;;  %v8637_v9 = vpop.eup %8636  ;;  %v2186_v12 = vadd.f32 1.0, %v8635_v58 }
 0x362   :  { %8646 = vrcp.f32 %v2171_v54  ;;  %v2185_v33 = vadd.f32 1.0, %v8637_v9 }
 0x363   :  { %8648 = vrcp.f32 %v2186_v12 }
 0x36a   :  { %v8639_v19 = vpop.eup %8638 }
 0x36b   :  { %v2200_v23 = vmul.f32 %v8639_v19, %v8633_v42 }
 0x36c   :  { %v8641_v13 = vpop.eup %8640 }
 0x36d   :  { %v8643_v53 = vpop.eup %8642 }
 0x36e   :  { %v8645_v4 = vpop.eup %8644  ;;  %v2198_v46 = vmul.f32 %v8643_v53, %v2194_v15 }
 0x36f   :  { %v8647_v24 = vpop.eup %8646  ;;  %v2199_v48 = vmul.f32 %v8645_v4, %v8641_v13 }
 0x370   :  { %v2197_v62 = vmul.f32 %v8647_v24, %v2193_v37  ;;  %v10369_v52 = vadd.f32 %v2200_v23, %v2198_v46  ;;  %v8649_v1 = vpop.eup %8648 }
 0x372   :  { %v10371_v14 = vadd.f32 %v2199_v48, %v2197_v62  ;;  %8650 = vtanh.f32 %v10369_v52 }
 0x373   :  { %8652 = vrcp.f32 %v2185_v33 }
 0x374   :  { %8654 = vtanh.f32 %v10371_v14 }
 0x37f   :  { %v8651_v54 = vpop.eup %8650 }
 0x380   :  { %v8653_v58 = vpop.eup %8652  ;;  %v2206_v51 = vmul.f32 %v8651_v54, %v8649_v1 }
 0x381   :  { %v8655_v42 = vpop.eup %8654 }
 0x382   :  { %v2205_v19 = vmul.f32 %v8655_v42, %v8653_v58  ;;  %2208 = vst [vmem:[#allocation2 + $0x8] sm:$0x2] %v2206_v51  ;;  %v2210_v13 = vpack.c.bf16 %v2206_v51, %v2206_v51 }
 0x384   :  { %2207 = vst [vmem:[#allocation2] sm:$0x2] %v2205_v19  ;;  %v2209_v9 = vpack.c.bf16 %v2205_v19, %v2205_v19  ;;  %v2214_v53 = vunpack.c.l.b16 %v2210_v13 }
 0x386   :  { %v2213_v15 = vunpack.c.l.b16 %v2209_v9 }
 0x388   :  { %v2215_v12 = vrot.slane %v2213_v15, 1 }
 0x38a   :  { %v2216_v4 = vsel %vm2043_vm10, %v2214_v53, %v2215_v12 }
 0x38b   :  { %v2217_v37 = vpack.c.b16 %v2216_v4, %v2216_v4  ;;  %v2369_v4 = vrot.slane %v10371_v14, 7 }
 0x38d   :  { %2252 = vmatmul.mubr.bf16.vlgmr.msra.gmra.mxu0 %v2217_v37  ;;  %2293 = vmatmul.mubr.bf16.vlgmr.msra.gmra.mxu1 %v2217_v37 }
 0x38e   :  { %2397 = vmatpush1.bf16.msra.mxu0 %v9897_v35  ;;  %2438 = vmatpush1.bf16.msra.mxu1 %v10043_v28 }
 0x38f   :  { %2398 = vmatprep.subr.bf16.mxu0 %v9906_v41  ;;  %2439 = vmatprep.subr.bf16.mxu1 %v10050_v30 }
 0x390   :  { %2428 = vmatprep.mubr.bf16.mxu0 %v12622_v49  ;;  %2469 = vmatprep.mubr.bf16.mxu1 %v12622_v49 }
 0x392   :  { %2399 = vmatpush1.bf16.msra.mxu0 %v9922_v45  ;;  %2440 = vmatpush1.bf16.msra.mxu1 %v10059_v31 }
 0x393   :  { %2400 = vmatprep.subr.bf16.mxu0 %v9931_v39  ;;  %2441 = vmatprep.subr.bf16.mxu1 %v10065_v34 }
 0x396   :  { %2401 = vmatpush1.bf16.msra.mxu0 %v9942_v47  ;;  %2442 = vmatpush1.bf16.msra.mxu1 %v10075_v36 }
 0x397   :  { %2402 = vmatprep.subr.bf16.mxu0 %v9951_v56  ;;  %2443 = vmatprep.subr.bf16.mxu1 %v10081_v44 }
 0x39a   :  { %2403 = vmatpush1.bf16.msra.mxu0 %v9960_v6  ;;  %2444 = vmatpush1.bf16.msra.mxu1 %v10089_v38 }
 0x39b   :  { %2404 = vmatprep.subr.bf16.mxu0 %v9969_v60  ;;  %2445 = vmatprep.subr.bf16.mxu1 %v10095_v43 }
 0x39e   :  { %2405 = vmatpush1.bf16.msra.mxu0 %v9978_v0  ;;  %2446 = vmatpush1.bf16.msra.mxu1 %v10103_v50 }
 0x39f   :  { %2406 = vmatprep.subr.bf16.mxu0 %v9987_v3  ;;  %2447 = vmatprep.subr.bf16.mxu1 %v10109_v59 }
 0x3a2   :  { %2407 = vmatpush1.bf16.msra.mxu0 %v9996_v8  ;;  %2448 = vmatpush1.bf16.msra.mxu1 %v10117_v7 }
 0x3a3   :  { %2408 = vmatprep.subr.bf16.mxu0 %v10005_v16  ;;  %2449 = vmatprep.subr.bf16.mxu1 %v10123_v61 }
 0x3a6   :  { %2409 = vmatpush1.bf16.msra.mxu0 %v10014_v20  ;;  %2450 = vmatpush1.bf16.msra.mxu1 %v10131_v2 }
 0x3a7   :  { %2410 = vmatprep.subr.bf16.mxu0 %v10023_v22  ;;  %2451 = vmatprep.subr.bf16.mxu1 %v10137_v5 }
 0x3aa   :  { %2411 = vmatpush1.bf16.msra.mxu0 %v10032_v25  ;;  %2452 = vmatpush1.bf16.msra.mxu1 %v10145_v11 }
 0x3ab   :  { %2573 = vmatprep.subr.bf16.mxu0 %v9889_v32  ;;  %2614 = vmatprep.subr.bf16.mxu1 %v10037_v27 }
 0x44d   :  { %v2253_v35 = vpop.f32.mrf.mxu0  ;;  %v2294_v41 = vpop.f32.mrf.mxu1 }
 0x44e   :  { %v2305_v45 = vrot.slane %v2253_v35, 6  ;;  %v2309_v39 = vrot.slane %v2253_v35, 7  ;;  %v2307_v44 = vrot.slane %v2294_v41, 6  ;;  %v2311_v38 = vrot.slane %v2294_v41, 7 }
 0x44f   :  { %v2255_v47 = vpop.f32.mrf.mxu0  ;;  %v2296_v56 = vpop.f32.mrf.mxu1  ;;  %v2370_v41 = vrot.slane %v10369_v52, 7 }
 0x450   :  { %v2321_v6 = vadd.f32 %v2305_v45, %v10291_v18  ;;  %v2325_v60 = vadd.f32 %v2309_v39, %v10299_v26  ;;  %v2306_v0 = vrot.slane %v2255_v47, 6  ;;  %v2310_v3 = vrot.slane %v2255_v47, 7 }
 0x451   :  { %v2257_v8 = vpop.f32.mrf.mxu0  ;;  %v2298_v16 = vpop.f32.mrf.mxu1  ;;  %v2308_v34 = vrot.slane %v2296_v56, 6  ;;  %v2312_v36 = vrot.slane %v2296_v56, 7  ;;  %v2323_v59 = vadd.f32 %v2307_v44, %v10306_v17  ;;  %v2327_v23 = vadd.f32 %v2311_v38, %v10310_v55  ;;  %v10430_v44 = vld [vmem:[%s12373_s18 + $0xe0] ss:$16 sps:$4 sm:$0xff]   ;;  %v10436_v38 = vld [vmem:[%s12373_s18 + $0xe8] ss:$16 sps:$4 sm:$0xff]  }
 0x452   :  { %v7489_v20 = vmul.f32 -1.442695, %v2321_v6  ;;  %v7490_v22 = vmul.f32 -1.442695, %v2325_v60  ;;  %v2322_v32 = vadd.f32 %v2306_v0, %v10293_v21  ;;  %v2326_v25 = vadd.f32 %v2310_v3, %v10295_v29 }
 0x453   :  { %v2258_v27 = vpop.f32.mrf.mxu0  ;;  %v2299_v28 = vpop.f32.mrf.mxu1  ;;  %v2324_v43 = vadd.f32 %v2308_v34, %v10308_v10  ;;  %v2328_v50 = vadd.f32 %v2312_v36, %v10313_v63 }
 0x454   :  { %8656 = vpow2.f32 %v7489_v20  ;;  %v7491_v30 = vmul.f32 -1.442695, %v2322_v32  ;;  %v7492_v31 = vmul.f32 -1.442695, %v2326_v25 }
 0x455   :  { %8658 = vpow2.f32 %v7490_v22  ;;  %v7493_v46 = vmul.f32 -1.442695, %v2324_v43  ;;  %v7494_v24 = vmul.f32 -1.442695, %v2328_v50  ;;  %v10442_v43 = vld [vmem:[%s12373_s18 + $0xc4] ss:$16 sps:$4 sm:$0xff]  }
 0x456   :  { %8660 = vpow2.f32 %v7491_v30  ;;  %v10448_v50 = vld [vmem:[%s12373_s18 + $0xcc] ss:$16 sps:$4 sm:$0xff]  }
 0x457   :  { %8662 = vpow2.f32 %v7492_v31 }
 0x458   :  { %8664 = vtanh.f32 %v2323_v59  ;;  %v10456_v59 = vld [vmem:[%s12373_s18 + $0xc0] ss:$16 sps:$4 sm:$0xff]  }
 0x459   :  { %8666 = vtanh.f32 %v2327_v23  ;;  %v10462_v23 = vld [vmem:[%s12373_s18 + $0xc8] ss:$16 sps:$4 sm:$0xff]  }
 0x45a   :  { %8668 = vpow2.f32 %v7493_v46  ;;  %v10468_v46 = vld [vmem:[%s12373_s18 + $0xa4] ss:$16 sps:$4 sm:$0xff]  }
 0x45b   :  { %8670 = vpow2.f32 %v7494_v24  ;;  %v10474_v24 = vld [vmem:[%s12373_s18 + $0xac] ss:$16 sps:$4 sm:$0xff]  }
 0x461   :  { %v8657_v33 = vpop.eup %8656 }
 0x462   :  { %v8659_v48 = vpop.eup %8658  ;;  %v2335_v62 = vadd.f32 1.0, %v8657_v33  ;;  %v10480_v33 = vld [vmem:[%s12373_s18 + $0xa0] ss:$16 sps:$4 sm:$0xff]  }
 0x463   :  { %v2336_v1 = vadd.f32 1.0, %v8659_v48  ;;  %v8661_v54 = vpop.eup %8660  ;;  %v10486_v48 = vld [vmem:[%s12373_s18 + $0xa8] ss:$16 sps:$4 sm:$0xff]  }
 0x464   :  { %v8663_v58 = vpop.eup %8662  ;;  %8672 = vrcp.f32 %v2335_v62  ;;  %v2347_v51 = vadd.f32 1.0, %v8661_v54  ;;  %v10492_v62 = vld [vmem:[%s12373_s18 + $0x84] ss:$16 sps:$4 sm:$0xff]   ;;  %v10504_v54 = vld [vmem:[%s12373_s18 + $0x80] ss:$16 sps:$4 sm:$0xff]  }
 0x465   :  { %8674 = vrcp.f32 %v2336_v1  ;;  %v2348_v42 = vadd.f32 1.0, %v8663_v58  ;;  %v8665_v19 = vpop.eup %8664  ;;  %v10498_v1 = vld [vmem:[%s12373_s18 + $0x8c] ss:$16 sps:$4 sm:$0xff]   ;;  %v10510_v58 = vld [vmem:[%s12373_s18 + $0x88] ss:$16 sps:$4 sm:$0xff]  }
 0x466   :  { %8676 = vrcp.f32 %v2347_v51  ;;  %v8667_v9 = vpop.eup %8666  ;;  %v10516_v51 = vld [vmem:[%s12373_s18 + $0x64] ss:$16 sps:$4 sm:$0xff]  }
 0x467   :  { %8678 = vrcp.f32 %v2348_v42  ;;  %v8669_v13 = vpop.eup %8668  ;;  %v10522_v42 = vld [vmem:[%s12373_s18 + $0x6c] ss:$16 sps:$4 sm:$0xff]  }
 0x468   :  { %v8671_v15 = vpop.eup %8670  ;;  %v2361_v37 = vadd.f32 1.0, %v8669_v13  ;;  %v10540_v13 = vld [vmem:[%s12373_s18 + $0x44] ss:$16 sps:$4 sm:$0xff]  }
 0x469   :  { %v2362_v45 = vadd.f32 1.0, %v8671_v15  ;;  %v10546_v15 = vld [vmem:[%s12373_s18 + $0x4c] ss:$16 sps:$4 sm:$0xff]  }
 0x46a   :  { %8680 = vrcp.f32 %v2361_v37 }
 0x46b   :  { %8682 = vrcp.f32 %v2362_v45 }
 0x471   :  { %v8673_v53 = vpop.eup %8672 }
 0x472   :  { %v8675_v12 = vpop.eup %8674  ;;  %v2375_v47 = vmul.f32 %v8673_v53, %v8665_v19  ;;  %v10528_v19 = vld [vmem:[%s12373_s18 + $0x60] ss:$16 sps:$4 sm:$0xff]  }
 0x473   :  { %v8677_v35 = vpop.eup %8676  ;;  %v2376_v6 = vmul.f32 %v8675_v12, %v8667_v9  ;;  %v10534_v9 = vld [vmem:[%s12373_s18 + $0x68] ss:$16 sps:$4 sm:$0xff]   ;;  %v10552_v53 = vld [vmem:[%s12373_s18 + $0x40] ss:$16 sps:$4 sm:$0xff]   ;;  %v10559_v12 = vld [vmem:[%s12373_s18 + $0x24] ss:$16 sps:$4 sm:$0xff]  }
 0x474   :  { %v8679_v39 = vpop.eup %8678  ;;  %v2373_v56 = vmul.f32 %v8677_v35, %v2369_v4  ;;  %v10566_v4 = vld [vmem:[%s12373_s18 + $0x20] ss:$16 sps:$4 sm:$0xff]  }
 0x475   :  { %v2374_v60 = vmul.f32 %v8679_v39, %v2370_v41 }
 0x476   :  { %v10420_v0 = vadd.f32 %v2375_v47, %v2373_v56 }
 0x477   :  { %v10422_v3 = vadd.f32 %v2376_v6, %v2374_v60  ;;  %v8681_v14 = vpop.eup %8680 }
 0x478   :  { %8684 = vtanh.f32 %v10420_v0  ;;  %v8683_v8 = vpop.eup %8682 }
 0x479   :  { %8686 = vtanh.f32 %v10422_v3 }
 0x485   :  { %v8685_v16 = vpop.eup %8684 }
 0x486   :  { %v8687_v52 = vpop.eup %8686  ;;  %v2381_v20 = vmul.f32 %v8685_v16, %v8681_v14 }
 0x487   :  { %v2382_v22 = vmul.f32 %v8687_v52, %v8683_v8 }
 0x488   :  { %2383 = vst [vmem:[#allocation2] sm:$0x4] %v2381_v20  ;;  %v2385_v32 = vpack.c.bf16 %v2381_v20, %v2381_v20 }
 0x489   :  { %2384 = vst [vmem:[#allocation2 + $0x8] sm:$0x4] %v2382_v22  ;;  %v2386_v25 = vpack.c.bf16 %v2382_v22, %v2382_v22 }
 0x48a   :  { %v2389_v27 = vunpack.c.l.b16 %v2385_v32 }
 0x48b   :  { %v2390_v28 = vunpack.c.l.b16 %v2386_v25 }
 0x48c   :  { %v2391_v30 = vrot.slane %v2389_v27, 2 }
 0x48d   :  { %v2392_v31 = vrot.slane %v2390_v28, 1 }
 0x48f   :  { %v2393_v34 = vsel %vm2043_vm10, %v2392_v31, %v2391_v30 }
 0x490   :  { %v2394_v36 = vpack.c.b16 %v2393_v34, %v2393_v34 }
 0x492   :  { %2429 = vmatmul.mubr.bf16.vlgmr.msra.gmra.mxu0 %v2394_v36  ;;  %2470 = vmatmul.mubr.bf16.vlgmr.msra.gmra.mxu1 %v2394_v36 }
 0x493   :  { %2574 = vmatpush1.bf16.msra.mxu0 %v10430_v44  ;;  %2615 = vmatpush1.bf16.msra.mxu1 %v10436_v38 }
 0x494   :  { %2575 = vmatprep.subr.bf16.mxu0 %v10442_v43  ;;  %2616 = vmatprep.subr.bf16.mxu1 %v10448_v50 }
 0x495   :  { %2605 = vmatprep.mubr.bf16.mxu0 %v12622_v49  ;;  %2646 = vmatprep.mubr.bf16.mxu1 %v12622_v49 }
 0x497   :  { %2576 = vmatpush1.bf16.msra.mxu0 %v10456_v59  ;;  %2617 = vmatpush1.bf16.msra.mxu1 %v10462_v23 }
 0x498   :  { %2577 = vmatprep.subr.bf16.mxu0 %v10468_v46  ;;  %2618 = vmatprep.subr.bf16.mxu1 %v10474_v24 }
 0x49b   :  { %2578 = vmatpush1.bf16.msra.mxu0 %v10480_v33  ;;  %2619 = vmatpush1.bf16.msra.mxu1 %v10486_v48 }
 0x49c   :  { %2579 = vmatprep.subr.bf16.mxu0 %v10492_v62  ;;  %2620 = vmatprep.subr.bf16.mxu1 %v10498_v1 }
 0x49f   :  { %2580 = vmatpush1.bf16.msra.mxu0 %v10504_v54  ;;  %2621 = vmatpush1.bf16.msra.mxu1 %v10510_v58 }
 0x4a0   :  { %2581 = vmatprep.subr.bf16.mxu0 %v10516_v51  ;;  %2622 = vmatprep.subr.bf16.mxu1 %v10522_v42 }
 0x4a3   :  { %2582 = vmatpush1.bf16.msra.mxu0 %v10528_v19  ;;  %2623 = vmatpush1.bf16.msra.mxu1 %v10534_v9 }
 0x4a4   :  { %2583 = vmatprep.subr.bf16.mxu0 %v10540_v13  ;;  %2624 = vmatprep.subr.bf16.mxu1 %v10546_v15 }
 0x4a7   :  { %2584 = vmatpush1.bf16.msra.mxu0 %v10552_v53  ;;  %2625 = vmatpush1.bf16.msra.mxu1 %v10117_v7  ;;  %v10573_v7 = vld [vmem:[%s12373_s18 + $0x4] ss:$16 sps:$4 sm:$0xff]  }
 0x4a8   :  { %2585 = vmatprep.subr.bf16.mxu0 %v10559_v12  ;;  %2626 = vmatprep.subr.bf16.mxu1 %v10123_v61  ;;  %v10580_v61 = vld [vmem:[%s12373_s18] ss:$16 sps:$4 sm:$0xff]  }
 0x4ab   :  { %2586 = vmatpush1.bf16.msra.mxu0 %v10566_v4  ;;  %2627 = vmatpush1.bf16.msra.mxu1 %v10131_v2  ;;  %v10587_v2 = vld [vmem:[%s12373_s18 + $0xe4] ss:$16 sps:$4 sm:$0xff]  }
 0x4ac   :  { %2587 = vmatprep.subr.bf16.mxu0 %v10573_v7  ;;  %2628 = vmatprep.subr.bf16.mxu1 %v10137_v5  ;;  %v10593_v5 = vld [vmem:[%s12373_s18 + $0xec] ss:$16 sps:$4 sm:$0xff]  }
 0x4af   :  { %2588 = vmatpush1.bf16.msra.mxu0 %v10580_v61  ;;  %2629 = vmatpush1.bf16.msra.mxu1 %v10145_v11 }
 0x4b0   :  { %2750 = vmatprep.subr.bf16.mxu0 %v10587_v2  ;;  %2791 = vmatprep.subr.bf16.mxu1 %v10593_v5 }
 0x552   :  { %v2430_v37 = vpop.f32.mrf.mxu0  ;;  %v2471_v35 = vpop.f32.mrf.mxu1 }
 0x553   :  { %v2482_v41 = vrot.slane %v2430_v37, 5  ;;  %v2486_v45 = vrot.slane %v2430_v37, 6  ;;  %v2484_v34 = vrot.slane %v2471_v35, 5  ;;  %v2488_v36 = vrot.slane %v2471_v35, 6 }
 0x554   :  { %v2432_v39 = vpop.f32.mrf.mxu0  ;;  %v2473_v11 = vpop.f32.mrf.mxu1 }
 0x555   :  { %v2498_v47 = vadd.f32 %v2482_v41, %v10291_v18  ;;  %v2502_v56 = vadd.f32 %v2486_v45, %v10299_v26  ;;  %v2483_v6 = vrot.slane %v2432_v39, 5  ;;  %v2487_v60 = vrot.slane %v2432_v39, 6 }
 0x556   :  { %v2434_v14 = vpop.f32.mrf.mxu0  ;;  %v2475_v8 = vpop.f32.mrf.mxu1  ;;  %v2485_v30 = vrot.slane %v2473_v11, 5  ;;  %v2489_v31 = vrot.slane %v2473_v11, 6  ;;  %v2500_v45 = vadd.f32 %v2484_v34, %v10306_v17  ;;  %v2504_v39 = vadd.f32 %v2488_v36, %v10310_v55 }
 0x557   :  { %v7495_v16 = vmul.f32 -1.442695, %v2498_v47  ;;  %v7496_v52 = vmul.f32 -1.442695, %v2502_v56  ;;  %v2499_v20 = vadd.f32 %v2483_v6, %v10293_v21  ;;  %v2503_v22 = vadd.f32 %v2487_v60, %v10295_v29 }
 0x558   :  { %v2435_v32 = vpop.f32.mrf.mxu0  ;;  %v2476_v25 = vpop.f32.mrf.mxu1  ;;  %v2501_v37 = vadd.f32 %v2485_v30, %v10308_v10  ;;  %v2505_v41 = vadd.f32 %v2489_v31, %v10313_v63  ;;  %v2546_v30 = vrot.slane %v10420_v0, 7  ;;  %v2547_v36 = vrot.slane %v10422_v3, 7 }
 0x559   :  { %8688 = vpow2.f32 %v7495_v16  ;;  %v7497_v27 = vmul.f32 -1.442695, %v2499_v20  ;;  %v7498_v28 = vmul.f32 -1.442695, %v2503_v22 }
 0x55a   :  { %8690 = vpow2.f32 %v7496_v52  ;;  %v7499_v47 = vmul.f32 -1.442695, %v2501_v37  ;;  %v7500_v56 = vmul.f32 -1.442695, %v2505_v41 }
 0x55b   :  { %8692 = vpow2.f32 %v7497_v27 }
 0x55c   :  { %8694 = vpow2.f32 %v7498_v28 }
 0x55d   :  { %8696 = vtanh.f32 %v2500_v45 }
 0x55e   :  { %8698 = vtanh.f32 %v2504_v39 }
 0x55f   :  { %8700 = vpow2.f32 %v7499_v47 }
 0x560   :  { %8702 = vpow2.f32 %v7500_v56 }
 0x566   :  { %v8689_v6 = vpop.eup %8688 }
 0x567   :  { %v8691_v60 = vpop.eup %8690  ;;  %v2512_v14 = vadd.f32 1.0, %v8689_v6 }
 0x568   :  { %v2513_v8 = vadd.f32 1.0, %v8691_v60  ;;  %v8693_v11 = vpop.eup %8692 }
 0x569   :  { %v8695_v35 = vpop.eup %8694  ;;  %8704 = vrcp.f32 %v2512_v14  ;;  %v2524_v16 = vadd.f32 1.0, %v8693_v11 }
 0x56a   :  { %8706 = vrcp.f32 %v2513_v8  ;;  %v2525_v52 = vadd.f32 1.0, %v8695_v35  ;;  %v8697_v20 = vpop.eup %8696 }
 0x56b   :  { %8708 = vrcp.f32 %v2524_v16  ;;  %v8699_v22 = vpop.eup %8698 }
 0x56c   :  { %8710 = vrcp.f32 %v2525_v52  ;;  %v8701_v32 = vpop.eup %8700 }
 0x56d   :  { %v8703_v25 = vpop.eup %8702  ;;  %v2538_v31 = vadd.f32 1.0, %v8701_v32 }
 0x56e   :  { %v2539_v37 = vadd.f32 1.0, %v8703_v25 }
 0x56f   :  { %8712 = vrcp.f32 %v2538_v31  ;;  %v10646_v31 = vld [vmem:[%s12373_s18 + $0x2c] ss:$16 sps:$4 sm:$0xff]  }
 0x570   :  { %8714 = vrcp.f32 %v2539_v37  ;;  %v10667_v37 = vld [vmem:[%s12373_s18 + $0x8] ss:$16 sps:$4 sm:$0xff]  }
 0x576   :  { %v8705_v27 = vpop.eup %8704 }
 0x577   :  { %v8707_v28 = vpop.eup %8706  ;;  %v2552_v45 = vmul.f32 %v8705_v27, %v8697_v20 }
 0x578   :  { %v8709_v34 = vpop.eup %8708  ;;  %v2553_v47 = vmul.f32 %v8707_v28, %v8699_v22 }
 0x579   :  { %v8711_v41 = vpop.eup %8710  ;;  %v2550_v39 = vmul.f32 %v8709_v34, %v2546_v30  ;;  %v10639_v30 = vld [vmem:[%s12373_s18 + $0x48] ss:$16 sps:$4 sm:$0xff]  }
 0x57a   :  { %v2551_v56 = vmul.f32 %v8711_v41, %v2547_v36  ;;  %v10653_v34 = vld [vmem:[%s12373_s18 + $0x28] ss:$16 sps:$4 sm:$0xff]   ;;  %v10660_v36 = vld [vmem:[%s12373_s18 + $0xc] ss:$16 sps:$4 sm:$0xff]  }
 0x57b   :  { %v10606_v6 = vadd.f32 %v2552_v45, %v2550_v39 }
 0x57c   :  { %v10608_v60 = vadd.f32 %v2553_v47, %v2551_v56  ;;  %v8713_v0 = vpop.eup %8712 }
 0x57d   :  { %8716 = vtanh.f32 %v10606_v6  ;;  %v8715_v14 = vpop.eup %8714 }
 0x57e   :  { %8718 = vtanh.f32 %v10608_v60 }
 0x58a   :  { %v8717_v8 = vpop.eup %8716 }
 0x58b   :  { %v8719_v3 = vpop.eup %8718  ;;  %v2558_v11 = vmul.f32 %v8717_v8, %v8713_v0 }
 0x58c   :  { %v2559_v35 = vmul.f32 %v8719_v3, %v8715_v14 }
 0x58d   :  { %2560 = vst [vmem:[#allocation2] sm:$0x8] %v2558_v11  ;;  %v2562_v16 = vpack.c.bf16 %v2558_v11, %v2558_v11 }
 0x58e   :  { %2561 = vst [vmem:[#allocation2 + $0x8] sm:$0x8] %v2559_v35  ;;  %v2563_v52 = vpack.c.bf16 %v2559_v35, %v2559_v35 }
 0x58f   :  { %v2566_v20 = vunpack.c.l.b16 %v2562_v16 }
 0x590   :  { %v2567_v22 = vunpack.c.l.b16 %v2563_v52 }
 0x591   :  { %v2568_v32 = vrot.slane %v2566_v20, 3 }
 0x592   :  { %v2569_v25 = vrot.slane %v2567_v22, 2 }
 0x594   :  { %v2570_v27 = vsel %vm2043_vm10, %v2569_v25, %v2568_v32 }
 0x595   :  { %v2571_v28 = vpack.c.b16 %v2570_v27, %v2570_v27 }
 0x597   :  { %2606 = vmatmul.mubr.bf16.vlgmr.msra.gmra.mxu0 %v2571_v28  ;;  %2647 = vmatmul.mubr.bf16.vlgmr.msra.gmra.mxu1 %v2571_v28 }
 0x598   :  { %2751 = vmatpush1.bf16.msra.mxu0 %v10430_v44  ;;  %2792 = vmatpush1.bf16.msra.mxu1 %v10436_v38 }
 0x599   :  { %2752 = vmatprep.subr.bf16.mxu0 %v10442_v43  ;;  %2793 = vmatprep.subr.bf16.mxu1 %v10448_v50 }
 0x59a   :  { %2782 = vmatprep.mubr.bf16.mxu0 %v12622_v49  ;;  %2823 = vmatprep.mubr.bf16.mxu1 %v12622_v49 }
 0x59c   :  { %2753 = vmatpush1.bf16.msra.mxu0 %v10456_v59  ;;  %2794 = vmatpush1.bf16.msra.mxu1 %v10462_v23 }
 0x59d   :  { %2754 = vmatprep.subr.bf16.mxu0 %v10468_v46  ;;  %2795 = vmatprep.subr.bf16.mxu1 %v10474_v24 }
 0x5a0   :  { %2755 = vmatpush1.bf16.msra.mxu0 %v10480_v33  ;;  %2796 = vmatpush1.bf16.msra.mxu1 %v10486_v48 }
 0x5a1   :  { %2756 = vmatprep.subr.bf16.mxu0 %v10492_v62  ;;  %2797 = vmatprep.subr.bf16.mxu1 %v10498_v1 }
 0x5a4   :  { %2757 = vmatpush1.bf16.msra.mxu0 %v10504_v54  ;;  %2798 = vmatpush1.bf16.msra.mxu1 %v10510_v58 }
 0x5a5   :  { %2758 = vmatprep.subr.bf16.mxu0 %v10516_v51  ;;  %2799 = vmatprep.subr.bf16.mxu1 %v10522_v42 }
 0x5a8   :  { %2759 = vmatpush1.bf16.msra.mxu0 %v10528_v19  ;;  %2800 = vmatpush1.bf16.msra.mxu1 %v10534_v9 }
 0x5a9   :  { %2760 = vmatprep.subr.bf16.mxu0 %v10540_v13  ;;  %2801 = vmatprep.subr.bf16.mxu1 %v10546_v15 }
 0x5ac   :  { %2761 = vmatpush1.bf16.msra.mxu0 %v10552_v53  ;;  %2802 = vmatpush1.bf16.msra.mxu1 %v10639_v30 }
 0x5ad   :  { %2762 = vmatprep.subr.bf16.mxu0 %v10559_v12  ;;  %2803 = vmatprep.subr.bf16.mxu1 %v10646_v31 }
 0x5b0   :  { %2763 = vmatpush1.bf16.msra.mxu0 %v10566_v4  ;;  %2804 = vmatpush1.bf16.msra.mxu1 %v10653_v34 }
 0x5b1   :  { %2764 = vmatprep.subr.bf16.mxu0 %v10573_v7  ;;  %2805 = vmatprep.subr.bf16.mxu1 %v10660_v36 }
 0x5b4   :  { %2765 = vmatpush1.bf16.msra.mxu0 %v10580_v61  ;;  %2806 = vmatpush1.bf16.msra.mxu1 %v10667_v37 }
 0x5b5   :  { %2927 = vmatprep.subr.bf16.mxu0 %v10587_v2  ;;  %2968 = vmatprep.subr.bf16.mxu1 %v10593_v5 }
 0x657   :  { %v2607_v41 = vpop.f32.mrf.mxu0  ;;  %v2648_v45 = vpop.f32.mrf.mxu1 }
 0x658   :  { %v2659_v39 = vrot.slane %v2607_v41, 4  ;;  %v2663_v47 = vrot.slane %v2607_v41, 5  ;;  %v2661_v57 = vrot.slane %v2648_v45, 4 }
 0x659   :  { %v2609_v56 = vpop.f32.mrf.mxu0  ;;  %v2650_v0 = vpop.f32.mrf.mxu1 }
 0x65a   :  { %v2675_v14 = vadd.f32 %v2659_v39, %v10291_v18  ;;  %v2679_v8 = vadd.f32 %v2663_v47, %v10299_v26  ;;  %v2660_v3 = vrot.slane %v2609_v56, 4  ;;  %v2664_v11 = vrot.slane %v2609_v56, 5 }
 0x65b   :  { %v2611_v35 = vpop.f32.mrf.mxu0  ;;  %v2652_v16 = vpop.f32.mrf.mxu1  ;;  %v2662_v39 = vrot.slane %v2650_v0, 4  ;;  %v2666_v47 = vrot.slane %v2650_v0, 5  ;;  %v2665_v56 = vrot.slane %v2648_v45, 5 }
 0x65c   :  { %v7501_v52 = vmul.f32 -1.442695, %v2675_v14  ;;  %v7502_v20 = vmul.f32 -1.442695, %v2679_v8  ;;  %v2676_v22 = vadd.f32 %v2660_v3, %v10293_v21  ;;  %v2680_v32 = vadd.f32 %v2664_v11, %v10295_v29 }
 0x65d   :  { %v2612_v25 = vpop.f32.mrf.mxu0  ;;  %v2653_v27 = vpop.f32.mrf.mxu1  ;;  %v2678_v35 = vadd.f32 %v2662_v39, %v10308_v10  ;;  %v2682_v14 = vadd.f32 %v2666_v47, %v10313_v63  ;;  %v2677_v8 = vadd.f32 %v2661_v57, %v10306_v17  ;;  %v2681_v3 = vadd.f32 %v2665_v56, %v10310_v55 }
 0x65e   :  { %8720 = vpow2.f32 %v7501_v52  ;;  %v7503_v28 = vmul.f32 -1.442695, %v2676_v22  ;;  %v7504_v41 = vmul.f32 -1.442695, %v2680_v32 }
 0x65f   :  { %8722 = vpow2.f32 %v7502_v20  ;;  %v7505_v11 = vmul.f32 -1.442695, %v2678_v35  ;;  %v7506_v16 = vmul.f32 -1.442695, %v2682_v14  ;;  %v2723_v35 = vrot.slane %v10606_v6, 7 }
 0x660   :  { %8724 = vpow2.f32 %v7503_v28 }
 0x661   :  { %8726 = vpow2.f32 %v7504_v41 }
 0x662   :  { %8728 = vtanh.f32 %v2677_v8 }
 0x663   :  { %8730 = vtanh.f32 %v2681_v3  ;;  %v2724_v3 = vrot.slane %v10608_v60, 7 }
 0x664   :  { %8732 = vpow2.f32 %v7505_v11 }
 0x665   :  { %8734 = vpow2.f32 %v7506_v16 }
 0x66b   :  { %v8721_v52 = vpop.eup %8720 }
 0x66c   :  { %v8723_v20 = vpop.eup %8722  ;;  %v2689_v22 = vadd.f32 1.0, %v8721_v52 }
 0x66d   :  { %v2690_v32 = vadd.f32 1.0, %v8723_v20  ;;  %v8725_v0 = vpop.eup %8724 }
 0x66e   :  { %v8727_v45 = vpop.eup %8726  ;;  %8736 = vrcp.f32 %v2689_v22  ;;  %v2701_v25 = vadd.f32 1.0, %v8725_v0 }
 0x66f   :  { %8738 = vrcp.f32 %v2690_v32  ;;  %v2702_v27 = vadd.f32 1.0, %v8727_v45  ;;  %v8729_v57 = vpop.eup %8728 }
 0x670   :  { %8740 = vrcp.f32 %v2701_v25  ;;  %v8731_v28 = vpop.eup %8730 }
 0x671   :  { %8742 = vrcp.f32 %v2702_v27  ;;  %v8733_v41 = vpop.eup %8732 }
 0x672   :  { %v8735_v39 = vpop.eup %8734  ;;  %v2715_v14 = vadd.f32 1.0, %v8733_v41 }
 0x673   :  { %v2716_v11 = vadd.f32 1.0, %v8735_v39 }
 0x674   :  { %8744 = vrcp.f32 %v2715_v14 }
 0x675   :  { %8746 = vrcp.f32 %v2716_v11 }
 0x67b   :  { %v8737_v47 = vpop.eup %8736 }
 0x67c   :  { %v8739_v56 = vpop.eup %8738  ;;  %v2729_v52 = vmul.f32 %v8737_v47, %v8729_v57 }
 0x67d   :  { %v8741_v8 = vpop.eup %8740  ;;  %v2730_v22 = vmul.f32 %v8739_v56, %v8731_v28 }
 0x67e   :  { %v8743_v16 = vpop.eup %8742  ;;  %v2727_v20 = vmul.f32 %v8741_v8, %v2723_v35 }
 0x67f   :  { %v2728_v32 = vmul.f32 %v8743_v16, %v2724_v3 }
 0x680   :  { %v10682_v0 = vadd.f32 %v2729_v52, %v2727_v20 }
 0x681   :  { %v10684_v45 = vadd.f32 %v2730_v22, %v2728_v32  ;;  %v8745_v6 = vpop.eup %8744 }
 0x682   :  { %8748 = vtanh.f32 %v10682_v0  ;;  %v8747_v25 = vpop.eup %8746 }
 0x683   :  { %8750 = vtanh.f32 %v10684_v45 }
 0x68f   :  { %v8749_v27 = vpop.eup %8748 }
 0x690   :  { %v8751_v60 = vpop.eup %8750  ;;  %v2735_v41 = vmul.f32 %v8749_v27, %v8745_v6 }
 0x691   :  { %v2736_v39 = vmul.f32 %v8751_v60, %v8747_v25 }
 0x692   :  { %2737 = vst [vmem:[#allocation2] sm:$0x10] %v2735_v41  ;;  %v2739_v57 = vpack.c.bf16 %v2735_v41, %v2735_v41 }
 0x693   :  { %2738 = vst [vmem:[#allocation2 + $0x8] sm:$0x10] %v2736_v39  ;;  %v2740_v28 = vpack.c.bf16 %v2736_v39, %v2736_v39 }
 0x694   :  { %v2743_v47 = vunpack.c.l.b16 %v2739_v57 }
 0x695   :  { %v2744_v56 = vunpack.c.l.b16 %v2740_v28 }
 0x696   :  { %v2745_v35 = vrot.slane %v2743_v47, 4 }
 0x697   :  { %v2746_v14 = vrot.slane %v2744_v56, 3 }
 0x699   :  { %v2747_v8 = vsel %vm2043_vm10, %v2746_v14, %v2745_v35 }
 0x69a   :  { %v2748_v3 = vpack.c.b16 %v2747_v8, %v2747_v8 }
 0x69c   :  { %2783 = vmatmul.mubr.bf16.vlgmr.msra.gmra.mxu0 %v2748_v3  ;;  %2824 = vmatmul.mubr.bf16.vlgmr.msra.gmra.mxu1 %v2748_v3 }
 0x69d   :  { %2928 = vmatpush1.bf16.msra.mxu0 %v10430_v44  ;;  %2969 = vmatpush1.bf16.msra.mxu1 %v10436_v38 }
 0x69e   :  { %2929 = vmatprep.subr.bf16.mxu0 %v10442_v43  ;;  %2970 = vmatprep.subr.bf16.mxu1 %v10448_v50 }
 0x69f   :  { %2959 = vmatprep.mubr.bf16.mxu0 %v12622_v49  ;;  %3000 = vmatprep.mubr.bf16.mxu1 %v12622_v49 }
 0x6a1   :  { %2930 = vmatpush1.bf16.msra.mxu0 %v10456_v59  ;;  %2971 = vmatpush1.bf16.msra.mxu1 %v10462_v23 }
 0x6a2   :  { %2931 = vmatprep.subr.bf16.mxu0 %v10468_v46  ;;  %2972 = vmatprep.subr.bf16.mxu1 %v10474_v24 }
 0x6a5   :  { %2932 = vmatpush1.bf16.msra.mxu0 %v10480_v33  ;;  %2973 = vmatpush1.bf16.msra.mxu1 %v10486_v48 }
 0x6a6   :  { %2933 = vmatprep.subr.bf16.mxu0 %v10492_v62  ;;  %2974 = vmatprep.subr.bf16.mxu1 %v10498_v1 }
 0x6a9   :  { %2934 = vmatpush1.bf16.msra.mxu0 %v10504_v54  ;;  %2975 = vmatpush1.bf16.msra.mxu1 %v10510_v58 }
 0x6aa   :  { %2935 = vmatprep.subr.bf16.mxu0 %v10516_v51  ;;  %2976 = vmatprep.subr.bf16.mxu1 %v10522_v42 }
 0x6ad   :  { %2936 = vmatpush1.bf16.msra.mxu0 %v10528_v19  ;;  %2977 = vmatpush1.bf16.msra.mxu1 %v10534_v9 }
 0x6ae   :  { %2937 = vmatprep.subr.bf16.mxu0 %v10540_v13  ;;  %2978 = vmatprep.subr.bf16.mxu1 %v10546_v15 }
 0x6b1   :  { %2938 = vmatpush1.bf16.msra.mxu0 %v10552_v53  ;;  %2979 = vmatpush1.bf16.msra.mxu1 %v10639_v30 }
 0x6b2   :  { %2939 = vmatprep.subr.bf16.mxu0 %v10559_v12  ;;  %2980 = vmatprep.subr.bf16.mxu1 %v10646_v31 }
 0x6b5   :  { %2940 = vmatpush1.bf16.msra.mxu0 %v10566_v4  ;;  %2981 = vmatpush1.bf16.msra.mxu1 %v10653_v34 }
 0x6b6   :  { %2941 = vmatprep.subr.bf16.mxu0 %v10573_v7  ;;  %2982 = vmatprep.subr.bf16.mxu1 %v10660_v36 }
 0x6b9   :  { %2942 = vmatpush1.bf16.msra.mxu0 %v10580_v61  ;;  %2983 = vmatpush1.bf16.msra.mxu1 %v10667_v37 }
 0x6ba   :  { %3104 = vmatprep.subr.bf16.mxu0 %v10587_v2  ;;  %3145 = vmatprep.subr.bf16.mxu1 %v10593_v5 }
 0x75c   :  { %v2784_v11 = vpop.f32.mrf.mxu0  ;;  %v2825_v16 = vpop.f32.mrf.mxu1 }
 0x75d   :  { %v2836_v52 = vrot.slane %v2784_v11, 3  ;;  %v2840_v20 = vrot.slane %v2784_v11, 4  ;;  %v2838_v11 = vrot.slane %v2825_v16, 3 }
 0x75e   :  { %v2786_v22 = vpop.f32.mrf.mxu0  ;;  %v2827_v32 = vpop.f32.mrf.mxu1 }
 0x75f   :  { %v2852_v6 = vadd.f32 %v2836_v52, %v10291_v18  ;;  %v2856_v25 = vadd.f32 %v2840_v20, %v10299_v26  ;;  %v2837_v27 = vrot.slane %v2786_v22, 3  ;;  %v2841_v60 = vrot.slane %v2786_v22, 4 }
 0x760   :  { %v2788_v41 = vpop.f32.mrf.mxu0  ;;  %v2829_v39 = vpop.f32.mrf.mxu1  ;;  %v2839_v8 = vrot.slane %v2827_v32, 3  ;;  %v2843_v3 = vrot.slane %v2827_v32, 4  ;;  %v2842_v52 = vrot.slane %v2825_v16, 4 }
 0x761   :  { %v7507_v57 = vmul.f32 -1.442695, %v2852_v6  ;;  %v7508_v28 = vmul.f32 -1.442695, %v2856_v25  ;;  %v2853_v2 = vadd.f32 %v2837_v27, %v10293_v21  ;;  %v2857_v5 = vadd.f32 %v2841_v60, %v10295_v29 }
 0x762   :  { %v2789_v47 = vpop.f32.mrf.mxu0  ;;  %v2830_v56 = vpop.f32.mrf.mxu1  ;;  %v2855_v20 = vadd.f32 %v2839_v8, %v10308_v10  ;;  %v2859_v22 = vadd.f32 %v2843_v3, %v10313_v63  ;;  %v2854_v6 = vadd.f32 %v2838_v11, %v10306_v17  ;;  %v2858_v25 = vadd.f32 %v2842_v52, %v10310_v55 }
 0x763   :  { %8752 = vpow2.f32 %v7507_v57  ;;  %v7509_v35 = vmul.f32 -1.442695, %v2853_v2  ;;  %v7510_v14 = vmul.f32 -1.442695, %v2857_v5  ;;  %v2900_v11 = vrot.slane %v10682_v0, 7 }
 0x764   :  { %8754 = vpow2.f32 %v7508_v28  ;;  %v7511_v27 = vmul.f32 -1.442695, %v2855_v20  ;;  %v7512_v60 = vmul.f32 -1.442695, %v2859_v22  ;;  %v2901_v22 = vrot.slane %v10684_v45, 7 }
 0x765   :  { %8756 = vpow2.f32 %v7509_v35 }
 0x766   :  { %8758 = vpow2.f32 %v7510_v14 }
 0x767   :  { %8760 = vtanh.f32 %v2854_v6 }
 0x768   :  { %8762 = vtanh.f32 %v2858_v25 }
 0x769   :  { %8764 = vpow2.f32 %v7511_v27 }
 0x76a   :  { %8766 = vpow2.f32 %v7512_v60 }
 0x770   :  { %v8753_v41 = vpop.eup %8752 }
 0x771   :  { %v8755_v39 = vpop.eup %8754  ;;  %v2866_v57 = vadd.f32 1.0, %v8753_v41 }
 0x772   :  { %v2867_v28 = vadd.f32 1.0, %v8755_v39  ;;  %v8757_v32 = vpop.eup %8756 }
 0x773   :  { %v8759_v16 = vpop.eup %8758  ;;  %8768 = vrcp.f32 %v2866_v57  ;;  %v2878_v2 = vadd.f32 1.0, %v8757_v32 }
 0x774   :  { %8770 = vrcp.f32 %v2867_v28  ;;  %v2879_v5 = vadd.f32 1.0, %v8759_v16  ;;  %v8761_v47 = vpop.eup %8760 }
 0x775   :  { %8772 = vrcp.f32 %v2878_v2  ;;  %v8763_v56 = vpop.eup %8762 }
 0x776   :  { %8774 = vrcp.f32 %v2879_v5  ;;  %v8765_v35 = vpop.eup %8764 }
 0x777   :  { %v8767_v14 = vpop.eup %8766  ;;  %v2892_v52 = vadd.f32 1.0, %v8765_v35 }
 0x778   :  { %v2893_v6 = vadd.f32 1.0, %v8767_v14 }
 0x779   :  { %8776 = vrcp.f32 %v2892_v52 }
 0x77a   :  { %8778 = vrcp.f32 %v2893_v6 }
 0x780   :  { %v8769_v8 = vpop.eup %8768 }
 0x781   :  { %v8771_v3 = vpop.eup %8770  ;;  %v2906_v27 = vmul.f32 %v8769_v8, %v8761_v47 }
 0x782   :  { %v8773_v20 = vpop.eup %8772  ;;  %v2907_v41 = vmul.f32 %v8771_v3, %v8763_v56 }
 0x783   :  { %v8775_v25 = vpop.eup %8774  ;;  %v2904_v60 = vmul.f32 %v8773_v20, %v2900_v11 }
 0x784   :  { %v2905_v39 = vmul.f32 %v8775_v25, %v2901_v22 }
 0x785   :  { %v10733_v57 = vadd.f32 %v2906_v27, %v2904_v60 }
 0x786   :  { %v10735_v28 = vadd.f32 %v2907_v41, %v2905_v39  ;;  %v8777_v0 = vpop.eup %8776 }
 0x787   :  { %8780 = vtanh.f32 %v10733_v57  ;;  %v8779_v32 = vpop.eup %8778 }
 0x788   :  { %8782 = vtanh.f32 %v10735_v28 }
 0x794   :  { %v8781_v16 = vpop.eup %8780 }
 0x795   :  { %v8783_v45 = vpop.eup %8782  ;;  %v2912_v2 = vmul.f32 %v8781_v16, %v8777_v0 }
 0x796   :  { %v2913_v5 = vmul.f32 %v8783_v45, %v8779_v32 }
 0x797   :  { %2914 = vst [vmem:[#allocation2] sm:$0x20] %v2912_v2  ;;  %v2916_v47 = vpack.c.bf16 %v2912_v2, %v2912_v2 }
 0x798   :  { %2915 = vst [vmem:[#allocation2 + $0x8] sm:$0x20] %v2913_v5  ;;  %v2917_v56 = vpack.c.bf16 %v2913_v5, %v2913_v5 }
 0x799   :  { %v2920_v35 = vunpack.c.l.b16 %v2916_v47 }
 0x79a   :  { %v2921_v14 = vunpack.c.l.b16 %v2917_v56 }
 0x79b   :  { %v2922_v8 = vrot.slane %v2920_v35, 5  ;;  %v3077_v35 = vrot.slane %v10733_v57, 7 }
 0x79c   :  { %v2923_v3 = vrot.slane %v2921_v14, 4 }
 0x79e   :  { %v2924_v11 = vsel %vm2043_vm10, %v2923_v3, %v2922_v8  ;;  %v3078_v3 = vrot.slane %v10735_v28, 7 }
 0x79f   :  { %v2925_v52 = vpack.c.b16 %v2924_v11, %v2924_v11 }
 0x7a1   :  { %2960 = vmatmul.mubr.bf16.vlgmr.msra.gmra.mxu0 %v2925_v52  ;;  %3001 = vmatmul.mubr.bf16.vlgmr.msra.gmra.mxu1 %v2925_v52 }
 0x7a2   :  { %3105 = vmatpush1.bf16.msra.mxu0 %v10430_v44  ;;  %3146 = vmatpush1.bf16.msra.mxu1 %v10436_v38  ;;  %v12623_v44 = vmov 0.0   ;;  %v8430_v38 = vld [vmem:[%s12624_s9 + $0x74] ss:$8 sps:$4 sm:$0xff]  }
 0x7a3   :  { %3106 = vmatprep.subr.bf16.mxu0 %v10442_v43  ;;  %3147 = vmatprep.subr.bf16.mxu1 %v10448_v50 }
 0x7a4   :  { %3136 = vmatprep.mubr.bf16.mxu0 %v12622_v49  ;;  %3177 = vmatprep.mubr.bf16.mxu1 %v12622_v49 }
 0x7a6   :  { %3107 = vmatpush1.bf16.msra.mxu0 %v10456_v59  ;;  %3148 = vmatpush1.bf16.msra.mxu1 %v10462_v23 }
 0x7a7   :  { %3108 = vmatprep.subr.bf16.mxu0 %v10468_v46  ;;  %3149 = vmatprep.subr.bf16.mxu1 %v10474_v24 }
 0x7aa   :  { %3109 = vmatpush1.bf16.msra.mxu0 %v10480_v33  ;;  %3150 = vmatpush1.bf16.msra.mxu1 %v10486_v48 }
 0x7ab   :  { %3110 = vmatprep.subr.bf16.mxu0 %v10492_v62  ;;  %3151 = vmatprep.subr.bf16.mxu1 %v10498_v1 }
 0x7ae   :  { %3111 = vmatpush1.bf16.msra.mxu0 %v10504_v54  ;;  %3152 = vmatpush1.bf16.msra.mxu1 %v10510_v58 }
 0x7af   :  { %3112 = vmatprep.subr.bf16.mxu0 %v10516_v51  ;;  %3153 = vmatprep.subr.bf16.mxu1 %v10522_v42 }
 0x7b2   :  { %3113 = vmatpush1.bf16.msra.mxu0 %v10528_v19  ;;  %3154 = vmatpush1.bf16.msra.mxu1 %v10534_v9 }
 0x7b3   :  { %3114 = vmatprep.subr.bf16.mxu0 %v10540_v13  ;;  %3155 = vmatprep.subr.bf16.mxu1 %v10546_v15 }
 0x7b6   :  { %3115 = vmatpush1.bf16.msra.mxu0 %v10552_v53  ;;  %3156 = vmatpush1.bf16.msra.mxu1 %v10639_v30 }
 0x7b7   :  { %3116 = vmatprep.subr.bf16.mxu0 %v10559_v12  ;;  %3157 = vmatprep.subr.bf16.mxu1 %v10646_v31 }
 0x7ba   :  { %3117 = vmatpush1.bf16.msra.mxu0 %v10566_v4  ;;  %3158 = vmatpush1.bf16.msra.mxu1 %v10653_v34 }
 0x7bb   :  { %3118 = vmatprep.subr.bf16.mxu0 %v10573_v7  ;;  %3159 = vmatprep.subr.bf16.mxu1 %v10660_v36 }
 0x7be   :  { %3119 = vmatpush1.bf16.msra.mxu0 %v10580_v61  ;;  %3160 = vmatpush1.bf16.msra.mxu1 %v10667_v37 }
 0x7bf   :  { %7946 = vmatprep.subr.bf16.mxu1 %v12623_v44  ;;  %3370 = vmatprep.subr.bf16.mxu0 %v8430_v38 }
 0x861   :  { %v2961_v43 = vpop.f32.mrf.mxu0  ;;  %v3002_v50 = vpop.f32.mrf.mxu1 }
 0x862   :  { %v3013_v59 = vrot.slane %v2961_v43, 2  ;;  %v3017_v23 = vrot.slane %v2961_v43, 3  ;;  %v3015_v61 = vrot.slane %v3002_v50, 2  ;;  %v3019_v30 = vrot.slane %v3002_v50, 3 }
 0x863   :  { %v2963_v46 = vpop.f32.mrf.mxu0  ;;  %v3004_v24 = vpop.f32.mrf.mxu1 }
 0x864   :  { %v3029_v33 = vadd.f32 %v3013_v59, %v10291_v18  ;;  %v3033_v48 = vadd.f32 %v3017_v23, %v10299_v26  ;;  %v3014_v62 = vrot.slane %v2963_v46, 2  ;;  %v3018_v1 = vrot.slane %v2963_v46, 3 }
 0x865   :  { %v2965_v54 = vpop.f32.mrf.mxu0  ;;  %v3006_v58 = vpop.f32.mrf.mxu1  ;;  %v3016_v4 = vrot.slane %v3004_v24, 2  ;;  %v3020_v7 = vrot.slane %v3004_v24, 3  ;;  %v3031_v36 = vadd.f32 %v3015_v61, %v10306_v17  ;;  %v3035_v37 = vadd.f32 %v3019_v30, %v10310_v55  ;;  %v8439_v61 = vld [vmem:[%s12624_s9 + $0x44] ss:$8 sps:$4 sm:$0xff]  }
 0x866   :  { %v7513_v51 = vmul.f32 -1.442695, %v3029_v33  ;;  %v7514_v42 = vmul.f32 -1.442695, %v3033_v48  ;;  %v3030_v19 = vadd.f32 %v3014_v62, %v10293_v21  ;;  %v3034_v9 = vadd.f32 %v3018_v1, %v10295_v29  ;;  %v12625_v30 = vld [vmem:[#allocation16_spill] sm:$0xff] }
 0x867   :  { %v2966_v13 = vpop.f32.mrf.mxu0  ;;  %v3007_v15 = vpop.f32.mrf.mxu1  ;;  %v3032_v31 = vadd.f32 %v3016_v4, %v10308_v10  ;;  %v3036_v34 = vadd.f32 %v3020_v7, %v10313_v63  ;;  %v8436_v4 = vld [vmem:[%s12624_s9 + $0x54] ss:$8 sps:$4 sm:$0xff]   ;;  %v8434_v7 = vld [vmem:[%s12624_s9 + $0x50] ss:$8 sps:$4 sm:$0xff]  }
 0x868   :  { %8784 = vpow2.f32 %v7513_v51  ;;  %v7515_v53 = vmul.f32 -1.442695, %v3030_v19  ;;  %v7516_v12 = vmul.f32 -1.442695, %v3034_v9  ;;  %v8428_v9 = vld [vmem:[%s12624_s9 + $0x70] ss:$8 sps:$4 sm:$0xff]  }
 0x869   :  { %8786 = vpow2.f32 %v7514_v42  ;;  %v7517_v20 = vmul.f32 -1.442695, %v3032_v31  ;;  %v7518_v22 = vmul.f32 -1.442695, %v3036_v34  ;;  %v8437_v31 = vld [vmem:[%s12624_s9 + $0x40] ss:$8 sps:$4 sm:$0xff]  }
 0x86a   :  { %8788 = vpow2.f32 %v7515_v53  ;;  %v8433_v53 = vld [vmem:[%s12624_s9 + $0x64] ss:$8 sps:$4 sm:$0xff]   ;;  %v8442_v34 = vld [vmem:[%s12624_s9 + $0x34] ss:$8 sps:$4 sm:$0xff]  }
 0x86b   :  { %8790 = vpow2.f32 %v7516_v12  ;;  %v8431_v12 = vld [vmem:[%s12624_s9 + $0x60] ss:$8 sps:$4 sm:$0xff]  }
 0x86c   :  { %8792 = vtanh.f32 %v3031_v36  ;;  %v8440_v36 = vld [vmem:[%s12624_s9 + $0x30] ss:$8 sps:$4 sm:$0xff]  }
 0x86d   :  { %8794 = vtanh.f32 %v3035_v37  ;;  %v8445_v37 = vld [vmem:[%s12624_s9 + $0x24] ss:$8 sps:$4 sm:$0xff]  }
 0x86e   :  { %8796 = vpow2.f32 %v7517_v20  ;;  %v12626_v20 = vld [vmem:[#allocation11_spill] sm:$0xff] }
 0x86f   :  { %8798 = vpow2.f32 %v7518_v22  ;;  %v8443_v22 = vld [vmem:[%s12624_s9 + $0x20] ss:$8 sps:$4 sm:$0xff]  }
 0x875   :  { %v8785_v6 = vpop.eup %8784 }
 0x876   :  { %v8787_v25 = vpop.eup %8786  ;;  %v3043_v27 = vadd.f32 1.0, %v8785_v6  ;;  %v8448_v6 = vld [vmem:[%s12624_s9 + $0x14] ss:$8 sps:$4 sm:$0xff]  }
 0x877   :  { %v3044_v60 = vadd.f32 1.0, %v8787_v25  ;;  %v8789_v41 = vpop.eup %8788  ;;  %v8446_v25 = vld [vmem:[%s12624_s9 + $0x10] ss:$8 sps:$4 sm:$0xff]  }
 0x878   :  { %v8791_v39 = vpop.eup %8790  ;;  %8800 = vrcp.f32 %v3043_v27  ;;  %v3055_v0 = vadd.f32 1.0, %v8789_v41  ;;  %v8451_v27 = vld [vmem:[%s12624_s9 + $0x4] ss:$8 sps:$4 sm:$0xff]   ;;  %v8449_v41 = vld [vmem:[%s12624_s9] ss:$8 sps:$4 sm:$0xff]   ;;  %s12653_s9 = sld [smem:[#allocation91_spill]] }
 0x879   :  { %8802 = vrcp.f32 %v3044_v60  ;;  %v3056_v32 = vadd.f32 1.0, %v8791_v39  ;;  %v8793_v16 = vpop.eup %8792  ;;  %v12627_v60 = vld [vmem:[#allocation10_spill] sm:$0xff] }
 0x87a   :  { %8804 = vrcp.f32 %v3055_v0  ;;  %v8795_v45 = vpop.eup %8794  ;;  %v12628_v39 = vld [vmem:[#allocation30_spill] sm:$0xff]  ;;  %v12629_v0 = vld [vmem:[#allocation28_spill] sm:$0xff] }
 0x87b   :  { %8806 = vrcp.f32 %v3056_v32  ;;  %v8797_v2 = vpop.eup %8796  ;;  %v12630_v32 = vld [vmem:[#allocation29_spill] sm:$0xff] }
 0x87c   :  { %v8799_v5 = vpop.eup %8798  ;;  %v3069_v14 = vadd.f32 1.0, %v8797_v2 }
 0x87d   :  { %v3070_v11 = vadd.f32 1.0, %v8799_v5 }
 0x87e   :  { %8808 = vrcp.f32 %v3069_v14 }
 0x87f   :  { %8810 = vrcp.f32 %v3070_v11 }
 0x885   :  { %v8801_v47 = vpop.eup %8800 }
 0x886   :  { %v8803_v56 = vpop.eup %8802  ;;  %v3083_v38 = vmul.f32 %v8801_v47, %v8793_v16  ;;  %v12631_v16 = vld [vmem:[#allocation21_spill] sm:$0xff] }
 0x887   :  { %v8805_v8 = vpop.eup %8804  ;;  %v3084_v50 = vmul.f32 %v8803_v56, %v8795_v45  ;;  %v12632_v45 = vld [vmem:[#allocation22_spill] sm:$0xff] }
 0x888   :  { %v8807_v52 = vpop.eup %8806  ;;  %v3081_v43 = vmul.f32 %v8805_v8, %v3077_v35 }
 0x889   :  { %v3082_v59 = vmul.f32 %v8807_v52, %v3078_v3 }
 0x88a   :  { %v10786_v23 = vadd.f32 %v3083_v38, %v3081_v43 }
 0x88b   :  { %v10788_v46 = vadd.f32 %v3084_v50, %v3082_v59  ;;  %v8809_v57 = vpop.eup %8808 }
 0x88c   :  { %8812 = vtanh.f32 %v10786_v23  ;;  %v8811_v24 = vpop.eup %8810 }
 0x88d   :  { %8814 = vtanh.f32 %v10788_v46 }
 0x899   :  { %v8813_v33 = vpop.eup %8812 }
 0x89a   :  { %v8815_v28 = vpop.eup %8814  ;;  %v3089_v48 = vmul.f32 %v8813_v33, %v8809_v57 }
 0x89b   :  { %v3090_v62 = vmul.f32 %v8815_v28, %v8811_v24 }
 0x89c   :  { %3091 = vst [vmem:[#allocation2] sm:$0x40] %v3089_v48  ;;  %v3093_v1 = vpack.c.bf16 %v3089_v48, %v3089_v48 }
 0x89d   :  { %3092 = vst [vmem:[#allocation2 + $0x8] sm:$0x40] %v3090_v62  ;;  %v3094_v54 = vpack.c.bf16 %v3090_v62, %v3090_v62 }
 0x89e   :  { %v3097_v58 = vunpack.c.l.b16 %v3093_v1 }
 0x89f   :  { %v3098_v51 = vunpack.c.l.b16 %v3094_v54 }
 0x8a0   :  { %v3099_v42 = vrot.slane %v3097_v58, 6 }
 0x8a1   :  { %v3100_v19 = vrot.slane %v3098_v51, 5 }
 0x8a3   :  { %v3101_v13 = vsel %vm2043_vm10, %v3100_v19, %v3099_v42 }
 0x8a4   :  { %v3102_v15 = vpack.c.b16 %v3101_v13, %v3101_v13 }
 0x8a6   :  { %3137 = vmatmul.mubr.bf16.vlgmr.msra.gmra.mxu0 %v3102_v15  ;;  %3178 = vmatmul.mubr.bf16.vlgmr.msra.gmra.mxu1 %v3102_v15 }
 0x8a7   :  { %3371 = vmatpush1.bf16.msra.mxu0 %v8428_v9  ;;  %7947 = vmatpush3.bf16.xpose.msra.mxu1 %v9513_v40 }
 0x8a8   :  { %3372 = vmatprep.subr.bf16.mxu0 %v8433_v53  ;;  %7948 = vmatprep.subr.bf16.mxu1 %v12623_v44 }
 0x8a9   :  { %3402 = vmatprep.mubr.bf16.mxu0 %v12622_v49  ;;  %7954 = vmatprep.mubr.msk.bf16.mxu1 %vm9148_vm9, %v12623_v44 }
 0x8ab   :  { %3373 = vmatpush1.bf16.msra.mxu0 %v8431_v12 }
 0x8ac   :  { %3374 = vmatprep.subr.bf16.mxu0 %v8436_v4 }
 0x8af   :  { %3375 = vmatpush1.bf16.msra.mxu0 %v8434_v7  ;;  %7949 = vmatpush3.bf16.xpose.msra.mxu1 %v12625_v30 }
 0x8b0   :  { %3376 = vmatprep.subr.bf16.mxu0 %v8439_v61  ;;  %7950 = vmatprep.subr.bf16.mxu1 %v12623_v44 }
 0x8b3   :  { %3377 = vmatpush1.bf16.msra.mxu0 %v8437_v31  ;;  %v12633_v31 = vld [vmem:[#allocation52_spill] sm:$0xff] }
 0x8b4   :  { %3378 = vmatprep.subr.bf16.mxu0 %v8442_v34  ;;  %v12634_v34 = vld [vmem:[#allocation55_spill] sm:$0xff] }
 0x8b7   :  { %3379 = vmatpush1.bf16.msra.mxu0 %v8440_v36  ;;  %7951 = vmatpush3.bf16.xpose.msra.mxu1 %v12626_v20  ;;  %v3502_v36 = vpack.c.bf16 %v12634_v34, %v12633_v31 }
 0x8b8   :  { %3380 = vmatprep.subr.bf16.mxu0 %v8445_v37  ;;  %7952 = vmatprep.subr.bf16.mxu1 %v12623_v44 }
 0x8bb   :  { %3381 = vmatpush1.bf16.msra.mxu0 %v8443_v22 }
 0x8bc   :  { %3382 = vmatprep.subr.bf16.mxu0 %v8448_v6 }
 0x8bf   :  { %3383 = vmatpush1.bf16.msra.mxu0 %v8446_v25  ;;  %7953 = vmatpush3.bf16.xpose.msra.mxu1 %v12627_v60 }
 0x8c0   :  { %3384 = vmatprep.subr.bf16.mxu0 %v8451_v27  ;;  %7970 = vmatprep.subr.bf16.mxu1 %v12623_v44 }
 0x8c3   :  { %3385 = vmatpush1.bf16.msra.mxu0 %v8449_v41 }
 0x8c4   :  { %7958 = vmatprep.subr.bf16.mxu0 %v12623_v44 }
 0x8c6   :  { %3403 = vmatmul.mubr.bf16.vlgmr.msra.gmra.mxu0 %v12628_v39 }
 0x8c7   :  { %7959 = vmatpush3.bf16.xpose.msra.mxu0 %v12629_v0  ;;  %7966 = vmatprep.mubr.msk.bf16.mxu0 %vm9148_vm9, %v12623_v44 }
 0x8c8   :  { %7960 = vmatprep.subr.bf16.mxu0 %v12623_v44 }
 0x8cf   :  { %7961 = vmatpush3.bf16.xpose.msra.mxu0 %v12630_v32 }
 0x8d0   :  { %7962 = vmatprep.subr.bf16.mxu0 %v12623_v44 }
 0x8d7   :  { %7963 = vmatpush3.bf16.xpose.msra.mxu0 %v12631_v16 }
 0x8d8   :  { %7964 = vmatprep.subr.bf16.mxu0 %v12623_v44 }
 0x8df   :  { %7965 = vmatpush3.bf16.xpose.msra.mxu0 %v12632_v45 }
 0x8e0   :  { %7982 = vmatprep.subr.bf16.mxu0 %v12623_v44 }
 0x966   :  { %v3138_v2 = vpop.f32.mrf.mxu0  ;;  %v3179_v5 = vpop.f32.mrf.mxu1 }
 0x967   :  { %v3190_v47 = vrot.slane %v3138_v2, 1  ;;  %v3194_v56 = vrot.slane %v3138_v2, 2  ;;  %v3192_v1 = vrot.slane %v3179_v5, 1  ;;  %v3196_v54 = vrot.slane %v3179_v5, 2  ;;  %v12635_v2 = vld [vmem:[#allocation46_spill] sm:$0xff]  ;;  %v12636_v5 = vld [vmem:[#allocation49_spill] sm:$0xff] }
 0x968   :  { %v3140_v35 = vpop.f32.mrf.mxu0  ;;  %v3181_v14 = vpop.f32.mrf.mxu1 }
 0x969   :  { %v3206_v8 = vadd.f32 %v3190_v47, %v10291_v18  ;;  %v3210_v3 = vadd.f32 %v3194_v56, %v10299_v26  ;;  %v3191_v11 = vrot.slane %v3140_v35, 1  ;;  %v3195_v52 = vrot.slane %v3140_v35, 2  ;;  %v12637_v56 = vld [vmem:[#allocation75_spill] sm:$0xff] }
 0x96a   :  { %v3142_v38 = vpop.f32.mrf.mxu0  ;;  %v3183_v43 = vpop.f32.mrf.mxu1  ;;  %v3193_v18 = vrot.slane %v3181_v14, 1  ;;  %v3197_v26 = vrot.slane %v3181_v14, 2  ;;  %v3501_v47 = vpack.c.bf16 %v12636_v5, %v12635_v2  ;;  %v12638_v35 = vld [vmem:[#allocation79_spill] sm:$0xff] }
 0x96b   :  { %v7519_v50 = vmul.f32 -1.442695, %v3206_v8  ;;  %v7520_v59 = vmul.f32 -1.442695, %v3210_v3  ;;  %v3207_v57 = vadd.f32 %v3191_v11, %v10293_v21  ;;  %v3211_v24 = vadd.f32 %v3195_v52, %v10295_v29 }
 0x96c   :  { %v3143_v33 = vpop.f32.mrf.mxu0  ;;  %v3184_v28 = vpop.f32.mrf.mxu1  ;;  %v3209_v58 = vadd.f32 %v3193_v18, %v10308_v10  ;;  %v3213_v51 = vadd.f32 %v3197_v26, %v10313_v63  ;;  %v3208_v21 = vadd.f32 %v3192_v1, %v10306_v17  ;;  %v3212_v29 = vadd.f32 %v3196_v54, %v10310_v55  ;;  %v12643_v1 = vld [vmem:[#allocation31_spill] sm:$0xff] }
 0x96d   :  { %8816 = vpow2.f32 %v7519_v50  ;;  %v7521_v48 = vmul.f32 -1.442695, %v3207_v57  ;;  %v7522_v62 = vmul.f32 -1.442695, %v3211_v24  ;;  %v3506_v14 = vpack.c.bf16 %v12638_v35, %v12637_v56  ;;  %v12639_v33 = vld [vmem:[#allocation39_spill] sm:$0xff] }
 0x96e   :  { %8818 = vpow2.f32 %v7520_v59  ;;  %v7523_v42 = vmul.f32 -1.442695, %v3209_v58  ;;  %v7524_v19 = vmul.f32 -1.442695, %v3213_v51  ;;  %v3254_v8 = vrot.slane %v10786_v23, 7  ;;  %v12640_v28 = vld [vmem:[#allocation43_spill] sm:$0xff] }
 0x96f   :  { %8820 = vpow2.f32 %v7521_v48  ;;  %v3255_v52 = vrot.slane %v10788_v46, 7  ;;  %v3500_v23 = vpack.c.bf16 %v12640_v28, %v12639_v33  ;;  %v12641_v48 = vld [vmem:[#allocation70_spill] sm:$0xff]  ;;  %v12644_v54 = vld [vmem:[#allocation35_spill] sm:$0xff]  ;;  %v12645_v51 = vld [vmem:[#allocation64_spill] sm:$0xff] }
 0x970   :  { %8822 = vpow2.f32 %v7522_v62  ;;  %v12642_v62 = vld [vmem:[#allocation73_spill] sm:$0xff]  ;;  %v3499_v58 = vpack.c.bf16 %v12644_v54, %v12643_v1 }
 0x971   :  { %8824 = vtanh.f32 %v3208_v21  ;;  %v3505_v18 = vpack.c.bf16 %v12642_v62, %v12641_v48  ;;  %v12646_v21 = vld [vmem:[#allocation67_spill] sm:$0xff] }
 0x972   :  { %8826 = vtanh.f32 %v3212_v29  ;;  %v3504_v29 = vpack.c.bf16 %v12646_v21, %v12645_v51 }
 0x973   :  { %8828 = vpow2.f32 %v7523_v42 }
 0x974   :  { %8830 = vpow2.f32 %v7524_v19 }
 0x97a   :  { %v8817_v9 = vpop.eup %8816 }
 0x97b   :  { %v8819_v13 = vpop.eup %8818  ;;  %v3220_v15 = vadd.f32 1.0, %v8817_v9  ;;  %v12647_v9 = vld [vmem:[#allocation58_spill] sm:$0xff] }
 0x97c   :  { %v3221_v53 = vadd.f32 1.0, %v8819_v13  ;;  %v8821_v12 = vpop.eup %8820  ;;  %v12648_v13 = vld [vmem:[#allocation61_spill] sm:$0xff] }
 0x97d   :  { %v8823_v4 = vpop.eup %8822  ;;  %8832 = vrcp.f32 %v3220_v15  ;;  %v3232_v10 = vadd.f32 1.0, %v8821_v12  ;;  %v3503_v15 = vpack.c.bf16 %v12648_v13, %v12647_v9 }
 0x97e   :  { %8834 = vrcp.f32 %v3221_v53  ;;  %v3233_v63 = vadd.f32 1.0, %v8823_v4  ;;  %v8825_v55 = vpop.eup %8824 }
 0x97f   :  { %8836 = vrcp.f32 %v3232_v10  ;;  %v8827_v61 = vpop.eup %8826 }
 0x980   :  { %8838 = vrcp.f32 %v3233_v63  ;;  %v8829_v22 = vpop.eup %8828 }
 0x981   :  { %v8831_v6 = vpop.eup %8830  ;;  %v3246_v3 = vadd.f32 1.0, %v8829_v22 }
 0x982   :  { %v3247_v38 = vadd.f32 1.0, %v8831_v6 }
 0x983   :  { %8840 = vrcp.f32 %v3246_v3 }
 0x984   :  { %8842 = vrcp.f32 %v3247_v38 }
 0x986   :  { %v3404_v17 = vpop.f32.mrf.mxu0 }
 0x987   :  { %v3413_v7 = vpack.c.bf16 %v3404_v17, %v3404_v17 }
 0x988   :  { %v10871_v37 = vpop.f32.mrf.mxu0 }
 0x989   :  { %7955 = vmatmul.mubr.bf16.vlgmr.msra.gmra.mxu1 %v3413_v7  ;;  %v3598_v42 = vpack.c.bf16 %v10871_v37, %v10871_v37 }
 0x98a   :  { %7971 = vmatpush3.bf16.msra.mxu1 %v3502_v36  ;;  %v3408_v25 = vpop.f32.mrf.mxu0  ;;  %7978 = vmatprep.mubr.msk.bf16.mxu1 %vm9148_vm9, %v12623_v44  ;;  %v8833_v27 = vpop.eup %8832 }
 0x98b   :  { %v3414_v41 = vpack.c.bf16 %v3408_v25, %v3408_v25  ;;  %7972 = vmatprep.subr.bf16.mxu1 %v12623_v44  ;;  %v8835_v39 = vpop.eup %8834  ;;  %v3260_v50 = vmul.f32 %v8833_v27, %v8825_v55 }
 0x98c   :  { %v8837_v11 = vpop.eup %8836  ;;  %v3261_v57 = vmul.f32 %v8835_v39, %v8827_v61  ;;  %v10898_v19 = vpop.f32.mrf.mxu0 }
 0x98d   :  { %7967 = vmatmul.mubr.bf16.vlgmr.msra.gmra.mxu0 %v3414_v41  ;;  %v8839_v43 = vpop.eup %8838  ;;  %v3258_v59 = vmul.f32 %v8837_v11, %v3254_v8  ;;  %v3599_v53 = vpack.c.bf16 %v10898_v19, %v10898_v19  ;;  %v3631_v8 = vsel %vm3629_vm11, %v3598_v42, 0 }
 0x98e   :  { %7973 = vmatpush3.bf16.msra.mxu1 %v3501_v47  ;;  %7983 = vmatpush3.bf16.msra.mxu0 %v3506_v14  ;;  %v3259_v24 = vmul.f32 %v8839_v43, %v3255_v52  ;;  %v8454_v14 = vld [vmem:[%s12649_s1 + $0x74] ss:$8 sps:$4 sm:$0xff]   ;;  %v8452_v43 = vld [vmem:[%s12649_s1 + $0x70] ss:$8 sps:$4 sm:$0xff]  }
 0x98f   :  { %7974 = vmatprep.subr.bf16.mxu1 %v12623_v44  ;;  %7984 = vmatprep.subr.bf16.mxu0 %v12623_v44  ;;  %v3262_v46 = vadd.f32 %v3260_v50, %v3258_v59  ;;  %v3727_v52 = vsel %vm3629_vm11, %v3599_v53, 0  ;;  %v8457_v50 = vld [vmem:[%s12649_s1 + $0x64] ss:$8 sps:$4 sm:$0xff]  }
 0x990   :  { %7990 = vmatprep.mubr.msk.bf16.mxu0 %vm9148_vm9, %v12623_v44  ;;  %v3263_v26 = vadd.f32 %v3261_v57, %v3259_v24  ;;  %v8841_v12 = vpop.eup %8840  ;;  %v8455_v57 = vld [vmem:[%s12649_s1 + $0x60] ss:$8 sps:$4 sm:$0xff]   ;;  %v8460_v24 = vld [vmem:[%s12649_s1 + $0x54] ss:$8 sps:$4 sm:$0xff]  }
 0x991   :  { %8844 = vtanh.f32 %v3262_v46  ;;  %v8843_v4 = vpop.eup %8842  ;;  %v8463_v46 = vld [vmem:[%s12649_s1 + $0x44] ss:$8 sps:$4 sm:$0xff]  }
 0x992   :  { %7975 = vmatpush3.bf16.msra.mxu1 %v3500_v23  ;;  %7985 = vmatpush3.bf16.msra.mxu0 %v3505_v18  ;;  %8846 = vtanh.f32 %v3263_v26  ;;  %v8458_v18 = vld [vmem:[%s12649_s1 + $0x50] ss:$8 sps:$4 sm:$0xff]  }
 0x993   :  { %7976 = vmatprep.subr.bf16.mxu1 %v12623_v44  ;;  %7986 = vmatprep.subr.bf16.mxu0 %v12623_v44 }
 0x996   :  { %7977 = vmatpush3.bf16.msra.mxu1 %v3499_v58  ;;  %7987 = vmatpush3.bf16.msra.mxu0 %v3504_v29  ;;  %v8461_v58 = vld [vmem:[%s12649_s1 + $0x40] ss:$8 sps:$4 sm:$0xff]   ;;  %v8466_v29 = vld [vmem:[%s12649_s1 + $0x34] ss:$8 sps:$4 sm:$0xff]  }
 0x997   :  { %8190 = vmatprep.subr.msk.bf16.mxu1 %vm3629_vm11, %v3598_v42  ;;  %7988 = vmatprep.subr.bf16.mxu0 %v12623_v44 }
 0x99a   :  { %7989 = vmatpush3.bf16.msra.mxu0 %v3503_v15  ;;  %v8464_v15 = vld [vmem:[%s12649_s1 + $0x30] ss:$8 sps:$4 sm:$0xff]  }
 0x99b   :  { %8191 = vmatprep.subr.msk.bf16.mxu0 %vm3629_vm11, %v3599_v53  ;;  %v8469_v53 = vld [vmem:[%s12649_s1 + $0x24] ss:$8 sps:$4 sm:$0xff]  }
 0x99e   :  { %v8845_v10 = vpop.eup %8844 }
 0x99f   :  { %v8847_v63 = vpop.eup %8846  ;;  %v3266_v17 = vmul.f32 %v8845_v10, %v8841_v12  ;;  %v8472_v10 = vld [vmem:[%s12649_s1 + $0x14] ss:$8 sps:$4 sm:$0xff]  }
 0x9a0   :  { %v3267_v55 = vmul.f32 %v8847_v63, %v8843_v4  ;;  %v8467_v4 = vld [vmem:[%s12649_s1 + $0x20] ss:$8 sps:$4 sm:$0xff]  }
 0x9a1   :  { %3268 = vst [vmem:[#allocation2] sm:$0x80] %v3266_v17  ;;  %v8470_v17 = vld [vmem:[%s12649_s1 + $0x10] ss:$8 sps:$4 sm:$0xff]  }
 0x9a2   :  { %3269 = vst [vmem:[#allocation2 + $0x8] sm:$0x80] %v3267_v55  ;;  %v8475_v55 = vld [vmem:[%s12649_s1 + $0x4] ss:$8 sps:$4 sm:$0xff]  }
 0xa49   :  { %v3449_v7 = vpop.f32.mrf.mxu1 }
 0xa4a   :  { %8848 = vtanh.f32 %v3449_v7 }
 0xa4b   :  { %v7956_v61 = vpop.f32.mrf.mxu1 }
 0xa4c   :  { %v8473_v61 = vld [vmem:[%s12649_s1] ss:$8 sps:$4 sm:$0xff]  }
 0xa4d   :  { %v3452_v36 = vpop.f32.mrf.mxu1  ;;  %v3489_v22 = vpop.f32.mrf.mxu0 }
 0xa4e   :  { %8850 = vtanh.f32 %v3489_v22  ;;  %v12650_v36 = vld [vmem:[#allocation81_spill] sm:$0xff]  ;;  %v12651_v22 = vld [vmem:[#allocation82_spill] sm:$0xff] }
 0xa4f   :  { %v7957_v6 = vpop.f32.mrf.mxu1  ;;  %v7968_v25 = vpop.f32.mrf.mxu0 }
 0xa50   :  { %v4436_v6 = vpack.c.bf16 %v12651_v22, %v12650_v36  ;;  %v12679_v36 = vld [vmem:[#allocation42_spill] sm:$0xff]  ;;  %v12680_v22 = vld [vmem:[#allocation47_spill] sm:$0xff] }
 0xa51   :  { %v3492_v27 = vpop.f32.mrf.mxu0 }
 0xa53   :  { %v7969_v41 = vpop.f32.mrf.mxu0 }
 0xa57   :  { %v8849_v39 = vpop.eup %8848 }
 0xa58   :  { %v3497_v47 = vpack.c.bf16 %v8849_v39, %v8849_v39 }
 0xa5a   :  { %3600 = vxpose.xlu0.c.b16.start.end [1/1] (short) (narrow) %v3497_v47, 64  ;;  %7979 = vmatmul.mubr.msk.bf16.vlgmr.msra.gmra.mxu1 %vm3507_vm12, %v3497_v47 }
 0xa5b   :  { %v8851_v3 = vpop.eup %8850  ;;  %7995 = vmatpush3.bf16.msra.mxu1 %v3631_v8 }
 0xa5c   :  { %v3498_v11 = vpack.c.bf16 %v8851_v3, %v8851_v3  ;;  %4517 = vmatprep.subr.bf16.mxu1 %v8454_v14 }
 0xa5e   :  { %7991 = vmatmul.mubr.msk.bf16.vlgmr.msra.gmra.mxu0 %vm3507_vm12, %v3498_v11 }
 0xa5f   :  { %8005 = vmatpush3.bf16.msra.mxu0 %v3727_v52 }
 0xa60   :  { %8014 = vmatprep.subr.bf16.mxu0 %v12623_v44 }
 0xa67   :  { %3698 = vxpose.xlu0.c.b16.start.end [1/1] (short) (narrow) %v3498_v11, 64 }
 0xa70   :  { %8201 = vset.pattern.permute.xlu0 %v12622_v49 }
 0xabc   :  { %v3608_v38 = vpop.trf.xlu0 }
 0xabd   :  { %7996 = vmatprep.mubr.msk.bf16.mxu1 %vm3616_vm13, %v3608_v38  ;;  %v10998_v38 = vld [vmem:[%s12652_s29] ss:$0 sm:$0xff] }
 0xac0   :  { %v3609_v59 = vpop.trf.xlu0 }
 0xac1   :  { %7997 = vmatmul.mubr.msk.bf16.vlgmr.msra.gmra.mxu1 %vm3616_vm13, %v3609_v59 }
 0xac2   :  { %4518 = vmatpush1.bf16.msra.mxu1 %v8452_v43 }
 0xac3   :  { %4519 = vmatprep.subr.bf16.mxu1 %v8457_v50 }
 0xac4   :  { %v3610_v23 = vpop.trf.xlu0 }
 0xac5   :  { %8000 = vmatprep.mubr.msk.bf16.mxu1 %vm3616_vm13, %v3610_v23 }
 0xac6   :  { %4520 = vmatpush1.bf16.msra.mxu1 %v8455_v57 }
 0xac7   :  { %4521 = vmatprep.subr.bf16.mxu1 %v8460_v24 }
 0xac8   :  { %v3611_v26 = vpop.trf.xlu0 }
 0xac9   :  { %8001 = vmatmul.mubr.msk.bf16.gmra.mxu1 %vm3616_vm13, %v3611_v26 }
 0xaca   :  { %4522 = vmatpush1.bf16.msra.mxu1 %v8458_v18  ;;  %4549 = vmatprep.mubr.bf16.mxu1 %v12622_v49 }
 0xacb   :  { %4523 = vmatprep.subr.bf16.mxu1 %v8463_v46 }
 0xacc   :  { %v3706_v42 = vpop.trf.xlu0 }
 0xacd   :  { %8006 = vmatprep.mubr.msk.bf16.mxu0 %vm3616_vm13, %v3706_v42  ;;  %v11009_v42 = vld [vmem:[%s12653_s9] ss:$0 sm:$0xff] }
 0xace   :  { %4524 = vmatpush1.bf16.msra.mxu1 %v8461_v58 }
 0xacf   :  { %4525 = vmatprep.subr.bf16.mxu1 %v8466_v29 }
 0xad0   :  { %v3707_v12 = vpop.trf.xlu0 }
 0xad1   :  { %8007 = vmatmul.mubr.msk.bf16.vlgmr.msra.gmra.mxu0 %vm3616_vm13, %v3707_v12 }
 0xad2   :  { %4526 = vmatpush1.bf16.msra.mxu1 %v8464_v15  ;;  %8015 = vmatpush3.bf16.xpose.msra.mxu0 %v9513_v40 }
 0xad3   :  { %4527 = vmatprep.subr.bf16.mxu1 %v8469_v53  ;;  %8016 = vmatprep.subr.bf16.mxu0 %v12623_v44 }
 0xad4   :  { %v3708_v63 = vpop.trf.xlu0 }
 0xad5   :  { %8010 = vmatprep.mubr.msk.bf16.mxu0 %vm3616_vm13, %v3708_v63 }
 0xad6   :  { %4528 = vmatpush1.bf16.msra.mxu1 %v8467_v4 }
 0xad7   :  { %4529 = vmatprep.subr.bf16.mxu1 %v8472_v10 }
 0xad8   :  { %v3709_v7 = vpop.trf.xlu0 }
 0xad9   :  { %8011 = vmatmul.mubr.msk.bf16.gmra.mxu0 %vm3616_vm13, %v3709_v7 }
 0xada   :  { %4530 = vmatpush1.bf16.msra.mxu1 %v8470_v17  ;;  %8017 = vmatpush3.bf16.xpose.msra.mxu0 %v12625_v30 }
 0xadb   :  { %4531 = vmatprep.subr.bf16.mxu1 %v8475_v55  ;;  %8018 = vmatprep.subr.bf16.mxu0 %v12623_v44 }
 0xadc   :  { %8022 = vmatprep.mubr.msk.bf16.mxu0 %vm9148_vm9, %v12623_v44 }
 0xade   :  { %4532 = vmatpush1.bf16.msra.mxu1 %v8473_v61 }
 0xadf   :  { %8026 = vmatprep.subr.bf16.mxu1 %v12623_v44 }
 0xae1   :  { %4550 = vmatmul.mubr.bf16.vlgmr.msra.gmra.mxu1 %v4436_v6 }
 0xae2   :  { %8019 = vmatpush3.bf16.xpose.msra.mxu0 %v12626_v20  ;;  %8027 = vmatpush3.bf16.xpose.msra.mxu1 %v12629_v0 }
 0xae3   :  { %8020 = vmatprep.subr.bf16.mxu0 %v12623_v44  ;;  %8028 = vmatprep.subr.bf16.mxu1 %v12623_v44 }
 0xae4   :  { %8034 = vmatprep.mubr.msk.bf16.mxu1 %vm9148_vm9, %v12623_v44 }
 0xaea   :  { %8021 = vmatpush3.bf16.xpose.msra.mxu0 %v12627_v60  ;;  %8029 = vmatpush3.bf16.xpose.msra.mxu1 %v12630_v32 }
 0xaeb   :  { %8030 = vmatprep.subr.bf16.mxu1 %v12623_v44  ;;  %8038 = vmatprep.subr.bf16.mxu0 %v12623_v44 }
 0xaf2   :  { %8031 = vmatpush3.bf16.xpose.msra.mxu1 %v12631_v16 }
 0xaf3   :  { %8032 = vmatprep.subr.bf16.mxu1 %v12623_v44 }
 0xafa   :  { %8033 = vmatpush3.bf16.xpose.msra.mxu1 %v12632_v45 }
 0xb1a   :  { %v10992_v25 = vpop.f32.mrf.mxu1 }
 0xb1c   :  { %v7980_v27 = vpop.f32.mrf.mxu1 }
 0xb1e   :  { %v3548_v41 = vpop.f32.mrf.mxu1  ;;  %v3588_v39 = vpop.f32.mrf.mxu0 }
 0xb1f   :  { %v3595_v47 = vadd.f32 %v3588_v39, %v10898_v19 }
 0xb20   :  { %v7981_v14 = vpop.f32.mrf.mxu1  ;;  %v7992_v8 = vpop.f32.mrf.mxu0 }
 0xb21   :  { %8852 = vtanh.f32 %v3595_v47  ;;  %v12654_v8 = vld [vmem:[#allocation54_spill] sm:$0xff] }
 0xb22   :  { %v3591_v3 = vpop.f32.mrf.mxu0 }
 0xb24   :  { %v7993_v11 = vpop.f32.mrf.mxu0 }
 0xb2e   :  { %v8853_v52 = vpop.eup %8852 }
 0xb2f   :  { %v11001_v43 = vmul.f32 %v8853_v52, %v10998_v38 }
 0xb81   :  { %v7998_v50 = vpop.f32.mrf.mxu1 }
 0xb82   :  { %v3796_v15 = vadd.f32 %v7998_v50, %v12639_v33 }
 0xb83   :  { %v3667_v59 = vpop.f32.mrf.mxu1 }
 0xb84   :  { %v3794_v57 = vadd.f32 %v3667_v59, %v12643_v1 }
 0xb85   :  { %v7999_v24 = vpop.f32.mrf.mxu1 }
 0xb86   :  { %8854 = vtanh.f32 %v3794_v57  ;;  %v3797_v4 = vadd.f32 %v7999_v24, %v12640_v28 }
 0xb87   :  { %v3670_v19 = vpop.f32.mrf.mxu1 }
 0xb88   :  { %v3795_v23 = vadd.f32 %v3670_v19, %v12644_v54  ;;  %v12657_v19 = vld [vmem:[#allocation51_spill] sm:$0xff] }
 0xb89   :  { %v8002_v18 = vpop.f32.mrf.mxu1 }
 0xb8a   :  { %8856 = vtanh.f32 %v3795_v23  ;;  %v3800_v52 = vadd.f32 %v8002_v18, %v12633_v31  ;;  %v12656_v31 = vld [vmem:[#allocation48_spill] sm:$0xff] }
 0xb8b   :  { %v3683_v54 = vpop.f32.mrf.mxu1  ;;  %v4648_v23 = vpack.c.bf16 %v12657_v19, %v12656_v31 }
 0xb8c   :  { %v3798_v55 = vadd.f32 %v3683_v54, %v12635_v2  ;;  %v12655_v2 = vld [vmem:[#allocation57_spill] sm:$0xff] }
 0xb8d   :  { %v8003_v33 = vpop.f32.mrf.mxu1  ;;  %v4649_v3 = vpack.c.bf16 %v12655_v2, %v12654_v8 }
 0xb8f   :  { %v3686_v61 = vpop.f32.mrf.mxu1 }
 0xb90   :  { %v3799_v27 = vadd.f32 %v3686_v61, %v12636_v5 }
 0xb91   :  { %v8008_v46 = vpop.f32.mrf.mxu0 }
 0xb92   :  { %v3804_v26 = vadd.f32 %v8008_v46, %v12645_v51  ;;  %v3801_v46 = vadd.f32 %v8003_v33, %v12634_v34  ;;  %v12660_v33 = vld [vmem:[#allocation33_spill] sm:$0xff] }
 0xb93   :  { %v8855_v58 = vpop.eup %8854  ;;  %v3763_v29 = vpop.f32.mrf.mxu0 }
 0xb94   :  { %8858 = vtanh.f32 %v3804_v26  ;;  %v3802_v1 = vadd.f32 %v3763_v29, %v12647_v9  ;;  %v3844_v53 = vmul.f32 %v8855_v58, %v11009_v42 }
 0xb95   :  { %v11014_v12 = vpop.f32.mrf.mxu0 }
 0xb96   :  { %8860 = vtanh.f32 %v3802_v1  ;;  %3860 = vadd.xlane.f32.xlu0 %v3844_v53  ;;  %v12659_v1 = vld [vmem:[#allocation45_spill] sm:$0xff] }
 0xb97   :  { %v8857_v51 = vpop.eup %8856  ;;  %v11017_v10 = vpop.f32.mrf.mxu0  ;;  %8862 = vtanh.f32 %v3796_v15  ;;  %v12658_v15 = vld [vmem:[#allocation41_spill] sm:$0xff] }
 0xb98   :  { %v11020_v63 = vmul.f32 %v8857_v51, %v11009_v42  ;;  %8864 = vtanh.f32 %v3797_v4  ;;  %v4647_v53 = vpack.c.bf16 %v12659_v1, %v12658_v15 }
 0xb99   :  { %v8012_v17 = vpop.f32.mrf.mxu0 }
 0xb9a   :  { %v3808_v9 = vadd.f32 %v8012_v17, %v12637_v56  ;;  %v12661_v17 = vld [vmem:[#allocation37_spill] sm:$0xff] }
 0xb9b   :  { %v11024_v7 = vpop.f32.mrf.mxu0 }
 0xb9c   :  { %8866 = vtanh.f32 %v3808_v9  ;;  %v4646_v9 = vpack.c.bf16 %v12661_v17, %v12660_v33 }
 0xb9d   :  { %v8013_v6 = vpop.f32.mrf.mxu0  ;;  %8868 = vtanh.f32 %v3798_v55 }
 0xb9e   :  { %v3809_v28 = vadd.f32 %v8013_v6, %v12638_v35 }
 0xba0   :  { %8870 = vtanh.f32 %v3809_v28 }
 0xba1   :  { %v8859_v41 = vpop.eup %8858  ;;  %v4551_v39 = vpop.f32.mrf.mxu1  ;;  %8872 = vtanh.f32 %v3799_v27 }
 0xba2   :  { %v4560_v47 = vpack.c.bf16 %v4551_v39, %v4551_v39  ;;  %v11029_v14 = vmul.f32 %v8859_v41, %v11009_v42  ;;  %8874 = vtanh.f32 %v3800_v52 }
 0xba3   :  { %v8861_v56 = vpop.eup %8860  ;;  %v11033_v11 = vpop.f32.mrf.mxu1  ;;  %8876 = vtanh.f32 %v3801_v46 }
 0xba4   :  { %v4744_v35 = vpack.c.bf16 %v11033_v11, %v11033_v11  ;;  %8023 = vmatmul.mubr.bf16.vlgmr.msra.gmra.mxu0 %v4560_v47  ;;  %v3852_v5 = vmul.f32 %v8861_v56, %v11009_v42  ;;  %v8863_v50 = vpop.eup %8862  ;;  %v8478_v47 = vld [vmem:[%s12662_s8 + $0x74] ss:$8 sps:$4 sm:$0xff]   ;;  %v3782_v56 = vpop.f32.mrf.mxu0 }
 0xba5   :  { %8039 = vmatpush3.bf16.msra.mxu0 %v4649_v3  ;;  %v4555_v59 = vpop.f32.mrf.mxu1  ;;  %8046 = vmatprep.mubr.msk.bf16.mxu0 %vm9148_vm9, %v12623_v44  ;;  %v8865_v18 = vpop.eup %8864  ;;  %v3846_v26 = vmul.f32 %v8863_v50, %v11009_v42 }
 0xba6   :  { %v4561_v57 = vpack.c.bf16 %v4555_v59, %v4555_v59  ;;  %8192 = vmatprep.subr.msk.bf16.mxu1 %vm3629_vm11, %v4744_v35  ;;  %3876 = vadd.xlane.f32.xlu0 %v3852_v5  ;;  %v4775_v24 = vsel %vm3629_vm11, %v4744_v35, 0  ;;  %v3847_v51 = vmul.f32 %v8865_v18, %v11009_v42 }
 0xba7   :  { %8040 = vmatprep.subr.bf16.mxu0 %v12623_v44  ;;  %v11069_v52 = vpop.f32.mrf.mxu1 }
 0xba8   :  { %8035 = vmatmul.mubr.bf16.vlgmr.msra.gmra.mxu1 %v4561_v57 }
 0xba9   :  { %v8867_v58 = vpop.eup %8866  ;;  %8041 = vmatpush3.bf16.msra.mxu0 %v4648_v23  ;;  %8063 = vmatpush3.bf16.msra.mxu1 %v4775_v24 }
 0xbaa   :  { %3864 = vadd.xlane.f32.xlu0 %v3846_v26  ;;  %8042 = vmatprep.subr.bf16.mxu0 %v12623_v44  ;;  %v11050_v29 = vmul.f32 %v8867_v58, %v11009_v42  ;;  %v8869_v54 = vpop.eup %8868  ;;  %v12663_v26 = vld [vmem:[#allocation77_spill] sm:$0xff]  ;;  %v12664_v58 = vld [vmem:[#allocation80_spill] sm:$0xff] }
 0xbab   :  { %v3848_v55 = vmul.f32 %v8869_v54, %v11009_v42  ;;  %5642 = vmatprep.subr.bf16.mxu1 %v8478_v47  ;;  %v12665_v54 = vld [vmem:[#allocation72_spill] sm:$0xff]  ;;  %v4745_v47 = vpack.c.bf16 %v11069_v52, %v11069_v52 }
 0xbad   :  { %v8871_v34 = vpop.eup %8870  ;;  %8043 = vmatpush3.bf16.msra.mxu0 %v4647_v53  ;;  %v4653_v53 = vpack.c.bf16 %v12664_v58, %v12663_v26 }
 0xbae   :  { %3866 = vadd.xlane.f32.xlu0 %v3847_v51  ;;  %8044 = vmatprep.subr.bf16.mxu0 %v12623_v44  ;;  %v11057_v4 = vmul.f32 %v8871_v34, %v11009_v42  ;;  %v8873_v61 = vpop.eup %8872  ;;  %v12666_v51 = vld [vmem:[#allocation74_spill] sm:$0xff] }
 0xbaf   :  { %v3849_v6 = vmul.f32 %v8873_v61, %v11009_v42  ;;  %v8875_v28 = vpop.eup %8874  ;;  %v4652_v34 = vpack.c.bf16 %v12666_v51, %v12665_v54 }
 0xbb0   :  { %v3850_v27 = vmul.f32 %v8875_v28, %v11009_v42  ;;  %v8877_v41 = vpop.eup %8876  ;;  %v12669_v28 = vld [vmem:[#allocation60_spill] sm:$0xff] }
 0xbb1   :  { %8045 = vmatpush3.bf16.msra.mxu0 %v4646_v9  ;;  %v3851_v39 = vmul.f32 %v8877_v41, %v11009_v42  ;;  %v12667_v9 = vld [vmem:[#allocation66_spill] sm:$0xff] }
 0xbb2   :  { %3868 = vadd.xlane.f32.xlu0 %v3848_v55  ;;  %8050 = vmatprep.subr.bf16.mxu0 %v12623_v44  ;;  %v12668_v55 = vld [vmem:[#allocation69_spill] sm:$0xff] }
 0xbb3   :  { %v4651_v61 = vpack.c.bf16 %v12668_v55, %v12667_v9 }
 0xbb6   :  { %3870 = vadd.xlane.f32.xlu0 %v3849_v6 }
 0xbba   :  { %3872 = vadd.xlane.f32.xlu0 %v3850_v27  ;;  %v12670_v27 = vld [vmem:[#allocation63_spill] sm:$0xff] }
 0xbbb   :  { %v4650_v41 = vpack.c.bf16 %v12670_v27, %v12669_v28 }
 0xbbe   :  { %3874 = vadd.xlane.f32.xlu0 %v3851_v39 }
 0xc64   :  { %v4596_v3 = vpop.f32.mrf.mxu0 }
 0xc65   :  { %8878 = vtanh.f32 %v4596_v3  ;;  %v4871_v3 = vsel %vm3629_vm11, %v4745_v47, 0 }
 0xc66   :  { %v8024_v35 = vpop.f32.mrf.mxu0 }
 0xc67   :  { %v3803_v35 = vadd.f32 %v11017_v10, %v12648_v13 }
 0xc68   :  { %v4599_v5 = vpop.f32.mrf.mxu0  ;;  %v4636_v50 = vpop.f32.mrf.mxu1 }
 0xc69   :  { %8880 = vtanh.f32 %v4636_v50  ;;  %v3805_v5 = vadd.f32 %v11014_v12, %v12646_v21  ;;  %v3806_v50 = vadd.f32 %v11024_v7, %v12641_v48  ;;  %v3594_v21 = vadd.f32 %v10992_v25, %v10871_v37  ;;  %v8476_v25 = vld [vmem:[%s12662_s8 + $0x70] ss:$8 sps:$4 sm:$0xff]  }
 0xc6a   :  { %v8025_v59 = vpop.f32.mrf.mxu0  ;;  %v8036_v57 = vpop.f32.mrf.mxu1  ;;  %8882 = vtanh.f32 %v3803_v35  ;;  %v8494_v35 = vld [vmem:[%s12662_s8 + $0x10] ss:$8 sps:$4 sm:$0xff]  }
 0xc6b   :  { %8884 = vtanh.f32 %v3805_v5  ;;  %v3807_v59 = vadd.f32 %v3782_v56, %v12642_v62  ;;  %v8482_v56 = vld [vmem:[%s12662_s8 + $0x50] ss:$8 sps:$4 sm:$0xff]  }
 0xc6c   :  { %v4639_v24 = vpop.f32.mrf.mxu1  ;;  %8886 = vtanh.f32 %v3806_v50  ;;  %v8497_v50 = vld [vmem:[%s12662_s8] ss:$8 sps:$4 sm:$0xff]  }
 0xc6d   :  { %8888 = vtanh.f32 %v3807_v59  ;;  %v3270_v59 = vld [vmem:[#allocation2] sm:$0xff] }
 0xc6e   :  { %v8037_v23 = vpop.f32.mrf.mxu1  ;;  %8890 = vtanh.f32 %v3594_v21 }
 0xc72   :  { %v8879_v18 = vpop.eup %8878 }
 0xc73   :  { %v4644_v46 = vpack.c.bf16 %v8879_v18, %v8879_v18  ;;  %v8487_v18 = vld [vmem:[%s12662_s8 + $0x44] ss:$8 sps:$4 sm:$0xff]  }
 0xc75   :  { %4746 = vxpose.xlu1.c.b16.start.end [1/1] (short) (narrow) %v4644_v46, 64  ;;  %8047 = vmatmul.mubr.msk.bf16.vlgmr.msra.gmra.mxu0 %vm3507_vm12, %v4644_v46 }
 0xc76   :  { %8051 = vmatpush3.bf16.msra.mxu0 %v4653_v53  ;;  %8058 = vmatprep.mubr.msk.bf16.mxu0 %vm9148_vm9, %v12623_v44  ;;  %v8881_v6 = vpop.eup %8880  ;;  %v8485_v53 = vld [vmem:[%s12662_s8 + $0x40] ss:$8 sps:$4 sm:$0xff]  }
 0xc77   :  { %8052 = vmatprep.subr.bf16.mxu0 %v12623_v44  ;;  %v4645_v39 = vpack.c.bf16 %v8881_v6, %v8881_v6  ;;  %v8883_v57 = vpop.eup %8882  ;;  %v8488_v6 = vld [vmem:[%s12662_s8 + $0x30] ss:$8 sps:$4 sm:$0xff]  }
 0xc78   :  { %v3853_v24 = vmul.f32 %v8883_v57, %v11009_v42  ;;  %v8885_v23 = vpop.eup %8884  ;;  %v3271_v57 = vld [vmem:[#allocation2 + $0x8] sm:$0xff] }
 0xc79   :  { %v3855_v13 = vmul.f32 %v8885_v23, %v11009_v42  ;;  %v8887_v12 = vpop.eup %8886  ;;  %v12671_v23 = vlaneseq }
 0xc7a   :  { %8053 = vmatpush3.bf16.msra.mxu0 %v4652_v34  ;;  %v3856_v48 = vmul.f32 %v8887_v12, %v11009_v42  ;;  %v8889_v62 = vpop.eup %8888  ;;  %v8490_v34 = vld [vmem:[%s12662_s8 + $0x34] ss:$8 sps:$4 sm:$0xff]  }
 0xc7b   :  { %8054 = vmatprep.subr.bf16.mxu0 %v12623_v44  ;;  %v3857_v10 = vmul.f32 %v8889_v62, %v11009_v42  ;;  %v8481_v42 = vld [vmem:[%s12662_s8 + $0x64] ss:$8 sps:$4 sm:$0xff]  }
 0xc7e   :  { %8055 = vmatpush3.bf16.msra.mxu0 %v4651_v61 }
 0xc7f   :  { %8056 = vmatprep.subr.bf16.mxu0 %v12623_v44 }
 0xc82   :  { %8057 = vmatpush3.bf16.msra.mxu0 %v4650_v41  ;;  %4842 = vxpose.xlu1.c.b16.start.end [1/1] (short) (narrow) %v4645_v39, 64  ;;  %v8493_v41 = vld [vmem:[%s12662_s8 + $0x24] ss:$8 sps:$4 sm:$0xff]  }
 0xc83   :  { %8193 = vmatprep.subr.msk.bf16.mxu0 %vm3629_vm11, %v4745_v47  ;;  %v8496_v47 = vld [vmem:[%s12662_s8 + $0x14] ss:$8 sps:$4 sm:$0xff]  }
 0xc85   :  { %8059 = vmatmul.mubr.msk.bf16.vlgmr.msra.gmra.mxu0 %vm3507_vm12, %v4645_v39 }
 0xc86   :  { %8073 = vmatpush3.bf16.msra.mxu0 %v4871_v3  ;;  %8200 = vset.pattern.permute.xlu1 %v12622_v49 }
 0xc87   :  { %8082 = vmatprep.subr.bf16.mxu0 %v12623_v44 }
 0xc9b   :  { %3862 = vadd.xlane.f32.xlu1 %v11020_v63  ;;  %v8891_v63 = vpop.eup %8890 }
 0xc9c   :  { %v3832_v7 = vmul.f32 %v8891_v63, %v10998_v38  ;;  %v8479_v38 = vld [vmem:[%s12662_s8 + $0x60] ss:$8 sps:$4 sm:$0xff]  }
 0xc9f   :  { %3878 = vadd.xlane.f32.xlu1 %v3853_v24  ;;  %v5561_v24 = vpack.c.bf16 %v3271_v57, %v3270_v59 }
 0xca3   :  { %3880 = vadd.xlane.f32.xlu1 %v11029_v14 }
 0xca7   :  { %3882 = vadd.xlane.f32.xlu1 %v3855_v13 }
 0xcab   :  { %3884 = vadd.xlane.f32.xlu1 %v3856_v48 }
 0xcaf   :  { %3886 = vadd.xlane.f32.xlu1 %v3857_v10 }
 0xcb3   :  { %3888 = vadd.xlane.f32.xlu1 %v11050_v29  ;;  %v8484_v29 = vld [vmem:[%s12662_s8 + $0x54] ss:$8 sps:$4 sm:$0xff]  }
 0xcb7   :  { %3890 = vadd.xlane.f32.xlu1 %v11057_v4 }
 0xcbb   :  { %3834 = vadd.xlane.f32.xlu1 %v3832_v7 }
 0xcd7   :  { %v4754_v37 = vpop.trf.xlu1 }
 0xcd8   :  { %8064 = vmatprep.mubr.msk.bf16.mxu1 %vm3616_vm13, %v4754_v37 }
 0xcdb   :  { %v4755_v14 = vpop.trf.xlu1 }
 0xcdc   :  { %8065 = vmatmul.mubr.msk.bf16.vlgmr.msra.gmra.mxu1 %vm3616_vm13, %v4755_v14 }
 0xcdd   :  { %5643 = vmatpush1.bf16.msra.mxu1 %v8476_v25 }
 0xcde   :  { %5644 = vmatprep.subr.bf16.mxu1 %v8481_v42 }
 0xcdf   :  { %v4756_v4 = vpop.trf.xlu1 }
 0xce0   :  { %8068 = vmatprep.mubr.msk.bf16.mxu1 %vm3616_vm13, %v4756_v4 }
 0xce1   :  { %5645 = vmatpush1.bf16.msra.mxu1 %v8479_v38 }
 0xce2   :  { %5646 = vmatprep.subr.bf16.mxu1 %v8484_v29 }
 0xce3   :  { %v4757_v46 = vpop.trf.xlu1 }
 0xce4   :  { %8069 = vmatmul.mubr.msk.bf16.gmra.mxu1 %vm3616_vm13, %v4757_v46 }
 0xce5   :  { %5647 = vmatpush1.bf16.msra.mxu1 %v8482_v56  ;;  %5674 = vmatprep.mubr.bf16.mxu1 %v12622_v49  ;;  %v8491_v49 = vld [vmem:[%s12662_s8 + $0x20] ss:$8 sps:$4 sm:$0xff]  }
 0xce6   :  { %5648 = vmatprep.subr.bf16.mxu1 %v8487_v18 }
 0xce7   :  { %v4850_v61 = vpop.trf.xlu1 }
 0xce8   :  { %8074 = vmatprep.mubr.msk.bf16.mxu0 %vm3616_vm13, %v4850_v61 }
 0xce9   :  { %5649 = vmatpush1.bf16.msra.mxu1 %v8485_v53 }
 0xcea   :  { %5650 = vmatprep.subr.bf16.mxu1 %v8490_v34 }
 0xceb   :  { %v4851_v39 = vpop.trf.xlu1 }
 0xcec   :  { %8075 = vmatmul.mubr.msk.bf16.vlgmr.msra.gmra.mxu0 %vm3616_vm13, %v4851_v39 }
 0xced   :  { %5651 = vmatpush1.bf16.msra.mxu1 %v8488_v6  ;;  %8083 = vmatpush3.bf16.xpose.msra.mxu0 %v9513_v40  ;;  %v8499_v40 = vld [vmem:[%s12662_s8 + $0x4] ss:$8 sps:$4 sm:$0xff]  }
 0xcee   :  { %5652 = vmatprep.subr.bf16.mxu1 %v8493_v41  ;;  %8084 = vmatprep.subr.bf16.mxu0 %v12623_v44 }
 0xcef   :  { %v4852_v3 = vpop.trf.xlu1 }
 0xcf0   :  { %8078 = vmatprep.mubr.msk.bf16.mxu0 %vm3616_vm13, %v4852_v3 }
 0xcf1   :  { %5653 = vmatpush1.bf16.msra.mxu1 %v8491_v49 }
 0xcf2   :  { %5654 = vmatprep.subr.bf16.mxu1 %v8496_v47 }
 0xcf3   :  { %v4853_v5 = vpop.trf.xlu1 }
 0xcf4   :  { %8079 = vmatmul.mubr.msk.bf16.gmra.mxu0 %vm3616_vm13, %v4853_v5 }
 0xcf5   :  { %5655 = vmatpush1.bf16.msra.mxu1 %v8494_v35  ;;  %8085 = vmatpush3.bf16.xpose.msra.mxu0 %v12625_v30  ;;  %v11184_v30 = vpop.xlane.xlu0 %3860 }
 0xcf6   :  { %5656 = vmatprep.subr.bf16.mxu1 %v8499_v40  ;;  %8086 = vmatprep.subr.bf16.mxu0 %v12623_v44 }
 0xcf7   :  { %8090 = vmatprep.mubr.msk.bf16.mxu0 %vm9148_vm9, %v12623_v44 }
 0xcf9   :  { %5657 = vmatpush1.bf16.msra.mxu1 %v8497_v50 }
 0xcfa   :  { %8094 = vmatprep.subr.bf16.mxu1 %v12623_v44 }
 0xcfc   :  { %5675 = vmatmul.mubr.bf16.vlgmr.msra.gmra.mxu1 %v5561_v24 }
 0xcfd   :  { %8087 = vmatpush3.bf16.xpose.msra.mxu0 %v12626_v20  ;;  %8095 = vmatpush3.bf16.xpose.msra.mxu1 %v12629_v0  ;;  %v11186_v20 = vpop.xlane.xlu0 %3876 }
 0xcfe   :  { %8088 = vmatprep.subr.bf16.mxu0 %v12623_v44  ;;  %8096 = vmatprep.subr.bf16.mxu1 %v12623_v44 }
 0xcff   :  { %8102 = vmatprep.mubr.msk.bf16.mxu1 %vm9148_vm9, %v12623_v44 }
 0xd01   :  { %v11188_v0 = vpop.xlane.xlu0 %3864 }
 0xd05   :  { %8089 = vmatpush3.bf16.xpose.msra.mxu0 %v12627_v60  ;;  %8097 = vmatpush3.bf16.xpose.msra.mxu1 %v12630_v32  ;;  %v3896_v60 = vand.u32 127, %v12671_v23  ;;  %v11193_v13 = vpop.xlane.xlu0 %3866 }
 0xd06   :  { %8098 = vmatprep.subr.bf16.mxu1 %v12623_v44  ;;  %8106 = vmatprep.subr.bf16.mxu0 %v12623_v44 }
 0xd07   :  { %v3940_v32 = vadd.s32 4294967288, %v3896_v60  ;;  %v3947_v62 = vadd.s32 4294967280, %v3896_v60  ;;  %v3954_v7 = vadd.s32 4294967272, %v3896_v60  ;;  %v3961_v14 = vadd.s32 4294967264, %v3896_v60 }
 0xd08   :  { %v3968_v46 = vadd.s32 4294967256, %v3896_v60  ;;  %v3975_v39 = vadd.s32 4294967248, %v3896_v60  ;;  %v3982_v5 = vadd.s32 4294967240, %v3896_v60 }
 0xd09   :  { %v11203_v10 = vpop.xlane.xlu0 %3868 }
 0xd0d   :  { %8099 = vmatpush3.bf16.xpose.msra.mxu1 %v12631_v16  ;;  %v12672_v16 = vld [vmem:[#allocation23_spill] sm:$0xff]  ;;  %v11222_v18 = vpop.xlane.xlu0 %3870 }
 0xd0e   :  { %8100 = vmatprep.subr.bf16.mxu1 %v12623_v44  ;;  %v11198_v48 = vsub.s32 %v3940_v32, %v12672_v16  ;;  %v11210_v25 = vsub.s32 %v3947_v62, %v12672_v16  ;;  %v11217_v29 = vsub.s32 %v3954_v7, %v12672_v16  ;;  %v11225_v53 = vsub.s32 %v3961_v14, %v12672_v16 }
 0xd0f   :  { %v11235_v49 = vsub.s32 %v3968_v46, %v12672_v16  ;;  %v11247_v24 = vsub.s32 %v3975_v39, %v12672_v16 }
 0xd10   :  { %v3951_v56 = vrot.slane %v11188_v0, %v11210_v25  ;;  %v3958_v6 = vrot.slane %v11193_v13, %v11217_v29  ;;  %v3965_v35 = vrot.slane %v11203_v10, %v11225_v53 }
 0xd11   :  { %v11240_v40 = vpop.xlane.xlu0 %3872 }
 0xd15   :  { %8101 = vmatpush3.bf16.xpose.msra.mxu1 %v12632_v45  ;;  %v11201_v45 = vsub.s32 %v3896_v60, %v12672_v16  ;;  %v3972_v60 = vrot.slane %v11222_v18, %v11235_v49  ;;  %v11271_v39 = vpop.xlane.xlu0 %3874 }
 0xd17   :  { %v3939_v42 = vrot.slane %v11184_v30, %v11201_v45  ;;  %v3992_v62 = vrot.slane %v11186_v20, %v11201_v45 }
 0xd24   :  { %v11191_v21 = vpop.xlane.xlu1 %3862 }
 0xd25   :  { %v3944_v37 = vrot.slane %v11191_v21, %v11198_v48 }
 0xd27   :  { %v3946_v4 = vsel %vm3945_vm14, %v3944_v37, %v3939_v42  ;;  %v11259_v42 = vsub.s32 %v3982_v5, %v12672_v16 }
 0xd28   :  { %v11195_v12 = vpop.xlane.xlu1 %3878  ;;  %v3953_v34 = vsel %vm3952_vm15, %v3951_v56, %v3946_v4 }
 0xd29   :  { %v3960_v47 = vsel %vm3959_vm0, %v3958_v6, %v3953_v34  ;;  %v3996_v59 = vrot.slane %v11195_v12, %v11198_v48  ;;  %12673 = vst [vmem:[#allocation16_spill] sm:$0xff] %v11259_v42  ;;  %v3979_v6 = vrot.slane %v11240_v40, %v11247_v24 }
 0xd2a   :  { %v3967_v32 = vsel %vm3966_vm1, %v3965_v35, %v3960_v47 }
 0xd2b   :  { %v3997_v56 = vsel %vm3945_vm14, %v3996_v59, %v3992_v62  ;;  %v3974_v34 = vsel %vm3973_vm2, %v3972_v60, %v3967_v32 }
 0xd2c   :  { %v11205_v63 = vpop.xlane.xlu1 %3880  ;;  %v3981_v59 = vsel %vm3980_vm3, %v3979_v6, %v3974_v34 }
 0xd2d   :  { %v4001_v23 = vrot.slane %v11205_v63, %v11210_v25 }
 0xd2f   :  { %v4002_v16 = vsel %vm3952_vm15, %v4001_v23, %v3997_v56 }
 0xd30   :  { %v11214_v38 = vpop.xlane.xlu1 %3882 }
 0xd31   :  { %v4006_v7 = vrot.slane %v11214_v38, %v11217_v29 }
 0xd34   :  { %v11228_v61 = vpop.xlane.xlu1 %3884 }
 0xd35   :  { %v11232_v41 = vpop.f32.mrf.mxu0  ;;  %v4011_v14 = vrot.slane %v11228_v61, %v11225_v53 }
 0xd37   :  { %v8048_v3 = vpop.f32.mrf.mxu0 }
 0xd38   :  { %v11242_v50 = vpop.xlane.xlu1 %3886  ;;  %v4007_v3 = vsel %vm3959_vm0, %v4006_v7, %v4002_v16 }
 0xd39   :  { %v4694_v57 = vpop.f32.mrf.mxu0  ;;  %v4016_v46 = vrot.slane %v11242_v50, %v11235_v49  ;;  %v4012_v35 = vsel %vm3966_vm1, %v4011_v14, %v4007_v3  ;;  %v11296_v3 = vld [vmem:[%s12674_s2] ss:$0 sm:$0xff] }
 0xd3a   :  { %v3986_v57 = vrot.slane %v11271_v39, %v11259_v42 }
 0xd3b   :  { %v8049_v37 = vpop.f32.mrf.mxu0  ;;  %v4017_v32 = vsel %vm3973_vm2, %v4016_v46, %v4012_v35 }
 0xd3c   :  { %v11263_v4 = vpop.xlane.xlu1 %3888  ;;  %v3988_v60 = vsel %vm3987_vm4, %v3986_v57, %v3981_v59 }
 0xd3d   :  { %v4021_v47 = vrot.slane %v11263_v4, %v11247_v24 }
 0xd3f   :  { %v4022_v62 = vsel %vm3980_vm3, %v4021_v47, %v4017_v32 }
 0xd40   :  { %v11278_v5 = vpop.xlane.xlu1 %3890 }
 0xd41   :  { %v4026_v23 = vrot.slane %v11278_v5, %v11259_v42 }
 0xd43   :  { %v4027_v7 = vsel %vm3987_vm4, %v4026_v23, %v4022_v62 }
 0xd44   :  { %v4028_v37 = vsel %vm2043_vm10, %v4027_v7, %v3988_v60 }
 0xd45   :  { %v4734_v14 = vpop.f32.mrf.mxu0  ;;  %v4031_v56 = vsel %vm4030_vm5, %v4028_v37, -inf }
 0xd46   :  { %v4741_v34 = vadd.f32 %v4734_v14, %v11069_v52  ;;  %4032 = vmax.xlane.f32.xlu0 %v4031_v56  ;;  %v12676_v14 = vld [vmem:[#allocation40_spill] sm:$0xff] }
 0xd47   :  { %v8060_v6 = vpop.f32.mrf.mxu0  ;;  %v12677_v56 = vld [vmem:[#allocation44_spill] sm:$0xff] }
 0xd48   :  { %8892 = vtanh.f32 %v4741_v34  ;;  %v5774_v34 = vpack.c.bf16 %v12677_v56, %v12676_v14  ;;  %v5773_v56 = vpack.c.bf16 %v12680_v22, %v12679_v36  ;;  %v12684_v14 = vld [vmem:[#allocation38_spill] sm:$0xff] }
 0xd49   :  { %v4737_v46 = vpop.f32.mrf.mxu0  ;;  %v12686_v22 = vld [vmem:[#allocation78_spill] sm:$0xff] }
 0xd4a   :  { %3836 = vadd.xlane.f32.xlu0 %v11001_v43 }
 0xd4b   :  { %v8061_v16 = vpop.f32.mrf.mxu0 }
 0xd55   :  { %v8893_v47 = vpop.eup %8892 }
 0xd56   :  { %v11299_v35 = vmul.f32 %v8893_v47, %v11296_v3 }
 0xd58   :  { %12675 = vst [vmem:[#allocation11_spill] sm:$0xff] %v11299_v35 }
 0xd9c   :  { %v11301_v59 = vpop.f32.mrf.mxu1 }
 0xd9e   :  { %v11303_v57 = vpop.f32.mrf.mxu1 }
 0xda0   :  { %v11305_v52 = vpop.f32.mrf.mxu1 }
 0xda2   :  { %v11307_v32 = vpop.f32.mrf.mxu1 }
 0xda4   :  { %v11309_v23 = vpop.f32.mrf.mxu1 }
 0xda6   :  { %v11311_v43 = vpop.f32.mrf.mxu1 }
 0xda8   :  { %v11313_v62 = vpop.f32.mrf.mxu1 }
 0xdaa   :  { %v11315_v60 = vpop.f32.mrf.mxu1 }
 0xdbc   :  { %v5676_v7 = vpop.f32.mrf.mxu1 }
 0xdbd   :  { %v5685_v37 = vpack.c.bf16 %v5676_v7, %v5676_v7 }
 0xdbe   :  { %v11319_v6 = vpop.f32.mrf.mxu1 }
 0xdbf   :  { %12678 = vst [vmem:[#allocation10_spill] sm:$0xff] %v11319_v6  ;;  %v5869_v46 = vpack.c.bf16 %v11319_v6, %v11319_v6  ;;  %8091 = vmatmul.mubr.bf16.vlgmr.msra.gmra.mxu0 %v5685_v37  ;;  %v12681_v37 = vld [vmem:[#allocation32_spill] sm:$0xff] }
 0xdc0   :  { %8107 = vmatpush3.bf16.msra.mxu0 %v5774_v34  ;;  %v5680_v16 = vpop.f32.mrf.mxu1  ;;  %8114 = vmatprep.mubr.msk.bf16.mxu0 %vm9148_vm9, %v12623_v44  ;;  %v12682_v34 = vld [vmem:[#allocation36_spill] sm:$0xff] }
 0xdc1   :  { %v5686_v47 = vpack.c.bf16 %v5680_v16, %v5680_v16  ;;  %8194 = vmatprep.subr.msk.bf16.mxu1 %vm3629_vm11, %v5869_v46  ;;  %8108 = vmatprep.subr.bf16.mxu0 %v12623_v44  ;;  %v5900_v7 = vsel %vm3629_vm11, %v5869_v46, 0  ;;  %v5772_v6 = vpack.c.bf16 %v12682_v34, %v12681_v37  ;;  %v12683_v16 = vld [vmem:[#allocation34_spill] sm:$0xff] }
 0xdc2   :  { %v5771_v35 = vpack.c.bf16 %v12684_v14, %v12683_v16 }
 0xdc3   :  { %8103 = vmatmul.mubr.bf16.vlgmr.msra.gmra.mxu1 %v5686_v47  ;;  %v3835_v47 = vpop.xlane.xlu1 %3834 }
 0xdc4   :  { %8109 = vmatpush3.bf16.msra.mxu0 %v5773_v56  ;;  %8131 = vmatpush3.bf16.msra.mxu1 %v5900_v7  ;;  %v12685_v56 = vld [vmem:[#allocation76_spill] sm:$0xff]  ;;  %v3900_v16 = vrot.slane %v3835_v47, %v11201_v45 }
 0xdc5   :  { %8110 = vmatprep.subr.bf16.mxu0 %v12623_v44  ;;  %8150 = vmatprep.subr.bf16.mxu1 %v12623_v44 }
 0xdc8   :  { %8111 = vmatpush3.bf16.msra.mxu0 %v5772_v6  ;;  %v11347_v6 = vld [vmem:[%s12687_s12] sm:$0x3] }
 0xdc9   :  { %8112 = vmatprep.subr.bf16.mxu0 %v12623_v44  ;;  %12688 = vst [vmem:[#allocation30_spill] sm:$0xff] %v11347_v6  ;;  %vm3892_vm6 = vcmp.gt.f32.partialorder %v11347_v6, 0.0 }
 0xdcc   :  { %8113 = vmatpush3.bf16.msra.mxu0 %v5771_v35 }
 0xdcd   :  { %8118 = vmatprep.subr.bf16.mxu0 %v12623_v44 }
 0xdcf   :  { %v4033_v46 = vpop.xlane.xlu0 %4032 }
 0xdd0   :  { %v11339_v7 = vrot.slane %v4033_v46, %v12685_v56  ;;  %v11342_v36 = vrot.slane %v4033_v46, %v12686_v22 }
 0xdd2   :  { %v4046_v34 = vsub.f32 %v11191_v21, %v11339_v7  ;;  %v4057_v35 = vsub.f32 %v11228_v61, %v11342_v36  ;;  %v4045_v22 = vsub.f32 %v11184_v30, %v11339_v7  ;;  %v4050_v21 = vsub.f32 %v11222_v18, %v11339_v7 }
 0xdd3   :  { %v3837_v14 = vpop.xlane.xlu0 %3836  ;;  %v4054_v18 = vsub.f32 %v11195_v12, %v11342_v36 }
 0xdd4   :  { %v3904_v37 = vrot.slane %v3837_v14, %v11201_v45  ;;  %v4063_v46 = vmul.f32 1.442695, %v4046_v34  ;;  %v4085_v42 = vmul.f32 1.442695, %v4057_v35  ;;  %v4061_v47 = vmul.f32 1.442695, %v4045_v22 }
 0xdd5   :  { %v4053_v34 = vsub.f32 %v11186_v20, %v11342_v36  ;;  %v4071_v30 = vmul.f32 1.442695, %v4050_v21  ;;  %v4051_v35 = vsub.f32 %v11240_v40, %v11339_v7  ;;  %v4079_v22 = vmul.f32 1.442695, %v4054_v18 }
 0xdd6   :  { %v3905_v56 = vsel %vm2043_vm10, %v3904_v37, %v3900_v16  ;;  %8894 = vpow2.f32 %v4063_v46  ;;  %v4058_v37 = vsub.f32 %v11242_v50, %v11342_v36  ;;  %v4047_v20 = vsub.f32 %v11188_v0, %v11339_v7 }
 0xdd7   :  { %v11363_v61 = vsel %vm3892_vm6, %v3905_v56, -1e+30  ;;  %8896 = vpow2.f32 %v4085_v42  ;;  %v4077_v16 = vmul.f32 1.442695, %v4053_v34  ;;  %v4073_v42 = vmul.f32 1.442695, %v4051_v35 }
 0xdd8   :  { %v3909_v14 = vsel %vm3908_vm7, %v11363_v61, -inf  ;;  %8898 = vpow2.f32 %v4061_v47  ;;  %v4087_v56 = vmul.f32 1.442695, %v4058_v37  ;;  %v4059_v50 = vsub.f32 %v11263_v4, %v11342_v36 }
 0xdd9   :  { %3910 = vmax.xlane.f32.xlu1 %v3909_v14  ;;  %8900 = vpow2.f32 %v4071_v30  ;;  %v4065_v12 = vmul.f32 1.442695, %v4047_v20  ;;  %v4055_v21 = vsub.f32 %v11205_v63, %v11342_v36  ;;  %v4052_v14 = vsub.f32 %v11271_v39, %v11339_v7 }
 0xdda   :  { %8902 = vpow2.f32 %v4077_v16  ;;  %v4089_v40 = vmul.f32 1.442695, %v4059_v50  ;;  %v4048_v47 = vsub.f32 %v11193_v13, %v11339_v7  ;;  %v4056_v37 = vsub.f32 %v11214_v38, %v11342_v36 }
 0xddb   :  { %8904 = vpow2.f32 %v4087_v56  ;;  %v4081_v4 = vmul.f32 1.442695, %v4055_v21  ;;  %v4075_v63 = vmul.f32 1.442695, %v4052_v14  ;;  %v4049_v56 = vsub.f32 %v11203_v10, %v11339_v7 }
 0xddc   :  { %8906 = vpow2.f32 %v4079_v22  ;;  %v4067_v39 = vmul.f32 1.442695, %v4048_v47  ;;  %v4083_v18 = vmul.f32 1.442695, %v4056_v37 }
 0xddd   :  { %8908 = vpow2.f32 %v4073_v42  ;;  %v4069_v38 = vmul.f32 1.442695, %v4049_v56 }
 0xdde   :  { %8910 = vpow2.f32 %v4065_v12 }
 0xddf   :  { %8912 = vpow2.f32 %v4089_v40  ;;  %v8076_v40 = vpop.f32.mrf.mxu0 }
 0xde0   :  { %8914 = vpow2.f32 %v4081_v4 }
 0xde1   :  { %8916 = vpow2.f32 %v4075_v63  ;;  %v4907_v14 = vpop.f32.mrf.mxu0 }
 0xde2   :  { %8918 = vpow2.f32 %v4067_v39 }
 0xde3   :  { %v11379_v46 = vpop.eup %8894  ;;  %8920 = vpow2.f32 %v4083_v18  ;;  %v11434_v4 = vpop.f32.mrf.mxu0 }
 0xde4   :  { %4113 = vperm.xlu0 %8201, %v11379_v46   ;;  %v11386_v0 = vpop.eup %8896  ;;  %8922 = vpow2.f32 %v4069_v38  ;;  %v11444_v38 = vpop.f32.mrf.mxu1 }
 0xde5   :  { %12689 = vst [vmem:[#allocation28_spill] sm:$0xff] %v11386_v0  ;;  %v11391_v34 = vpop.eup %8898  ;;  %v4910_v47 = vpop.f32.mrf.mxu0 }
 0xde6   :  { %v11394_v30 = vpop.eup %8900 }
 0xde7   :  { %12690 = vst [vmem:[#allocation29_spill] sm:$0xff] %v11394_v30  ;;  %v11399_v16 = vpop.eup %8902  ;;  %v11436_v63 = vpop.f32.mrf.mxu0 }
 0xde8   :  { %4146 = vperm.xlu0 %8201, %v11386_v0   ;;  %12691 = vst [vmem:[#allocation21_spill] sm:$0xff] %v11399_v16  ;;  %v11402_v13 = vpop.eup %8904 }
 0xde9   :  { %12692 = vst [vmem:[#allocation22_spill] sm:$0xff] %v11402_v13  ;;  %v11407_v35 = vpop.eup %8906  ;;  %v11438_v39 = vpop.f32.mrf.mxu0 }
 0xdea   :  { %4110 = vperm.xlu1 %8200, %v11391_v34   ;;  %12693 = vst [vmem:[#allocation52_spill] sm:$0xff] %v11407_v35  ;;  %v11410_v22 = vpop.eup %8908 }
 0xdeb   :  { %12694 = vst [vmem:[#allocation55_spill] sm:$0xff] %v11410_v22  ;;  %v11413_v20 = vpop.eup %8910  ;;  %v11440_v37 = vpop.f32.mrf.mxu0 }
 0xdec   :  { %4125 = vperm.xlu0 %8201, %v11394_v30   ;;  %v11416_v42 = vpop.eup %8912 }
 0xded   :  { %12695 = vst [vmem:[#allocation46_spill] sm:$0xff] %v11416_v42  ;;  %v11419_v10 = vpop.eup %8914  ;;  %v11442_v18 = vpop.f32.mrf.mxu0 }
 0xdee   :  { %4134 = vperm.xlu1 %8200, %v11399_v16   ;;  %12696 = vst [vmem:[#allocation49_spill] sm:$0xff] %v11419_v10  ;;  %v11422_v7 = vpop.eup %8916 }
 0xdef   :  { %12697 = vst [vmem:[#allocation75_spill] sm:$0xff] %v11422_v7  ;;  %v11425_v50 = vpop.eup %8918 }
 0xdf0   :  { %4149 = vperm.xlu0 %8201, %v11402_v13   ;;  %12698 = vst [vmem:[#allocation79_spill] sm:$0xff] %v11425_v50  ;;  %v11428_v12 = vpop.eup %8920 }
 0xdf1   :  { %12699 = vst [vmem:[#allocation39_spill] sm:$0xff] %v11428_v12  ;;  %v11431_v21 = vpop.eup %8922 }
 0xdf2   :  { %4137 = vperm.xlu1 %8200, %v11407_v35   ;;  %12700 = vst [vmem:[#allocation43_spill] sm:$0xff] %v11431_v21  ;;  %v12702_v35 = vld [vmem:[#allocation68_spill] sm:$0xff] }
 0xdf4   :  { %4128 = vperm.xlu0 %8201, %v11410_v22  }
 0xdf6   :  { %4116 = vperm.xlu1 %8200, %v11413_v20  }
 0xdf8   :  { %4152 = vperm.xlu0 %8201, %v11416_v42  }
 0xdfa   :  { %4140 = vperm.xlu1 %8200, %v11419_v10  }
 0xdfc   :  { %4131 = vperm.xlu0 %8201, %v11422_v7  }
 0xdfe   :  { %4119 = vperm.xlu1 %8200, %v11425_v50  }
 0xe02   :  { %4143 = vperm.xlu1 %8200, %v11428_v12  }
 0xe06   :  { %4122 = vperm.xlu1 %8200, %v11431_v21   ;;  %v12701_v21 = vld [vmem:[#allocation62_spill] sm:$0xff] }
 0xe07   :  { %v5778_v50 = vpack.c.bf16 %v12702_v35, %v12701_v21 }
 0xe7f   :  { %v5721_v56 = vpop.f32.mrf.mxu0 }
 0xe80   :  { %8924 = vtanh.f32 %v5721_v56  ;;  %v12707_v56 = vld [vmem:[#allocation53_spill] sm:$0xff] }
 0xe81   :  { %v8092_v6 = vpop.f32.mrf.mxu0 }
 0xe83   :  { %v5724_v42 = vpop.f32.mrf.mxu0  ;;  %v5761_v13 = vpop.f32.mrf.mxu1 }
 0xe84   :  { %8926 = vtanh.f32 %v5761_v13  ;;  %v12703_v13 = vld [vmem:[#allocation65_spill] sm:$0xff]  ;;  %v4060_v42 = vsub.f32 %v11278_v5, %v11342_v36  ;;  %v4947_v36 = vadd.f32 %v4910_v47, %v12670_v27  ;;  %v4940_v5 = vadd.f32 %v11301_v59, %v12658_v15  ;;  %v11477_v47 = vld [vmem:[%s12709_s0] ss:$0 sm:$0xff] }
 0xe85   :  { %v8093_v7 = vpop.f32.mrf.mxu0  ;;  %v8104_v0 = vpop.f32.mrf.mxu1 }
 0xe86   :  { %v12704_v0 = vld [vmem:[#allocation71_spill] sm:$0xff]  ;;  %v12705_v7 = vld [vmem:[#allocation50_spill] sm:$0xff] }
 0xe87   :  { %v5764_v22 = vpop.f32.mrf.mxu1 }
 0xe88   :  { %v5777_v22 = vpack.c.bf16 %v12704_v0, %v12703_v13 }
 0xe89   :  { %v8105_v12 = vpop.f32.mrf.mxu1 }
 0xe8a   :  { %v4091_v12 = vmul.f32 1.442695, %v4060_v42  ;;  %v4941_v42 = vadd.f32 %v11305_v52, %v12659_v1  ;;  %v4950_v1 = vadd.f32 %v11438_v39, %v12665_v54  ;;  %v4952_v54 = vadd.f32 %v11436_v63, %v12663_v26 }
 0xe8b   :  { %v4944_v26 = vadd.f32 %v11309_v23, %v12654_v8 }
 0xe8d   :  { %v8925_v30 = vpop.eup %8924 }
 0xe8e   :  { %v5769_v10 = vpack.c.bf16 %v8925_v30, %v8925_v30  ;;  %v4939_v30 = vadd.f32 %v11307_v32, %v12661_v17  ;;  %v12708_v17 = vld [vmem:[#allocation59_spill] sm:$0xff] }
 0xe8f   :  { %v5775_v32 = vpack.c.bf16 %v12708_v17, %v12707_v56 }
 0xe90   :  { %5871 = vxpose.xlu1.c.b16.start.end [1/1] (short) (narrow) %v5769_v10, 64  ;;  %8115 = vmatmul.mubr.msk.bf16.vlgmr.msra.gmra.mxu0 %vm3507_vm12, %v5769_v10  ;;  %v4946_v10 = vadd.f32 %v4907_v14, %v12669_v28  ;;  %8928 = vtanh.f32 %v4939_v30  ;;  %v5870_v28 = vpack.c.bf16 %v11444_v38, %v11444_v38 }
 0xe91   :  { %v8927_v16 = vpop.eup %8926  ;;  %8119 = vmatpush3.bf16.msra.mxu0 %v5778_v50  ;;  %8126 = vmatprep.mubr.msk.bf16.mxu0 %vm9148_vm9, %v12623_v44  ;;  %v12706_v50 = vld [vmem:[#allocation56_spill] sm:$0xff] }
 0xe92   :  { %v5770_v6 = vpack.c.bf16 %v8927_v16, %v8927_v16  ;;  %8120 = vmatprep.subr.bf16.mxu0 %v12623_v44  ;;  %v5776_v16 = vpack.c.bf16 %v12706_v50, %v12705_v7  ;;  %8930 = vtanh.f32 %v4946_v10  ;;  %v5996_v14 = vsel %vm3629_vm11, %v5870_v28, 0 }
 0xe93   :  { %8932 = vpow2.f32 %v4091_v12  ;;  %v4951_v12 = vadd.f32 %v11442_v18, %v12666_v51  ;;  %v4943_v51 = vadd.f32 %v11315_v60, %v12657_v19  ;;  %v4945_v19 = vadd.f32 %v11313_v62, %v12655_v2 }
 0xe94   :  { %5967 = vxpose.xlu0.c.b16.start.end [1/1] (short) (narrow) %v5770_v6, 64  ;;  %8934 = vtanh.f32 %v4947_v36  ;;  %v4740_v60 = vadd.f32 %v11232_v41, %v11033_v11 }
 0xe95   :  { %8121 = vmatpush3.bf16.msra.mxu0 %v5777_v22  ;;  %8936 = vtanh.f32 %v4940_v5  ;;  %v4948_v22 = vadd.f32 %v8076_v40, %v12667_v9  ;;  %v4949_v9 = vadd.f32 %v11434_v4, %v12668_v55 }
 0xe96   :  { %8122 = vmatprep.subr.bf16.mxu0 %v12623_v44 }
 0xe97   :  { %8938 = vtanh.f32 %v4948_v22 }
 0xe98   :  { %8940 = vtanh.f32 %v4941_v42  ;;  %v4114_v42 = vpop.permute.xlu0 %4113 }
 0xe99   :  { %8123 = vmatpush3.bf16.msra.mxu0 %v5776_v16  ;;  %8942 = vtanh.f32 %v4949_v9  ;;  %v4938_v16 = vadd.f32 %v11303_v57, %v12660_v33  ;;  %v3911_v33 = vpop.xlane.xlu1 %3910  ;;  %v4953_v57 = vadd.f32 %v11440_v37, %v12664_v58 }
 0xe9a   :  { %8124 = vmatprep.subr.bf16.mxu0 %v12623_v44  ;;  %8944 = vtanh.f32 %v4950_v1 }
 0xe9b   :  { %8946 = vtanh.f32 %v4938_v16 }
 0xe9c   :  { %8948 = vtanh.f32 %v4951_v12  ;;  %v4147_v12 = vpop.permute.xlu0 %4146 }
 0xe9d   :  { %8125 = vmatpush3.bf16.msra.mxu0 %v5775_v32  ;;  %v8929_v27 = vpop.eup %8928  ;;  %v4942_v32 = vadd.f32 %v11311_v43, %v12656_v31  ;;  %v3912_v43 = vsub.f32 %v11363_v61, %v3911_v33  ;;  %v11515_v8 = vpop.permute.xlu1 %4110 }
 0xe9e   :  { %8195 = vmatprep.subr.msk.bf16.mxu0 %vm3629_vm11, %v5870_v28  ;;  %v4989_v15 = vmul.f32 %v8929_v27, %v11477_v47 }
 0xe9f   :  { %v8931_v30 = vpop.eup %8930  ;;  %8950 = vtanh.f32 %v4942_v32  ;;  %v3913_v5 = vmul.f32 1.442695, %v3912_v43 }
 0xea0   :  { %8127 = vmatmul.mubr.msk.bf16.vlgmr.msra.gmra.mxu0 %vm3507_vm12, %v5770_v6  ;;  %v11482_v59 = vpop.eup %8932  ;;  %v4996_v40 = vmul.f32 %v8931_v30, %v11477_v47  ;;  %8952 = vtanh.f32 %v4952_v54 }
 0xea1   :  { %8141 = vmatpush3.bf16.msra.mxu0 %v5996_v14  ;;  %v8935_v6 = vpop.eup %8934  ;;  %8954 = vtanh.f32 %v4943_v51  ;;  %v11519_v2 = vpop.permute.xlu1 %4134 }
 0xea2   :  { %v4997_v52 = vmul.f32 %v8935_v6, %v11477_v47  ;;  %v8937_v10 = vpop.eup %8936  ;;  %8956 = vtanh.f32 %v4953_v57 }
 0xea3   :  { %v4990_v55 = vmul.f32 %v8937_v10, %v11477_v47  ;;  %8958 = vtanh.f32 %v4944_v26 }
 0xea4   :  { %v8939_v4 = vpop.eup %8938  ;;  %8960 = vpow2.f32 %v3913_v5 }
 0xea5   :  { %v4998_v39 = vmul.f32 %v8939_v4, %v11477_v47  ;;  %v8941_v36 = vpop.eup %8940  ;;  %8962 = vtanh.f32 %v4945_v19  ;;  %v4138_v6 = vpop.permute.xlu1 %4137 }
 0xea6   :  { %v4991_v18 = vmul.f32 %v8941_v36, %v11477_v47  ;;  %v8943_v31 = vpop.eup %8942  ;;  %8964 = vtanh.f32 %v4740_v60 }
 0xea7   :  { %v4999_v63 = vmul.f32 %v8943_v31, %v11477_v47  ;;  %v8945_v28 = vpop.eup %8944 }
 0xea8   :  { %v8947_v58 = vpop.eup %8946  ;;  %v5000_v61 = vmul.f32 %v8945_v28, %v11477_v47 }
 0xea9   :  { %5006 = vadd.xlane.f32.xlu1 %v4989_v15  ;;  %4155 = vperm.xlu0 %8201, %v11482_v59   ;;  %v8949_v37 = vpop.eup %8948  ;;  %v4988_v23 = vmul.f32 %v8947_v58, %v11477_v47  ;;  %v4117_v4 = vpop.permute.xlu1 %4116 }
 0xeaa   :  { %v5001_v22 = vmul.f32 %v8949_v37, %v11477_v47  ;;  %v4203_v37 = vrot.slane %v4138_v6, %v11198_v48 }
 0xeac   :  { %v8951_v14 = vpop.eup %8950 }
 0xead   :  { %5020 = vadd.xlane.f32.xlu1 %v4996_v40  ;;  %v8953_v27 = vpop.eup %8952  ;;  %v4992_v11 = vmul.f32 %v8951_v14, %v11477_v47  ;;  %v4141_v36 = vpop.permute.xlu1 %4140 }
 0xeae   :  { %v8955_v41 = vpop.eup %8954  ;;  %v5002_v62 = vmul.f32 %v8953_v27, %v11477_v47  ;;  %v4208_v14 = vrot.slane %v4141_v36, %v11210_v25  ;;  %v4199_v27 = vrot.slane %v11519_v2, %v11201_v45  ;;  %v4218_v2 = vrot.slane %v4147_v12, %v11225_v53  ;;  %v12710_v12 = vld [vmem:[#allocation16_spill] sm:$0xff] }
 0xeaf   :  { %v8957_v30 = vpop.eup %8956  ;;  %v4993_v15 = vmul.f32 %v8955_v41, %v11477_v47 }
 0xeb0   :  { %v8959_v9 = vpop.eup %8958  ;;  %v5003_v40 = vmul.f32 %v8957_v30, %v11477_v47 }
 0xeb1   :  { %5022 = vadd.xlane.f32.xlu1 %v4997_v52  ;;  %v11525_v1 = vpop.eup %8960  ;;  %v4994_v52 = vmul.f32 %v8959_v9, %v11477_v47  ;;  %v4120_v51 = vpop.permute.xlu1 %4119 }
 0xeb2   :  { %v8963_v10 = vpop.eup %8962 }
 0xeb3   :  { %v8965_v16 = vpop.eup %8964  ;;  %v4995_v32 = vmul.f32 %v8963_v10, %v11477_v47 }
 0xeb4   :  { %v4976_v54 = vmul.f32 %v8965_v16, %v11296_v3 }
 0xeb5   :  { %5008 = vadd.xlane.f32.xlu1 %v4990_v55  ;;  %v3915_v55 = vsel %vm3908_vm7, %v11525_v1, 0.0 }
 0xeb9   :  { %5024 = vadd.xlane.f32.xlu1 %v4998_v39  ;;  %v4126_v39 = vpop.permute.xlu0 %4125 }
 0xebd   :  { %5010 = vadd.xlane.f32.xlu1 %v4991_v18  ;;  %v4150_v33 = vpop.permute.xlu0 %4149  ;;  %v4144_v18 = vpop.permute.xlu1 %4143 }
 0xebe   :  { %v4213_v41 = vrot.slane %v4144_v18, %v11217_v29  ;;  %v4223_v16 = vrot.slane %v4150_v33, %v11235_v49 }
 0xec1   :  { %5026 = vadd.xlane.f32.xlu1 %v4999_v63  ;;  %v4129_v57 = vpop.permute.xlu0 %4128  ;;  %v4123_v43 = vpop.permute.xlu1 %4122 }
 0xec5   :  { %5028 = vadd.xlane.f32.xlu1 %v5000_v61  ;;  %v4153_v31 = vpop.permute.xlu0 %4152  ;;  %v4160_v61 = vrot.slane %v11515_v8, %v11201_v45  ;;  %v4204_v8 = vsel %vm3945_vm14, %v4203_v37, %v4199_v27 }
 0xec6   :  { %v4209_v9 = vsel %vm3952_vm15, %v4208_v14, %v4204_v8 }
 0xec8   :  { %5004 = vadd.xlane.f32.xlu0 %v4988_v23  ;;  %v4169_v23 = vrot.slane %v4117_v4, %v11210_v25  ;;  %v4189_v4 = vrot.slane %v4129_v57, %v11247_v24 }
 0xec9   :  { %5030 = vadd.xlane.f32.xlu1 %v5001_v22  ;;  %v4132_v26 = vpop.permute.xlu0 %4131  ;;  %v4164_v22 = vrot.slane %v4114_v42, %v11198_v48  ;;  %v4214_v42 = vsel %vm3959_vm0, %v4213_v41, %v4209_v9 }
 0xeca   :  { %v4219_v10 = vsel %vm3966_vm1, %v4218_v2, %v4214_v42  ;;  %v4194_v18 = vrot.slane %v4132_v26, %v12710_v12 }
 0xecb   :  { %v4165_v30 = vsel %vm3945_vm14, %v4164_v22, %v4160_v61 }
 0xecc   :  { %5012 = vadd.xlane.f32.xlu0 %v4992_v11  ;;  %v4174_v11 = vrot.slane %v4120_v51, %v11217_v29 }
 0xecd   :  { %5032 = vadd.xlane.f32.xlu1 %v5002_v62  ;;  %v4179_v62 = vrot.slane %v4123_v43, %v11225_v53 }
 0xed0   :  { %5014 = vadd.xlane.f32.xlu0 %v4993_v15  ;;  %v4170_v15 = vsel %vm3952_vm15, %v4169_v23, %v4165_v30 }
 0xed1   :  { %5034 = vadd.xlane.f32.xlu1 %v5003_v40  ;;  %v4175_v40 = vsel %vm3959_vm0, %v4174_v11, %v4170_v15 }
 0xed2   :  { %v4180_v6 = vsel %vm3966_vm1, %v4179_v62, %v4175_v40 }
 0xed4   :  { %5016 = vadd.xlane.f32.xlu0 %v4994_v52  ;;  %v4184_v52 = vrot.slane %v4126_v39, %v11235_v49 }
 0xed5   :  { %3916 = vadd.xlane.f32.xlu1 %v3915_v55 }
 0xed6   :  { %v4185_v55 = vsel %vm3973_vm2, %v4184_v52, %v4180_v6 }
 0xed7   :  { %v4190_v51 = vsel %vm3980_vm3, %v4189_v4, %v4185_v55 }
 0xed8   :  { %5018 = vadd.xlane.f32.xlu0 %v4995_v32  ;;  %v4224_v32 = vsel %vm3973_vm2, %v4223_v16, %v4219_v10 }
 0xed9   :  { %4978 = vadd.xlane.f32.xlu1 %v4976_v54  ;;  %v4228_v54 = vrot.slane %v4153_v31, %v11247_v24 }
 0xedb   :  { %v4229_v39 = vsel %vm3980_vm3, %v4228_v54, %v4224_v32 }
 0xef2   :  { %v5879_v63 = vpop.trf.xlu1 }
 0xef3   :  { %8132 = vmatprep.mubr.msk.bf16.mxu1 %vm3616_vm13, %v5879_v63  ;;  %v4195_v63 = vsel %vm3987_vm4, %v4194_v18, %v4190_v51 }
 0xef6   :  { %v5880_v28 = vpop.trf.xlu1  ;;  %v5975_v5 = vpop.trf.xlu0 }
 0xef7   :  { %8133 = vmatmul.mubr.msk.bf16.vlgmr.msra.gmra.mxu1 %vm3616_vm13, %v5880_v28  ;;  %8142 = vmatprep.mubr.msk.bf16.mxu0 %vm3616_vm13, %v5975_v5 }
 0xefa   :  { %v5881_v3 = vpop.trf.xlu1  ;;  %v5976_v47 = vpop.trf.xlu0 }
 0xefb   :  { %8143 = vmatmul.mubr.msk.bf16.vlgmr.msra.gmra.mxu0 %vm3616_vm13, %v5976_v47  ;;  %8136 = vmatprep.mubr.msk.bf16.mxu1 %vm3616_vm13, %v5881_v3 }
 0xefe   :  { %v5882_v19 = vpop.trf.xlu1  ;;  %v5977_v58 = vpop.trf.xlu0 }
 0xeff   :  { %8137 = vmatmul.mubr.msk.bf16.gmra.mxu1 %vm3616_vm13, %v5882_v19  ;;  %8146 = vmatprep.mubr.msk.bf16.mxu0 %vm3616_vm13, %v5977_v58 }
 0xf00   :  { %8166 = vmatprep.mubr.msk.bf16.mxu1 %vm9148_vm9, %v12623_v44 }
 0xf02   :  { %v5978_v60 = vpop.trf.xlu0 }
 0xf03   :  { %8147 = vmatmul.mubr.msk.bf16.gmra.mxu0 %vm3616_vm13, %v5978_v60 }
 0xf24   :  { %v4156_v36 = vpop.permute.xlu0 %4155 }
 0xf25   :  { %v4233_v43 = vrot.slane %v4156_v36, %v12710_v12 }
 0xf27   :  { %v4234_v33 = vsel %vm3987_vm4, %v4233_v43, %v4229_v39 }
 0xf28   :  { %v4235_v28 = vsel %vm2043_vm10, %v4234_v33, %v4195_v63 }
 0xf29   :  { %v4237_v57 = vsel %vm4030_vm5, %v4235_v28, 0.0 }
 0xf2a   :  { %4238 = vadd.xlane.f32.xlu0 %v4237_v57 }
 0xf32   :  { %v11576_v5 = vpop.xlane.xlu1 %5006 }
 0xf33   :  { %v5083_v41 = vrot.slane %v11576_v5, %v11198_v48 }
 0xf36   :  { %v11578_v31 = vpop.xlane.xlu1 %5020 }
 0xf37   :  { %v5118_v6 = vrot.slane %v11578_v31, %v11201_v45 }
 0xf3a   :  { %v11580_v3 = vpop.xlane.xlu1 %5022 }
 0xf3b   :  { %v5122_v40 = vrot.slane %v11580_v3, %v11198_v48 }
 0xf3d   :  { %v5123_v54 = vsel %vm3945_vm14, %v5122_v40, %v5118_v6 }
 0xf3e   :  { %v11582_v26 = vpop.xlane.xlu1 %5008 }
 0xf3f   :  { %v5088_v15 = vrot.slane %v11582_v26, %v11210_v25 }
 0xf42   :  { %v11584_v47 = vpop.xlane.xlu1 %5024 }
 0xf43   :  { %v5127_v42 = vrot.slane %v11584_v47, %v11210_v25 }
 0xf45   :  { %v5128_v43 = vsel %vm3952_vm15, %v5127_v42, %v5123_v54  ;;  %v12711_v54 = vld [vmem:[#allocation11_spill] sm:$0xff] }
 0xf46   :  { %v11586_v19 = vpop.xlane.xlu1 %5010 }
 0xf47   :  { %v5093_v52 = vrot.slane %v11586_v19, %v11217_v29 }
 0xf4a   :  { %v11588_v58 = vpop.xlane.xlu1 %5026 }
 0xf4b   :  { %v5132_v10 = vrot.slane %v11588_v58, %v11217_v29 }
 0xf4d   :  { %v5133_v33 = vsel %vm3959_vm0, %v5132_v10, %v5128_v43 }
 0xf4e   :  { %v11590_v60 = vpop.xlane.xlu1 %5028 }
 0xf4f   :  { %v5137_v16 = vrot.slane %v11590_v60, %v11225_v53 }
 0xf50   :  { %v11592_v61 = vpop.f32.mrf.mxu0 }
 0xf51   :  { %v11594_v37 = vpop.xlane.xlu0 %5004 }
 0xf52   :  { %v11596_v23 = vpop.xlane.xlu1 %5030  ;;  %v8116_v14 = vpop.f32.mrf.mxu0  ;;  %v5079_v22 = vrot.slane %v11594_v37, %v11201_v45 }
 0xf53   :  { %v5142_v36 = vrot.slane %v11596_v23, %v11235_v49  ;;  %v5138_v14 = vsel %vm3966_vm1, %v5137_v16, %v5133_v33 }
 0xf54   :  { %v5819_v27 = vpop.f32.mrf.mxu0  ;;  %v5084_v8 = vsel %vm3945_vm14, %v5083_v41, %v5079_v22 }
 0xf55   :  { %v11600_v11 = vpop.xlane.xlu0 %5012  ;;  %v5089_v2 = vsel %vm3952_vm15, %v5088_v15, %v5084_v8  ;;  %v5143_v41 = vsel %vm3973_vm2, %v5142_v36, %v5138_v14 }
 0xf56   :  { %v8117_v62 = vpop.f32.mrf.mxu0  ;;  %v11604_v30 = vpop.xlane.xlu1 %5032  ;;  %v5098_v55 = vrot.slane %v11600_v11, %v11225_v53  ;;  %v5094_v51 = vsel %vm3959_vm0, %v5093_v52, %v5089_v2 }
 0xf57   :  { %v5147_v39 = vrot.slane %v11604_v30, %v11247_v24 }
 0xf58   :  { %v5099_v22 = vsel %vm3966_vm1, %v5098_v55, %v5094_v51 }
 0xf59   :  { %v11609_v9 = vpop.xlane.xlu0 %5014  ;;  %v5148_v42 = vsel %vm3980_vm3, %v5147_v39, %v5143_v41  ;;  %v12714_v41 = vld [vmem:[#allocation21_spill] sm:$0xff] }
 0xf5a   :  { %v11626_v4 = vpop.xlane.xlu1 %5034  ;;  %v5103_v18 = vrot.slane %v11609_v9, %v11235_v49 }
 0xf5b   :  { %v5152_v28 = vrot.slane %v11626_v4, %v12710_v12 }
 0xf5c   :  { %v5104_v62 = vsel %vm3973_vm2, %v5103_v18, %v5099_v22  ;;  %v12712_v18 = vld [vmem:[#allocation76_spill] sm:$0xff] }
 0xf5d   :  { %v11628_v32 = vpop.xlane.xlu0 %5016  ;;  %v5153_v52 = vsel %vm3987_vm4, %v5152_v28, %v5148_v42 }
 0xf5e   :  { %v5108_v63 = vrot.slane %v11628_v32, %v11247_v24  ;;  %v3917_v22 = vpop.xlane.xlu1 %3916 }
 0xf60   :  { %v11644_v57 = vpop.f32.mrf.mxu0  ;;  %v5109_v40 = vsel %vm3980_vm3, %v5108_v63, %v5104_v62  ;;  %v12713_v63 = vld [vmem:[#allocation78_spill] sm:$0xff] }
 0xf61   :  { %v11648_v27 = vpop.xlane.xlu0 %5018 }
 0xf62   :  { %v8128_v8 = vpop.f32.mrf.mxu0  ;;  %v5113_v15 = vrot.slane %v11648_v27, %v12710_v12 }
 0xf63   :  { %v12715_v8 = vld [vmem:[#allocation79_spill] sm:$0xff] }
 0xf64   :  { %v5862_v2 = vpop.f32.mrf.mxu0  ;;  %v5114_v6 = vsel %vm3987_vm4, %v5113_v15, %v5109_v40  ;;  %v12716_v40 = vld [vmem:[#allocation52_spill] sm:$0xff] }
 0xf65   :  { %v5154_v10 = vsel %vm2043_vm10, %v5153_v52, %v5114_v6  ;;  %v12718_v6 = vld [vmem:[#allocation49_spill] sm:$0xff] }
 0xf66   :  { %v8129_v16 = vpop.f32.mrf.mxu0  ;;  %v5156_v55 = vsel %vm4030_vm5, %v5154_v10, -inf  ;;  %v12719_v52 = vld [vmem:[#allocation29_spill] sm:$0xff]  ;;  %v12720_v10 = vld [vmem:[#allocation39_spill] sm:$0xff] }
 0xf67   :  { %5157 = vmax.xlane.f32.xlu0 %v5156_v55  ;;  %v12721_v55 = vld [vmem:[#allocation55_spill] sm:$0xff] }
 0xf6b   :  { %4980 = vadd.xlane.f32.xlu0 %v12711_v54 }
 0xfb3   :  { %v4239_v36 = vpop.xlane.xlu0 %4238 }
 0xfb4   :  { %8966 = vrcp.f32 %v4239_v36 }
 0xfb5   :  { %8968 = vrcp.f32 %v3917_v22 }
 0xfc1   :  { %v8967_v51 = vpop.eup %8966 }
 0xfc2   :  { %v4245_v43 = vrot.slane %v8967_v51, %v12712_v18  ;;  %v4249_v33 = vrot.slane %v8967_v51, %v12713_v63  ;;  %v8969_v36 = vpop.eup %8968  ;;  %v12722_v51 = vld [vmem:[#allocation28_spill] sm:$0xff] }
 0xfc3   :  { %v3919_v22 = vmul.f32 %v8969_v36, %v11525_v1  ;;  %v8500_v1 = vld [vmem:[%s12375_s20 + $0x38] sm:$0xff]  }
 0xfc4   :  { %v4253_v39 = vmul.f32 %v11379_v46, %v4245_v43  ;;  %v4252_v14 = vmul.f32 %v11391_v34, %v4245_v43  ;;  %v4254_v28 = vmul.f32 %v11413_v20, %v4245_v43  ;;  %v4260_v62 = vmul.f32 %v12714_v41, %v4249_v33  ;;  %v12717_v46 = vld [vmem:[#allocation43_spill] sm:$0xff]  ;;  %v12724_v41 = vld [vmem:[#allocation22_spill] sm:$0xff]  ;;  %8151 = vmatpush3.bf16.msra.mxu1 %v8500_v1 }
 0xfc5   :  { %v4255_v15 = vmul.f32 %v12715_v8, %v4245_v43  ;;  %v4261_v42 = vmul.f32 %v12716_v40, %v4249_v33  ;;  %v4256_v2 = vmul.f32 %v12717_v46, %v4245_v43  ;;  %v4262_v34 = vmul.f32 %v12718_v6, %v4249_v33  ;;  %8152 = vmatprep.subr.bf16.mxu1 %v12623_v44 }
 0xfc6   :  { %4303 = vperm.xlu0 %8201, %v4253_v39   ;;  %4298 = vperm.xlu1 %8200, %v4252_v14   ;;  %v4257_v20 = vmul.f32 %v12719_v52, %v4245_v43  ;;  %v4263_v16 = vmul.f32 %v12720_v10, %v4249_v33  ;;  %v4258_v54 = vmul.f32 %v12721_v55, %v4245_v43  ;;  %v12723_v14 = vld [vmem:[#allocation75_spill] sm:$0xff]  ;;  %v8502_v52 = vld [vmem:[%s12375_s20 + $0x28] sm:$0xff]  }
 0xfc7   :  { %v4264_v39 = vmul.f32 %v12722_v51, %v4249_v33  ;;  %v4271_v8 = vrot.slane %v3919_v22, %v12712_v18  ;;  %v4278_v46 = vrot.slane %v3919_v22, %v12713_v63 }
 0xfca   :  { %4308 = vperm.xlu0 %8201, %v4254_v28   ;;  %4338 = vperm.xlu1 %8200, %v4260_v62   ;;  %v4259_v28 = vmul.f32 %v12723_v14, %v4245_v43  ;;  %v4265_v62 = vmul.f32 %v12724_v41, %v4249_v33 }
 0xfce   :  { %4313 = vperm.xlu0 %8201, %v4255_v15   ;;  %4343 = vperm.xlu1 %8200, %v4261_v42   ;;  %v12725_v15 = vld [vmem:[#allocation46_spill] sm:$0xff]  ;;  %v4267_v42 = vmul.f32 %v11482_v59, %v4249_v33 }
 0xfcf   :  { %v4266_v40 = vmul.f32 %v12725_v15, %v4249_v33 }
 0xfd2   :  { %4318 = vperm.xlu0 %8201, %v4256_v2   ;;  %4348 = vperm.xlu1 %8200, %v4262_v34   ;;  %v8501_v2 = vld [vmem:[%s12375_s20 + $0x30] sm:$0xff]  }
 0xfd3   :  { %8153 = vmatpush3.bf16.msra.mxu1 %v8501_v2 }
 0xfd4   :  { %8154 = vmatprep.subr.bf16.mxu1 %v12623_v44 }
 0xfd6   :  { %4323 = vperm.xlu0 %8201, %v4257_v20   ;;  %4353 = vperm.xlu1 %8200, %v4263_v16   ;;  %v4979_v20 = vpop.xlane.xlu1 %4978 }
 0xfd7   :  { %8155 = vmatpush3.bf16.msra.mxu1 %v8502_v52 }
 0xfd8   :  { %8156 = vmatprep.subr.bf16.mxu1 %v12623_v44 }
 0xfda   :  { %4328 = vperm.xlu0 %8201, %v4258_v54   ;;  %4358 = vperm.xlu1 %8200, %v4264_v39   ;;  %v8503_v39 = vld [vmem:[%s12375_s20 + $0x20] sm:$0xff]  }
 0xfdb   :  { %8157 = vmatpush3.bf16.msra.mxu1 %v8503_v39 }
 0xfdc   :  { %8158 = vmatprep.subr.bf16.mxu1 %v12623_v44 }
 0xfde   :  { %4333 = vperm.xlu0 %8201, %v4259_v28   ;;  %4363 = vperm.xlu1 %8200, %v4265_v62   ;;  %v8504_v28 = vld [vmem:[%s12375_s20 + $0x18] sm:$0xff]  }
 0xfdf   :  { %8159 = vmatpush3.bf16.msra.mxu1 %v8504_v28 }
 0xfe0   :  { %8160 = vmatprep.subr.bf16.mxu1 %v12623_v44 }
 0xfe2   :  { %4273 = vbcast.lane.b32.xlu0 %v4271_v8, 256  ;;  %4368 = vperm.xlu1 %8200, %v4266_v40   ;;  %v8505_v8 = vld [vmem:[%s12375_s20 + $0x10] sm:$0xff]  }
 0xfe3   :  { %8161 = vmatpush3.bf16.msra.mxu1 %v8505_v8 }
 0xfe4   :  { %8162 = vmatprep.subr.bf16.mxu1 %v12623_v44 }
 0xfe6   :  { %4373 = vperm.xlu1 %8200, %v4267_v42  }
 0xfea   :  { %4280 = vbcast.lane.b32.xlu1 %v4278_v46, 256 }
 0xff0   :  { %v5158_v43 = vpop.xlane.xlu0 %5157 }
 0xff1   :  { %v11690_v6 = vrot.slane %v5158_v43, %v12712_v18  ;;  %v11693_v59 = vrot.slane %v5158_v43, %v12713_v63 }
 0xff3   :  { %v5171_v33 = vsub.f32 %v11576_v5, %v11690_v6  ;;  %v5179_v16 = vsub.f32 %v11580_v3, %v11693_v59  ;;  %v5041_v5 = vrot.slane %v4979_v20, %v11201_v45  ;;  %v5180_v54 = vsub.f32 %v11584_v47, %v11693_v59 }
 0xff4   :  { %v4981_v34 = vpop.xlane.xlu0 %4980  ;;  %v5181_v47 = vsub.f32 %v11588_v58, %v11693_v59  ;;  %v5170_v62 = vsub.f32 %v11594_v37, %v11690_v6  ;;  %v5182_v15 = vsub.f32 %v11590_v60, %v11693_v59  ;;  %v5178_v46 = vsub.f32 %v11578_v31, %v11693_v59  ;;  %v8506_v37 = vld [vmem:[%s12375_s20 + $0x8] sm:$0xff]   ;;  %v8507_v31 = vld [vmem:[%s12375_s20] sm:$0xff]  }
 0xff5   :  { %v5188_v10 = vmul.f32 1.442695, %v5171_v33  ;;  %v5045_v55 = vrot.slane %v4981_v34, %v11201_v45  ;;  %v5204_v36 = vmul.f32 1.442695, %v5179_v16  ;;  %v5206_v22 = vmul.f32 1.442695, %v5180_v54  ;;  %8163 = vmatpush3.bf16.msra.mxu1 %v8506_v37 }
 0xff6   :  { %v5208_v58 = vmul.f32 1.442695, %v5181_v47  ;;  %v5186_v42 = vmul.f32 1.442695, %v5170_v62  ;;  %v5175_v60 = vsub.f32 %v11609_v9, %v11690_v6  ;;  %v5210_v1 = vmul.f32 1.442695, %v5182_v15  ;;  %8164 = vmatprep.subr.bf16.mxu1 %v12623_v44 }
 0xff7   :  { %8970 = vpow2.f32 %v5188_v10  ;;  %v5046_v51 = vsel %vm2043_vm10, %v5045_v55, %v5041_v5  ;;  %v5172_v43 = vsub.f32 %v11582_v26, %v11690_v6  ;;  %v5202_v2 = vmul.f32 1.442695, %v5178_v46  ;;  %v12727_v37 = vld [vmem:[#allocation32_spill] sm:$0xff] }
 0xff8   :  { %v11714_v3 = vsel %vm3892_vm6, %v5046_v51, -1e+30  ;;  %8972 = vpow2.f32 %v5204_v36  ;;  %v5183_v33 = vsub.f32 %v11596_v23, %v11693_v59  ;;  %v5196_v34 = vmul.f32 1.442695, %v5175_v60 }
 0xff9   :  { %v5049_v41 = vsel %vm3908_vm7, %v11714_v3, -inf  ;;  %8974 = vpow2.f32 %v5206_v22  ;;  %v5173_v52 = vsub.f32 %v11586_v19, %v11690_v6  ;;  %v5190_v26 = vmul.f32 1.442695, %v5172_v43  ;;  %8165 = vmatpush3.bf16.msra.mxu1 %v8507_v31 }
 0xffa   :  { %8976 = vpow2.f32 %v5208_v58  ;;  %v5176_v20 = vsub.f32 %v11628_v32, %v11690_v6  ;;  %v5212_v10 = vmul.f32 1.442695, %v5183_v33  ;;  %v5174_v23 = vsub.f32 %v11600_v11, %v11690_v6  ;;  %v8144_v58 = vpop.f32.mrf.mxu0 }
 0xffb   :  { %8978 = vpow2.f32 %v5186_v42  ;;  %v5192_v55 = vmul.f32 1.442695, %v5173_v52  ;;  %v5184_v19 = vsub.f32 %v11604_v30, %v11693_v59  ;;  %v5177_v11 = vsub.f32 %v11648_v27, %v11690_v6  ;;  %v8134_v42 = vpop.f32.mrf.mxu1 }
 0xffc   :  { %8980 = vpow2.f32 %v5210_v1  ;;  %v5198_v5 = vmul.f32 1.442695, %v5176_v20  ;;  %v5194_v32 = vmul.f32 1.442695, %v5174_v23  ;;  %v5185_v28 = vsub.f32 %v11626_v4, %v11693_v59  ;;  %v6032_v1 = vpop.f32.mrf.mxu0 }
 0xffd   :  { %8982 = vpow2.f32 %v5202_v2  ;;  %v5214_v51 = vmul.f32 1.442695, %v5184_v19  ;;  %v5200_v47 = vmul.f32 1.442695, %v5177_v11  ;;  %v6065_v60 = vadd.f32 %v8134_v42, %v12727_v37  ;;  %v5936_v43 = vpop.f32.mrf.mxu1  ;;  %v12730_v19 = vld [vmem:[#allocation34_spill] sm:$0xff] }
 0xffe   :  { %8984 = vpow2.f32 %v5196_v34  ;;  %v5216_v6 = vmul.f32 1.442695, %v5185_v28  ;;  %v6073_v2 = vadd.f32 %v8144_v58, %v12705_v7  ;;  %v8145_v31 = vpop.f32.mrf.mxu0  ;;  %v12728_v34 = vld [vmem:[#allocation36_spill] sm:$0xff]  ;;  %v11817_v7 = vld [vmem:[%s12369_s14] ss:$0 sm:$0xff] }
 0xfff   :  { %8986 = vpow2.f32 %v5190_v26  ;;  %v8135_v33 = vpop.f32.mrf.mxu1  ;;  %v6074_v42 = vadd.f32 %v8145_v31, %v12706_v50 }
0x1000   :  { %8988 = vpow2.f32 %v5212_v10  ;;  %v6066_v52 = vadd.f32 %v8135_v33, %v12728_v34  ;;  %v6035_v26 = vpop.f32.mrf.mxu0  ;;  %v12729_v10 = vld [vmem:[#allocation38_spill] sm:$0xff] }
0x1001   :  { %5050 = vmax.xlane.f32.xlu0 %v5049_v41  ;;  %8990 = vpow2.f32 %v5192_v55  ;;  %v5939_v20 = vpop.f32.mrf.mxu1 }
0x1002   :  { %8992 = vpow2.f32 %v5198_v5  ;;  %v6064_v23 = vadd.f32 %v5939_v20, %v12729_v10  ;;  %v8148_v55 = vpop.f32.mrf.mxu0  ;;  %v6063_v5 = vadd.f32 %v5936_v43, %v12730_v19  ;;  %v12731_v43 = vld [vmem:[#allocation40_spill] sm:$0xff]  ;;  %v12732_v19 = vld [vmem:[#allocation6_spill] sm:$0xff] }
0x1003   :  { %8994 = vpow2.f32 %v5194_v32  ;;  %v6071_v32 = vadd.f32 %v6032_v1, %v12707_v56  ;;  %v6077_v58 = vadd.f32 %v8148_v55, %v12701_v21  ;;  %v6072_v55 = vadd.f32 %v6035_v26, %v12708_v17  ;;  %v12736_v26 = vld [vmem:[#allocation7_spill] sm:$0xff] }
0x1004   :  { %v11732_v40 = vpop.eup %8970  ;;  %8996 = vpow2.f32 %v5214_v51  ;;  %v6048_v11 = vpop.f32.mrf.mxu0 }
0x1005   :  { %5238 = vperm.xlu1 %8200, %v11732_v40   ;;  %v11751_v9 = vpop.eup %8972  ;;  %8998 = vpow2.f32 %v5200_v47  ;;  %v6075_v34 = vadd.f32 %v6048_v11, %v12703_v13 }
0x1006   :  { %v11758_v16 = vpop.eup %8974  ;;  %9000 = vpow2.f32 %v5216_v6  ;;  %v8138_v6 = vpop.f32.mrf.mxu1 }
0x1007   :  { %v11765_v54 = vpop.eup %8976  ;;  %9002 = vtanh.f32 %v6065_v60  ;;  %v8149_v37 = vpop.f32.mrf.mxu0 }
0x1008   :  { %v11768_v36 = vpop.eup %8978  ;;  %9004 = vtanh.f32 %v6073_v2  ;;  %v6069_v2 = vadd.f32 %v8138_v6, %v12731_v43  ;;  %v5952_v10 = vpop.f32.mrf.mxu1 }
0x1009   :  { %5262 = vperm.xlu1 %8200, %v11751_v9   ;;  %v11773_v39 = vpop.eup %8980  ;;  %9006 = vtanh.f32 %v6066_v52  ;;  %v6051_v52 = vpop.f32.mrf.mxu0 }
0x100a   :  { %v11776_v30 = vpop.eup %8982  ;;  %9008 = vtanh.f32 %v6064_v23  ;;  %v6076_v31 = vadd.f32 %v6051_v52, %v12704_v0  ;;  %v8139_v6 = vpop.f32.mrf.mxu1 }
0x100b   :  { %v11781_v22 = vpop.eup %8984  ;;  %9010 = vtanh.f32 %v6063_v5 }
0x100c   :  { %v11784_v27 = vpop.eup %8986  ;;  %9012 = vtanh.f32 %v6071_v32  ;;  %v12733_v32 = vld [vmem:[#allocation8_spill] sm:$0xff] }
0x100d   :  { %5265 = vperm.xlu1 %8200, %v11758_v16   ;;  %v11787_v41 = vpop.eup %8988  ;;  %9014 = vtanh.f32 %v6077_v58 }
0x100e   :  { %v11790_v62 = vpop.eup %8990  ;;  %9016 = vtanh.f32 %v6074_v42  ;;  %v12734_v42 = vld [vmem:[#allocation42_spill] sm:$0xff] }
0x100f   :  { %v11793_v4 = vpop.eup %8992  ;;  %9018 = vtanh.f32 %v6069_v2 }
0x1010   :  { %v11796_v59 = vpop.eup %8994  ;;  %9020 = vtanh.f32 %v6075_v34  ;;  %v6078_v34 = vadd.f32 %v8149_v37, %v12702_v35 }
0x1011   :  { %5268 = vperm.xlu1 %8200, %v11765_v54   ;;  %v11799_v8 = vpop.eup %8996  ;;  %9022 = vtanh.f32 %v6076_v31  ;;  %v12738_v31 = vld [vmem:[#allocation47_spill] sm:$0xff] }
0x1012   :  { %v11802_v15 = vpop.eup %8998  ;;  %9024 = vtanh.f32 %v6072_v55 }
0x1013   :  { %v11805_v46 = vpop.eup %9000 }
0x1014   :  { %v9003_v51 = vpop.eup %9002 }
0x1015   :  { %5271 = vperm.xlu1 %8200, %v11773_v39   ;;  %v6115_v60 = vmul.f32 %v9003_v51, %v11817_v7  ;;  %v9005_v56 = vpop.eup %9004 }
0x1016   :  { %v6123_v20 = vmul.f32 %v9005_v56, %v11817_v7  ;;  %v9007_v21 = vpop.eup %9006  ;;  %v12735_v56 = vld [vmem:[#allocation9_spill] sm:$0xff] }
0x1017   :  { %5235 = vperm.xlu0 %8201, %v11768_v36   ;;  %v6116_v13 = vmul.f32 %v9007_v21, %v11817_v7  ;;  %v9009_v11 = vpop.eup %9008 }
0x1018   :  { %v9011_v0 = vpop.eup %9010 }
0x1019   :  { %5250 = vperm.xlu1 %8200, %v11781_v22   ;;  %v9013_v52 = vpop.eup %9012  ;;  %v6113_v35 = vmul.f32 %v9011_v0, %v11817_v7  ;;  %v12742_v0 = vld [vmem:[#allocation18_spill] sm:$0xff] }
0x101a   :  { %v9015_v37 = vpop.eup %9014 }
0x101b   :  { %5259 = vperm.xlu0 %8201, %v11776_v30  }
0x101d   :  { %5274 = vperm.xlu1 %8200, %v11787_v41  }
0x101f   :  { %5241 = vperm.xlu0 %8201, %v11784_v27  }
0x1021   :  { %5253 = vperm.xlu1 %8200, %v11793_v4  }
0x1023   :  { %5244 = vperm.xlu0 %8201, %v11790_v62  }
0x1025   :  { %5277 = vperm.xlu1 %8200, %v11799_v8  }
0x1027   :  { %5247 = vperm.xlu0 %8201, %v11796_v59  }
0x1029   :  { %5256 = vperm.xlu1 %8200, %v11802_v15  }
0x102d   :  { %5280 = vperm.xlu1 %8200, %v11805_v46  }
0x1041   :  { %v4304_v28 = vpop.permute.xlu0 %4303  ;;  %v4299_v47 = vpop.permute.xlu1 %4298 }
0x1042   :  { %v4376_v5 = vmul.f32 %v12732_v19, %v4299_v47  ;;  %v4377_v51 = vmul.f32 %v12733_v32, %v4304_v28  ;;  %v6114_v28 = vmul.f32 %v9009_v11, %v11817_v7  ;;  %v9017_v11 = vpop.eup %9016  ;;  %v12743_v32 = vld [vmem:[#allocation17_spill] sm:$0xff] }
0x1043   :  { %v12747_v19 = vld [vmem:[#allocation25_spill] sm:$0xff] }
0x1044   :  { %v4392_v17 = vadd.f32 %v4377_v51, %v4376_v5  ;;  %v12739_v51 = vld [vmem:[#allocation15_spill] sm:$0xff] }
0x1045   :  { %v4309_v1 = vpop.permute.xlu0 %4308  ;;  %v4339_v33 = vpop.permute.xlu1 %4338 }
0x1046   :  { %6133 = vadd.xlane.f32.xlu0 %v6115_v60  ;;  %v6067_v60 = vadd.f32 %v5952_v10, %v12734_v42  ;;  %v4378_v43 = vmul.f32 %v12735_v56, %v4309_v1  ;;  %v12737_v10 = vld [vmem:[#allocation13_spill] sm:$0xff] }
0x1048   :  { %9026 = vtanh.f32 %v6067_v60  ;;  %v4393_v14 = vadd.f32 %v4392_v17, %v4378_v43  ;;  %v12741_v17 = vld [vmem:[#allocation12_spill] sm:$0xff] }
0x1049   :  { %v4314_v23 = vpop.permute.xlu0 %4313  ;;  %v4344_v50 = vpop.permute.xlu1 %4343  ;;  %9028 = vtanh.f32 %v6078_v34 }
0x104a   :  { %6149 = vadd.xlane.f32.xlu0 %v6123_v20  ;;  %v4379_v47 = vmul.f32 %v12736_v26, %v4314_v23  ;;  %v5955_v20 = vpop.f32.mrf.mxu1  ;;  %v12740_v26 = vld [vmem:[#allocation20_spill] sm:$0xff]  ;;  %v9019_v34 = vpop.eup %9018 }
0x104b   :  { %v6068_v55 = vadd.f32 %v5955_v20, %v12738_v31  ;;  %v4385_v56 = vmul.f32 %v12740_v26, %v4344_v50  ;;  %v6124_v50 = vmul.f32 %v9017_v11, %v11817_v7 }
0x104c   :  { %v4394_v5 = vadd.f32 %v4393_v14, %v4379_v47  ;;  %v6127_v14 = vmul.f32 %v9015_v37, %v11817_v7  ;;  %v9021_v47 = vpop.eup %9020 }
0x104d   :  { %v4319_v58 = vpop.permute.xlu0 %4318  ;;  %v4349_v2 = vpop.permute.xlu1 %4348  ;;  %9030 = vtanh.f32 %v6068_v55 }
0x104e   :  { %6135 = vadd.xlane.f32.xlu0 %v6116_v13  ;;  %v4380_v42 = vmul.f32 %v12737_v10, %v4319_v58  ;;  %v6121_v13 = vmul.f32 %v9013_v52, %v11817_v7  ;;  %v4384_v10 = vmul.f32 %v12742_v0, %v4339_v33  ;;  %v4386_v20 = vmul.f32 %v12743_v32, %v4349_v2 }
0x104f   :  { %v6125_v32 = vmul.f32 %v9021_v47, %v11817_v7 }
0x1050   :  { %v4395_v43 = vadd.f32 %v4394_v5, %v4380_v42  ;;  %v12745_v42 = vld [vmem:[#allocation19_spill] sm:$0xff] }
0x1051   :  { %v4324_v21 = vpop.permute.xlu0 %4323  ;;  %v4354_v1 = vpop.permute.xlu1 %4353  ;;  %6129 = vadd.xlane.f32.xlu1 %v6113_v35  ;;  %v4405_v35 = vadd.f32 %v4385_v56, %v4384_v10 }
0x1052   :  { %6131 = vadd.xlane.f32.xlu0 %v6114_v28  ;;  %v4381_v23 = vmul.f32 %v12739_v51, %v4324_v21  ;;  %v12744_v21 = vld [vmem:[#allocation44_spill] sm:$0xff]  ;;  %v4387_v5 = vmul.f32 %v12745_v42, %v4354_v1  ;;  %v12746_v51 = vld [vmem:[#allocation14_spill] sm:$0xff]  ;;  %v12748_v1 = vld [vmem:[#allocation27_spill] sm:$0xff] }
0x1053   :  { %v6070_v52 = vadd.f32 %v8139_v6, %v12744_v21  ;;  %v4406_v2 = vadd.f32 %v4405_v35, %v4386_v20  ;;  %v9023_v6 = vpop.eup %9022  ;;  %v9120_v20 = vld [vmem:[%s12557_s5] sm:$0xff] }
0x1054   :  { %v4396_v31 = vadd.f32 %v4395_v43, %v4381_v23  ;;  %v6119_v23 = vmul.f32 %v9019_v34, %v11817_v7  ;;  %v9025_v56 = vpop.eup %9024  ;;  %v6126_v34 = vmul.f32 %v9023_v6, %v11817_v7 }
0x1055   :  { %v4329_v60 = vpop.permute.xlu0 %4328  ;;  %v4359_v58 = vpop.permute.xlu1 %4358  ;;  %6157 = vadd.xlane.f32.xlu1 %v6127_v14  ;;  %9032 = vtanh.f32 %v6070_v52  ;;  %v4407_v10 = vadd.f32 %v4406_v2, %v4387_v5  ;;  %v12749_v52 = vld [vmem:[#allocation24_spill] sm:$0xff] }
0x1056   :  { %v4382_v28 = vmul.f32 %v12741_v17, %v4329_v60  ;;  %6145 = vadd.xlane.f32.xlu0 %v6121_v13  ;;  %v4388_v37 = vmul.f32 %v12747_v19, %v4359_v58  ;;  %v9027_v47 = vpop.eup %9026 }
0x1058   :  { %v4397_v13 = vadd.f32 %v4396_v31, %v4382_v28  ;;  %v4408_v21 = vadd.f32 %v4407_v10, %v4388_v37 }
0x1059   :  { %v4334_v60 = vpop.permute.xlu0 %4333  ;;  %v4364_v17 = vpop.permute.xlu1 %4363  ;;  %6153 = vadd.xlane.f32.xlu1 %v6125_v32  ;;  %v6122_v32 = vmul.f32 %v9025_v56, %v11817_v7 }
0x105a   :  { %v4383_v33 = vmul.f32 %v12746_v51, %v4334_v60  ;;  %6151 = vadd.xlane.f32.xlu0 %v6124_v50  ;;  %v4389_v11 = vmul.f32 %v12748_v1, %v4364_v17  ;;  %v9029_v50 = vpop.eup %9028 }
0x105b   :  { %v6128_v37 = vmul.f32 %v9029_v50, %v11817_v7  ;;  %v9031_v6 = vpop.eup %9030 }
0x105c   :  { %v4398_v55 = vadd.f32 %v4397_v13, %v4383_v33  ;;  %v4409_v17 = vadd.f32 %v4408_v21, %v4389_v11 }
0x105d   :  { %v4274_v43 = vpop.permute.xlu0 %4273  ;;  %v4369_v14 = vpop.permute.xlu1 %4368  ;;  %6155 = vadd.xlane.f32.xlu1 %v6126_v34 }
0x105e   :  { %v4399_v28 = vrot.slane %v4398_v55, 4  ;;  %v4282_v58 = vmul.f32 %v9120_v20, %v4274_v43  ;;  %6141 = vadd.xlane.f32.xlu0 %v6119_v23  ;;  %v4390_v31 = vmul.f32 %v12749_v52, %v4369_v14  ;;  %v12750_v43 = vld [vmem:[#allocation26_spill] sm:$0xff]  ;;  %v6117_v14 = vmul.f32 %v9027_v47, %v11817_v7 }
0x1060   :  { %v4400_v35 = vadd.f32 %v4399_v28, %v4398_v55  ;;  %v4284_v5 = vrot.slane %v4282_v58, 4  ;;  %v4410_v2 = vadd.f32 %v4409_v17, %v4390_v31  ;;  %v6118_v31 = vmul.f32 %v9031_v6, %v11817_v7 }
0x1061   :  { %v4374_v13 = vpop.permute.xlu1 %4373  ;;  %6159 = vadd.xlane.f32.xlu1 %v6128_v37 }
0x1062   :  { %v4285_v60 = vadd.f32 %v4284_v5, %v4282_v58  ;;  %6147 = vadd.xlane.f32.xlu0 %v6122_v32  ;;  %v4401_v33 = vrot.slane %v4400_v35, 2  ;;  %v4391_v23 = vmul.f32 %v12750_v43, %v4374_v13  ;;  %v9121_v58 = vld [vmem:[%s12557_s5 + $0x8] sm:$0xff]  ;;  %v9033_v34 = vpop.eup %9032 }
0x1064   :  { %v4286_v10 = vrot.slane %v4285_v60, 2  ;;  %v4411_v20 = vadd.f32 %v4410_v2, %v4391_v23  ;;  %v4402_v56 = vadd.f32 %v4401_v33, %v4400_v35 }
0x1065   :  { %v4281_v28 = vpop.permute.xlu1 %4280 }
0x1066   :  { %v4287_v55 = vadd.f32 %v4286_v10, %v4285_v60  ;;  %6137 = vadd.xlane.f32.xlu0 %v6117_v14  ;;  %v4412_v11 = vrot.slane %v4411_v20, 4  ;;  %v4283_v21 = vmul.f32 %v9121_v58, %v4281_v28  ;;  %v4403_v47 = vrot.slane %v4402_v56, 1 }
0x1067   :  { %v6120_v60 = vmul.f32 %v9033_v34, %v11817_v7 }
0x1068   :  { %v4288_v50 = vrot.slane %v4287_v55, 1  ;;  %v4413_v5 = vadd.f32 %v4412_v11, %v4411_v20  ;;  %v4290_v32 = vrot.slane %v4283_v21, 4  ;;  %v4404_v23 = vadd.f32 %v4403_v47, %v4402_v56 }
0x106a   :  { %6139 = vadd.xlane.f32.xlu0 %v6118_v31  ;;  %v4414_v17 = vrot.slane %v4413_v5, 2  ;;  %v4291_v13 = vadd.f32 %v4290_v32, %v4283_v21  ;;  %v4289_v2 = vadd.f32 %v4288_v50, %v4287_v55  ;;  %v12751_v50 = vld [vmem:[#allocation10_spill] sm:$0xff] }
0x106c   :  { %v4415_v35 = vadd.f32 %v4414_v17, %v4413_v5  ;;  %v4292_v33 = vrot.slane %v4291_v13, 2  ;;  %v6668_v14 = vadd.f32 %v4404_v23, %v4289_v2  ;;  %v5865_v5 = vadd.f32 %v11592_v61, %v12751_v50  ;;  %v7607_v61 = vld [vmem:[%s12368_s13] ss:$0 sm:$0xff] }
0x106e   :  { %6143 = vadd.xlane.f32.xlu0 %v6120_v60  ;;  %v4416_v37 = vrot.slane %v4415_v35, 1  ;;  %v4293_v10 = vadd.f32 %v4292_v33, %v4291_v13  ;;  %v6670_v51 = vpack.c.bf16 %v6668_v14, %v6668_v14 }
0x1070   :  { %v4294_v28 = vrot.slane %v4293_v10, 1  ;;  %v4417_v6 = vadd.f32 %v4416_v37, %v4415_v35  ;;  %v6697_v31 = vunpack.c.l.b16 %v6670_v51 }
0x1072   :  { %v4295_v58 = vadd.f32 %v4294_v28, %v4293_v10 }
0x1074   :  { %v6669_v20 = vadd.f32 %v4417_v6, %v4295_v58  ;;  %v5866_v58 = vadd.f32 %v11644_v57, %v11444_v38 }
0x1076   :  { %v6671_v11 = vpack.c.bf16 %v6669_v20, %v6669_v20 }
0x1078   :  { %v6698_v43 = vunpack.c.l.b16 %v6671_v11 }
0x107a   :  { %v6699_v21 = vsel %vm2043_vm10, %v6698_v43, %v6697_v31 }
0x107b   :  { %v6700_v32 = vpack.c.b16 %v6699_v21, %v6699_v21 }
0x107d   :  { %8167 = vmatmul.mubr.bf16.vlgmr.msra.gmra.mxu1 %v6700_v32 }
0x1080   :  { %v5239_v7 = vpop.permute.xlu1 %5238 }
0x1081   :  { %v5289_v21 = vrot.slane %v5239_v7, %v11198_v48 }
0x1084   :  { %v5263_v55 = vpop.permute.xlu1 %5262 }
0x1085   :  { %v5328_v28 = vrot.slane %v5263_v55, %v11198_v48 }
0x1088   :  { %v5266_v47 = vpop.permute.xlu1 %5265 }
0x108a   :  { %v5051_v34 = vpop.xlane.xlu0 %5050 }
0x108b   :  { %v5052_v56 = vsub.f32 %v11714_v3, %v5051_v34 }
0x108c   :  { %v5269_v13 = vpop.permute.xlu1 %5268 }
0x108d   :  { %v5053_v17 = vmul.f32 1.442695, %v5052_v56  ;;  %v5333_v56 = vrot.slane %v5266_v47, %v11210_v25  ;;  %v5338_v7 = vrot.slane %v5269_v13, %v11217_v29 }
0x108f   :  { %9034 = vpow2.f32 %v5053_v17 }
0x1090   :  { %9036 = vtanh.f32 %v5865_v5  ;;  %v5272_v51 = vpop.permute.xlu1 %5271 }
0x1091   :  { %9038 = vtanh.f32 %v5866_v58 }
0x1092   :  { %v5236_v60 = vpop.permute.xlu0 %5235 }
0x1093   :  { %v5285_v6 = vrot.slane %v5236_v60, %v11201_v45 }
0x1094   :  { %v5251_v35 = vpop.permute.xlu1 %5250 }
0x1095   :  { %v5290_v55 = vsel %vm3945_vm14, %v5289_v21, %v5285_v6  ;;  %v5309_v47 = vrot.slane %v5251_v35, %v11235_v49 }
0x1096   :  { %v5260_v2 = vpop.permute.xlu0 %5259 }
0x1097   :  { %v5324_v10 = vrot.slane %v5260_v2, %v11201_v45 }
0x1098   :  { %v5275_v23 = vpop.permute.xlu1 %5274 }
0x1099   :  { %v5329_v32 = vsel %vm3945_vm14, %v5328_v28, %v5324_v10  ;;  %v5348_v13 = vrot.slane %v5275_v23, %v11235_v49 }
0x109a   :  { %v5242_v43 = vpop.permute.xlu0 %5241  ;;  %v5334_v38 = vsel %vm3952_vm15, %v5333_v56, %v5329_v32 }
0x109b   :  { %v5294_v20 = vrot.slane %v5242_v43, %v11210_v25  ;;  %v5339_v43 = vsel %vm3959_vm0, %v5338_v7, %v5334_v38 }
0x109c   :  { %v11871_v33 = vpop.eup %9034  ;;  %v5254_v11 = vpop.permute.xlu1 %5253 }
0x109d   :  { %v9037_v37 = vpop.eup %9036  ;;  %v5055_v3 = vsel %vm3908_vm7, %v11871_v33, 0.0  ;;  %v5295_v57 = vsel %vm3952_vm15, %v5294_v20, %v5290_v55  ;;  %v5314_v28 = vrot.slane %v5254_v11, %v11247_v24 }
0x109e   :  { %5056 = vadd.xlane.f32.xlu1 %v5055_v3  ;;  %v5245_v14 = vpop.permute.xlu0 %5244  ;;  %v6101_v31 = vmul.f32 %v9037_v37, %v7607_v61  ;;  %v5343_v37 = vrot.slane %v5272_v51, %v11225_v53  ;;  %v9039_v56 = vpop.eup %9038 }
0x109f   :  { %v5299_v34 = vrot.slane %v5245_v14, %v11217_v29 }
0x10a0   :  { %v5278_v17 = vpop.permute.xlu1 %5277  ;;  %v5344_v14 = vsel %vm3966_vm1, %v5343_v37, %v5339_v43 }
0x10a1   :  { %v5300_v60 = vsel %vm3959_vm0, %v5299_v34, %v5295_v57  ;;  %v5353_v6 = vrot.slane %v5278_v17, %v11247_v24 }
0x10a2   :  { %6103 = vadd.xlane.f32.xlu1 %v6101_v31  ;;  %v5248_v50 = vpop.permute.xlu0 %5247  ;;  %v5349_v31 = vsel %vm3973_vm2, %v5348_v13, %v5344_v14 }
0x10a3   :  { %v5304_v5 = vrot.slane %v5248_v50, %v11225_v53  ;;  %v5354_v21 = vsel %vm3980_vm3, %v5353_v6, %v5349_v31  ;;  %v6102_v50 = vmul.f32 %v9039_v56, %v7607_v61 }
0x10a4   :  { %v5257_v10 = vpop.permute.xlu1 %5256 }
0x10a5   :  { %v5305_v2 = vsel %vm3966_vm1, %v5304_v5, %v5300_v60  ;;  %v5319_v58 = vrot.slane %v5257_v10, %v12710_v12  ;;  %v7609_v10 = vld [vmem:[%s12376_s21] ss:$0 sm:$0xff] }
0x10a6   :  { %v5310_v3 = vsel %vm3973_vm2, %v5309_v47, %v5305_v2 }
0x10a7   :  { %v5315_v35 = vsel %vm3980_vm3, %v5314_v28, %v5310_v3 }
0x10a8   :  { %v5281_v20 = vpop.permute.xlu1 %5280  ;;  %v5320_v32 = vsel %vm3987_vm4, %v5319_v58, %v5315_v35 }
0x10a9   :  { %v5358_v51 = vrot.slane %v5281_v20, %v12710_v12 }
0x10ab   :  { %v5359_v34 = vsel %vm3987_vm4, %v5358_v51, %v5354_v21 }
0x10ac   :  { %v5360_v11 = vsel %vm2043_vm10, %v5359_v34, %v5320_v32 }
0x10ad   :  { %v5362_v23 = vsel %vm4030_vm5, %v5360_v11, 0.0 }
0x10ae   :  { %5363 = vadd.xlane.f32.xlu0 %v5362_v23 }
0x10b2   :  { %6105 = vadd.xlane.f32.xlu0 %v6102_v50 }
0x10cf   :  { %v11912_v55 = vpop.xlane.xlu0 %6133 }
0x10d3   :  { %v11914_v5 = vpop.xlane.xlu0 %6149 }
0x10d7   :  { %v11916_v38 = vpop.xlane.xlu0 %6135 }
0x10da   :  { %v11937_v3 = vpop.xlane.xlu1 %6129 }
0x10db   :  { %v11918_v57 = vpop.xlane.xlu0 %6131 }
0x10de   :  { %v11939_v58 = vpop.xlane.xlu1 %6157 }
0x10df   :  { %v11920_v17 = vpop.xlane.xlu0 %6145 }
0x10e2   :  { %v11941_v31 = vpop.xlane.xlu1 %6153 }
0x10e3   :  { %v11922_v7 = vpop.xlane.xlu0 %6151 }
0x10e6   :  { %v11951_v56 = vpop.xlane.xlu1 %6155 }
0x10e7   :  { %v11924_v60 = vpop.xlane.xlu0 %6141 }
0x10eb   :  { %v11926_v2 = vpop.xlane.xlu0 %6147 }
0x10ef   :  { %v11928_v47 = vpop.xlane.xlu0 %6137 }
0x10f3   :  { %v11930_v61 = vpop.xlane.xlu0 %6139 }
0x10f7   :  { %v11932_v43 = vpop.xlane.xlu0 %6143 }
0x1137   :  { %v5364_v37 = vpop.xlane.xlu0 %5363 }
0x1138   :  { %9040 = vrcp.f32 %v5364_v37  ;;  %v6247_v37 = vrot.slane %v11926_v2, %v11198_v48 }
0x113d   :  { %v6784_v14 = vpop.f32.mrf.mxu1 }
0x113e   :  { %v6785_v28 = vadd.f32 %v7609_v10, %v6784_v14  ;;  %v6243_v10 = vrot.slane %v11920_v17, %v11201_v45  ;;  %v11959_v14 = vpop.xlane.xlu1 %6159 }
0x113f   :  { %v8168_v6 = vpop.f32.mrf.mxu1 }
0x1140   :  { %9042 = vtanh.f32 %v6785_v28  ;;  %v6208_v28 = vrot.slane %v11918_v57, %v11198_v48  ;;  %v6252_v6 = vrot.slane %v11914_v5, %v11210_v25 }
0x1141   :  { %v6787_v13 = vpop.f32.mrf.mxu1 }
0x1143   :  { %v8169_v20 = vpop.f32.mrf.mxu1 }
0x1145   :  { %v9041_v35 = vpop.eup %9040 }
0x1146   :  { %v11944_v51 = vrot.slane %v9041_v35, %v12712_v18  ;;  %v5374_v21 = vrot.slane %v9041_v35, %v12713_v63  ;;  %v5057_v35 = vpop.xlane.xlu1 %5056 }
0x1147   :  { %9044 = vrcp.f32 %v5057_v35 }
0x1148   :  { %v5378_v32 = vmul.f32 %v11732_v40, %v11944_v51  ;;  %v5377_v34 = vmul.f32 %v11768_v36, %v11944_v51  ;;  %v5385_v50 = vmul.f32 %v11776_v30, %v5374_v21  ;;  %v5386_v40 = vmul.f32 %v11751_v9, %v5374_v21 }
0x1149   :  { %v6204_v36 = vrot.slane %v11937_v3, %v11201_v45  ;;  %v6248_v30 = vsel %vm3945_vm14, %v6247_v37, %v6243_v10  ;;  %v5387_v13 = vmul.f32 %v11758_v16, %v5374_v21  ;;  %v6262_v16 = vrot.slane %v11941_v31, %v11225_v53 }
0x114a   :  { %5428 = vperm.xlu0 %8201, %v5378_v32   ;;  %5423 = vperm.xlu1 %8200, %v5377_v34   ;;  %v6253_v20 = vsel %vm3952_vm15, %v6252_v6, %v6248_v30  ;;  %v6257_v32 = vrot.slane %v11922_v7, %v11217_v29  ;;  %v6213_v34 = vrot.slane %v11912_v55, %v11210_v25 }
0x114b   :  { %v6209_v9 = vsel %vm3945_vm14, %v6208_v28, %v6204_v36  ;;  %v6223_v37 = vrot.slane %v11928_v47, %v11225_v53  ;;  %v6218_v10 = vrot.slane %v11916_v38, %v11217_v29  ;;  %v5389_v30 = vmul.f32 %v11773_v39, %v5374_v21 }
0x114d   :  { %v9043_v11 = vpop.eup %9042 }
0x114e   :  { %v6798_v23 = vpack.c.bf16 %v9043_v11, %v9043_v11  ;;  %5463 = vperm.xlu1 %8200, %v5385_v50   ;;  %v6258_v11 = vsel %vm3959_vm0, %v6257_v32, %v6253_v20  ;;  %v6214_v50 = vsel %vm3952_vm15, %v6213_v34, %v6209_v9  ;;  %v6238_v20 = vrot.slane %v11932_v43, %v12710_v12 }
0x114f   :  { %v6263_v36 = vsel %vm3966_vm1, %v6262_v16, %v6258_v11  ;;  %v6219_v28 = vsel %vm3959_vm0, %v6218_v10, %v6214_v50  ;;  %v6272_v9 = vrot.slane %v11939_v58, %v11247_v24  ;;  %v6233_v32 = vrot.slane %v11924_v60, %v11247_v24 }
0x1150   :  { %6966 = vmatprep.mubr.bf16.mxu0 %v6798_v23  ;;  %v5388_v23 = vmul.f32 %v11765_v54, %v5374_v21  ;;  %v6267_v54 = vrot.slane %v11951_v56, %v11235_v49  ;;  %v6224_v6 = vsel %vm3966_vm1, %v6223_v37, %v6219_v28  ;;  %v5390_v34 = vmul.f32 %v11787_v41, %v5374_v21 }
0x1151   :  { %v5391_v16 = vmul.f32 %v11799_v8, %v5374_v21  ;;  %v5379_v8 = vmul.f32 %v11784_v27, %v11944_v51  ;;  %v8509_v27 = vld [vmem:[%s12377_s22 + $0x38] sm:$0xff]  }
0x1152   :  { %5468 = vperm.xlu1 %8200, %v5386_v40   ;;  %v6228_v40 = vrot.slane %v11930_v61, %v11235_v49  ;;  %v6268_v35 = vsel %vm3973_vm2, %v6267_v54, %v6263_v36  ;;  %v5392_v36 = vmul.f32 %v11805_v46, %v5374_v21  ;;  %v5382_v46 = vmul.f32 %v11781_v22, %v11944_v51  ;;  %v8511_v22 = vld [vmem:[%s12377_s22 + $0x30] sm:$0xff]  }
0x1153   :  { %v6273_v11 = vsel %vm3980_vm3, %v6272_v9, %v6268_v35  ;;  %v5384_v21 = vmul.f32 %v11802_v15, %v11944_v51  ;;  %v8514_v35 = vld [vmem:[%s12377_s22 + $0x60] sm:$0xff]   ;;  %v8517_v9 = vld [vmem:[%s12377_s22 + $0x18] sm:$0xff]  }
0x1154   :  { %v9045_v10 = vpop.eup %9044  ;;  %v8515_v15 = vld [vmem:[%s12377_s22 + $0x20] sm:$0xff]  }
0x1155   :  { %v5059_v54 = vmul.f32 %v9045_v10, %v11871_v33  ;;  %v8508_v33 = vld [vmem:[%s12377_s22 + $0x78] sm:$0xff]  }
0x1156   :  { %5473 = vperm.xlu1 %8200, %v5387_v13   ;;  %v6229_v13 = vsel %vm3973_vm2, %v6228_v40, %v6224_v6  ;;  %v5381_v6 = vmul.f32 %v11796_v59, %v11944_v51  ;;  %7821 = vmatprep.subr.bf16.mxu0 %v8508_v33  ;;  %v5383_v59 = vmul.f32 %v11793_v4, %v11944_v51  ;;  %v8513_v4 = vld [vmem:[%s12377_s22 + $0x28] sm:$0xff]  }
0x1157   :  { %v6234_v39 = vsel %vm3980_vm3, %v6233_v32, %v6229_v13  ;;  %v5403_v28 = vrot.slane %v5059_v54, %v12713_v63  ;;  %7822 = vmatpush3.bf16.msra.mxu0 %v8509_v27  ;;  %v8512_v13 = vld [vmem:[%s12377_s22 + $0x68] sm:$0xff]   ;;  %v8518_v32 = vld [vmem:[%s12377_s22 + $0x50] sm:$0xff]  }
0x1158   :  { %v6239_v50 = vsel %vm3987_vm4, %v6238_v20, %v6234_v39  ;;  %v5396_v20 = vrot.slane %v5059_v54, %v12712_v18  ;;  %v8520_v39 = vld [vmem:[%s12377_s22 + $0x48] sm:$0xff]   ;;  %v12077_v54 = vpop.xlane.xlu0 %6105 }
0x115a   :  { %5478 = vperm.xlu1 %8200, %v5388_v23   ;;  %v6277_v23 = vrot.slane %v11959_v14, %v12710_v12 }
0x115c   :  { %v6278_v37 = vsel %vm3987_vm4, %v6277_v23, %v6273_v11  ;;  %v8521_v11 = vld [vmem:[%s12377_s22 + $0x8] sm:$0xff]   ;;  %v8522_v23 = vld [vmem:[%s12377_s22 + $0x40] sm:$0xff]  }
0x115d   :  { %v6279_v40 = vsel %vm2043_vm10, %v6278_v37, %v6239_v50  ;;  %v8523_v50 = vld [vmem:[%s12377_s22] sm:$0xff]  }
0x115e   :  { %5483 = vperm.xlu1 %8200, %v5389_v30   ;;  %v6281_v41 = vsel %vm4030_vm5, %v6279_v40, -inf  ;;  %v5380_v30 = vmul.f32 %v11790_v62, %v11944_v51  ;;  %v8510_v62 = vld [vmem:[%s12377_s22 + $0x70] sm:$0xff]   ;;  %v8516_v51 = vld [vmem:[%s12377_s22 + $0x58] sm:$0xff]  }
0x115f   :  { %7823 = vmatprep.subr.bf16.mxu0 %v8510_v62 }
0x1160   :  { %7824 = vmatpush3.bf16.msra.mxu0 %v8511_v22 }
0x1161   :  { %7825 = vmatprep.subr.bf16.mxu0 %v8512_v13  ;;  %v12752_v13 = vld [vmem:[#allocation17_spill] sm:$0xff] }
0x1162   :  { %5488 = vperm.xlu1 %8200, %v5390_v34   ;;  %v8519_v34 = vld [vmem:[%s12377_s22 + $0x10] sm:$0xff]  }
0x1164   :  { %7826 = vmatpush3.bf16.msra.mxu0 %v8513_v4 }
0x1165   :  { %7827 = vmatprep.subr.bf16.mxu0 %v8514_v35 }
0x1166   :  { %5493 = vperm.xlu1 %8200, %v5391_v16   ;;  %v12075_v16 = vpop.xlane.xlu1 %6103 }
0x1168   :  { %7828 = vmatpush3.bf16.msra.mxu0 %v8515_v15 }
0x1169   :  { %6282 = vmax.xlane.f32.xlu0 %v6281_v41  ;;  %7829 = vmatprep.subr.bf16.mxu0 %v8516_v51 }
0x116a   :  { %5498 = vperm.xlu1 %8200, %v5392_v36  }
0x116c   :  { %7830 = vmatpush3.bf16.msra.mxu0 %v8517_v9 }
0x116d   :  { %7831 = vmatprep.subr.bf16.mxu0 %v8518_v32 }
0x116e   :  { %5405 = vbcast.lane.b32.xlu1 %v5403_v28, 256 }
0x1170   :  { %7832 = vmatpush3.bf16.msra.mxu0 %v8519_v34 }
0x1171   :  { %7833 = vmatprep.subr.bf16.mxu0 %v8520_v39 }
0x1174   :  { %7834 = vmatpush3.bf16.msra.mxu0 %v8521_v11 }
0x1175   :  { %7835 = vmatprep.subr.bf16.mxu0 %v8522_v23 }
0x1178   :  { %7836 = vmatpush3.bf16.msra.mxu0 %v8523_v50 }
0x1179   :  { %8170 = vmatprep.subr.bf16.mxu0 %v12623_v44 }
0x117f   :  { %5433 = vperm.xlu0 %8201, %v5379_v8  }
0x1183   :  { %5438 = vperm.xlu0 %8201, %v5380_v30  }
0x1187   :  { %5443 = vperm.xlu0 %8201, %v5381_v6  }
0x118b   :  { %5448 = vperm.xlu0 %8201, %v5382_v46  }
0x118f   :  { %5453 = vperm.xlu0 %8201, %v5383_v59  }
0x1193   :  { %5458 = vperm.xlu0 %8201, %v5384_v21  }
0x1197   :  { %5398 = vbcast.lane.b32.xlu0 %v5396_v20, 256 }
0x11c5   :  { %v5424_v37 = vpop.permute.xlu1 %5423  ;;  %v5429_v8 = vpop.permute.xlu0 %5428 }
0x11c9   :  { %v5464_v10 = vpop.permute.xlu1 %5463 }
0x11ca   :  { %v5509_v21 = vmul.f32 %v12742_v0, %v5464_v10 }
0x11cd   :  { %v5469_v40 = vpop.permute.xlu1 %5468 }
0x11ce   :  { %v5510_v62 = vmul.f32 %v12740_v26, %v5469_v40 }
0x11d0   :  { %v5530_v15 = vadd.f32 %v5510_v62, %v5509_v21  ;;  %v12755_v21 = vld [vmem:[#allocation26_spill] sm:$0xff] }
0x11d1   :  { %v5474_v41 = vpop.permute.xlu1 %5473 }
0x11d2   :  { %v5511_v20 = vmul.f32 %v12752_v13, %v5474_v41 }
0x11d5   :  { %v5479_v36 = vpop.permute.xlu1 %5478 }
0x11d6   :  { %v5512_v51 = vmul.f32 %v12745_v42, %v5479_v36 }
0x11d9   :  { %v5484_v28 = vpop.permute.xlu1 %5483 }
0x11da   :  { %v5513_v32 = vmul.f32 %v12747_v19, %v5484_v28 }
0x11dd   :  { %v5489_v30 = vpop.permute.xlu1 %5488 }
0x11de   :  { %v5514_v23 = vmul.f32 %v12748_v1, %v5489_v30 }
0x11e1   :  { %v5494_v59 = vpop.permute.xlu1 %5493 }
0x11e5   :  { %v5499_v34 = vpop.permute.xlu1 %5498 }
0x11e9   :  { %v5406_v30 = vpop.permute.xlu1 %5405 }
0x11f2   :  { %v6283_v6 = vpop.xlane.xlu0 %6282 }
0x11f3   :  { %v12080_v46 = vrot.slane %v6283_v6, %v12712_v18  ;;  %v12088_v22 = vrot.slane %v6283_v6, %v12713_v63  ;;  %v12753_v6 = vld [vmem:[#allocation6_spill] sm:$0xff] }
0x11f5   :  { %v6295_v33 = vsub.f32 %v11937_v3, %v12080_v46  ;;  %v6296_v27 = vsub.f32 %v11918_v57, %v12080_v46  ;;  %v6303_v3 = vsub.f32 %v11920_v17, %v12088_v22  ;;  %v5531_v57 = vadd.f32 %v5530_v15, %v5511_v20  ;;  %v12756_v15 = vld [vmem:[#allocation9_spill] sm:$0xff] }
0x11f6   :  { %v6304_v39 = vsub.f32 %v11926_v2, %v12088_v22  ;;  %v6297_v10 = vsub.f32 %v11912_v55, %v12080_v46  ;;  %v5515_v17 = vmul.f32 %v12749_v52, %v5494_v59  ;;  %v6305_v36 = vsub.f32 %v11914_v5, %v12088_v22 }
0x11f7   :  { %v6311_v4 = vmul.f32 1.442695, %v6295_v33  ;;  %v6313_v35 = vmul.f32 1.442695, %v6296_v27  ;;  %v5532_v11 = vadd.f32 %v5531_v57, %v5512_v51  ;;  %v6327_v40 = vmul.f32 1.442695, %v6303_v3 }
0x11f8   :  { %v6329_v28 = vmul.f32 1.442695, %v6304_v39  ;;  %v5501_v33 = vmul.f32 %v12753_v6, %v5424_v37  ;;  %v12754_v27 = vld [vmem:[#allocation8_spill] sm:$0xff]  ;;  %v5516_v20 = vmul.f32 %v12755_v21, %v5499_v34  ;;  %v6298_v55 = vsub.f32 %v11916_v38, %v12080_v46 }
0x11f9   :  { %9046 = vpow2.f32 %v6311_v4  ;;  %v5533_v41 = vadd.f32 %v5532_v11, %v5513_v32  ;;  %v5502_v2 = vmul.f32 %v12754_v27, %v5429_v8  ;;  %v6306_v5 = vsub.f32 %v11922_v7, %v12088_v22  ;;  %v12757_v8 = vld [vmem:[#allocation82_spill] sm:$0xff]  ;;  %v12758_v32 = vld [vmem:[#allocation7_spill] sm:$0xff] }
0x11fa   :  { %v5434_v9 = vpop.permute.xlu0 %5433  ;;  %9048 = vpow2.f32 %v6313_v35  ;;  %v6315_v35 = vmul.f32 1.442695, %v6297_v10  ;;  %v6331_v37 = vmul.f32 1.442695, %v6305_v36  ;;  %v5408_v57 = vmul.f32 %v5406_v30, %v12757_v8  ;;  %v12762_v8 = vld [vmem:[#allocation14_spill] sm:$0xff] }
0x11fb   :  { %v5534_v62 = vadd.f32 %v5533_v41, %v5514_v23  ;;  %9050 = vpow2.f32 %v6327_v40  ;;  %v5503_v59 = vmul.f32 %v12756_v15, %v5434_v9  ;;  %v5517_v3 = vadd.f32 %v5502_v2, %v5501_v33  ;;  %v12759_v9 = vld [vmem:[#allocation13_spill] sm:$0xff]  ;;  %v12760_v33 = vld [vmem:[#allocation15_spill] sm:$0xff] }
0x11fc   :  { %9052 = vpow2.f32 %v6329_v28  ;;  %v6299_v11 = vsub.f32 %v11928_v47, %v12080_v46  ;;  %v6317_v23 = vmul.f32 1.442695, %v6298_v55  ;;  %v6307_v7 = vsub.f32 %v11941_v31, %v12088_v22 }
0x11fd   :  { %v5535_v51 = vadd.f32 %v5534_v62, %v5515_v17  ;;  %9054 = vpow2.f32 %v6315_v35  ;;  %v5518_v10 = vadd.f32 %v5517_v3, %v5503_v59  ;;  %v6333_v17 = vmul.f32 1.442695, %v6306_v5 }
0x11fe   :  { %v5439_v50 = vpop.permute.xlu0 %5438  ;;  %9056 = vpow2.f32 %v6331_v37  ;;  %v6300_v31 = vsub.f32 %v11930_v61, %v12080_v46  ;;  %v6335_v35 = vmul.f32 1.442695, %v6307_v7 }
0x11ff   :  { %v5504_v34 = vmul.f32 %v12758_v32, %v5439_v50  ;;  %v5536_v39 = vadd.f32 %v5535_v51, %v5516_v20  ;;  %v5415_v50 = vrot.slane %v5408_v57, 4  ;;  %9058 = vpow2.f32 %v6317_v23 }
0x1200   :  { %v6319_v20 = vmul.f32 1.442695, %v6299_v11  ;;  %9060 = vpow2.f32 %v6333_v17  ;;  %v6308_v11 = vsub.f32 %v11951_v56, %v12088_v22  ;;  %v6321_v23 = vmul.f32 1.442695, %v6300_v31  ;;  %v12763_v17 = vld [vmem:[#allocation81_spill] sm:$0xff] }
0x1201   :  { %v5519_v28 = vadd.f32 %v5518_v10, %v5504_v34  ;;  %v5537_v47 = vrot.slane %v5536_v39, 4  ;;  %v5416_v59 = vadd.f32 %v5415_v50, %v5408_v57  ;;  %v6301_v56 = vsub.f32 %v11924_v60, %v12080_v46 }
0x1202   :  { %v5444_v4 = vpop.permute.xlu0 %5443  ;;  %9062 = vpow2.f32 %v6319_v20 }
0x1203   :  { %v5505_v40 = vmul.f32 %v12759_v9, %v5444_v4  ;;  %v12761_v4 = vld [vmem:[#allocation12_spill] sm:$0xff]  ;;  %v5538_v37 = vadd.f32 %v5537_v47, %v5536_v39  ;;  %9064 = vpow2.f32 %v6335_v35  ;;  %v5417_v61 = vrot.slane %v5416_v59, 2 }
0x1204   :  { %9066 = vpow2.f32 %v6321_v23  ;;  %v6323_v60 = vmul.f32 1.442695, %v6301_v56 }
0x1205   :  { %v5520_v30 = vadd.f32 %v5519_v28, %v5505_v40  ;;  %v5539_v40 = vrot.slane %v5538_v37, 2 }
0x1206   :  { %v5449_v38 = vpop.permute.xlu0 %5448  ;;  %v12117_v41 = vpop.eup %9046 }
0x1207   :  { %v12121_v36 = vpop.eup %9048  ;;  %v5506_v2 = vmul.f32 %v12760_v33, %v5449_v38  ;;  %6360 = vperm.xlu0 %8201, %v12117_v41  }
0x1208   :  { %6363 = vperm.xlu1 %8200, %v12121_v36   ;;  %v12130_v38 = vpop.eup %9050 }
0x1209   :  { %v5521_v51 = vadd.f32 %v5520_v30, %v5506_v2  ;;  %v12134_v10 = vpop.eup %9052  ;;  %v6337_v2 = vmul.f32 1.442695, %v6308_v11 }
0x120a   :  { %v5454_v62 = vpop.permute.xlu0 %5453  ;;  %v12139_v28 = vpop.eup %9054 }
0x120b   :  { %v5507_v55 = vmul.f32 %v12761_v4, %v5454_v62  ;;  %6384 = vperm.xlu0 %8201, %v12130_v38   ;;  %v12143_v47 = vpop.eup %9056  ;;  %v5418_v62 = vadd.f32 %v5417_v61, %v5416_v59  ;;  %9068 = vpow2.f32 %v6337_v2 }
0x120c   :  { %6387 = vperm.xlu1 %8200, %v12134_v10   ;;  %9070 = vpow2.f32 %v6323_v60 }
0x120d   :  { %v5522_v3 = vadd.f32 %v5521_v51, %v5507_v55  ;;  %v5540_v55 = vadd.f32 %v5539_v40, %v5538_v37  ;;  %v12147_v51 = vpop.eup %9058 }
0x120e   :  { %v5459_v5 = vpop.permute.xlu0 %5458 }
0x120f   :  { %v5508_v34 = vmul.f32 %v12762_v8, %v5459_v5  ;;  %6366 = vperm.xlu0 %8201, %v12139_v28   ;;  %v6309_v5 = vsub.f32 %v11939_v58, %v12088_v22  ;;  %v5541_v23 = vrot.slane %v5540_v55, 1 }
0x1210   :  { %6390 = vperm.xlu1 %8200, %v12143_v47  }
0x1211   :  { %v5523_v57 = vadd.f32 %v5522_v3, %v5508_v34  ;;  %v12151_v3 = vpop.eup %9060  ;;  %v5419_v34 = vrot.slane %v5418_v62, 1  ;;  %v6339_v58 = vmul.f32 1.442695, %v6309_v5 }
0x1212   :  { %v5399_v39 = vpop.permute.xlu0 %5398 }
0x1213   :  { %v5524_v7 = vrot.slane %v5523_v57, 4  ;;  %v5407_v50 = vmul.f32 %v5399_v39, %v12763_v17  ;;  %6369 = vperm.xlu0 %8201, %v12147_v51   ;;  %v6302_v39 = vsub.f32 %v11932_v43, %v12080_v46  ;;  %9072 = vpow2.f32 %v6339_v58 }
0x1214   :  { %6393 = vperm.xlu1 %8200, %v12151_v3  }
0x1215   :  { %v5525_v20 = vadd.f32 %v5524_v7, %v5523_v57  ;;  %v5409_v30 = vrot.slane %v5407_v50, 4  ;;  %v12155_v57 = vpop.eup %9062  ;;  %v5420_v7 = vadd.f32 %v5419_v34, %v5418_v62  ;;  %v6170_v34 = vrot.slane %v12077_v54, %v11201_v45 }
0x1216   :  { %v12159_v40 = vpop.eup %9064 }
0x1217   :  { %v5526_v31 = vrot.slane %v5525_v20, 2  ;;  %v5410_v35 = vadd.f32 %v5409_v30, %v5407_v50  ;;  %6372 = vperm.xlu0 %8201, %v12155_v57   ;;  %v5542_v50 = vadd.f32 %v5541_v23, %v5540_v55  ;;  %v6325_v30 = vmul.f32 1.442695, %v6302_v39 }
0x1218   :  { %6396 = vperm.xlu1 %8200, %v12159_v40  }
0x1219   :  { %v5527_v59 = vadd.f32 %v5526_v31, %v5525_v20  ;;  %v5411_v11 = vrot.slane %v5410_v35, 2  ;;  %v6310_v20 = vsub.f32 %v11959_v14, %v12088_v22  ;;  %v12165_v31 = vpop.eup %9066  ;;  %v6792_v43 = vadd.f32 %v5542_v50, %v5420_v7 }
0x121a   :  { %9074 = vpow2.f32 %v6325_v30  ;;  %v12169_v60 = vpop.eup %9068 }
0x121b   :  { %v5528_v37 = vrot.slane %v5527_v59, 1  ;;  %v5412_v61 = vadd.f32 %v5411_v11, %v5410_v35  ;;  %v6341_v35 = vmul.f32 1.442695, %v6310_v20  ;;  %v12174_v14 = vpop.eup %9070 }
0x121c   :  { %6375 = vperm.xlu1 %8200, %v12165_v31  }
0x121d   :  { %v5413_v17 = vrot.slane %v5412_v61, 1  ;;  %v5529_v56 = vadd.f32 %v5528_v37, %v5527_v59  ;;  %9076 = vpow2.f32 %v6341_v35  ;;  %v6166_v59 = vrot.slane %v12075_v16, %v11201_v45 }
0x121f   :  { %v5414_v2 = vadd.f32 %v5413_v17, %v5412_v61  ;;  %v6171_v23 = vsel %vm2043_vm10, %v6170_v34, %v6166_v59 }
0x1220   :  { %6399 = vperm.xlu1 %8200, %v12169_v60   ;;  %v12177_v22 = vpop.eup %9072  ;;  %v6173_v61 = vsel %vm3892_vm6, %v6171_v23, -1e+30 }
0x1221   :  { %v6791_v46 = vadd.f32 %v5529_v56, %v5414_v2  ;;  %v6174_v39 = vsel %vm3908_vm7, %v6173_v61, -inf }
0x1223   :  { %v6795_v62 = vsel %vm2043_vm10, %v6792_v43, %v6791_v46 }
0x1224   :  { %v6797_v5 = vpack.c.bf16 %v6795_v62, %v6795_v62  ;;  %6378 = vperm.xlu1 %8200, %v12174_v14  }
0x1226   :  { %6967 = vmatmul.mubr.bf16.vlgmr.msra.gmra.mxu0 %v6797_v5 }
0x1227   :  { %8186 = vmatprep.mubr.msk.bf16.mxu0 %vm9148_vm9, %v12623_v44  ;;  %v12180_v55 = vpop.eup %9074 }
0x1228   :  { %6402 = vperm.xlu1 %8200, %v12177_v22  }
0x122a   :  { %v12187_v11 = vpop.eup %9076 }
0x122c   :  { %6381 = vperm.xlu1 %8200, %v12180_v55  }
0x1230   :  { %6405 = vperm.xlu1 %8200, %v12187_v11  }
0x1236   :  { %6175 = vmax.xlane.f32.xlu0 %v6174_v39 }
0x1282   :  { %v6361_v17 = vpop.permute.xlu0 %6360 }
0x1283   :  { %v6364_v58 = vpop.permute.xlu1 %6363  ;;  %v6410_v5 = vrot.slane %v6361_v17, %v11201_v45 }
0x1284   :  { %v6414_v35 = vrot.slane %v6364_v58, %v11198_v48 }
0x1286   :  { %v6385_v56 = vpop.permute.xlu0 %6384  ;;  %v6415_v17 = vsel %vm3945_vm14, %v6414_v35, %v6410_v5 }
0x1287   :  { %v6388_v7 = vpop.permute.xlu1 %6387  ;;  %v6449_v59 = vrot.slane %v6385_v56, %v11201_v45 }
0x1288   :  { %v6453_v34 = vrot.slane %v6388_v7, %v11198_v48 }
0x128a   :  { %v6367_v20 = vpop.permute.xlu0 %6366  ;;  %v6454_v48 = vsel %vm3945_vm14, %v6453_v34, %v6449_v59 }
0x128b   :  { %v6391_v54 = vpop.permute.xlu1 %6390  ;;  %v6419_v39 = vrot.slane %v6367_v20, %v11210_v25 }
0x128c   :  { %v6458_v37 = vrot.slane %v6391_v54, %v11210_v25 }
0x128d   :  { %v6420_v25 = vsel %vm3952_vm15, %v6419_v39, %v6415_v17 }
0x128e   :  { %v6370_v43 = vpop.permute.xlu0 %6369  ;;  %v6459_v54 = vsel %vm3952_vm15, %v6458_v37, %v6454_v48  ;;  %v7618_v37 = vld [vmem:[%s12378_s23] ss:$0 sm:$0xff] }
0x128f   :  { %v6394_v50 = vpop.permute.xlu1 %6393  ;;  %v6424_v52 = vrot.slane %v6370_v43, %v11217_v29 }
0x1290   :  { %v6463_v21 = vrot.slane %v6394_v50, %v11217_v29 }
0x1292   :  { %v6373_v23 = vpop.permute.xlu0 %6372  ;;  %v6464_v56 = vsel %vm3959_vm0, %v6463_v21, %v6459_v54 }
0x1293   :  { %v6397_v2 = vpop.permute.xlu1 %6396  ;;  %v6429_v19 = vrot.slane %v6373_v23, %v11225_v53 }
0x1294   :  { %v6468_v1 = vrot.slane %v6397_v2, %v11225_v53  ;;  %v6425_v53 = vsel %vm3959_vm0, %v6424_v52, %v6420_v25 }
0x1296   :  { %v6469_v20 = vsel %vm3966_vm1, %v6468_v1, %v6464_v56 }
0x1297   :  { %v6376_v16 = vpop.permute.xlu1 %6375 }
0x1298   :  { %v6434_v45 = vrot.slane %v6376_v16, %v11235_v49  ;;  %v6430_v16 = vsel %vm3966_vm1, %v6429_v19, %v6425_v53 }
0x129b   :  { %v6400_v30 = vpop.permute.xlu1 %6399 }
0x129c   :  { %v6473_v7 = vrot.slane %v6400_v30, %v11235_v49  ;;  %v6435_v49 = vsel %vm3973_vm2, %v6434_v45, %v6430_v16 }
0x129e   :  { %v6474_v30 = vsel %vm3973_vm2, %v6473_v7, %v6469_v20 }
0x129f   :  { %v6379_v46 = vpop.permute.xlu1 %6378 }
0x12a0   :  { %v6439_v50 = vrot.slane %v6379_v46, %v11247_v24 }
0x12a2   :  { %v6440_v46 = vsel %vm3980_vm3, %v6439_v50, %v6435_v49 }
0x12a3   :  { %v6403_v62 = vpop.permute.xlu1 %6402 }
0x12a4   :  { %v6478_v29 = vrot.slane %v6403_v62, %v11247_v24 }
0x12a6   :  { %v6479_v24 = vsel %vm3980_vm3, %v6478_v29, %v6474_v30 }
0x12a7   :  { %v6382_v58 = vpop.permute.xlu1 %6381 }
0x12a8   :  { %v6444_v2 = vrot.slane %v6382_v58, %v12710_v12 }
0x12aa   :  { %v6445_v21 = vsel %vm3987_vm4, %v6444_v2, %v6440_v46 }
0x12ab   :  { %v6406_v43 = vpop.permute.xlu1 %6405 }
0x12ac   :  { %v6483_v35 = vrot.slane %v6406_v43, %v12710_v12 }
0x12ae   :  { %v6484_v52 = vsel %vm3987_vm4, %v6483_v35, %v6479_v24  ;;  %v8530_v24 = vld [vmem:[%s12379_s24 + $0x60] sm:$0xff]  }
0x12af   :  { %v6485_v62 = vsel %vm2043_vm10, %v6484_v52, %v6445_v21  ;;  %v8531_v21 = vld [vmem:[%s12379_s24 + $0x20] sm:$0xff]   ;;  %v8533_v52 = vld [vmem:[%s12379_s24 + $0x18] sm:$0xff]  }
0x12b0   :  { %v6487_v1 = vsel %vm4030_vm5, %v6485_v62, 0.0  ;;  %v8534_v62 = vld [vmem:[%s12379_s24 + $0x50] sm:$0xff]  }
0x12b1   :  { %6488 = vadd.xlane.f32.xlu1 %v6487_v1  ;;  %v8535_v1 = vld [vmem:[%s12379_s24 + $0x10] sm:$0xff]  }
0x12bf   :  { %v6176_v19 = vpop.xlane.xlu0 %6175 }
0x12c0   :  { %v6177_v5 = vsub.f32 %v6173_v61, %v6176_v19  ;;  %v8536_v19 = vld [vmem:[%s12379_s24 + $0x48] sm:$0xff]  }
0x12c2   :  { %v6178_v34 = vmul.f32 1.442695, %v6177_v5  ;;  %v8537_v5 = vld [vmem:[%s12379_s24 + $0x8] sm:$0xff]  }
0x12c4   :  { %9078 = vpow2.f32 %v6178_v34  ;;  %v8538_v34 = vld [vmem:[%s12379_s24 + $0x40] sm:$0xff]  }
0x12d1   :  { %v9079_v59 = vpop.eup %9078 }
0x12d2   :  { %v6180_v12 = vsel %vm3908_vm7, %v9079_v59, 0.0 }
0x12d3   :  { %6181 = vadd.xlane.f32.xlu0 %v6180_v12  ;;  %v8541_v12 = vld [vmem:[%s12381_s26 + $0x30] sm:$0xff]  }
0x12e6   :  { %v7837_v23 = vpop.f32.mrf.mxu0 }
0x12e8   :  { %v7838_v39 = vpop.f32.mrf.mxu0 }
0x12e9   :  { %v7839_v58 = vadd.f32 %v7838_v39, %v7837_v23  ;;  %v8539_v23 = vld [vmem:[%s12379_s24] sm:$0xff]  }
0x12ea   :  { %v7840_v17 = vpop.f32.mrf.mxu0 }
0x12eb   :  { %v6969_v48 = vadd.f32 %v7839_v58, %v7618_v37 }
0x12ec   :  { %v7841_v45 = vpop.f32.mrf.mxu0 }
0x12ed   :  { %9080 = vtanh.f32 %v6969_v48 }
0x12fa   :  { %v9081_v7 = vpop.eup %9080 }
0x12fb   :  { %v6982_v54 = vpack.c.bf16 %v9081_v7, %v9081_v7 }
0x12fd   :  { %7150 = vmatprep.mubr.bf16.mxu1 %v6982_v54 }
0x133a   :  { %v6489_v61 = vpop.xlane.xlu1 %6488 }
0x133b   :  { %9082 = vrcp.f32 %v6489_v61 }
0x1348   :  { %v9083_v25 = vpop.eup %9082 }
0x1349   :  { %v6495_v50 = vrot.slane %v9083_v25, %v12712_v18  ;;  %v6499_v29 = vrot.slane %v9083_v25, %v12713_v63 }
0x134b   :  { %v6511_v56 = vmul.f32 %v12134_v10, %v6499_v29  ;;  %v6502_v53 = vmul.f32 %v12117_v41, %v6495_v50  ;;  %v6506_v2 = vmul.f32 %v12155_v57, %v6495_v50  ;;  %v6503_v20 = vmul.f32 %v12121_v36, %v6495_v50 }
0x134c   :  { %v6507_v16 = vmul.f32 %v12165_v31, %v6495_v50  ;;  %v6510_v43 = vmul.f32 %v12130_v38, %v6499_v29  ;;  %v6508_v49 = vmul.f32 %v12174_v14, %v6495_v50  ;;  %v6504_v10 = vmul.f32 %v12139_v28, %v6495_v50 }
0x134d   :  { %6593 = vperm.xlu1 %8200, %v6511_v56   ;;  %6548 = vperm.xlu0 %8201, %v6502_v53   ;;  %v6509_v41 = vmul.f32 %v12180_v55, %v6495_v50  ;;  %v6512_v57 = vmul.f32 %v12143_v47, %v6499_v29  ;;  %v6505_v36 = vmul.f32 %v12147_v51, %v6495_v50  ;;  %v8524_v51 = vld [vmem:[%s12379_s24 + $0x78] sm:$0xff]  }
0x134e   :  { %v6513_v38 = vmul.f32 %v12151_v3, %v6499_v29  ;;  %v6514_v31 = vmul.f32 %v12159_v40, %v6499_v29  ;;  %v6515_v14 = vmul.f32 %v12169_v60, %v6499_v29  ;;  %v6516_v55 = vmul.f32 %v12177_v22, %v6499_v29  ;;  %v8525_v3 = vld [vmem:[%s12379_s24 + $0x38] sm:$0xff]   ;;  %7843 = vmatprep.subr.bf16.mxu1 %v8524_v51  ;;  %v8527_v60 = vld [vmem:[%s12379_s24 + $0x30] sm:$0xff]   ;;  %v8528_v22 = vld [vmem:[%s12379_s24 + $0x68] sm:$0xff]  }
0x134f   :  { %v6517_v40 = vmul.f32 %v12187_v11, %v6499_v29  ;;  %7844 = vmatpush3.bf16.msra.mxu1 %v8525_v3  ;;  %v8529_v11 = vld [vmem:[%s12379_s24 + $0x28] sm:$0xff]  }
0x1350   :  { %v12765_v51 = vld [vmem:[#allocation25_spill] sm:$0xff] }
0x1351   :  { %6568 = vperm.xlu1 %8200, %v6506_v2   ;;  %6553 = vperm.xlu0 %8201, %v6503_v20  }
0x1355   :  { %6573 = vperm.xlu1 %8200, %v6507_v16   ;;  %6588 = vperm.xlu0 %8201, %v6510_v43  }
0x1359   :  { %6578 = vperm.xlu1 %8200, %v6508_v49   ;;  %6558 = vperm.xlu0 %8201, %v6504_v10  }
0x135c   :  { %v6182_v30 = vpop.xlane.xlu0 %6181 }
0x135d   :  { %6583 = vperm.xlu1 %8200, %v6509_v41   ;;  %6598 = vperm.xlu0 %8201, %v6512_v57   ;;  %9084 = vrcp.f32 %v6182_v30 }
0x1361   :  { %6563 = vperm.xlu0 %8201, %v6505_v36  }
0x1365   :  { %6603 = vperm.xlu0 %8201, %v6513_v38  }
0x1369   :  { %6608 = vperm.xlu0 %8201, %v6514_v31  }
0x136a   :  { %v9085_v28 = vpop.eup %9084 }
0x136b   :  { %v6184_v35 = vmul.f32 %v9085_v28, %v9079_v59  ;;  %v8540_v59 = vld [vmem:[%s12381_s26 + $0x38] sm:$0xff]  }
0x136c   :  { %8171 = vmatpush3.bf16.msra.mxu0 %v8540_v59 }
0x136d   :  { %6613 = vperm.xlu0 %8201, %v6515_v14   ;;  %v6521_v47 = vrot.slane %v6184_v35, %v12712_v18  ;;  %v8526_v18 = vld [vmem:[%s12379_s24 + $0x70] sm:$0xff]   ;;  %v6528_v46 = vrot.slane %v6184_v35, %v12713_v63  ;;  %v8532_v63 = vld [vmem:[%s12379_s24 + $0x58] sm:$0xff]   ;;  %8172 = vmatprep.subr.bf16.mxu0 %v12623_v44 }
0x136e   :  { %7845 = vmatprep.subr.bf16.mxu1 %v8526_v18  ;;  %v12766_v18 = vld [vmem:[#allocation27_spill] sm:$0xff] }
0x136f   :  { %6523 = vbcast.lane.b32.xlu1 %v6521_v47, 256  ;;  %7846 = vmatpush3.bf16.msra.mxu1 %v8527_v60 }
0x1370   :  { %7847 = vmatprep.subr.bf16.mxu1 %v8528_v22  ;;  %8173 = vmatpush3.bf16.msra.mxu0 %v8541_v12  ;;  %v9123_v12 = vld [vmem:[#allocation2 + $0x8] sm:$0xff] }
0x1371   :  { %6618 = vperm.xlu0 %8201, %v6516_v55   ;;  %8174 = vmatprep.subr.bf16.mxu0 %v12623_v44  ;;  %v9122_v55 = vld [vmem:[#allocation2] sm:$0xff] }
0x1373   :  { %7848 = vmatpush3.bf16.msra.mxu1 %v8529_v11 }
0x1374   :  { %7849 = vmatprep.subr.bf16.mxu1 %v8530_v24 }
0x1375   :  { %6623 = vperm.xlu0 %8201, %v6517_v40  }
0x1377   :  { %7850 = vmatpush3.bf16.msra.mxu1 %v8531_v21 }
0x1378   :  { %7851 = vmatprep.subr.bf16.mxu1 %v8532_v63 }
0x1379   :  { %6530 = vbcast.lane.b32.xlu0 %v6528_v46, 256 }
0x137b   :  { %7852 = vmatpush3.bf16.msra.mxu1 %v8533_v52  ;;  %v12768_v52 = vld [vmem:[#allocation26_spill] sm:$0xff] }
0x137c   :  { %7853 = vmatprep.subr.bf16.mxu1 %v8534_v62 }
0x137f   :  { %7854 = vmatpush3.bf16.msra.mxu1 %v8535_v1 }
0x1380   :  { %7855 = vmatprep.subr.bf16.mxu1 %v8536_v19 }
0x1383   :  { %7856 = vmatpush3.bf16.msra.mxu1 %v8537_v5 }
0x1384   :  { %7857 = vmatprep.subr.bf16.mxu1 %v8538_v34 }
0x1387   :  { %7858 = vmatpush3.bf16.msra.mxu1 %v8539_v23 }
0x13c8   :  { %v6549_v37 = vpop.permute.xlu0 %6548  ;;  %v6594_v39 = vpop.permute.xlu1 %6593 }
0x13c9   :  { %v6626_v25 = vmul.f32 %v12753_v6, %v6549_v37  ;;  %v6635_v36 = vmul.f32 %v12740_v26, %v6594_v39 }
0x13cc   :  { %v6554_v58 = vpop.permute.xlu0 %6553  ;;  %v6569_v17 = vpop.permute.xlu1 %6568 }
0x13cd   :  { %v6627_v54 = vmul.f32 %v12754_v27, %v6554_v58  ;;  %v6630_v16 = vmul.f32 %v12759_v9, %v6569_v17 }
0x13cf   :  { %v6642_v29 = vadd.f32 %v6627_v54, %v6626_v25 }
0x13d0   :  { %v6589_v48 = vpop.permute.xlu0 %6588  ;;  %v6574_v7 = vpop.permute.xlu1 %6573 }
0x13d1   :  { %v6631_v10 = vmul.f32 %v12760_v33, %v6574_v7  ;;  %v6634_v27 = vmul.f32 %v12742_v0, %v6589_v48 }
0x13d3   :  { %v6655_v28 = vadd.f32 %v6635_v36, %v6634_v27  ;;  %v8543_v27 = vld [vmem:[%s12381_s26 + $0x20] sm:$0xff]  }
0x13d4   :  { %v6559_v45 = vpop.permute.xlu0 %6558  ;;  %v6579_v56 = vpop.permute.xlu1 %6578  ;;  %v8547_v36 = vld [vmem:[%s12381_s26] sm:$0xff]  }
0x13d5   :  { %v6628_v50 = vmul.f32 %v12756_v15, %v6559_v45  ;;  %v6632_v6 = vmul.f32 %v12761_v4, %v6579_v56 }
0x13d7   :  { %v6643_v2 = vadd.f32 %v6642_v29, %v6628_v50 }
0x13d8   :  { %v6599_v61 = vpop.permute.xlu0 %6598  ;;  %v6584_v57 = vpop.permute.xlu1 %6583 }
0x13d9   :  { %v6633_v38 = vmul.f32 %v12762_v8, %v6584_v57  ;;  %v8542_v57 = vld [vmem:[%s12381_s26 + $0x28] sm:$0xff]  }
0x13da   :  { %8175 = vmatpush3.bf16.msra.mxu0 %v8542_v57 }
0x13db   :  { %8176 = vmatprep.subr.bf16.mxu0 %v12623_v44 }
0x13dc   :  { %v6564_v53 = vpop.permute.xlu0 %6563 }
0x13dd   :  { %v6629_v20 = vmul.f32 %v12758_v32, %v6564_v53  ;;  %v6636_v32 = vmul.f32 %v12752_v13, %v6599_v61  ;;  %v12767_v13 = vld [vmem:[#allocation24_spill] sm:$0xff] }
0x13de   :  { %8177 = vmatpush3.bf16.msra.mxu0 %v8543_v27 }
0x13df   :  { %v6644_v43 = vadd.f32 %v6643_v2, %v6629_v20  ;;  %v6656_v47 = vadd.f32 %v6655_v28, %v6636_v32  ;;  %8178 = vmatprep.subr.bf16.mxu0 %v12623_v44  ;;  %v7635_v32 = vld [vmem:[%s12380_s25] ss:$0 sm:$0xff] }
0x13e0   :  { %v6604_v49 = vpop.permute.xlu0 %6603 }
0x13e1   :  { %v6645_v41 = vadd.f32 %v6644_v43, %v6630_v16  ;;  %v6524_v9 = vpop.permute.xlu1 %6523  ;;  %v6637_v33 = vmul.f32 %v12745_v42, %v6604_v49 }
0x13e2   :  { %v6532_v0 = vmul.f32 %v9122_v55, %v6524_v9  ;;  %v7652_v55 = vld [vmem:[%s12382_s27] ss:$0 sm:$0xff] }
0x13e3   :  { %v6646_v30 = vadd.f32 %v6645_v41, %v6631_v10  ;;  %v6657_v40 = vadd.f32 %v6656_v47, %v6637_v33 }
0x13e4   :  { %v6609_v15 = vpop.permute.xlu0 %6608  ;;  %v6534_v8 = vrot.slane %v6532_v0, 4 }
0x13e5   :  { %v6647_v31 = vadd.f32 %v6646_v30, %v6632_v6  ;;  %v6638_v4 = vmul.f32 %v12765_v51, %v6609_v15  ;;  %v8544_v6 = vld [vmem:[%s12381_s26 + $0x18] sm:$0xff]   ;;  %v8545_v30 = vld [vmem:[%s12381_s26 + $0x10] sm:$0xff]   ;;  %v8546_v15 = vld [vmem:[%s12381_s26 + $0x8] sm:$0xff]   ;;  %s9149_s26 = smov [#allocation3]  }
0x13e6   :  { %v6535_v63 = vadd.f32 %v6534_v8, %v6532_v0  ;;  %8179 = vmatpush3.bf16.msra.mxu0 %v8544_v6  ;;  %s7278_s8 = sshll.u32 %s9149_s26, 4  ;;  %s7279_s8 = int_to_ptr.vmem [resolvable:$true] %s7278_s8 }
0x13e7   :  { %v6648_v14 = vadd.f32 %v6647_v31, %v6633_v38  ;;  %v6658_v22 = vadd.f32 %v6657_v40, %v6638_v4  ;;  %8180 = vmatprep.subr.bf16.mxu0 %v12623_v44  ;;  %s9124_s25 = scalar_lea.vmem %s7279_s8, 32  ;;  %p9129_p1 = scmp.lt.s32.totalorder %s7279_s8, %s7279_s8 }
0x13e8   :  { %v6614_v35 = vpop.permute.xlu0 %6613  ;;  %v6536_v34 = vrot.slane %v6535_v63, 2  ;;  %p9125_p0 = scmp.ne.s32.totalorder %s7279_s8, %s9124_s25  ;;  %p9130_p2 = scmp.lt.s32.totalorder %s9124_s25, %s9124_s25 }
0x13e9   :  { %v6649_v3 = vrot.slane %v6648_v14, 4  ;;  %v6639_v26 = vmul.f32 %v12766_v18, %v6614_v35 }
0x13ea   :  { %v6537_v17 = vadd.f32 %v6536_v34, %v6535_v63  ;;  %8181 = vmatpush3.bf16.msra.mxu0 %v8545_v30  ;;  %p9131_p3 = por %p9130_p2, %p9129_p1 }
0x13eb   :  { %v6650_v11 = vadd.f32 %v6649_v3, %v6648_v14  ;;  %v6659_v24 = vadd.f32 %v6658_v22, %v6639_v26  ;;  %8182 = vmatprep.subr.bf16.mxu0 %v12623_v44 }
0x13ec   :  { %v6619_v60 = vpop.permute.xlu0 %6618  ;;  %v6538_v25 = vrot.slane %v6537_v17, 1  ;;  %p9132_p4 = pnand %p9131_p3, %p9125_p0 }
0x13ed   :  { %v6640_v46 = vmul.f32 %v12767_v13, %v6619_v60  ;;  %v6651_v1 = vrot.slane %v6650_v11, 2 }
0x13ee   :  { %v6539_v2 = vadd.f32 %v6538_v25, %v6537_v17  ;;  %8183 = vmatpush3.bf16.msra.mxu0 %v8546_v15 }
0x13ef   :  { %v6660_v42 = vadd.f32 %v6659_v24, %v6640_v46  ;;  %v6652_v37 = vadd.f32 %v6651_v1, %v6650_v11  ;;  %8184 = vmatprep.subr.bf16.mxu0 %v12623_v44 }
0x13f0   :  { %v6624_v21 = vpop.permute.xlu0 %6623 }
0x13f1   :  { %v6641_v62 = vmul.f32 %v12768_v52, %v6624_v21  ;;  %v6653_v7 = vrot.slane %v6652_v37, 1 }
0x13f2   :  { %8185 = vmatpush3.bf16.msra.mxu0 %v8547_v36 }
0x13f3   :  { %v6661_v19 = vadd.f32 %v6660_v42, %v6641_v62  ;;  %v6654_v56 = vadd.f32 %v6653_v7, %v6652_v37 }
0x13f4   :  { %v6531_v5 = vpop.permute.xlu0 %6530 }
0x13f5   :  { %v6662_v59 = vrot.slane %v6661_v19, 4  ;;  %v6533_v23 = vmul.f32 %v9123_v12, %v6531_v5  ;;  %v6975_v43 = vadd.f32 %v6654_v56, %v6539_v2 }
0x13f7   :  { %v6663_v39 = vadd.f32 %v6662_v59, %v6661_v19  ;;  %v6540_v58 = vrot.slane %v6533_v23, 4 }
0x13f9   :  { %v6664_v48 = vrot.slane %v6663_v39, 2  ;;  %v6541_v45 = vadd.f32 %v6540_v58, %v6533_v23 }
0x13fb   :  { %v6665_v54 = vadd.f32 %v6664_v48, %v6663_v39  ;;  %v6542_v61 = vrot.slane %v6541_v45, 2 }
0x13fd   :  { %v6666_v50 = vrot.slane %v6665_v54, 1  ;;  %v6543_v29 = vadd.f32 %v6542_v61, %v6541_v45 }
0x13ff   :  { %v6544_v53 = vrot.slane %v6543_v29, 1  ;;  %v6667_v20 = vadd.f32 %v6666_v50, %v6665_v54 }
0x1401   :  { %v6545_v16 = vadd.f32 %v6544_v53, %v6543_v29 }
0x1403   :  { %v6976_v49 = vadd.f32 %v6667_v20, %v6545_v16 }
0x1405   :  { %v6979_v10 = vsel %vm2043_vm10, %v6976_v49, %v6975_v43 }
0x1406   :  { %v6981_v41 = vpack.c.bf16 %v6979_v10, %v6979_v10 }
0x1408   :  { %7151 = vmatmul.mubr.bf16.vlgmr.msra.gmra.mxu1 %v6981_v41 }
0x14c8   :  { %v7859_v38 = vpop.f32.mrf.mxu1 }
0x14ca   :  { %v7860_v31 = vpop.f32.mrf.mxu1 }
0x14cb   :  { %v7861_v9 = vadd.f32 %v7860_v31, %v7859_v38 }
0x14cc   :  { %v7862_v28 = vpop.f32.mrf.mxu1 }
0x14cd   :  { %v7153_v14 = vadd.f32 %v7861_v9, %v7635_v32 }
0x14ce   :  { %v7863_v33 = vpop.f32.mrf.mxu1 }
0x14cf   :  { %9086 = vtanh.f32 %v7153_v14 }
0x14dc   :  { %v9087_v35 = vpop.eup %9086 }
0x14dd   :  { %v7159_v47 = vpack.c.bf16 %v9087_v35, %v9087_v35 }
0x14df   :  { %8187 = vmatmul.mubr.bf16.vlgmr.msra.gmra.mxu0 %v7159_v47 }
0x159f   :  { %v7265_v44 = vpop.f32.mrf.mxu0 }
0x15a0   :  { %v7266_v0 = vadd.f32 %v7652_v55, %v7265_v44 }
0x15a1   :  { %v8188_v51 = vpop.f32.mrf.mxu0 }
0x15a2   :  { %7271 = vst [vmem:[#allocation3] sm:$0x3] %v7266_v0 }
0x15a3   :  { %v7268_v4 = vpop.f32.mrf.mxu0 }
0x15a4   :  { %9135 = shalt.err (!%p9132_p4)
}
0x15a5   :  { %7281 = dma.vmem_to_hbm [thread:$0]  %s7279_s8, 32, %s12383_s28, [#allocation4]   ;;  %v8189_v3 = vpop.f32.mrf.mxu0 }
0x15a6   :  { %9144 = dma.done.wait [#allocation4], 32  }
0x15a7   :  { %9145 = vsyncadd [#allocation4], 4294967264 }
0x15a8   :  { %7285 = vsyncpa [#allocation4], 1 }

</bundles_post_ra>
